<compile_context>
chip_gen: v6e
topology: v6e:2x2x1
jax: 0.10.0
libtpu: 0.0.40
codegen_flags: <defaults>
</compile_context>

<pallas_src>
import functools
import math

import jax
import jax.numpy as jnp
from jax.experimental import pallas as pl
from jax.experimental.pallas import tpu as pltpu

NHEAD = 10
LN_EPS = 1e-5
LEAKY_SLOPE = 0.1        # module explicitly sets nn.LeakyReLU(negative_slope=0.1)
FILTER_SIZES = (3, 4, 5)
N_CLASS = 2


# ----------------------------------------------------------------------------
# Kernel 1: TransformerEncoderLayer (post-norm, ReLU FF) + Tanh + gate.
# Weight matrices are passed pre-transposed (and bf16) so the kernel only does
# row-major (x @ W) matmuls on the MXU with f32 accumulation.
# ----------------------------------------------------------------------------
def _transformer_tanh_mul_kernel(nhead, eps,
                                 x_ref,
                                 wq_ref, bq_ref, wk_ref, bk_ref, wv_ref, bv_ref,
                                 wo_ref, bo_ref,
                                 ln1w_ref, ln1b_ref,
                                 l1w_ref, l1b_ref, l2w_ref, l2b_ref,
                                 ln2w_ref, ln2b_ref,
                                 out_ref):
    TS, B, D = x_ref.shape
    hd = D // nhead
    scale = 1.0 / math.sqrt(hd)

    x = x_ref[...]                                   # [TS, B, D] f32
    x2 = x.reshape(TS * B, D)
    xb = x2.astype(jnp.bfloat16)

    q = (jnp.dot(xb, wq_ref[...], preferred_element_type=jnp.float32)
         + bq_ref[...]).reshape(TS, B, D)
    k = (jnp.dot(xb, wk_ref[...], preferred_element_type=jnp.float32)
         + bk_ref[...]).reshape(TS, B, D)
    v = (jnp.dot(xb, wv_ref[...], preferred_element_type=jnp.float32)
         + bv_ref[...]).reshape(TS, B, D)

    # Multi-head attention over axis "B" (independently per position s).
    # hd = 4 lanes per head is too narrow to split the lane dimension, so each
    # head is isolated with a lane mask; head outputs accumulate into one
    # full-width tensor so the output projection below is a SINGLE
    # [TS*B, D] x [D, D] matmul (was: nhead accumulated K=hd matmuls).
    lane = jax.lax.broadcasted_iota(jnp.int32, (1, 1, D), 2)
    o = jnp.zeros((TS, B, D), jnp.float32)
    for h in range(nhead):
        m = ((lane >= h * hd) & (lane < (h + 1) * hd)).astype(jnp.float32)
        km = k * m
        vm = v * m
        sc = jnp.einsum('sbd,scd->sbc', q, km,
                        preferred_element_type=jnp.float32) * scale   # [TS, B, B]
        sc = sc - jnp.max(sc, axis=-1, keepdims=True)
        p = jnp.exp(sc)
        p = p * pl.reciprocal(jnp.sum(p, axis=-1, keepdims=True), approx=True)
        o = o + jnp.einsum('sbc,scd->sbd', p, vm,
                           preferred_element_type=jnp.float32)        # [TS, B, D]

    sa = (jnp.dot(o.reshape(TS * B, D).astype(jnp.bfloat16), wo_ref[...],
                  preferred_element_type=jnp.float32) + bo_ref[...])

    # residual + LayerNorm1   (dropout == identity)
    y1 = x2 + sa
    mu1 = jnp.mean(y1, axis=-1, keepdims=True)
    var1 = jnp.mean(jnp.square(y1 - mu1), axis=-1, keepdims=True)
    y1 = (y1 - mu1) * jax.lax.rsqrt(var1 + eps) * ln1w_ref[...] + ln1b_ref[...]

    # feed-forward (ReLU), residual + LayerNorm2
    h1 = (jnp.dot(y1.astype(jnp.bfloat16), l1w_ref[...],
                  preferred_element_type=jnp.float32) + l1b_ref[...])
    h1 = jnp.maximum(h1, 0.0)
    ff = (jnp.dot(h1.astype(jnp.bfloat16), l2w_ref[...],
                  preferred_element_type=jnp.float32) + l2b_ref[...])
    y2 = y1 + ff
    mu2 = jnp.mean(y2, axis=-1, keepdims=True)
    var2 = jnp.mean(jnp.square(y2 - mu2), axis=-1, keepdims=True)
    y2 = (y2 - mu2) * jax.lax.rsqrt(var2 + eps) * ln2w_ref[...] + ln2b_ref[...]

    # Tanh (tail of the nn.Sequential) and elementwise gate with the embedding.
    out_ref[...] = (x2 * jnp.tanh(y2)).reshape(TS, B, D).astype(out_ref.dtype)


# ----------------------------------------------------------------------------
# Kernel 2: three full-width "valid" convs + LeakyReLU + max-over-time pooling
# + concat + Linear, executed over a batch tile of TB samples per grid step.
# The block is [S, TB, D]; flattened rows are ordered (s, b) so the conv tap i
# is a static row-slice and each conv is fs accumulated [T*TB, D] x [D, D]
# matmuls (Conv2d(1, D, (fs, D)) on [1, S, D]  ==  sum_i x[t+i, :] @ W_fs[i]).
# ----------------------------------------------------------------------------
def _conv_pool_fc_kernel(leaky_slope,
                         x_ref,
                         w3_ref, b3_ref, w4_ref, b4_ref, w5_ref, b5_ref,
                         fcw_ref, fcb_ref,
                         out_ref):
    S, TB, D = x_ref.shape
    n_class = out_ref.shape[-1]
    x2 = x_ref[...].reshape(S * TB, D)               # bf16, row index = s*TB + b

    pred = jnp.zeros((TB, n_class), jnp.float32) + fcb_ref[...]
    off = 0
    for w_ref, b_ref in ((w3_ref, b3_ref), (w4_ref, b4_ref), (w5_ref, b5_ref)):
        fs = w_ref.shape[0]
        T = S - fs + 1
        acc = jnp.zeros((T * TB, D), jnp.float32)
        for i in range(fs):
            acc = acc + jnp.dot(x2[i * TB:(i + T) * TB, :], w_ref[i],
                                preferred_element_type=jnp.float32)
        acc = acc + b_ref[...]                                  # conv bias [1, D]
        act = jnp.where(acc > 0, acc, leaky_slope * acc)        # LeakyReLU(0.1)
        pooled = jnp.max(act.reshape(T, TB, D), axis=0)         # max over time -> [TB, D]
        pred = pred + jnp.dot(pooled.astype(jnp.bfloat16), fcw_ref[off:off + D, :],
                              preferred_element_type=jnp.float32)
        off += D
    out_ref[...] = pred


# ----------------------------------------------------------------------------
# Wrapper (parameter plumbing + pallas_call glue)
# ----------------------------------------------------------------------------
def _largest_divisor_leq(n, cap):
    cap = max(1, min(n, cap))
    for d in range(cap, 0, -1):
        if n % d == 0:
            return d
    return 1


def tcnn_forward(params, text, text_length=None, block_s=None):
    del text_length  # unused, matching the PyTorch forward
    bf16 = jnp.bfloat16

    # Embedding gather directly in [S, B, D] (seq-major) order: both kernels use
    # this layout, so no HBM transpose of activations is ever needed.
    x_t = params['embed'][jnp.transpose(text)].astype(jnp.float32)   # [S, B, D]
    S, B, D = x_t.shape
    assert D % NHEAD == 0
    dim_ff = params['lin1_w_t'].shape[1]
    n_class = params['fc_b'].shape[-1]
    fc_in = params['fc_w_t'].shape[0]

    # Tile over S so the [ts*B, dim_ff] f32 FF intermediate stays ~2 MiB
    # (keeps the kernel comfortably inside v7x's smaller VMEM).
    if block_s is None:
        block_s = max(8, (2 * 1024 * 1024) // (4 * max(1, B) * dim_ff))
    ts = _largest_divisor_leq(S, block_s)

    def const(*shape):
        return pl.BlockSpec(shape, lambda i, _s=len(shape): (0,) * _s)

    k1 = functools.partial(_transformer_tanh_mul_kernel, NHEAD, LN_EPS)
    weighted_t = pl.pallas_call(
        k1,
        out_shape=jax.ShapeDtypeStruct((S, B, D), bf16),
        grid=(S // ts,),
        in_specs=[
            pl.BlockSpec((ts, B, D), lambda i: (i, 0, 0)),
            const(D, D), const(1, D), const(D, D), const(1, D),
            const(D, D), const(1, D), const(D, D), const(1, D),
            const(1, D), const(1, D),
            const(D, dim_ff), const(1, dim_ff), const(dim_ff, D), const(1, D),
            const(1, D), const(1, D),
        ],
        out_specs=pl.BlockSpec((ts, B, D), lambda i: (i, 0, 0)),
        compiler_params=pltpu.CompilerParams(
            dimension_semantics=("parallel",),
            vmem_limit_bytes=32 * 1024 * 1024),
    )(x_t,
      params['wq_t'].astype(bf16), params['bq'],
      params['wk_t'].astype(bf16), params['bk'],
      params['wv_t'].astype(bf16), params['bv'],
      params['wo_t'].astype(bf16), params['bo'],
      params['ln1_w'], params['ln1_b'],
      params['lin1_w_t'].astype(bf16), params['lin1_b'],
      params['lin2_w_t'].astype(bf16), params['lin2_b'],
      params['ln2_w'], params['ln2_b'])

    # Kernel 2 batch tile: second-to-last block dim must be a multiple of 8 or
    # equal to the full B.
    if B % 8 == 0:
        tb = next(c for c in (32, 24, 16, 8) if B % c == 0)
    else:
        tb = B

    k2 = functools.partial(_conv_pool_fc_kernel, LEAKY_SLOPE)
    pred = pl.pallas_call(
        k2,
        out_shape=jax.ShapeDtypeStruct((B, n_class), jnp.float32),
        grid=(B // tb,),
        in_specs=[
            pl.BlockSpec((S, tb, D), lambda b: (0, b, 0)),
            pl.BlockSpec((3, D, D), lambda b: (0, 0, 0)),
            pl.BlockSpec((1, D), lambda b: (0, 0)),
            pl.BlockSpec((4, D, D), lambda b: (0, 0, 0)),
            pl.BlockSpec((1, D), lambda b: (0, 0)),
            pl.BlockSpec((5, D, D), lambda b: (0, 0, 0)),
            pl.BlockSpec((1, D), lambda b: (0, 0)),
            pl.BlockSpec((fc_in, n_class), lambda b: (0, 0)),
            pl.BlockSpec((1, n_class), lambda b: (0, 0)),
        ],
        out_specs=pl.BlockSpec((tb, n_class), lambda b: (b, 0)),
        compiler_params=pltpu.CompilerParams(
            dimension_semantics=("parallel",),
            vmem_limit_bytes=32 * 1024 * 1024),
    )(weighted_t,
      params['conv3_w_t'].astype(bf16), params['conv3_b'],
      params['conv4_w_t'].astype(bf16), params['conv4_b'],
      params['conv5_w_t'].astype(bf16), params['conv5_b'],
      params['fc_w_t'].astype(bf16), params['fc_b'])
    return pred


# ----------------------------------------------------------------------------
# Deterministic parameter init (shapes dictated by TCNN.__init__)
# ----------------------------------------------------------------------------
def init_params(key, embed_num, embed_dim, dim_ff=2048):
    D = embed_dim
    ks = jax.random.split(key, 24)

    def unif(k, shape, fan_in):
        bound = 1.0 / math.sqrt(fan_in)
        return jax.random.uniform(k, shape, jnp.float32, -bound, bound)

    p = {}
    p['embed'] = 0.5 * jax.random.normal(ks[0], (embed_num, D), jnp.float32)

    in_w = unif(ks[1], (3 * D, D), 4 * D)            # MHA in_proj (xavier-ish)
    p['wq_t'] = in_w[:D].T
    p['wk_t'] = in_w[D:2 * D].T
    p['wv_t'] = in_w[2 * D:].T
    p['bq'] = jnp.zeros((1, D), jnp.float32)
    p['bk'] = jnp.zeros((1, D), jnp.float32)
    p['bv'] = jnp.zeros((1, D), jnp.float32)
    p['wo_t'] = unif(ks[2], (D, D), D).T
    p['bo'] = jnp.zeros((1, D), jnp.float32)

    p['ln1_w'] = jnp.ones((1, D), jnp.float32)
    p['ln1_b'] = jnp.zeros((1, D), jnp.float32)
    p['lin1_w_t'] = unif(ks[3], (dim_ff, D), D).T     # [D, dim_ff]
    p['lin1_b'] = unif(ks[4], (1, dim_ff), D)
    p['lin2_w_t'] = unif(ks[5], (D, dim_ff), dim_ff).T  # [dim_ff, D]
    p['lin2_b'] = unif(ks[6], (1, D), dim_ff)
    p['ln2_w'] = jnp.ones((1, D), jnp.float32)
    p['ln2_b'] = jnp.zeros((1, D), jnp.float32)

    for i, fs in enumerate(FILTER_SIZES):
        w = unif(ks[7 + i], (D, 1, fs, D), fs * D)    # torch Conv2d weight [D,1,fs,D]
        p[f'conv{fs}_w_t'] = jnp.transpose(w[:, 0], (1, 2, 0))  # [fs, D_in, D_out]
        p[f'conv{fs}_b'] = unif(ks[12 + i], (1, D), fs * D)

    fc_in = len(FILTER_SIZES) * D
    p['fc_w_t'] = unif(ks[17], (N_CLASS, fc_in), fc_in).T       # [3D, 2]
    p['fc_b'] = unif(ks[18], (1, N_CLASS), fc_in)
    return p


# ----------------------------------------------------------------------------
# Pure-JAX reference (mirrors the PyTorch forward exactly, f32 / HIGHEST)
# ----------------------------------------------------------------------------
_HI = jax.lax.Precision.HIGHEST


def _layernorm(x, w, b, eps):
    mu = jnp.mean(x, axis=-1, keepdims=True)
    var = jnp.mean(jnp.square(x - mu), axis=-1, keepdims=True)
    return (x - mu) * jax.lax.rsqrt(var + eps) * w + b


def tcnn_reference(params, text):
    emb = params['embed'][text].astype(jnp.float32)
    B, S, D = emb.shape
    hd = D // NHEAD
    x = jnp.transpose(emb, (1, 0, 2))                # [S, B, D]
    x2 = x.reshape(S * B, D)
    q = (jnp.dot(x2, params['wq_t'], precision=_HI) + params['bq']).reshape(S, B, NHEAD, hd)
    k = (jnp.dot(x2, params['wk_t'], precision=_HI) + params['bk']).reshape(S, B, NHEAD, hd)
    v = (jnp.dot(x2, params['wv_t'], precision=_HI) + params['bv']).reshape(S, B, NHEAD, hd)
    sc = jnp.einsum('sbhd,schd->shbc', q, k, precision=_HI) / math.sqrt(hd)
    p = jax.nn.softmax(sc, axis=-1)
    o = jnp.einsum('shbc,schd->sbhd', p, v, precision=_HI).reshape(S * B, D)
    sa = jnp.dot(o, params['wo_t'], precision=_HI) + params['bo']
    y1 = _layernorm(x2 + sa, params['ln1_w'], params['ln1_b'], LN_EPS)
    h1 = jax.nn.relu(jnp.dot(y1, params['lin1_w_t'], precision=_HI) + params['lin1_b'])
    ff = jnp.dot(h1, params['lin2_w_t'], precision=_HI) + params['lin2_b']
    y2 = _layernorm(y1 + ff, params['ln2_w'], params['ln2_b'], LN_EPS)
    weighted = jnp.transpose(x * jnp.tanh(y2).reshape(S, B, D), (1, 0, 2))  # [B,S,D]

    pred = params['fc_b']
    off = 0
    for fs in FILTER_SIZES:
        w_t = params[f'conv{fs}_w_t']
        T = S - fs + 1
        acc = sum(jnp.einsum('btd,de->bte', weighted[:, i:i + T, :], w_t[i], precision=_HI)
                  for i in range(fs)) + params[f'conv{fs}_b'].reshape(1, 1, D)
        act = jnp.where(acc > 0, acc, LEAKY_SLOPE * acc)
        pooled = jnp.max(act, axis=1)                 # [B, D]
        pred = pred + jnp.dot(pooled, params['fc_w_t'][off:off + D, :], precision=_HI)
        off += D
    return pred


if __name__ == "__main__":
    key = jax.random.PRNGKey(0)
    kp, kt = jax.random.split(key)

    embed_num, embed_dim = 50, 40                     # embed_dim divisible by nhead=10
    B, S = 4, 16

    params = init_params(kp, embed_num=embed_num, embed_dim=embed_dim)
    text = jax.random.randint(kt, (B, S), 0, embed_num, dtype=jnp.int32)
    text_length = jnp.full((B,), S, dtype=jnp.int32)  # unused (as in the PyTorch forward)

    fwd = jax.jit(functools.partial(tcnn_forward, block_s=8))  # 2-step pipelined grid over S
    pred = jax.block_until_ready(fwd(params, text, text_length))
    ref = tcnn_reference(params, text)

    assert pred.shape == (B, N_CLASS), pred.shape
    assert bool(jnp.all(jnp.isfinite(pred))), pred
    assert jnp.allclose(pred, ref, rtol=1e-1, atol=3e-2), (pred, ref)
    print("KERNEL_OK")
</pallas_src>

<mosaic_0001>
module attributes {stable_mosaic.version = 11 : i64} {
  func.func @_transformer_tanh_mul_kernel(%arg0: i32, %arg1: memref<8x4x40xf32, #tpu.memory_space<vmem>>, %arg2: memref<40x40xbf16, #tpu.memory_space<vmem>>, %arg3: memref<1x40xf32, #tpu.memory_space<vmem>>, %arg4: memref<40x40xbf16, #tpu.memory_space<vmem>>, %arg5: memref<1x40xf32, #tpu.memory_space<vmem>>, %arg6: memref<40x40xbf16, #tpu.memory_space<vmem>>, %arg7: memref<1x40xf32, #tpu.memory_space<vmem>>, %arg8: memref<40x40xbf16, #tpu.memory_space<vmem>>, %arg9: memref<1x40xf32, #tpu.memory_space<vmem>>, %arg10: memref<1x40xf32, #tpu.memory_space<vmem>>, %arg11: memref<1x40xf32, #tpu.memory_space<vmem>>, %arg12: memref<40x2048xbf16, #tpu.memory_space<vmem>>, %arg13: memref<1x2048xf32, #tpu.memory_space<vmem>>, %arg14: memref<2048x40xbf16, #tpu.memory_space<vmem>>, %arg15: memref<1x40xf32, #tpu.memory_space<vmem>>, %arg16: memref<1x40xf32, #tpu.memory_space<vmem>>, %arg17: memref<1x40xf32, #tpu.memory_space<vmem>>, %arg18: memref<8x4x40xbf16, #tpu.memory_space<vmem>>) attributes {dimension_semantics = [#tpu.dimension_semantics<parallel>], iteration_bounds = array<i64: 2>, scalar_prefetch = 0 : i64, scratch_operands = 0 : i64, tpu.core_type = #tpu.core_type<tc>, window_params = [{transform_indices = @transform_0, window_bounds = array<i64: 8, 4, 40>}, {pipeline_mode = #tpu.pipeline_mode<synchronous>, transform_indices = @transform_1, window_bounds = array<i64: 40, 40>}, {pipeline_mode = #tpu.pipeline_mode<synchronous>, transform_indices = @transform_2, window_bounds = array<i64: 1, 40>}, {pipeline_mode = #tpu.pipeline_mode<synchronous>, transform_indices = @transform_3, window_bounds = array<i64: 40, 40>}, {pipeline_mode = #tpu.pipeline_mode<synchronous>, transform_indices = @transform_4, window_bounds = array<i64: 1, 40>}, {pipeline_mode = #tpu.pipeline_mode<synchronous>, transform_indices = @transform_5, window_bounds = array<i64: 40, 40>}, {pipeline_mode = #tpu.pipeline_mode<synchronous>, transform_indices = @transform_6, window_bounds = array<i64: 1, 40>}, {pipeline_mode = #tpu.pipeline_mode<synchronous>, transform_indices = @transform_7, window_bounds = array<i64: 40, 40>}, {pipeline_mode = #tpu.pipeline_mode<synchronous>, transform_indices = @transform_8, window_bounds = array<i64: 1, 40>}, {pipeline_mode = #tpu.pipeline_mode<synchronous>, transform_indices = @transform_9, window_bounds = array<i64: 1, 40>}, {pipeline_mode = #tpu.pipeline_mode<synchronous>, transform_indices = @transform_10, window_bounds = array<i64: 1, 40>}, {pipeline_mode = #tpu.pipeline_mode<synchronous>, transform_indices = @transform_11, window_bounds = array<i64: 40, 2048>}, {pipeline_mode = #tpu.pipeline_mode<synchronous>, transform_indices = @transform_12, window_bounds = array<i64: 1, 2048>}, {pipeline_mode = #tpu.pipeline_mode<synchronous>, transform_indices = @transform_13, window_bounds = array<i64: 2048, 40>}, {pipeline_mode = #tpu.pipeline_mode<synchronous>, transform_indices = @transform_14, window_bounds = array<i64: 1, 40>}, {pipeline_mode = #tpu.pipeline_mode<synchronous>, transform_indices = @transform_15, window_bounds = array<i64: 1, 40>}, {pipeline_mode = #tpu.pipeline_mode<synchronous>, transform_indices = @transform_16, window_bounds = array<i64: 1, 40>}, {transform_indices = @transform_17, window_bounds = array<i64: 8, 4, 40>}]} {
    %c0 = arith.constant 0 : index
    %c0_0 = arith.constant 0 : index
    %c0_1 = arith.constant 0 : index
    %0 = vector.load %arg1[%c0, %c0_0, %c0_1] : memref<8x4x40xf32, #tpu.memory_space<vmem>>, vector<8x4x40xf32>
    %1 = vector.shape_cast %0 : vector<8x4x40xf32> to vector<32x40xf32>
    %2 = arith.truncf %1 : vector<32x40xf32> to vector<32x40xbf16>
    %c0_2 = arith.constant 0 : index
    %c0_3 = arith.constant 0 : index
    %3 = vector.load %arg2[%c0_2, %c0_3] : memref<40x40xbf16, #tpu.memory_space<vmem>>, vector<40x40xbf16>
    %cst = arith.constant dense<0.000000e+00> : vector<32x40xf32>
    %4 = tpu.matmul %2, %3, %cst {dimension_numbers = #tpu.dot_dimension_numbers<[1], [0], [0], [1], [0, 0, 1, 1], [], []>} : vector<32x40xbf16>, vector<40x40xbf16>, vector<32x40xf32> -> vector<32x40xf32>
    %c0_4 = arith.constant 0 : index
    %c0_5 = arith.constant 0 : index
    %5 = vector.load %arg3[%c0_4, %c0_5] : memref<1x40xf32, #tpu.memory_space<vmem>>, vector<1x40xf32>
    %6 = vector.broadcast %5 : vector<1x40xf32> to vector<32x40xf32>
    %7 = arith.addf %4, %6 : vector<32x40xf32>
    %8 = vector.shape_cast %7 : vector<32x40xf32> to vector<8x4x40xf32>
    %c0_6 = arith.constant 0 : index
    %c0_7 = arith.constant 0 : index
    %9 = vector.load %arg4[%c0_6, %c0_7] : memref<40x40xbf16, #tpu.memory_space<vmem>>, vector<40x40xbf16>
    %cst_8 = arith.constant dense<0.000000e+00> : vector<32x40xf32>
    %10 = tpu.matmul %2, %9, %cst_8 {dimension_numbers = #tpu.dot_dimension_numbers<[1], [0], [0], [1], [0, 0, 1, 1], [], []>} : vector<32x40xbf16>, vector<40x40xbf16>, vector<32x40xf32> -> vector<32x40xf32>
    %c0_9 = arith.constant 0 : index
    %c0_10 = arith.constant 0 : index
    %11 = vector.load %arg5[%c0_9, %c0_10] : memref<1x40xf32, #tpu.memory_space<vmem>>, vector<1x40xf32>
    %12 = vector.broadcast %11 : vector<1x40xf32> to vector<32x40xf32>
    %13 = arith.addf %10, %12 : vector<32x40xf32>
    %14 = vector.shape_cast %13 : vector<32x40xf32> to vector<8x4x40xf32>
    %c0_11 = arith.constant 0 : index
    %c0_12 = arith.constant 0 : index
    %15 = vector.load %arg6[%c0_11, %c0_12] : memref<40x40xbf16, #tpu.memory_space<vmem>>, vector<40x40xbf16>
    %cst_13 = arith.constant dense<0.000000e+00> : vector<32x40xf32>
    %16 = tpu.matmul %2, %15, %cst_13 {dimension_numbers = #tpu.dot_dimension_numbers<[1], [0], [0], [1], [0, 0, 1, 1], [], []>} : vector<32x40xbf16>, vector<40x40xbf16>, vector<32x40xf32> -> vector<32x40xf32>
    %c0_14 = arith.constant 0 : index
    %c0_15 = arith.constant 0 : index
    %17 = vector.load %arg7[%c0_14, %c0_15] : memref<1x40xf32, #tpu.memory_space<vmem>>, vector<1x40xf32>
    %18 = vector.broadcast %17 : vector<1x40xf32> to vector<32x40xf32>
    %19 = arith.addf %16, %18 : vector<32x40xf32>
    %20 = vector.shape_cast %19 : vector<32x40xf32> to vector<8x4x40xf32>
    %21 = tpu.iota {dimensions = array<i32: 2>} : vector<1x1x40xi32>
    %cst_16 = arith.constant 0.000000e+00 : f32
    %22 = vector.broadcast %cst_16 : f32 to vector<8x4x40xf32>
    %c0_i32 = arith.constant 0 : i32
    %23 = vector.broadcast %c0_i32 : i32 to vector<1x1x40xi32>
    %24 = arith.cmpi sge, %21, %23 : vector<1x1x40xi32>
    %c4_i32 = arith.constant 4 : i32
    %25 = vector.broadcast %c4_i32 : i32 to vector<1x1x40xi32>
    %26 = arith.cmpi slt, %21, %25 : vector<1x1x40xi32>
    %27 = arith.andi %24, %26 : vector<1x1x40xi1>
    %28 = arith.extui %27 : vector<1x1x40xi1> to vector<1x1x40xi32>
    %29 = arith.sitofp %28 : vector<1x1x40xi32> to vector<1x1x40xf32>
    %30 = vector.broadcast %29 : vector<1x1x40xf32> to vector<8x4x40xf32>
    %31 = arith.mulf %14, %30 : vector<8x4x40xf32>
    %32 = vector.broadcast %29 : vector<1x1x40xf32> to vector<8x4x40xf32>
    %33 = arith.mulf %20, %32 : vector<8x4x40xf32>
    "tpu.trace_start"() <{level = 10 : i32, message = "sbd,scd->sbc"}> : () -> ()
    %cst_17 = arith.constant dense<0.000000e+00> : vector<8x4x4xf32>
    %34 = tpu.matmul %8, %31, %cst_17 {dimension_numbers = #tpu.dot_dimension_numbers<[2], [2], [1], [1], [0, 0, 0, 1, 1, 1], [0], [0]>} : vector<8x4x40xf32>, vector<8x4x40xf32>, vector<8x4x4xf32> -> vector<8x4x4xf32>
    "tpu.trace_stop"() : () -> ()
    %cst_18 = arith.constant 5.000000e-01 : f32
    %35 = vector.broadcast %cst_18 : f32 to vector<8x4x4xf32>
    %36 = arith.mulf %34, %35 : vector<8x4x4xf32>
    %cst_19 = arith.constant dense<0xFF800000> : vector<8x4xf32>
    %37 = vector.multi_reduction <maximumf>, %36, %cst_19 [2] : vector<8x4x4xf32> to vector<8x4xf32>
    %38 = vector.shape_cast %37 : vector<8x4xf32> to vector<8x4x1xf32>
    %39 = vector.broadcast %38 : vector<8x4x1xf32> to vector<8x4x4xf32>
    %40 = arith.subf %36, %39 : vector<8x4x4xf32>
    %41 = math.exp %40 : vector<8x4x4xf32>
    %cst_20 = arith.constant dense<0.000000e+00> : vector<8x4xf32>
    %42 = vector.multi_reduction <add>, %41, %cst_20 [2] : vector<8x4x4xf32> to vector<8x4xf32>
    %43 = vector.shape_cast %42 : vector<8x4xf32> to vector<8x4x1xf32>
    %44 = tpu.reciprocal %43 {approx = true} : vector<8x4x1xf32> -> vector<8x4x1xf32>
    %45 = vector.broadcast %44 : vector<8x4x1xf32> to vector<8x4x4xf32>
    %46 = arith.mulf %41, %45 : vector<8x4x4xf32>
    "tpu.trace_start"() <{level = 10 : i32, message = "sbc,scd->sbd"}> : () -> ()
    %cst_21 = arith.constant dense<0.000000e+00> : vector<8x4x40xf32>
    %47 = tpu.matmul %46, %33, %cst_21 {dimension_numbers = #tpu.dot_dimension_numbers<[2], [1], [1], [2], [0, 0, 0, 1, 1, 2], [0], [0]>} : vector<8x4x4xf32>, vector<8x4x40xf32>, vector<8x4x40xf32> -> vector<8x4x40xf32>
    "tpu.trace_stop"() : () -> ()
    %48 = arith.addf %22, %47 : vector<8x4x40xf32>
    %c4_i32_22 = arith.constant 4 : i32
    %49 = vector.broadcast %c4_i32_22 : i32 to vector<1x1x40xi32>
    %50 = arith.cmpi sge, %21, %49 : vector<1x1x40xi32>
    %c8_i32 = arith.constant 8 : i32
    %51 = vector.broadcast %c8_i32 : i32 to vector<1x1x40xi32>
    %52 = arith.cmpi slt, %21, %51 : vector<1x1x40xi32>
    %53 = arith.andi %50, %52 : vector<1x1x40xi1>
    %54 = arith.extui %53 : vector<1x1x40xi1> to vector<1x1x40xi32>
    %55 = arith.sitofp %54 : vector<1x1x40xi32> to vector<1x1x40xf32>
    %56 = vector.broadcast %55 : vector<1x1x40xf32> to vector<8x4x40xf32>
    %57 = arith.mulf %14, %56 : vector<8x4x40xf32>
    %58 = vector.broadcast %55 : vector<1x1x40xf32> to vector<8x4x40xf32>
    %59 = arith.mulf %20, %58 : vector<8x4x40xf32>
    "tpu.trace_start"() <{level = 10 : i32, message = "sbd,scd->sbc"}> : () -> ()
    %cst_23 = arith.constant dense<0.000000e+00> : vector<8x4x4xf32>
    %60 = tpu.matmul %8, %57, %cst_23 {dimension_numbers = #tpu.dot_dimension_numbers<[2], [2], [1], [1], [0, 0, 0, 1, 1, 1], [0], [0]>} : vector<8x4x40xf32>, vector<8x4x40xf32>, vector<8x4x4xf32> -> vector<8x4x4xf32>
    "tpu.trace_stop"() : () -> ()
    %cst_24 = arith.constant 5.000000e-01 : f32
    %61 = vector.broadcast %cst_24 : f32 to vector<8x4x4xf32>
    %62 = arith.mulf %60, %61 : vector<8x4x4xf32>
    %cst_25 = arith.constant dense<0xFF800000> : vector<8x4xf32>
    %63 = vector.multi_reduction <maximumf>, %62, %cst_25 [2] : vector<8x4x4xf32> to vector<8x4xf32>
    %64 = vector.shape_cast %63 : vector<8x4xf32> to vector<8x4x1xf32>
    %65 = vector.broadcast %64 : vector<8x4x1xf32> to vector<8x4x4xf32>
    %66 = arith.subf %62, %65 : vector<8x4x4xf32>
    %67 = math.exp %66 : vector<8x4x4xf32>
    %cst_26 = arith.constant dense<0.000000e+00> : vector<8x4xf32>
    %68 = vector.multi_reduction <add>, %67, %cst_26 [2] : vector<8x4x4xf32> to vector<8x4xf32>
    %69 = vector.shape_cast %68 : vector<8x4xf32> to vector<8x4x1xf32>
    %70 = tpu.reciprocal %69 {approx = true} : vector<8x4x1xf32> -> vector<8x4x1xf32>
    %71 = vector.broadcast %70 : vector<8x4x1xf32> to vector<8x4x4xf32>
    %72 = arith.mulf %67, %71 : vector<8x4x4xf32>
    "tpu.trace_start"() <{level = 10 : i32, message = "sbc,scd->sbd"}> : () -> ()
    %cst_27 = arith.constant dense<0.000000e+00> : vector<8x4x40xf32>
    %73 = tpu.matmul %72, %59, %cst_27 {dimension_numbers = #tpu.dot_dimension_numbers<[2], [1], [1], [2], [0, 0, 0, 1, 1, 2], [0], [0]>} : vector<8x4x4xf32>, vector<8x4x40xf32>, vector<8x4x40xf32> -> vector<8x4x40xf32>
    "tpu.trace_stop"() : () -> ()
    %74 = arith.addf %48, %73 : vector<8x4x40xf32>
    %c8_i32_28 = arith.constant 8 : i32
    %75 = vector.broadcast %c8_i32_28 : i32 to vector<1x1x40xi32>
    %76 = arith.cmpi sge, %21, %75 : vector<1x1x40xi32>
    %c12_i32 = arith.constant 12 : i32
    %77 = vector.broadcast %c12_i32 : i32 to vector<1x1x40xi32>
    %78 = arith.cmpi slt, %21, %77 : vector<1x1x40xi32>
    %79 = arith.andi %76, %78 : vector<1x1x40xi1>
    %80 = arith.extui %79 : vector<1x1x40xi1> to vector<1x1x40xi32>
    %81 = arith.sitofp %80 : vector<1x1x40xi32> to vector<1x1x40xf32>
    %82 = vector.broadcast %81 : vector<1x1x40xf32> to vector<8x4x40xf32>
    %83 = arith.mulf %14, %82 : vector<8x4x40xf32>
    %84 = vector.broadcast %81 : vector<1x1x40xf32> to vector<8x4x40xf32>
    %85 = arith.mulf %20, %84 : vector<8x4x40xf32>
    "tpu.trace_start"() <{level = 10 : i32, message = "sbd,scd->sbc"}> : () -> ()
    %cst_29 = arith.constant dense<0.000000e+00> : vector<8x4x4xf32>
    %86 = tpu.matmul %8, %83, %cst_29 {dimension_numbers = #tpu.dot_dimension_numbers<[2], [2], [1], [1], [0, 0, 0, 1, 1, 1], [0], [0]>} : vector<8x4x40xf32>, vector<8x4x40xf32>, vector<8x4x4xf32> -> vector<8x4x4xf32>
    "tpu.trace_stop"() : () -> ()
    %cst_30 = arith.constant 5.000000e-01 : f32
    %87 = vector.broadcast %cst_30 : f32 to vector<8x4x4xf32>
    %88 = arith.mulf %86, %87 : vector<8x4x4xf32>
    %cst_31 = arith.constant dense<0xFF800000> : vector<8x4xf32>
    %89 = vector.multi_reduction <maximumf>, %88, %cst_31 [2] : vector<8x4x4xf32> to vector<8x4xf32>
    %90 = vector.shape_cast %89 : vector<8x4xf32> to vector<8x4x1xf32>
    %91 = vector.broadcast %90 : vector<8x4x1xf32> to vector<8x4x4xf32>
    %92 = arith.subf %88, %91 : vector<8x4x4xf32>
    %93 = math.exp %92 : vector<8x4x4xf32>
    %cst_32 = arith.constant dense<0.000000e+00> : vector<8x4xf32>
    %94 = vector.multi_reduction <add>, %93, %cst_32 [2] : vector<8x4x4xf32> to vector<8x4xf32>
    %95 = vector.shape_cast %94 : vector<8x4xf32> to vector<8x4x1xf32>
    %96 = tpu.reciprocal %95 {approx = true} : vector<8x4x1xf32> -> vector<8x4x1xf32>
    %97 = vector.broadcast %96 : vector<8x4x1xf32> to vector<8x4x4xf32>
    %98 = arith.mulf %93, %97 : vector<8x4x4xf32>
    "tpu.trace_start"() <{level = 10 : i32, message = "sbc,scd->sbd"}> : () -> ()
    %cst_33 = arith.constant dense<0.000000e+00> : vector<8x4x40xf32>
    %99 = tpu.matmul %98, %85, %cst_33 {dimension_numbers = #tpu.dot_dimension_numbers<[2], [1], [1], [2], [0, 0, 0, 1, 1, 2], [0], [0]>} : vector<8x4x4xf32>, vector<8x4x40xf32>, vector<8x4x40xf32> -> vector<8x4x40xf32>
    "tpu.trace_stop"() : () -> ()
    %100 = arith.addf %74, %99 : vector<8x4x40xf32>
    %c12_i32_34 = arith.constant 12 : i32
    %101 = vector.broadcast %c12_i32_34 : i32 to vector<1x1x40xi32>
    %102 = arith.cmpi sge, %21, %101 : vector<1x1x40xi32>
    %c16_i32 = arith.constant 16 : i32
    %103 = vector.broadcast %c16_i32 : i32 to vector<1x1x40xi32>
    %104 = arith.cmpi slt, %21, %103 : vector<1x1x40xi32>
    %105 = arith.andi %102, %104 : vector<1x1x40xi1>
    %106 = arith.extui %105 : vector<1x1x40xi1> to vector<1x1x40xi32>
    %107 = arith.sitofp %106 : vector<1x1x40xi32> to vector<1x1x40xf32>
    %108 = vector.broadcast %107 : vector<1x1x40xf32> to vector<8x4x40xf32>
    %109 = arith.mulf %14, %108 : vector<8x4x40xf32>
    %110 = vector.broadcast %107 : vector<1x1x40xf32> to vector<8x4x40xf32>
    %111 = arith.mulf %20, %110 : vector<8x4x40xf32>
    "tpu.trace_start"() <{level = 10 : i32, message = "sbd,scd->sbc"}> : () -> ()
    %cst_35 = arith.constant dense<0.000000e+00> : vector<8x4x4xf32>
    %112 = tpu.matmul %8, %109, %cst_35 {dimension_numbers = #tpu.dot_dimension_numbers<[2], [2], [1], [1], [0, 0, 0, 1, 1, 1], [0], [0]>} : vector<8x4x40xf32>, vector<8x4x40xf32>, vector<8x4x4xf32> -> vector<8x4x4xf32>
    "tpu.trace_stop"() : () -> ()
    %cst_36 = arith.constant 5.000000e-01 : f32
    %113 = vector.broadcast %cst_36 : f32 to vector<8x4x4xf32>
    %114 = arith.mulf %112, %113 : vector<8x4x4xf32>
    %cst_37 = arith.constant dense<0xFF800000> : vector<8x4xf32>
    %115 = vector.multi_reduction <maximumf>, %114, %cst_37 [2] : vector<8x4x4xf32> to vector<8x4xf32>
    %116 = vector.shape_cast %115 : vector<8x4xf32> to vector<8x4x1xf32>
    %117 = vector.broadcast %116 : vector<8x4x1xf32> to vector<8x4x4xf32>
    %118 = arith.subf %114, %117 : vector<8x4x4xf32>
    %119 = math.exp %118 : vector<8x4x4xf32>
    %cst_38 = arith.constant dense<0.000000e+00> : vector<8x4xf32>
    %120 = vector.multi_reduction <add>, %119, %cst_38 [2] : vector<8x4x4xf32> to vector<8x4xf32>
    %121 = vector.shape_cast %120 : vector<8x4xf32> to vector<8x4x1xf32>
    %122 = tpu.reciprocal %121 {approx = true} : vector<8x4x1xf32> -> vector<8x4x1xf32>
    %123 = vector.broadcast %122 : vector<8x4x1xf32> to vector<8x4x4xf32>
    %124 = arith.mulf %119, %123 : vector<8x4x4xf32>
    "tpu.trace_start"() <{level = 10 : i32, message = "sbc,scd->sbd"}> : () -> ()
    %cst_39 = arith.constant dense<0.000000e+00> : vector<8x4x40xf32>
    %125 = tpu.matmul %124, %111, %cst_39 {dimension_numbers = #tpu.dot_dimension_numbers<[2], [1], [1], [2], [0, 0, 0, 1, 1, 2], [0], [0]>} : vector<8x4x4xf32>, vector<8x4x40xf32>, vector<8x4x40xf32> -> vector<8x4x40xf32>
    "tpu.trace_stop"() : () -> ()
    %126 = arith.addf %100, %125 : vector<8x4x40xf32>
    %c16_i32_40 = arith.constant 16 : i32
    %127 = vector.broadcast %c16_i32_40 : i32 to vector<1x1x40xi32>
    %128 = arith.cmpi sge, %21, %127 : vector<1x1x40xi32>
    %c20_i32 = arith.constant 20 : i32
    %129 = vector.broadcast %c20_i32 : i32 to vector<1x1x40xi32>
    %130 = arith.cmpi slt, %21, %129 : vector<1x1x40xi32>
    %131 = arith.andi %128, %130 : vector<1x1x40xi1>
    %132 = arith.extui %131 : vector<1x1x40xi1> to vector<1x1x40xi32>
    %133 = arith.sitofp %132 : vector<1x1x40xi32> to vector<1x1x40xf32>
    %134 = vector.broadcast %133 : vector<1x1x40xf32> to vector<8x4x40xf32>
    %135 = arith.mulf %14, %134 : vector<8x4x40xf32>
    %136 = vector.broadcast %133 : vector<1x1x40xf32> to vector<8x4x40xf32>
    %137 = arith.mulf %20, %136 : vector<8x4x40xf32>
    "tpu.trace_start"() <{level = 10 : i32, message = "sbd,scd->sbc"}> : () -> ()
    %cst_41 = arith.constant dense<0.000000e+00> : vector<8x4x4xf32>
    %138 = tpu.matmul %8, %135, %cst_41 {dimension_numbers = #tpu.dot_dimension_numbers<[2], [2], [1], [1], [0, 0, 0, 1, 1, 1], [0], [0]>} : vector<8x4x40xf32>, vector<8x4x40xf32>, vector<8x4x4xf32> -> vector<8x4x4xf32>
    "tpu.trace_stop"() : () -> ()
    %cst_42 = arith.constant 5.000000e-01 : f32
    %139 = vector.broadcast %cst_42 : f32 to vector<8x4x4xf32>
    %140 = arith.mulf %138, %139 : vector<8x4x4xf32>
    %cst_43 = arith.constant dense<0xFF800000> : vector<8x4xf32>
    %141 = vector.multi_reduction <maximumf>, %140, %cst_43 [2] : vector<8x4x4xf32> to vector<8x4xf32>
    %142 = vector.shape_cast %141 : vector<8x4xf32> to vector<8x4x1xf32>
    %143 = vector.broadcast %142 : vector<8x4x1xf32> to vector<8x4x4xf32>
    %144 = arith.subf %140, %143 : vector<8x4x4xf32>
    %145 = math.exp %144 : vector<8x4x4xf32>
    %cst_44 = arith.constant dense<0.000000e+00> : vector<8x4xf32>
    %146 = vector.multi_reduction <add>, %145, %cst_44 [2] : vector<8x4x4xf32> to vector<8x4xf32>
    %147 = vector.shape_cast %146 : vector<8x4xf32> to vector<8x4x1xf32>
    %148 = tpu.reciprocal %147 {approx = true} : vector<8x4x1xf32> -> vector<8x4x1xf32>
    %149 = vector.broadcast %148 : vector<8x4x1xf32> to vector<8x4x4xf32>
    %150 = arith.mulf %145, %149 : vector<8x4x4xf32>
    "tpu.trace_start"() <{level = 10 : i32, message = "sbc,scd->sbd"}> : () -> ()
    %cst_45 = arith.constant dense<0.000000e+00> : vector<8x4x40xf32>
    %151 = tpu.matmul %150, %137, %cst_45 {dimension_numbers = #tpu.dot_dimension_numbers<[2], [1], [1], [2], [0, 0, 0, 1, 1, 2], [0], [0]>} : vector<8x4x4xf32>, vector<8x4x40xf32>, vector<8x4x40xf32> -> vector<8x4x40xf32>
    "tpu.trace_stop"() : () -> ()
    %152 = arith.addf %126, %151 : vector<8x4x40xf32>
    %c20_i32_46 = arith.constant 20 : i32
    %153 = vector.broadcast %c20_i32_46 : i32 to vector<1x1x40xi32>
    %154 = arith.cmpi sge, %21, %153 : vector<1x1x40xi32>
    %c24_i32 = arith.constant 24 : i32
    %155 = vector.broadcast %c24_i32 : i32 to vector<1x1x40xi32>
    %156 = arith.cmpi slt, %21, %155 : vector<1x1x40xi32>
    %157 = arith.andi %154, %156 : vector<1x1x40xi1>
    %158 = arith.extui %157 : vector<1x1x40xi1> to vector<1x1x40xi32>
    %159 = arith.sitofp %158 : vector<1x1x40xi32> to vector<1x1x40xf32>
    %160 = vector.broadcast %159 : vector<1x1x40xf32> to vector<8x4x40xf32>
    %161 = arith.mulf %14, %160 : vector<8x4x40xf32>
    %162 = vector.broadcast %159 : vector<1x1x40xf32> to vector<8x4x40xf32>
    %163 = arith.mulf %20, %162 : vector<8x4x40xf32>
    "tpu.trace_start"() <{level = 10 : i32, message = "sbd,scd->sbc"}> : () -> ()
    %cst_47 = arith.constant dense<0.000000e+00> : vector<8x4x4xf32>
    %164 = tpu.matmul %8, %161, %cst_47 {dimension_numbers = #tpu.dot_dimension_numbers<[2], [2], [1], [1], [0, 0, 0, 1, 1, 1], [0], [0]>} : vector<8x4x40xf32>, vector<8x4x40xf32>, vector<8x4x4xf32> -> vector<8x4x4xf32>
    "tpu.trace_stop"() : () -> ()
    %cst_48 = arith.constant 5.000000e-01 : f32
    %165 = vector.broadcast %cst_48 : f32 to vector<8x4x4xf32>
    %166 = arith.mulf %164, %165 : vector<8x4x4xf32>
    %cst_49 = arith.constant dense<0xFF800000> : vector<8x4xf32>
    %167 = vector.multi_reduction <maximumf>, %166, %cst_49 [2] : vector<8x4x4xf32> to vector<8x4xf32>
    %168 = vector.shape_cast %167 : vector<8x4xf32> to vector<8x4x1xf32>
    %169 = vector.broadcast %168 : vector<8x4x1xf32> to vector<8x4x4xf32>
    %170 = arith.subf %166, %169 : vector<8x4x4xf32>
    %171 = math.exp %170 : vector<8x4x4xf32>
    %cst_50 = arith.constant dense<0.000000e+00> : vector<8x4xf32>
    %172 = vector.multi_reduction <add>, %171, %cst_50 [2] : vector<8x4x4xf32> to vector<8x4xf32>
    %173 = vector.shape_cast %172 : vector<8x4xf32> to vector<8x4x1xf32>
    %174 = tpu.reciprocal %173 {approx = true} : vector<8x4x1xf32> -> vector<8x4x1xf32>
    %175 = vector.broadcast %174 : vector<8x4x1xf32> to vector<8x4x4xf32>
    %176 = arith.mulf %171, %175 : vector<8x4x4xf32>
    "tpu.trace_start"() <{level = 10 : i32, message = "sbc,scd->sbd"}> : () -> ()
    %cst_51 = arith.constant dense<0.000000e+00> : vector<8x4x40xf32>
    %177 = tpu.matmul %176, %163, %cst_51 {dimension_numbers = #tpu.dot_dimension_numbers<[2], [1], [1], [2], [0, 0, 0, 1, 1, 2], [0], [0]>} : vector<8x4x4xf32>, vector<8x4x40xf32>, vector<8x4x40xf32> -> vector<8x4x40xf32>
    "tpu.trace_stop"() : () -> ()
    %178 = arith.addf %152, %177 : vector<8x4x40xf32>
    %c24_i32_52 = arith.constant 24 : i32
    %179 = vector.broadcast %c24_i32_52 : i32 to vector<1x1x40xi32>
    %180 = arith.cmpi sge, %21, %179 : vector<1x1x40xi32>
    %c28_i32 = arith.constant 28 : i32
    %181 = vector.broadcast %c28_i32 : i32 to vector<1x1x40xi32>
    %182 = arith.cmpi slt, %21, %181 : vector<1x1x40xi32>
    %183 = arith.andi %180, %182 : vector<1x1x40xi1>
    %184 = arith.extui %183 : vector<1x1x40xi1> to vector<1x1x40xi32>
    %185 = arith.sitofp %184 : vector<1x1x40xi32> to vector<1x1x40xf32>
    %186 = vector.broadcast %185 : vector<1x1x40xf32> to vector<8x4x40xf32>
    %187 = arith.mulf %14, %186 : vector<8x4x40xf32>
    %188 = vector.broadcast %185 : vector<1x1x40xf32> to vector<8x4x40xf32>
    %189 = arith.mulf %20, %188 : vector<8x4x40xf32>
    "tpu.trace_start"() <{level = 10 : i32, message = "sbd,scd->sbc"}> : () -> ()
    %cst_53 = arith.constant dense<0.000000e+00> : vector<8x4x4xf32>
    %190 = tpu.matmul %8, %187, %cst_53 {dimension_numbers = #tpu.dot_dimension_numbers<[2], [2], [1], [1], [0, 0, 0, 1, 1, 1], [0], [0]>} : vector<8x4x40xf32>, vector<8x4x40xf32>, vector<8x4x4xf32> -> vector<8x4x4xf32>
    "tpu.trace_stop"() : () -> ()
    %cst_54 = arith.constant 5.000000e-01 : f32
    %191 = vector.broadcast %cst_54 : f32 to vector<8x4x4xf32>
    %192 = arith.mulf %190, %191 : vector<8x4x4xf32>
    %cst_55 = arith.constant dense<0xFF800000> : vector<8x4xf32>
    %193 = vector.multi_reduction <maximumf>, %192, %cst_55 [2] : vector<8x4x4xf32> to vector<8x4xf32>
    %194 = vector.shape_cast %193 : vector<8x4xf32> to vector<8x4x1xf32>
    %195 = vector.broadcast %194 : vector<8x4x1xf32> to vector<8x4x4xf32>
    %196 = arith.subf %192, %195 : vector<8x4x4xf32>
    %197 = math.exp %196 : vector<8x4x4xf32>
    %cst_56 = arith.constant dense<0.000000e+00> : vector<8x4xf32>
    %198 = vector.multi_reduction <add>, %197, %cst_56 [2] : vector<8x4x4xf32> to vector<8x4xf32>
    %199 = vector.shape_cast %198 : vector<8x4xf32> to vector<8x4x1xf32>
    %200 = tpu.reciprocal %199 {approx = true} : vector<8x4x1xf32> -> vector<8x4x1xf32>
    %201 = vector.broadcast %200 : vector<8x4x1xf32> to vector<8x4x4xf32>
    %202 = arith.mulf %197, %201 : vector<8x4x4xf32>
    "tpu.trace_start"() <{level = 10 : i32, message = "sbc,scd->sbd"}> : () -> ()
    %cst_57 = arith.constant dense<0.000000e+00> : vector<8x4x40xf32>
    %203 = tpu.matmul %202, %189, %cst_57 {dimension_numbers = #tpu.dot_dimension_numbers<[2], [1], [1], [2], [0, 0, 0, 1, 1, 2], [0], [0]>} : vector<8x4x4xf32>, vector<8x4x40xf32>, vector<8x4x40xf32> -> vector<8x4x40xf32>
    "tpu.trace_stop"() : () -> ()
    %204 = arith.addf %178, %203 : vector<8x4x40xf32>
    %c28_i32_58 = arith.constant 28 : i32
    %205 = vector.broadcast %c28_i32_58 : i32 to vector<1x1x40xi32>
    %206 = arith.cmpi sge, %21, %205 : vector<1x1x40xi32>
    %c32_i32 = arith.constant 32 : i32
    %207 = vector.broadcast %c32_i32 : i32 to vector<1x1x40xi32>
    %208 = arith.cmpi slt, %21, %207 : vector<1x1x40xi32>
    %209 = arith.andi %206, %208 : vector<1x1x40xi1>
    %210 = arith.extui %209 : vector<1x1x40xi1> to vector<1x1x40xi32>
    %211 = arith.sitofp %210 : vector<1x1x40xi32> to vector<1x1x40xf32>
    %212 = vector.broadcast %211 : vector<1x1x40xf32> to vector<8x4x40xf32>
    %213 = arith.mulf %14, %212 : vector<8x4x40xf32>
    %214 = vector.broadcast %211 : vector<1x1x40xf32> to vector<8x4x40xf32>
    %215 = arith.mulf %20, %214 : vector<8x4x40xf32>
    "tpu.trace_start"() <{level = 10 : i32, message = "sbd,scd->sbc"}> : () -> ()
    %cst_59 = arith.constant dense<0.000000e+00> : vector<8x4x4xf32>
    %216 = tpu.matmul %8, %213, %cst_59 {dimension_numbers = #tpu.dot_dimension_numbers<[2], [2], [1], [1], [0, 0, 0, 1, 1, 1], [0], [0]>} : vector<8x4x40xf32>, vector<8x4x40xf32>, vector<8x4x4xf32> -> vector<8x4x4xf32>
    "tpu.trace_stop"() : () -> ()
    %cst_60 = arith.constant 5.000000e-01 : f32
    %217 = vector.broadcast %cst_60 : f32 to vector<8x4x4xf32>
    %218 = arith.mulf %216, %217 : vector<8x4x4xf32>
    %cst_61 = arith.constant dense<0xFF800000> : vector<8x4xf32>
    %219 = vector.multi_reduction <maximumf>, %218, %cst_61 [2] : vector<8x4x4xf32> to vector<8x4xf32>
    %220 = vector.shape_cast %219 : vector<8x4xf32> to vector<8x4x1xf32>
    %221 = vector.broadcast %220 : vector<8x4x1xf32> to vector<8x4x4xf32>
    %222 = arith.subf %218, %221 : vector<8x4x4xf32>
    %223 = math.exp %222 : vector<8x4x4xf32>
    %cst_62 = arith.constant dense<0.000000e+00> : vector<8x4xf32>
    %224 = vector.multi_reduction <add>, %223, %cst_62 [2] : vector<8x4x4xf32> to vector<8x4xf32>
    %225 = vector.shape_cast %224 : vector<8x4xf32> to vector<8x4x1xf32>
    %226 = tpu.reciprocal %225 {approx = true} : vector<8x4x1xf32> -> vector<8x4x1xf32>
    %227 = vector.broadcast %226 : vector<8x4x1xf32> to vector<8x4x4xf32>
    %228 = arith.mulf %223, %227 : vector<8x4x4xf32>
    "tpu.trace_start"() <{level = 10 : i32, message = "sbc,scd->sbd"}> : () -> ()
    %cst_63 = arith.constant dense<0.000000e+00> : vector<8x4x40xf32>
    %229 = tpu.matmul %228, %215, %cst_63 {dimension_numbers = #tpu.dot_dimension_numbers<[2], [1], [1], [2], [0, 0, 0, 1, 1, 2], [0], [0]>} : vector<8x4x4xf32>, vector<8x4x40xf32>, vector<8x4x40xf32> -> vector<8x4x40xf32>
    "tpu.trace_stop"() : () -> ()
    %230 = arith.addf %204, %229 : vector<8x4x40xf32>
    %c32_i32_64 = arith.constant 32 : i32
    %231 = vector.broadcast %c32_i32_64 : i32 to vector<1x1x40xi32>
    %232 = arith.cmpi sge, %21, %231 : vector<1x1x40xi32>
    %c36_i32 = arith.constant 36 : i32
    %233 = vector.broadcast %c36_i32 : i32 to vector<1x1x40xi32>
    %234 = arith.cmpi slt, %21, %233 : vector<1x1x40xi32>
    %235 = arith.andi %232, %234 : vector<1x1x40xi1>
    %236 = arith.extui %235 : vector<1x1x40xi1> to vector<1x1x40xi32>
    %237 = arith.sitofp %236 : vector<1x1x40xi32> to vector<1x1x40xf32>
    %238 = vector.broadcast %237 : vector<1x1x40xf32> to vector<8x4x40xf32>
    %239 = arith.mulf %14, %238 : vector<8x4x40xf32>
    %240 = vector.broadcast %237 : vector<1x1x40xf32> to vector<8x4x40xf32>
    %241 = arith.mulf %20, %240 : vector<8x4x40xf32>
    "tpu.trace_start"() <{level = 10 : i32, message = "sbd,scd->sbc"}> : () -> ()
    %cst_65 = arith.constant dense<0.000000e+00> : vector<8x4x4xf32>
    %242 = tpu.matmul %8, %239, %cst_65 {dimension_numbers = #tpu.dot_dimension_numbers<[2], [2], [1], [1], [0, 0, 0, 1, 1, 1], [0], [0]>} : vector<8x4x40xf32>, vector<8x4x40xf32>, vector<8x4x4xf32> -> vector<8x4x4xf32>
    "tpu.trace_stop"() : () -> ()
    %cst_66 = arith.constant 5.000000e-01 : f32
    %243 = vector.broadcast %cst_66 : f32 to vector<8x4x4xf32>
    %244 = arith.mulf %242, %243 : vector<8x4x4xf32>
    %cst_67 = arith.constant dense<0xFF800000> : vector<8x4xf32>
    %245 = vector.multi_reduction <maximumf>, %244, %cst_67 [2] : vector<8x4x4xf32> to vector<8x4xf32>
    %246 = vector.shape_cast %245 : vector<8x4xf32> to vector<8x4x1xf32>
    %247 = vector.broadcast %246 : vector<8x4x1xf32> to vector<8x4x4xf32>
    %248 = arith.subf %244, %247 : vector<8x4x4xf32>
    %249 = math.exp %248 : vector<8x4x4xf32>
    %cst_68 = arith.constant dense<0.000000e+00> : vector<8x4xf32>
    %250 = vector.multi_reduction <add>, %249, %cst_68 [2] : vector<8x4x4xf32> to vector<8x4xf32>
    %251 = vector.shape_cast %250 : vector<8x4xf32> to vector<8x4x1xf32>
    %252 = tpu.reciprocal %251 {approx = true} : vector<8x4x1xf32> -> vector<8x4x1xf32>
    %253 = vector.broadcast %252 : vector<8x4x1xf32> to vector<8x4x4xf32>
    %254 = arith.mulf %249, %253 : vector<8x4x4xf32>
    "tpu.trace_start"() <{level = 10 : i32, message = "sbc,scd->sbd"}> : () -> ()
    %cst_69 = arith.constant dense<0.000000e+00> : vector<8x4x40xf32>
    %255 = tpu.matmul %254, %241, %cst_69 {dimension_numbers = #tpu.dot_dimension_numbers<[2], [1], [1], [2], [0, 0, 0, 1, 1, 2], [0], [0]>} : vector<8x4x4xf32>, vector<8x4x40xf32>, vector<8x4x40xf32> -> vector<8x4x40xf32>
    "tpu.trace_stop"() : () -> ()
    %256 = arith.addf %230, %255 : vector<8x4x40xf32>
    %c36_i32_70 = arith.constant 36 : i32
    %257 = vector.broadcast %c36_i32_70 : i32 to vector<1x1x40xi32>
    %258 = arith.cmpi sge, %21, %257 : vector<1x1x40xi32>
    %c40_i32 = arith.constant 40 : i32
    %259 = vector.broadcast %c40_i32 : i32 to vector<1x1x40xi32>
    %260 = arith.cmpi slt, %21, %259 : vector<1x1x40xi32>
    %261 = arith.andi %258, %260 : vector<1x1x40xi1>
    %262 = arith.extui %261 : vector<1x1x40xi1> to vector<1x1x40xi32>
    %263 = arith.sitofp %262 : vector<1x1x40xi32> to vector<1x1x40xf32>
    %264 = vector.broadcast %263 : vector<1x1x40xf32> to vector<8x4x40xf32>
    %265 = arith.mulf %14, %264 : vector<8x4x40xf32>
    %266 = vector.broadcast %263 : vector<1x1x40xf32> to vector<8x4x40xf32>
    %267 = arith.mulf %20, %266 : vector<8x4x40xf32>
    "tpu.trace_start"() <{level = 10 : i32, message = "sbd,scd->sbc"}> : () -> ()
    %cst_71 = arith.constant dense<0.000000e+00> : vector<8x4x4xf32>
    %268 = tpu.matmul %8, %265, %cst_71 {dimension_numbers = #tpu.dot_dimension_numbers<[2], [2], [1], [1], [0, 0, 0, 1, 1, 1], [0], [0]>} : vector<8x4x40xf32>, vector<8x4x40xf32>, vector<8x4x4xf32> -> vector<8x4x4xf32>
    "tpu.trace_stop"() : () -> ()
    %cst_72 = arith.constant 5.000000e-01 : f32
    %269 = vector.broadcast %cst_72 : f32 to vector<8x4x4xf32>
    %270 = arith.mulf %268, %269 : vector<8x4x4xf32>
    %cst_73 = arith.constant dense<0xFF800000> : vector<8x4xf32>
    %271 = vector.multi_reduction <maximumf>, %270, %cst_73 [2] : vector<8x4x4xf32> to vector<8x4xf32>
    %272 = vector.shape_cast %271 : vector<8x4xf32> to vector<8x4x1xf32>
    %273 = vector.broadcast %272 : vector<8x4x1xf32> to vector<8x4x4xf32>
    %274 = arith.subf %270, %273 : vector<8x4x4xf32>
    %275 = math.exp %274 : vector<8x4x4xf32>
    %cst_74 = arith.constant dense<0.000000e+00> : vector<8x4xf32>
    %276 = vector.multi_reduction <add>, %275, %cst_74 [2] : vector<8x4x4xf32> to vector<8x4xf32>
    %277 = vector.shape_cast %276 : vector<8x4xf32> to vector<8x4x1xf32>
    %278 = tpu.reciprocal %277 {approx = true} : vector<8x4x1xf32> -> vector<8x4x1xf32>
    %279 = vector.broadcast %278 : vector<8x4x1xf32> to vector<8x4x4xf32>
    %280 = arith.mulf %275, %279 : vector<8x4x4xf32>
    "tpu.trace_start"() <{level = 10 : i32, message = "sbc,scd->sbd"}> : () -> ()
    %cst_75 = arith.constant dense<0.000000e+00> : vector<8x4x40xf32>
    %281 = tpu.matmul %280, %267, %cst_75 {dimension_numbers = #tpu.dot_dimension_numbers<[2], [1], [1], [2], [0, 0, 0, 1, 1, 2], [0], [0]>} : vector<8x4x4xf32>, vector<8x4x40xf32>, vector<8x4x40xf32> -> vector<8x4x40xf32>
    "tpu.trace_stop"() : () -> ()
    %282 = arith.addf %256, %281 : vector<8x4x40xf32>
    %283 = vector.shape_cast %282 : vector<8x4x40xf32> to vector<32x40xf32>
    %284 = arith.truncf %283 : vector<32x40xf32> to vector<32x40xbf16>
    %c0_76 = arith.constant 0 : index
    %c0_77 = arith.constant 0 : index
    %285 = vector.load %arg8[%c0_76, %c0_77] : memref<40x40xbf16, #tpu.memory_space<vmem>>, vector<40x40xbf16>
    %cst_78 = arith.constant dense<0.000000e+00> : vector<32x40xf32>
    %286 = tpu.matmul %284, %285, %cst_78 {dimension_numbers = #tpu.dot_dimension_numbers<[1], [0], [0], [1], [0, 0, 1, 1], [], []>} : vector<32x40xbf16>, vector<40x40xbf16>, vector<32x40xf32> -> vector<32x40xf32>
    %c0_79 = arith.constant 0 : index
    %c0_80 = arith.constant 0 : index
    %287 = vector.load %arg9[%c0_79, %c0_80] : memref<1x40xf32, #tpu.memory_space<vmem>>, vector<1x40xf32>
    %288 = vector.broadcast %287 : vector<1x40xf32> to vector<32x40xf32>
    %289 = arith.addf %286, %288 : vector<32x40xf32>
    %290 = arith.addf %1, %289 : vector<32x40xf32>
    %cst_81 = arith.constant dense<0.000000e+00> : vector<32xf32>
    %291 = vector.multi_reduction <add>, %290, %cst_81 [1] : vector<32x40xf32> to vector<32xf32>
    %292 = vector.shape_cast %291 : vector<32xf32> to vector<32x1xf32>
    %cst_82 = arith.constant 4.000000e+01 : f32
    %293 = vector.broadcast %cst_82 : f32 to vector<32x1xf32>
    %294 = arith.divf %292, %293 : vector<32x1xf32>
    %295 = vector.broadcast %294 : vector<32x1xf32> to vector<32x40xf32>
    %296 = arith.subf %290, %295 : vector<32x40xf32>
    %297 = arith.mulf %296, %296 : vector<32x40xf32>
    %cst_83 = arith.constant dense<0.000000e+00> : vector<32xf32>
    %298 = vector.multi_reduction <add>, %297, %cst_83 [1] : vector<32x40xf32> to vector<32xf32>
    %299 = vector.shape_cast %298 : vector<32xf32> to vector<32x1xf32>
    %cst_84 = arith.constant 4.000000e+01 : f32
    %300 = vector.broadcast %cst_84 : f32 to vector<32x1xf32>
    %301 = arith.divf %299, %300 : vector<32x1xf32>
    %302 = vector.broadcast %294 : vector<32x1xf32> to vector<32x40xf32>
    %303 = arith.subf %290, %302 : vector<32x40xf32>
    %cst_85 = arith.constant 9.99999974E-6 : f32
    %304 = vector.broadcast %cst_85 : f32 to vector<32x1xf32>
    %305 = arith.addf %301, %304 : vector<32x1xf32>
    %306 = math.rsqrt %305 : vector<32x1xf32>
    %307 = vector.broadcast %306 : vector<32x1xf32> to vector<32x40xf32>
    %308 = arith.mulf %303, %307 : vector<32x40xf32>
    %c0_86 = arith.constant 0 : index
    %c0_87 = arith.constant 0 : index
    %309 = vector.load %arg10[%c0_86, %c0_87] : memref<1x40xf32, #tpu.memory_space<vmem>>, vector<1x40xf32>
    %310 = vector.broadcast %309 : vector<1x40xf32> to vector<32x40xf32>
    %311 = arith.mulf %308, %310 : vector<32x40xf32>
    %c0_88 = arith.constant 0 : index
    %c0_89 = arith.constant 0 : index
    %312 = vector.load %arg11[%c0_88, %c0_89] : memref<1x40xf32, #tpu.memory_space<vmem>>, vector<1x40xf32>
    %313 = vector.broadcast %312 : vector<1x40xf32> to vector<32x40xf32>
    %314 = arith.addf %311, %313 : vector<32x40xf32>
    %315 = arith.truncf %314 : vector<32x40xf32> to vector<32x40xbf16>
    %c0_90 = arith.constant 0 : index
    %c0_91 = arith.constant 0 : index
    %316 = vector.load %arg12[%c0_90, %c0_91] : memref<40x2048xbf16, #tpu.memory_space<vmem>>, vector<40x2048xbf16>
    %cst_92 = arith.constant dense<0.000000e+00> : vector<32x2048xf32>
    %317 = tpu.matmul %315, %316, %cst_92 {dimension_numbers = #tpu.dot_dimension_numbers<[1], [0], [0], [1], [0, 0, 1, 1], [], []>} : vector<32x40xbf16>, vector<40x2048xbf16>, vector<32x2048xf32> -> vector<32x2048xf32>
    %c0_93 = arith.constant 0 : index
    %c0_94 = arith.constant 0 : index
    %318 = vector.load %arg13[%c0_93, %c0_94] : memref<1x2048xf32, #tpu.memory_space<vmem>>, vector<1x2048xf32>
    %319 = vector.broadcast %318 : vector<1x2048xf32> to vector<32x2048xf32>
    %320 = arith.addf %317, %319 : vector<32x2048xf32>
    %cst_95 = arith.constant 0.000000e+00 : f32
    %321 = vector.broadcast %cst_95 : f32 to vector<32x2048xf32>
    %322 = arith.maximumf %320, %321 : vector<32x2048xf32>
    %323 = arith.truncf %322 : vector<32x2048xf32> to vector<32x2048xbf16>
    %c0_96 = arith.constant 0 : index
    %c0_97 = arith.constant 0 : index
    %324 = vector.load %arg14[%c0_96, %c0_97] : memref<2048x40xbf16, #tpu.memory_space<vmem>>, vector<2048x40xbf16>
    %cst_98 = arith.constant dense<0.000000e+00> : vector<32x40xf32>
    %325 = tpu.matmul %323, %324, %cst_98 {dimension_numbers = #tpu.dot_dimension_numbers<[1], [0], [0], [1], [0, 0, 1, 1], [], []>} : vector<32x2048xbf16>, vector<2048x40xbf16>, vector<32x40xf32> -> vector<32x40xf32>
    %c0_99 = arith.constant 0 : index
    %c0_100 = arith.constant 0 : index
    %326 = vector.load %arg15[%c0_99, %c0_100] : memref<1x40xf32, #tpu.memory_space<vmem>>, vector<1x40xf32>
    %327 = vector.broadcast %326 : vector<1x40xf32> to vector<32x40xf32>
    %328 = arith.addf %325, %327 : vector<32x40xf32>
    %329 = arith.addf %314, %328 : vector<32x40xf32>
    %cst_101 = arith.constant dense<0.000000e+00> : vector<32xf32>
    %330 = vector.multi_reduction <add>, %329, %cst_101 [1] : vector<32x40xf32> to vector<32xf32>
    %331 = vector.shape_cast %330 : vector<32xf32> to vector<32x1xf32>
    %cst_102 = arith.constant 4.000000e+01 : f32
    %332 = vector.broadcast %cst_102 : f32 to vector<32x1xf32>
    %333 = arith.divf %331, %332 : vector<32x1xf32>
    %334 = vector.broadcast %333 : vector<32x1xf32> to vector<32x40xf32>
    %335 = arith.subf %329, %334 : vector<32x40xf32>
    %336 = arith.mulf %335, %335 : vector<32x40xf32>
    %cst_103 = arith.constant dense<0.000000e+00> : vector<32xf32>
    %337 = vector.multi_reduction <add>, %336, %cst_103 [1] : vector<32x40xf32> to vector<32xf32>
    %338 = vector.shape_cast %337 : vector<32xf32> to vector<32x1xf32>
    %cst_104 = arith.constant 4.000000e+01 : f32
    %339 = vector.broadcast %cst_104 : f32 to vector<32x1xf32>
    %340 = arith.divf %338, %339 : vector<32x1xf32>
    %341 = vector.broadcast %333 : vector<32x1xf32> to vector<32x40xf32>
    %342 = arith.subf %329, %341 : vector<32x40xf32>
    %cst_105 = arith.constant 9.99999974E-6 : f32
    %343 = vector.broadcast %cst_105 : f32 to vector<32x1xf32>
    %344 = arith.addf %340, %343 : vector<32x1xf32>
    %345 = math.rsqrt %344 : vector<32x1xf32>
    %346 = vector.broadcast %345 : vector<32x1xf32> to vector<32x40xf32>
    %347 = arith.mulf %342, %346 : vector<32x40xf32>
    %c0_106 = arith.constant 0 : index
    %c0_107 = arith.constant 0 : index
    %348 = vector.load %arg16[%c0_106, %c0_107] : memref<1x40xf32, #tpu.memory_space<vmem>>, vector<1x40xf32>
    %349 = vector.broadcast %348 : vector<1x40xf32> to vector<32x40xf32>
    %350 = arith.mulf %347, %349 : vector<32x40xf32>
    %c0_108 = arith.constant 0 : index
    %c0_109 = arith.constant 0 : index
    %351 = vector.load %arg17[%c0_108, %c0_109] : memref<1x40xf32, #tpu.memory_space<vmem>>, vector<1x40xf32>
    %352 = vector.broadcast %351 : vector<1x40xf32> to vector<32x40xf32>
    %353 = arith.addf %350, %352 : vector<32x40xf32>
    %354 = math.tanh %353 : vector<32x40xf32>
    %355 = arith.mulf %1, %354 : vector<32x40xf32>
    %356 = vector.shape_cast %355 : vector<32x40xf32> to vector<8x4x40xf32>
    %357 = arith.truncf %356 : vector<8x4x40xf32> to vector<8x4x40xbf16>
    %c0_110 = arith.constant 0 : index
    %c0_111 = arith.constant 0 : index
    %c0_112 = arith.constant 0 : index
    %358 = vector.load %arg18[%c0_110, %c0_111, %c0_112] : memref<8x4x40xbf16, #tpu.memory_space<vmem>>, vector<8x4x40xbf16>
    tpu.vector_store %arg18[%c0_110, %c0_111, %c0_112], %357 {strides = array<i32>} : memref<8x4x40xbf16, #tpu.memory_space<vmem>>, vector<8x4x40xbf16>,
    return
  }
  func.func @transform_0(%arg0: i32) -> (i32, i32, i32) {
    %c0_i32 = arith.constant 0 : i32
    %c0_i32_0 = arith.constant 0 : i32
    %c0_i32_1 = arith.constant 0 : i32
    return %arg0, %c0_i32, %c0_i32_0 : i32, i32, i32
  }
  func.func @transform_1(%arg0: i32) -> (i32, i32) {
    %c0_i32 = arith.constant 0 : i32
    %c0_i32_0 = arith.constant 0 : i32
    %c0_i32_1 = arith.constant 0 : i32
    return %c0_i32, %c0_i32_0 : i32, i32
  }
  func.func @transform_2(%arg0: i32) -> (i32, i32) {
    %c0_i32 = arith.constant 0 : i32
    %c0_i32_0 = arith.constant 0 : i32
    %c0_i32_1 = arith.constant 0 : i32
    return %c0_i32, %c0_i32_0 : i32, i32
  }
  func.func @transform_3(%arg0: i32) -> (i32, i32) {
    %c0_i32 = arith.constant 0 : i32
    %c0_i32_0 = arith.constant 0 : i32
    %c0_i32_1 = arith.constant 0 : i32
    return %c0_i32, %c0_i32_0 : i32, i32
  }
  func.func @transform_4(%arg0: i32) -> (i32, i32) {
    %c0_i32 = arith.constant 0 : i32
    %c0_i32_0 = arith.constant 0 : i32
    %c0_i32_1 = arith.constant 0 : i32
    return %c0_i32, %c0_i32_0 : i32, i32
  }
  func.func @transform_5(%arg0: i32) -> (i32, i32) {
    %c0_i32 = arith.constant 0 : i32
    %c0_i32_0 = arith.constant 0 : i32
    %c0_i32_1 = arith.constant 0 : i32
    return %c0_i32, %c0_i32_0 : i32, i32
  }
  func.func @transform_6(%arg0: i32) -> (i32, i32) {
    %c0_i32 = arith.constant 0 : i32
    %c0_i32_0 = arith.constant 0 : i32
    %c0_i32_1 = arith.constant 0 : i32
    return %c0_i32, %c0_i32_0 : i32, i32
  }
  func.func @transform_7(%arg0: i32) -> (i32, i32) {
    %c0_i32 = arith.constant 0 : i32
    %c0_i32_0 = arith.constant 0 : i32
    %c0_i32_1 = arith.constant 0 : i32
    return %c0_i32, %c0_i32_0 : i32, i32
  }
  func.func @transform_8(%arg0: i32) -> (i32, i32) {
    %c0_i32 = arith.constant 0 : i32
    %c0_i32_0 = arith.constant 0 : i32
    %c0_i32_1 = arith.constant 0 : i32
    return %c0_i32, %c0_i32_0 : i32, i32
  }
  func.func @transform_9(%arg0: i32) -> (i32, i32) {
    %c0_i32 = arith.constant 0 : i32
    %c0_i32_0 = arith.constant 0 : i32
    %c0_i32_1 = arith.constant 0 : i32
    return %c0_i32, %c0_i32_0 : i32, i32
  }
  func.func @transform_10(%arg0: i32) -> (i32, i32) {
    %c0_i32 = arith.constant 0 : i32
    %c0_i32_0 = arith.constant 0 : i32
    %c0_i32_1 = arith.constant 0 : i32
    return %c0_i32, %c0_i32_0 : i32, i32
  }
  func.func @transform_11(%arg0: i32) -> (i32, i32) {
    %c0_i32 = arith.constant 0 : i32
    %c0_i32_0 = arith.constant 0 : i32
    %c0_i32_1 = arith.constant 0 : i32
    return %c0_i32, %c0_i32_0 : i32, i32
  }
  func.func @transform_12(%arg0: i32) -> (i32, i32) {
    %c0_i32 = arith.constant 0 : i32
    %c0_i32_0 = arith.constant 0 : i32
    %c0_i32_1 = arith.constant 0 : i32
    return %c0_i32, %c0_i32_0 : i32, i32
  }
  func.func @transform_13(%arg0: i32) -> (i32, i32) {
    %c0_i32 = arith.constant 0 : i32
    %c0_i32_0 = arith.constant 0 : i32
    %c0_i32_1 = arith.constant 0 : i32
    return %c0_i32, %c0_i32_0 : i32, i32
  }
  func.func @transform_14(%arg0: i32) -> (i32, i32) {
    %c0_i32 = arith.constant 0 : i32
    %c0_i32_0 = arith.constant 0 : i32
    %c0_i32_1 = arith.constant 0 : i32
    return %c0_i32, %c0_i32_0 : i32, i32
  }
  func.func @transform_15(%arg0: i32) -> (i32, i32) {
    %c0_i32 = arith.constant 0 : i32
    %c0_i32_0 = arith.constant 0 : i32
    %c0_i32_1 = arith.constant 0 : i32
    return %c0_i32, %c0_i32_0 : i32, i32
  }
  func.func @transform_16(%arg0: i32) -> (i32, i32) {
    %c0_i32 = arith.constant 0 : i32
    %c0_i32_0 = arith.constant 0 : i32
    %c0_i32_1 = arith.constant 0 : i32
    return %c0_i32, %c0_i32_0 : i32, i32
  }
  func.func @transform_17(%arg0: i32) -> (i32, i32, i32) {
    %c0_i32 = arith.constant 0 : i32
    %c0_i32_0 = arith.constant 0 : i32
    %c0_i32_1 = arith.constant 0 : i32
    return %arg0, %c0_i32, %c0_i32_0 : i32, i32, i32
  }
}

module attributes {stable_mosaic.version = 11 : i64} {
  func.func @_conv_pool_fc_kernel(%arg0: i32, %arg1: memref<16x4x40xbf16, #tpu.memory_space<vmem>>, %arg2: memref<3x40x40xbf16, #tpu.memory_space<vmem>>, %arg3: memref<1x40xf32, #tpu.memory_space<vmem>>, %arg4: memref<4x40x40xbf16, #tpu.memory_space<vmem>>, %arg5: memref<1x40xf32, #tpu.memory_space<vmem>>, %arg6: memref<5x40x40xbf16, #tpu.memory_space<vmem>>, %arg7: memref<1x40xf32, #tpu.memory_space<vmem>>, %arg8: memref<120x2xbf16, #tpu.memory_space<vmem>>, %arg9: memref<1x2xf32, #tpu.memory_space<vmem>>, %arg10: memref<4x2xf32, #tpu.memory_space<vmem>>) attributes {dimension_semantics = [#tpu.dimension_semantics<parallel>], iteration_bounds = array<i64: 1>, scalar_prefetch = 0 : i64, scratch_operands = 0 : i64, tpu.core_type = #tpu.core_type<tc>, window_params = [{transform_indices = @transform_0, window_bounds = array<i64: 16, 4, 40>}, {pipeline_mode = #tpu.pipeline_mode<synchronous>, transform_indices = @transform_1, window_bounds = array<i64: 3, 40, 40>}, {pipeline_mode = #tpu.pipeline_mode<synchronous>, transform_indices = @transform_2, window_bounds = array<i64: 1, 40>}, {pipeline_mode = #tpu.pipeline_mode<synchronous>, transform_indices = @transform_3, window_bounds = array<i64: 4, 40, 40>}, {pipeline_mode = #tpu.pipeline_mode<synchronous>, transform_indices = @transform_4, window_bounds = array<i64: 1, 40>}, {pipeline_mode = #tpu.pipeline_mode<synchronous>, transform_indices = @transform_5, window_bounds = array<i64: 5, 40, 40>}, {pipeline_mode = #tpu.pipeline_mode<synchronous>, transform_indices = @transform_6, window_bounds = array<i64: 1, 40>}, {pipeline_mode = #tpu.pipeline_mode<synchronous>, transform_indices = @transform_7, window_bounds = array<i64: 120, 2>}, {pipeline_mode = #tpu.pipeline_mode<synchronous>, transform_indices = @transform_8, window_bounds = array<i64: 1, 2>}, {transform_indices = @transform_9, window_bounds = array<i64: 4, 2>}]} {
    %c0 = arith.constant 0 : index
    %c0_0 = arith.constant 0 : index
    %c0_1 = arith.constant 0 : index
    %0 = vector.load %arg1[%c0, %c0_0, %c0_1] : memref<16x4x40xbf16, #tpu.memory_space<vmem>>, vector<16x4x40xbf16>
    %1 = vector.shape_cast %0 : vector<16x4x40xbf16> to vector<64x40xbf16>
    %cst = arith.constant 0.000000e+00 : f32
    %2 = vector.broadcast %cst : f32 to vector<4x2xf32>
    %c0_2 = arith.constant 0 : index
    %c0_3 = arith.constant 0 : index
    %3 = vector.load %arg9[%c0_2, %c0_3] : memref<1x2xf32, #tpu.memory_space<vmem>>, vector<1x2xf32>
    %4 = vector.broadcast %3 : vector<1x2xf32> to vector<4x2xf32>
    %5 = arith.addf %2, %4 : vector<4x2xf32>
    %cst_4 = arith.constant 0.000000e+00 : f32
    %6 = vector.broadcast %cst_4 : f32 to vector<56x40xf32>
    %7 = vector.extract_strided_slice %1 {offsets = [0, 0], sizes = [56, 40], strides = [1, 1]} : vector<64x40xbf16> to vector<56x40xbf16>
    %c0_5 = arith.constant 0 : index
    %c0_6 = arith.constant 0 : index
    %c0_7 = arith.constant 0 : index
    %8 = vector.load %arg2[%c0_5, %c0_6, %c0_7] : memref<3x40x40xbf16, #tpu.memory_space<vmem>>, vector<1x40x40xbf16>
    %9 = vector.shape_cast %8 : vector<1x40x40xbf16> to vector<40x40xbf16>
    %cst_8 = arith.constant dense<0.000000e+00> : vector<56x40xf32>
    %10 = tpu.matmul %7, %9, %cst_8 {dimension_numbers = #tpu.dot_dimension_numbers<[1], [0], [0], [1], [0, 0, 1, 1], [], []>} : vector<56x40xbf16>, vector<40x40xbf16>, vector<56x40xf32> -> vector<56x40xf32>
    %11 = arith.addf %6, %10 : vector<56x40xf32>
    %12 = vector.extract_strided_slice %1 {offsets = [4, 0], sizes = [56, 40], strides = [1, 1]} : vector<64x40xbf16> to vector<56x40xbf16>
    %c1 = arith.constant 1 : index
    %c0_9 = arith.constant 0 : index
    %c0_10 = arith.constant 0 : index
    %13 = vector.load %arg2[%c1, %c0_9, %c0_10] : memref<3x40x40xbf16, #tpu.memory_space<vmem>>, vector<1x40x40xbf16>
    %14 = vector.shape_cast %13 : vector<1x40x40xbf16> to vector<40x40xbf16>
    %cst_11 = arith.constant dense<0.000000e+00> : vector<56x40xf32>
    %15 = tpu.matmul %12, %14, %cst_11 {dimension_numbers = #tpu.dot_dimension_numbers<[1], [0], [0], [1], [0, 0, 1, 1], [], []>} : vector<56x40xbf16>, vector<40x40xbf16>, vector<56x40xf32> -> vector<56x40xf32>
    %16 = arith.addf %11, %15 : vector<56x40xf32>
    %17 = vector.extract_strided_slice %1 {offsets = [8, 0], sizes = [56, 40], strides = [1, 1]} : vector<64x40xbf16> to vector<56x40xbf16>
    %c2 = arith.constant 2 : index
    %c0_12 = arith.constant 0 : index
    %c0_13 = arith.constant 0 : index
    %18 = vector.load %arg2[%c2, %c0_12, %c0_13] : memref<3x40x40xbf16, #tpu.memory_space<vmem>>, vector<1x40x40xbf16>
    %19 = vector.shape_cast %18 : vector<1x40x40xbf16> to vector<40x40xbf16>
    %cst_14 = arith.constant dense<0.000000e+00> : vector<56x40xf32>
    %20 = tpu.matmul %17, %19, %cst_14 {dimension_numbers = #tpu.dot_dimension_numbers<[1], [0], [0], [1], [0, 0, 1, 1], [], []>} : vector<56x40xbf16>, vector<40x40xbf16>, vector<56x40xf32> -> vector<56x40xf32>
    %21 = arith.addf %16, %20 : vector<56x40xf32>
    %c0_15 = arith.constant 0 : index
    %c0_16 = arith.constant 0 : index
    %22 = vector.load %arg3[%c0_15, %c0_16] : memref<1x40xf32, #tpu.memory_space<vmem>>, vector<1x40xf32>
    %23 = vector.broadcast %22 : vector<1x40xf32> to vector<56x40xf32>
    %24 = arith.addf %21, %23 : vector<56x40xf32>
    %cst_17 = arith.constant 0.000000e+00 : f32
    %25 = vector.broadcast %cst_17 : f32 to vector<56x40xf32>
    %26 = arith.cmpf ogt, %24, %25 : vector<56x40xf32>
    %cst_18 = arith.constant 1.000000e-01 : f32
    %27 = vector.broadcast %cst_18 : f32 to vector<56x40xf32>
    %28 = arith.mulf %27, %24 : vector<56x40xf32>
    %29 = arith.select %26, %24, %28 : vector<56x40xi1>, vector<56x40xf32>
    %30 = vector.shape_cast %29 : vector<56x40xf32> to vector<14x4x40xf32>
    %cst_19 = arith.constant dense<0xFF800000> : vector<4x40xf32>
    %31 = vector.multi_reduction <maximumf>, %30, %cst_19 [0] : vector<14x4x40xf32> to vector<4x40xf32>
    %32 = arith.truncf %31 : vector<4x40xf32> to vector<4x40xbf16>
    %c0_20 = arith.constant 0 : index
    %c0_21 = arith.constant 0 : index
    %33 = vector.load %arg8[%c0_20, %c0_21] : memref<120x2xbf16, #tpu.memory_space<vmem>>, vector<40x2xbf16>
    %cst_22 = arith.constant dense<0.000000e+00> : vector<4x2xf32>
    %34 = tpu.matmul %32, %33, %cst_22 {dimension_numbers = #tpu.dot_dimension_numbers<[1], [0], [0], [1], [0, 0, 1, 1], [], []>} : vector<4x40xbf16>, vector<40x2xbf16>, vector<4x2xf32> -> vector<4x2xf32>
    %35 = arith.addf %5, %34 : vector<4x2xf32>
    %cst_23 = arith.constant 0.000000e+00 : f32
    %36 = vector.broadcast %cst_23 : f32 to vector<52x40xf32>
    %37 = vector.extract_strided_slice %1 {offsets = [0, 0], sizes = [52, 40], strides = [1, 1]} : vector<64x40xbf16> to vector<52x40xbf16>
    %c0_24 = arith.constant 0 : index
    %c0_25 = arith.constant 0 : index
    %c0_26 = arith.constant 0 : index
    %38 = vector.load %arg4[%c0_24, %c0_25, %c0_26] : memref<4x40x40xbf16, #tpu.memory_space<vmem>>, vector<1x40x40xbf16>
    %39 = vector.shape_cast %38 : vector<1x40x40xbf16> to vector<40x40xbf16>
    %cst_27 = arith.constant dense<0.000000e+00> : vector<52x40xf32>
    %40 = tpu.matmul %37, %39, %cst_27 {dimension_numbers = #tpu.dot_dimension_numbers<[1], [0], [0], [1], [0, 0, 1, 1], [], []>} : vector<52x40xbf16>, vector<40x40xbf16>, vector<52x40xf32> -> vector<52x40xf32>
    %41 = arith.addf %36, %40 : vector<52x40xf32>
    %42 = vector.extract_strided_slice %1 {offsets = [4, 0], sizes = [52, 40], strides = [1, 1]} : vector<64x40xbf16> to vector<52x40xbf16>
    %c1_28 = arith.constant 1 : index
    %c0_29 = arith.constant 0 : index
    %c0_30 = arith.constant 0 : index
    %43 = vector.load %arg4[%c1_28, %c0_29, %c0_30] : memref<4x40x40xbf16, #tpu.memory_space<vmem>>, vector<1x40x40xbf16>
    %44 = vector.shape_cast %43 : vector<1x40x40xbf16> to vector<40x40xbf16>
    %cst_31 = arith.constant dense<0.000000e+00> : vector<52x40xf32>
    %45 = tpu.matmul %42, %44, %cst_31 {dimension_numbers = #tpu.dot_dimension_numbers<[1], [0], [0], [1], [0, 0, 1, 1], [], []>} : vector<52x40xbf16>, vector<40x40xbf16>, vector<52x40xf32> -> vector<52x40xf32>
    %46 = arith.addf %41, %45 : vector<52x40xf32>
    %47 = vector.extract_strided_slice %1 {offsets = [8, 0], sizes = [52, 40], strides = [1, 1]} : vector<64x40xbf16> to vector<52x40xbf16>
    %c2_32 = arith.constant 2 : index
    %c0_33 = arith.constant 0 : index
    %c0_34 = arith.constant 0 : index
    %48 = vector.load %arg4[%c2_32, %c0_33, %c0_34] : memref<4x40x40xbf16, #tpu.memory_space<vmem>>, vector<1x40x40xbf16>
    %49 = vector.shape_cast %48 : vector<1x40x40xbf16> to vector<40x40xbf16>
    %cst_35 = arith.constant dense<0.000000e+00> : vector<52x40xf32>
    %50 = tpu.matmul %47, %49, %cst_35 {dimension_numbers = #tpu.dot_dimension_numbers<[1], [0], [0], [1], [0, 0, 1, 1], [], []>} : vector<52x40xbf16>, vector<40x40xbf16>, vector<52x40xf32> -> vector<52x40xf32>
    %51 = arith.addf %46, %50 : vector<52x40xf32>
    %52 = vector.extract_strided_slice %1 {offsets = [12, 0], sizes = [52, 40], strides = [1, 1]} : vector<64x40xbf16> to vector<52x40xbf16>
    %c3 = arith.constant 3 : index
    %c0_36 = arith.constant 0 : index
    %c0_37 = arith.constant 0 : index
    %53 = vector.load %arg4[%c3, %c0_36, %c0_37] : memref<4x40x40xbf16, #tpu.memory_space<vmem>>, vector<1x40x40xbf16>
    %54 = vector.shape_cast %53 : vector<1x40x40xbf16> to vector<40x40xbf16>
    %cst_38 = arith.constant dense<0.000000e+00> : vector<52x40xf32>
    %55 = tpu.matmul %52, %54, %cst_38 {dimension_numbers = #tpu.dot_dimension_numbers<[1], [0], [0], [1], [0, 0, 1, 1], [], []>} : vector<52x40xbf16>, vector<40x40xbf16>, vector<52x40xf32> -> vector<52x40xf32>
    %56 = arith.addf %51, %55 : vector<52x40xf32>
    %c0_39 = arith.constant 0 : index
    %c0_40 = arith.constant 0 : index
    %57 = vector.load %arg5[%c0_39, %c0_40] : memref<1x40xf32, #tpu.memory_space<vmem>>, vector<1x40xf32>
    %58 = vector.broadcast %57 : vector<1x40xf32> to vector<52x40xf32>
    %59 = arith.addf %56, %58 : vector<52x40xf32>
    %cst_41 = arith.constant 0.000000e+00 : f32
    %60 = vector.broadcast %cst_41 : f32 to vector<52x40xf32>
    %61 = arith.cmpf ogt, %59, %60 : vector<52x40xf32>
    %cst_42 = arith.constant 1.000000e-01 : f32
    %62 = vector.broadcast %cst_42 : f32 to vector<52x40xf32>
    %63 = arith.mulf %62, %59 : vector<52x40xf32>
    %64 = arith.select %61, %59, %63 : vector<52x40xi1>, vector<52x40xf32>
    %65 = vector.shape_cast %64 : vector<52x40xf32> to vector<13x4x40xf32>
    %cst_43 = arith.constant dense<0xFF800000> : vector<4x40xf32>
    %66 = vector.multi_reduction <maximumf>, %65, %cst_43 [0] : vector<13x4x40xf32> to vector<4x40xf32>
    %67 = arith.truncf %66 : vector<4x40xf32> to vector<4x40xbf16>
    %c40 = arith.constant 40 : index
    %c0_44 = arith.constant 0 : index
    %68 = vector.load %arg8[%c40, %c0_44] : memref<120x2xbf16, #tpu.memory_space<vmem>>, vector<40x2xbf16>
    %cst_45 = arith.constant dense<0.000000e+00> : vector<4x2xf32>
    %69 = tpu.matmul %67, %68, %cst_45 {dimension_numbers = #tpu.dot_dimension_numbers<[1], [0], [0], [1], [0, 0, 1, 1], [], []>} : vector<4x40xbf16>, vector<40x2xbf16>, vector<4x2xf32> -> vector<4x2xf32>
    %70 = arith.addf %35, %69 : vector<4x2xf32>
    %cst_46 = arith.constant 0.000000e+00 : f32
    %71 = vector.broadcast %cst_46 : f32 to vector<48x40xf32>
    %72 = vector.extract_strided_slice %1 {offsets = [0, 0], sizes = [48, 40], strides = [1, 1]} : vector<64x40xbf16> to vector<48x40xbf16>
    %c0_47 = arith.constant 0 : index
    %c0_48 = arith.constant 0 : index
    %c0_49 = arith.constant 0 : index
    %73 = vector.load %arg6[%c0_47, %c0_48, %c0_49] : memref<5x40x40xbf16, #tpu.memory_space<vmem>>, vector<1x40x40xbf16>
    %74 = vector.shape_cast %73 : vector<1x40x40xbf16> to vector<40x40xbf16>
    %cst_50 = arith.constant dense<0.000000e+00> : vector<48x40xf32>
    %75 = tpu.matmul %72, %74, %cst_50 {dimension_numbers = #tpu.dot_dimension_numbers<[1], [0], [0], [1], [0, 0, 1, 1], [], []>} : vector<48x40xbf16>, vector<40x40xbf16>, vector<48x40xf32> -> vector<48x40xf32>
    %76 = arith.addf %71, %75 : vector<48x40xf32>
    %77 = vector.extract_strided_slice %1 {offsets = [4, 0], sizes = [48, 40], strides = [1, 1]} : vector<64x40xbf16> to vector<48x40xbf16>
    %c1_51 = arith.constant 1 : index
    %c0_52 = arith.constant 0 : index
    %c0_53 = arith.constant 0 : index
    %78 = vector.load %arg6[%c1_51, %c0_52, %c0_53] : memref<5x40x40xbf16, #tpu.memory_space<vmem>>, vector<1x40x40xbf16>
    %79 = vector.shape_cast %78 : vector<1x40x40xbf16> to vector<40x40xbf16>
    %cst_54 = arith.constant dense<0.000000e+00> : vector<48x40xf32>
    %80 = tpu.matmul %77, %79, %cst_54 {dimension_numbers = #tpu.dot_dimension_numbers<[1], [0], [0], [1], [0, 0, 1, 1], [], []>} : vector<48x40xbf16>, vector<40x40xbf16>, vector<48x40xf32> -> vector<48x40xf32>
    %81 = arith.addf %76, %80 : vector<48x40xf32>
    %82 = vector.extract_strided_slice %1 {offsets = [8, 0], sizes = [48, 40], strides = [1, 1]} : vector<64x40xbf16> to vector<48x40xbf16>
    %c2_55 = arith.constant 2 : index
    %c0_56 = arith.constant 0 : index
    %c0_57 = arith.constant 0 : index
    %83 = vector.load %arg6[%c2_55, %c0_56, %c0_57] : memref<5x40x40xbf16, #tpu.memory_space<vmem>>, vector<1x40x40xbf16>
    %84 = vector.shape_cast %83 : vector<1x40x40xbf16> to vector<40x40xbf16>
    %cst_58 = arith.constant dense<0.000000e+00> : vector<48x40xf32>
    %85 = tpu.matmul %82, %84, %cst_58 {dimension_numbers = #tpu.dot_dimension_numbers<[1], [0], [0], [1], [0, 0, 1, 1], [], []>} : vector<48x40xbf16>, vector<40x40xbf16>, vector<48x40xf32> -> vector<48x40xf32>
    %86 = arith.addf %81, %85 : vector<48x40xf32>
    %87 = vector.extract_strided_slice %1 {offsets = [12, 0], sizes = [48, 40], strides = [1, 1]} : vector<64x40xbf16> to vector<48x40xbf16>
    %c3_59 = arith.constant 3 : index
    %c0_60 = arith.constant 0 : index
    %c0_61 = arith.constant 0 : index
    %88 = vector.load %arg6[%c3_59, %c0_60, %c0_61] : memref<5x40x40xbf16, #tpu.memory_space<vmem>>, vector<1x40x40xbf16>
    %89 = vector.shape_cast %88 : vector<1x40x40xbf16> to vector<40x40xbf16>
    %cst_62 = arith.constant dense<0.000000e+00> : vector<48x40xf32>
    %90 = tpu.matmul %87, %89, %cst_62 {dimension_numbers = #tpu.dot_dimension_numbers<[1], [0], [0], [1], [0, 0, 1, 1], [], []>} : vector<48x40xbf16>, vector<40x40xbf16>, vector<48x40xf32> -> vector<48x40xf32>
    %91 = arith.addf %86, %90 : vector<48x40xf32>
    %92 = vector.extract_strided_slice %1 {offsets = [16, 0], sizes = [48, 40], strides = [1, 1]} : vector<64x40xbf16> to vector<48x40xbf16>
    %c4 = arith.constant 4 : index
    %c0_63 = arith.constant 0 : index
    %c0_64 = arith.constant 0 : index
    %93 = vector.load %arg6[%c4, %c0_63, %c0_64] : memref<5x40x40xbf16, #tpu.memory_space<vmem>>, vector<1x40x40xbf16>
    %94 = vector.shape_cast %93 : vector<1x40x40xbf16> to vector<40x40xbf16>
    %cst_65 = arith.constant dense<0.000000e+00> : vector<48x40xf32>
    %95 = tpu.matmul %92, %94, %cst_65 {dimension_numbers = #tpu.dot_dimension_numbers<[1], [0], [0], [1], [0, 0, 1, 1], [], []>} : vector<48x40xbf16>, vector<40x40xbf16>, vector<48x40xf32> -> vector<48x40xf32>
    %96 = arith.addf %91, %95 : vector<48x40xf32>
    %c0_66 = arith.constant 0 : index
    %c0_67 = arith.constant 0 : index
    %97 = vector.load %arg7[%c0_66, %c0_67] : memref<1x40xf32, #tpu.memory_space<vmem>>, vector<1x40xf32>
    %98 = vector.broadcast %97 : vector<1x40xf32> to vector<48x40xf32>
    %99 = arith.addf %96, %98 : vector<48x40xf32>
    %cst_68 = arith.constant 0.000000e+00 : f32
    %100 = vector.broadcast %cst_68 : f32 to vector<48x40xf32>
    %101 = arith.cmpf ogt, %99, %100 : vector<48x40xf32>
    %cst_69 = arith.constant 1.000000e-01 : f32
    %102 = vector.broadcast %cst_69 : f32 to vector<48x40xf32>
    %103 = arith.mulf %102, %99 : vector<48x40xf32>
    %104 = arith.select %101, %99, %103 : vector<48x40xi1>, vector<48x40xf32>
    %105 = vector.shape_cast %104 : vector<48x40xf32> to vector<12x4x40xf32>
    %cst_70 = arith.constant dense<0xFF800000> : vector<4x40xf32>
    %106 = vector.multi_reduction <maximumf>, %105, %cst_70 [0] : vector<12x4x40xf32> to vector<4x40xf32>
    %107 = arith.truncf %106 : vector<4x40xf32> to vector<4x40xbf16>
    %c80 = arith.constant 80 : index
    %c0_71 = arith.constant 0 : index
    %108 = vector.load %arg8[%c80, %c0_71] : memref<120x2xbf16, #tpu.memory_space<vmem>>, vector<40x2xbf16>
    %cst_72 = arith.constant dense<0.000000e+00> : vector<4x2xf32>
    %109 = tpu.matmul %107, %108, %cst_72 {dimension_numbers = #tpu.dot_dimension_numbers<[1], [0], [0], [1], [0, 0, 1, 1], [], []>} : vector<4x40xbf16>, vector<40x2xbf16>, vector<4x2xf32> -> vector<4x2xf32>
    %110 = arith.addf %70, %109 : vector<4x2xf32>
    %c0_73 = arith.constant 0 : index
    %c0_74 = arith.constant 0 : index
    %111 = vector.load %arg10[%c0_73, %c0_74] : memref<4x2xf32, #tpu.memory_space<vmem>>, vector<4x2xf32>
    tpu.vector_store %arg10[%c0_73, %c0_74], %110 {strides = array<i32>} : memref<4x2xf32, #tpu.memory_space<vmem>>, vector<4x2xf32>,
    return
  }
  func.func @transform_0(%arg0: i32) -> (i32, i32, i32) {
    %c0_i32 = arith.constant 0 : i32
    %c0_i32_0 = arith.constant 0 : i32
    %c0_i32_1 = arith.constant 0 : i32
    return %c0_i32, %arg0, %c0_i32_0 : i32, i32, i32
  }
  func.func @transform_1(%arg0: i32) -> (i32, i32, i32) {
    %c0_i32 = arith.constant 0 : i32
    %c0_i32_0 = arith.constant 0 : i32
    %c0_i32_1 = arith.constant 0 : i32
    %c0_i32_2 = arith.constant 0 : i32
    return %c0_i32, %c0_i32_0, %c0_i32_1 : i32, i32, i32
  }
  func.func @transform_2(%arg0: i32) -> (i32, i32) {
    %c0_i32 = arith.constant 0 : i32
    %c0_i32_0 = arith.constant 0 : i32
    %c0_i32_1 = arith.constant 0 : i32
    return %c0_i32, %c0_i32_0 : i32, i32
  }
  func.func @transform_3(%arg0: i32) -> (i32, i32, i32) {
    %c0_i32 = arith.constant 0 : i32
    %c0_i32_0 = arith.constant 0 : i32
    %c0_i32_1 = arith.constant 0 : i32
    %c0_i32_2 = arith.constant 0 : i32
    return %c0_i32, %c0_i32_0, %c0_i32_1 : i32, i32, i32
  }
  func.func @transform_4(%arg0: i32) -> (i32, i32) {
    %c0_i32 = arith.constant 0 : i32
    %c0_i32_0 = arith.constant 0 : i32
    %c0_i32_1 = arith.constant 0 : i32
    return %c0_i32, %c0_i32_0 : i32, i32
  }
  func.func @transform_5(%arg0: i32) -> (i32, i32, i32) {
    %c0_i32 = arith.constant 0 : i32
    %c0_i32_0 = arith.constant 0 : i32
    %c0_i32_1 = arith.constant 0 : i32
    %c0_i32_2 = arith.constant 0 : i32
    return %c0_i32, %c0_i32_0, %c0_i32_1 : i32, i32, i32
  }
  func.func @transform_6(%arg0: i32) -> (i32, i32) {
    %c0_i32 = arith.constant 0 : i32
    %c0_i32_0 = arith.constant 0 : i32
    %c0_i32_1 = arith.constant 0 : i32
    return %c0_i32, %c0_i32_0 : i32, i32
  }
  func.func @transform_7(%arg0: i32) -> (i32, i32) {
    %c0_i32 = arith.constant 0 : i32
    %c0_i32_0 = arith.constant 0 : i32
    %c0_i32_1 = arith.constant 0 : i32
    return %c0_i32, %c0_i32_0 : i32, i32
  }
  func.func @transform_8(%arg0: i32) -> (i32, i32) {
    %c0_i32 = arith.constant 0 : i32
    %c0_i32_0 = arith.constant 0 : i32
    %c0_i32_1 = arith.constant 0 : i32
    return %c0_i32, %c0_i32_0 : i32, i32
  }
  func.func @transform_9(%arg0: i32) -> (i32, i32) {
    %c0_i32 = arith.constant 0 : i32
    %c0_i32_0 = arith.constant 0 : i32
    return %arg0, %c0_i32 : i32, i32
  }
}

</mosaic_0001>

<bundles_post_ra>
// kernel: tcnn_forward.3
= control target key start
LH: loop header
LB: loop body
LE: loop exit
PB: predicated region body
PF: predicated region fallthrough
CT: control target
= control target key end

     0   :  { %vm169_vm0 = vcmask 1043456   ;;  %v2301_v1 = vmov 1983009808   ;;  %v87_v3 = vlaneseq  ;;  %vm156_vm1 = vcmask 326656   ;;  %s2927_s1 = inlined_call_operand.vmem [shape: bf16[3,40,40], index: 1, kind: input, shape index: {}]   ;;  %s2928_s0 = inlined_call_operand.vmem [shape: bf16[16,4,40], index: 0, kind: input, shape index: {}]   ;;  %s2929_s7 = inlined_call_operand.vmem [shape: bf16[120,2], index: 7, kind: input, shape index: {}]   ;;  %s2930_s3 = inlined_call_operand.vmem [shape: bf16[4,40,40], index: 3, kind: input, shape index: {}]   ;;  %s2931_s2 = inlined_call_operand.vmem [shape: f32[1,40], index: 2, kind: input, shape index: {}]   ;;  %s2932_s5 = inlined_call_operand.vmem [shape: bf16[5,40,40], index: 5, kind: input, shape index: {}]   ;;  %s2933_s4 = inlined_call_operand.vmem [shape: f32[1,40], index: 4, kind: input, shape index: {}]   ;;  %s2934_s8 = inlined_call_operand.vmem [shape: f32[1,2], index: 8, kind: input, shape index: {}]   ;;  %s2935_s6 = inlined_call_operand.vmem [shape: f32[1,40], index: 6, kind: input, shape index: {}]   ;;  %s2936_s9 = inlined_call_operand.vmem [shape: f32[4,2], index: 9, kind: output, shape index: {}]  }
   0x1   :  { %v2256_v0 = vld [vmem:[%s2927_s1 + $0x24] ss:$0 sps:$4 sm:$0xff]   ;;  %v85_v2 = vunpack.c.l.s4 %v2301_v1  ;;  %v2257_v4 = vld [vmem:[%s2927_s1 + $0x10] ss:$0 sps:$4 sm:$0xff]   ;;  %v2258_v6 = vld [vmem:[%s2927_s1 + $0x1c] sm:$0xff]   ;;  %vm2303_vm2 = vmmov 0  }
   0x2   :  { %2246 = vmatprep.subr.msk.bf16.mxu0 %vm169_vm0, %v2256_v0  ;;  %v171_v5 = vsel %vm169_vm0, %v2256_v0, 0  ;;  %2247 = vmatprep.subr.msk.bf16.mxu1 %vm169_vm0, %v2257_v4  ;;  %v325_v8 = vsel %vm169_vm0, %v2257_v4, 0  ;;  %v2259_v9 = vld [vmem:[%s2927_s1 + $0x8] sm:$0xff]   ;;  %v2260_v10 = vld [vmem:[%s2927_s1 + $0x14] sm:$0xff]   ;;  %v88_v11 = vshrl.u32 %v87_v3, 7  ;;  %v2261_v12 = vld [vmem:[%s2927_s1] sm:$0xff]  }
   0x3   :  { %v86_v7 = vunpack.c.0.s8 %v85_v2  ;;  %2029 = vmatpush3.bf16.msra.mxu0 %v171_v5  ;;  %2043 = vmatpush3.bf16.msra.mxu1 %v325_v8  ;;  %v34_v13 = vld [vmem:[%s2928_s0 + $0x2] sm:$0x3]  ;;  %v35_v14 = vld [vmem:[%s2928_s0 + $0x4] sm:$0x3]  ;;  %v36_v15 = vld [vmem:[%s2928_s0 + $0x6] sm:$0x3] }
   0x4   :  { %2030 = vmatprep.subr.bf16.mxu0 %v2258_v6  ;;  %2044 = vmatprep.subr.bf16.mxu1 %v2259_v9  ;;  %v37_v16 = vld [vmem:[%s2928_s0 + $0x8] sm:$0x3]  ;;  %v38_v17 = vld [vmem:[%s2928_s0 + $0xa] sm:$0x3]  ;;  %v82_v18 = vcombine.low %v34_v13, %v35_v14  ;;  %v33_v22 = vld [vmem:[%s2928_s0] sm:$0x3]  ;;  %v239_v23 = vcombine.low %v35_v14, %v36_v15 }
   0x5   :  { %v2391_v19 = vsub.s32 %v86_v7, %v88_v11  ;;  %v83_v20 = vcombine.low %v36_v15, %v37_v16  ;;  %v255_v21 = vcombine.low %v37_v16, %v38_v17  ;;  %v39_v24 = vld [vmem:[%s2928_s0 + $0xc] sm:$0x3]  ;;  %v40_v25 = vld [vmem:[%s2928_s0 + $0xe] sm:$0x3]  ;;  %v238_v27 = vcombine.low %v33_v22, %v34_v13  ;;  %v41_v28 = vld [vmem:[%s2928_s0 + $0x10] sm:$0x3] }
   0x6   :  { %v99_v29 = vcombine.low %v38_v17, %v39_v24  ;;  %v2262_v30 = vld [vmem:[%s2927_s1 + $0x38] ss:$0 sps:$4 sm:$0xff]   ;;  %v100_v33 = vcombine.low %v40_v25, %v41_v28  ;;  %v256_v34 = vcombine.low %v39_v24, %v40_v25  ;;  %v42_v39 = vld [vmem:[%s2928_s0 + $0x12] sm:$0x3]  ;;  %v43_v40 = vld [vmem:[%s2928_s0 + $0x14] sm:$0x3] }
   0x7   :  { %2031 = vmatpush3.bf16.msra.mxu0 %v2258_v6  ;;  %2045 = vmatpush3.bf16.msra.mxu1 %v2259_v9  ;;  %v90_v26 = vrot.slane %v82_v18, %v2391_v19  ;;  %v2410_v31 = vrot.slane %v83_v20, %v2391_v19  ;;  %v253_v32 = vrot.slane %v239_v23, %v2391_v19  ;;  %v437_v38 = vsel %vm169_vm0, %v2262_v30, 0  ;;  %v44_v44 = vld [vmem:[%s2928_s0 + $0x16] sm:$0x3]  ;;  %v2436_v45 = vld [vmem:[%s2928_s0 + $0x18] sm:$0x3]  ;;  %v2264_v1 = vld [vmem:[%s2927_s1 + $0x28] sm:$0xff]  }
   0x8   :  { %2032 = vmatprep.subr.bf16.mxu0 %v2260_v10  ;;  %2046 = vmatprep.subr.bf16.mxu1 %v2261_v12  ;;  %v246_v35 = vrot.slane %v238_v27, %v2391_v19  ;;  %v2415_v36 = vrot.slane %v99_v29, %v2391_v19  ;;  %v263_v37 = vrot.slane %v255_v21, %v2391_v19  ;;  %v2441_v47 = vld [vmem:[%s2928_s0 + $0x1a] sm:$0x3]  ;;  %v2450_v51 = vld [vmem:[%s2928_s0 + $0x1c] sm:$0x3]  ;;  %v2263_v54 = vld [vmem:[%s2927_s1 + $0x30] sm:$0xff]   ;;  %v2302_v11 = vmov 0.0  }
   0x9   :  { %v2426_v41 = vcombine.low %v90_v26, %v2410_v31  ;;  %v114_v42 = vrot.slane %v100_v33, %v2391_v19  ;;  %v270_v43 = vrot.slane %v256_v34, %v2391_v19  ;;  %v116_v46 = vcombine.low %v42_v39, %v43_v40  ;;  %v48_v7 = vld [vmem:[%s2928_s0 + $0x1e] sm:$0x3]  ;;  %v2266_v13 = vld [vmem:[%s2929_s7 + $0x8] sm:$0xff]   ;;  %v2267_v14 = vld [vmem:[%s2930_s3 + $0x10] ss:$0 sps:$4 sm:$0xff]  }
   0xa   :  { %v2443_v48 = vcombine.low %v246_v35, %v253_v32  ;;  %v117_v49 = vcombine.low %v44_v44, %v2436_v45  ;;  %v272_v50 = vcombine.low %v41_v28, %v42_v39  ;;  %v273_v56 = vcombine.low %v43_v40, %v44_v44  ;;  %v2268_v15 = vld [vmem:[%s2929_s7] sm:$0xff]   ;;  %v2270_v18 = vld [vmem:[%s2930_s3 + $0x8] sm:$0xff]  }
   0xb   :  { %2033 = vmatpush3.bf16.msra.mxu0 %v2260_v10  ;;  %2047 = vmatpush3.bf16.msra.mxu1 %v2261_v12  ;;  %v2455_v52 = vcombine.low %v2415_v36, %v114_v42  ;;  %v2457_v53 = vcombine.low %v263_v37, %v270_v43  ;;  %v124_v55 = vrot.slane %v116_v46, %v2391_v19  ;;  %v2265_v10 = vld [vmem:[%s2929_s7 + $0x10] ss:$0 sps:$4 sm:$0xff]   ;;  %v791_v16 = vsel %vm169_vm0, %v2267_v14, 0  ;;  %v2547_v17 = vld [vmem:[%s2930_s3 + $0x24] ss:$0 sps:$4 sm:$0xff]   ;;  %v2278_v25 = vld [vmem:[%s2930_s3 + $0x3c] sm:$0xff]  }
   0xc   :  { %2248 = vmatprep.subr.msk.bf16.mxu0 %vm169_vm0, %v2262_v30  ;;  %2034 = vmatprep.mubr.msk.bf16.mxu0 %vm156_vm1, %v2426_v41  ;;  %v2466_v57 = vrot.slane %v117_v49, %v2391_v19  ;;  %v280_v58 = vrot.slane %v272_v50, %v2391_v19  ;;  %v133_v59 = vcombine.low %v2441_v47, %v2450_v51  ;;  %v619_v12 = vsel %vm169_vm0, %v2265_v10, 0  ;;  %v2272_v20 = vld [vmem:[%s2930_s3] sm:$0xff]   ;;  %v2275_v21 = vld [vmem:[%s2930_s3 + $0x4c] ss:$0 sps:$4 sm:$0xff]  }
   0xd   :  { %2048 = vmatprep.mubr.msk.bf16.mxu1 %vm156_vm1, %v2443_v48  ;;  %v2475_v60 = vcombine.low %v114_v42, %v124_v55  ;;  %v287_v61 = vrot.slane %v273_v56, %v2391_v19  ;;  %v289_v62 = vcombine.low %v2436_v45, %v2441_v47  ;;  %v2498_v4 = vcombine.low %v253_v32, %v263_v37  ;;  %v2276_v24 = vld [vmem:[%s2930_s3 + $0x44] sm:$0xff]   ;;  %v1829_v49 = vld [vmem:[%s2931_s2] ss:$0 sm:$0xff] }
   0xe   :  { %2035 = vmatmul.mubr.msk.bf16.vlgmr.msra.gmra.mxu0 %vm156_vm1, %v2455_v52  ;;  %2049 = vmatmul.mubr.msk.bf16.vlgmr.msra.gmra.mxu1 %vm156_vm1, %v2457_v53  ;;  %v2481_v63 = vcombine.low %v124_v55, %v2466_v57  ;;  %v2493_v2 = vrot.slane %v133_v59, %v2391_v19  ;;  %v2506_v5 = vcombine.low %v270_v43, %v280_v58  ;;  %v1006_v22 = vsel %vm169_vm0, %v2275_v21, 0 }
   0xf   :  { %2057 = vmatpush3.bf16.msra.mxu0 %v437_v38  ;;  %v2483_v0 = vcombine.low %v280_v58, %v287_v61  ;;  %v2496_v3 = vrot.slane %v289_v62, %v2391_v19  ;;  %v401_v8 = vcombine.low %v2450_v51, %v48_v7  ;;  %2070 = vmatprep.subr.bf16.mxu1 %v2302_v11  ;;  %vm566_vm7 = vcmask 322560  }
  0x10   :  { %2058 = vmatprep.subr.bf16.mxu0 %v2263_v54  ;;  %2038 = vmatprep.mubr.msk.bf16.mxu0 %vm156_vm1, %v2481_v63  ;;  %v771_v23 = vrot.slane %v2436_v45, %v2391_v19  ;;  %v2579_v26 = vcombine.low %v2410_v31, %v2415_v36  ;;  %v2588_v27 = vcombine.low %v2466_v57, %v2493_v2 }
  0x11   :  { %2052 = vmatprep.mubr.msk.bf16.mxu1 %vm156_vm1, %v2483_v0  ;;  %v2509_v6 = vcombine.low %v287_v61, %v2496_v3  ;;  %v2520_v9 = vrot.slane %v401_v8, %v2391_v19  ;;  %2071 = vmatpush3.bf16.msra.mxu1 %v619_v12  ;;  %v977_v28 = vrot.slane %v48_v7, %v2391_v19 }
  0x12   :  { %2072 = vmatprep.subr.bf16.mxu1 %v2302_v11 }
  0x13   :  { %2059 = vmatpush3.bf16.msra.mxu0 %v2263_v54 }
  0x14   :  { %2060 = vmatprep.subr.bf16.mxu0 %v2264_v1 }
  0x15   :  { %2073 = vmatpush3.bf16.msra.mxu1 %v2266_v13 }
  0x16   :  { %2039 = vmatmul.mubr.msk.bf16.gmra.mxu0 %vm156_vm1, %v2493_v2  ;;  %2053 = vmatmul.mubr.msk.bf16.gmra.mxu1 %vm156_vm1, %v2496_v3 }
  0x17   :  { %2061 = vmatpush3.bf16.msra.mxu0 %v2264_v1  ;;  %2062 = vmatprep.mubr.msk.bf16.mxu0 %vm156_vm1, %v2498_v4 }
  0x18   :  { %2074 = vmatprep.subr.bf16.mxu1 %v2302_v11  ;;  %2250 = vmatprep.subr.msk.bf16.mxu0 %vm169_vm0, %v2267_v14 }
  0x19   :  { %2075 = vmatpush3.bf16.msra.mxu1 %v2268_v15  ;;  %2076 = vmatprep.mubr.msk.bf16.mxu1 %vm2303_vm2, %v2302_v11 }
  0x1a   :  { %2249 = vmatprep.subr.msk.bf16.mxu1 %vm169_vm0, %v2547_v17 }
  0x1e   :  { %2063 = vmatmul.mubr.msk.bf16.vlgmr.msra.gmra.mxu0 %vm156_vm1, %v2506_v5 }
  0x1f   :  { %2066 = vmatprep.mubr.msk.bf16.mxu0 %vm156_vm1, %v2509_v6  ;;  %2095 = vmatpush3.bf16.msra.mxu0 %v791_v16 }
  0x20   :  { %2096 = vmatprep.subr.bf16.mxu0 %v2270_v18 }
  0x23   :  { %2097 = vmatpush3.bf16.msra.mxu0 %v2270_v18 }
  0x24   :  { %2098 = vmatprep.subr.bf16.mxu0 %v2272_v20 }
  0x26   :  { %2067 = vmatmul.mubr.msk.bf16.gmra.mxu0 %vm156_vm1, %v2520_v9 }
  0x27   :  { %2100 = vmatprep.mubr.msk.bf16.mxu0 %vm156_vm1, %v2443_v48  ;;  %2099 = vmatpush3.bf16.msra.mxu0 %v2272_v20 }
  0x28   :  { %2252 = vmatprep.subr.msk.bf16.mxu0 %vm169_vm0, %v2275_v21 }
  0x2e   :  { %2101 = vmatmul.mubr.msk.bf16.vlgmr.msra.gmra.mxu0 %vm156_vm1, %v2457_v53 }
  0x2f   :  { %2104 = vmatprep.mubr.msk.bf16.mxu0 %vm156_vm1, %v2483_v0  ;;  %2123 = vmatpush3.bf16.msra.mxu0 %v1006_v22 }
  0x30   :  { %2124 = vmatprep.subr.bf16.mxu0 %v2276_v24 }
  0x33   :  { %2125 = vmatpush3.bf16.msra.mxu0 %v2276_v24 }
  0x34   :  { %2126 = vmatprep.subr.bf16.mxu0 %v2278_v25 }
  0x36   :  { %2105 = vmatmul.mubr.msk.bf16.gmra.mxu0 %vm156_vm1, %v771_v23 }
  0x37   :  { %2127 = vmatpush3.bf16.msra.mxu0 %v2278_v25  ;;  %2128 = vmatprep.mubr.msk.bf16.mxu0 %vm156_vm1, %v2579_v26 }
  0x38   :  { %2146 = vmatprep.subr.bf16.mxu0 %v2302_v11 }
  0x3e   :  { %2129 = vmatmul.mubr.msk.bf16.vlgmr.msra.gmra.mxu0 %vm156_vm1, %v2475_v60 }
  0x3f   :  { %2132 = vmatprep.mubr.msk.bf16.mxu0 %vm156_vm1, %v2588_v27 }
  0x46   :  { %2133 = vmatmul.mubr.msk.bf16.gmra.mxu0 %vm156_vm1, %v977_v28 }
  0x47   :  { %2152 = vmatprep.mubr.msk.bf16.mxu0 %vm2303_vm2, %v2302_v11 }
  0xce   :  { %v2036_v29 = vpop.f32.mrf.mxu0  ;;  %v2050_v30 = vpop.f32.mrf.mxu1 }
  0xcf   :  { %v370_v45 = vadd.f32 %v2050_v30, %v2036_v29 }
  0xd0   :  { %v207_v31 = vpop.f32.mrf.mxu0  ;;  %v361_v32 = vpop.f32.mrf.mxu1 }
  0xd1   :  { %v362_v50 = vadd.f32 %v361_v32, %v207_v31 }
  0xd2   :  { %v2037_v33 = vpop.f32.mrf.mxu0  ;;  %v2051_v34 = vpop.f32.mrf.mxu1 }
  0xd3   :  { %v373_v56 = vadd.f32 %v2051_v34, %v2037_v33 }
  0xd4   :  { %v210_v35 = vpop.f32.mrf.mxu0  ;;  %v364_v36 = vpop.f32.mrf.mxu1 }
  0xd5   :  { %v365_v1 = vadd.f32 %v364_v36, %v210_v35 }
  0xd6   :  { %v2040_v37 = vpop.f32.mrf.mxu0  ;;  %v2054_v38 = vpop.f32.mrf.mxu1 }
  0xd7   :  { %v386_v8 = vadd.f32 %v2054_v38, %v2040_v37 }
  0xd8   :  { %v223_v39 = vpop.f32.mrf.mxu0  ;;  %v377_v40 = vpop.f32.mrf.mxu1 }
  0xd9   :  { %v378_v15 = vadd.f32 %v377_v40, %v223_v39 }
  0xda   :  { %v2041_v42 = vpop.f32.mrf.mxu0  ;;  %v2055_v43 = vpop.f32.mrf.mxu1 }
  0xdc   :  { %v226_v44 = vpop.f32.mrf.mxu0  ;;  %v380_v18 = vpop.f32.mrf.mxu1 }
  0xdd   :  { %v381_v30 = vadd.f32 %v380_v18, %v226_v44 }
  0xde   :  { %v2064_v46 = vpop.f32.mrf.mxu0 }
  0xdf   :  { %v505_v54 = vadd.f32 %v2064_v46, %v370_v45 }
  0xe0   :  { %v473_v55 = vpop.f32.mrf.mxu0 }
  0xe1   :  { %v519_v57 = vadd.f32 %v1829_v49, %v505_v54  ;;  %v503_v58 = vadd.f32 %v473_v55, %v362_v50 }
  0xe2   :  { %v2065_v59 = vpop.f32.mrf.mxu0 }
  0xe3   :  { %v517_v61 = vadd.f32 %v1829_v49, %v503_v58  ;;  %v506_v62 = vadd.f32 %v2065_v59, %v373_v56  ;;  %v533_v2 = vmul.f32 0.1, %v519_v57  ;;  %vm526_vm3 = vcmp.gt.f32.partialorder %v519_v57, 0.0 }
  0xe4   :  { %v476_v7 = vpop.f32.mrf.mxu0 }
  0xe5   :  { %v531_v10 = vmul.f32 0.1, %v517_v61  ;;  %v520_v12 = vadd.f32 %v1829_v49, %v506_v62  ;;  %vm524_vm4 = vcmp.gt.f32.partialorder %v517_v61, 0.0  ;;  %v504_v13 = vadd.f32 %v476_v7, %v365_v1 }
  0xe6   :  { %v2068_v14 = vpop.f32.mrf.mxu0  ;;  %v540_v20 = vsel %vm526_vm3, %v519_v57, %v533_v2 }
  0xe7   :  { %v509_v16 = vadd.f32 %v2068_v14, %v386_v8  ;;  %v518_v21 = vadd.f32 %v1829_v49, %v504_v13  ;;  %v538_v23 = vsel %vm524_vm4, %v517_v61, %v531_v10  ;;  %v534_v24 = vmul.f32 0.1, %v520_v12 }
  0xe8   :  { %v489_v22 = vpop.f32.mrf.mxu0  ;;  %vm527_vm5 = vcmp.gt.f32.partialorder %v520_v12, 0.0  ;;  %v554_v33 = vcombine.high %v540_v20, %v540_v20  ;;  %v552_v34 = vcombine.high %v538_v23, %v538_v23  ;;  %v567_v37 = vsel %vm566_vm7, %v538_v23, -inf }
  0xe9   :  { %v523_v25 = vadd.f32 %v1829_v49, %v509_v16  ;;  %v507_v28 = vadd.f32 %v489_v22, %v378_v15  ;;  %vm525_vm6 = vcmp.gt.f32.partialorder %v518_v21, 0.0  ;;  %v532_v31 = vmul.f32 0.1, %v518_v21 }
  0xea   :  { %v2069_v29 = vpop.f32.mrf.mxu0  ;;  %v541_v38 = vsel %vm527_vm5, %v520_v12, %v534_v24  ;;  %v571_v42 = vsel %vm566_vm7, %v540_v20, -inf  ;;  %v573_v50 = vsel %vm566_vm7, %v554_v33, -inf  ;;  %v568_v54 = vsel %vm566_vm7, %v552_v34, -inf }
  0xeb   :  { %v537_v32 = vmul.f32 0.1, %v523_v25  ;;  %vm530_vm8 = vcmp.gt.f32.partialorder %v523_v25, 0.0  ;;  %v521_v35 = vadd.f32 %v1829_v49, %v507_v28  ;;  %v539_v39 = vsel %vm525_vm6, %v518_v21, %v532_v31 }
  0xec   :  { %v492_v36 = vpop.f32.mrf.mxu0  ;;  %v553_v43 = vcombine.high %v539_v39, %v539_v39  ;;  %v572_v55 = vmax.f32 %v567_v37, %v571_v42  ;;  %v555_v56 = vcombine.high %v541_v38, %v541_v38  ;;  %v569_v57 = vsel %vm566_vm7, %v539_v39, -inf  ;;  %v2279_v39 = vld [vmem:[%s2930_s3 + $0x28] sm:$0xff]  }
  0xed   :  { %v508_v40 = vadd.f32 %v492_v36, %v381_v30  ;;  %v544_v45 = vsel %vm530_vm8, %v523_v25, %v537_v32  ;;  %vm528_vm9 = vcmp.gt.f32.partialorder %v521_v35, 0.0  ;;  %v535_v46 = vmul.f32 0.1, %v521_v35  ;;  %v2273_v36 = vld [vmem:[%s2930_s3 + $0x14] sm:$0xff]  }
  0xee   :  { %v570_v61 = vsel %vm566_vm7, %v553_v43, -inf  ;;  %v558_v62 = vcombine.high %v544_v45, %v544_v45  ;;  %v574_v7 = vmax.f32 %v568_v54, %v573_v50  ;;  %v577_v12 = vsel %vm566_vm7, %v555_v56, -inf }
  0xef   :  { %v522_v44 = vadd.f32 %v1829_v49, %v508_v40  ;;  %v542_v58 = vsel %vm528_vm9, %v521_v35, %v535_v46  ;;  %v575_v49 = vsel %vm566_vm7, %v541_v38, -inf  ;;  %v578_v18 = vmax.f32 %v570_v61, %v577_v12  ;;  %v2271_v35 = vld [vmem:[%s2930_s3 + $0x1c] sm:$0xff]   ;;  %v2277_v38 = vld [vmem:[%s2930_s3 + $0x30] sm:$0xff]  }
  0xf0   :  { %v556_v1 = vcombine.high %v542_v58, %v542_v58  ;;  %v579_v2 = vsel %vm566_vm7, %v542_v58, -inf  ;;  %v576_v16 = vmax.f32 %v569_v57, %v575_v49  ;;  %v587_v21 = vsel %vm566_vm7, %v544_v45, -inf  ;;  %v2283_v49 = vld [vmem:[%s2929_s7 + $0x24] ss:$0 sps:$4 sm:$0xff]   ;;  %v2286_v12 = vld [vmem:[%s2929_s7 + $0x14] sm:$0xff]  }
  0xf1   :  { %vm529_vm10 = vcmp.gt.f32.partialorder %v522_v44, 0.0  ;;  %v536_v59 = vmul.f32 0.1, %v522_v44  ;;  %v580_v8 = vmax.f32 %v572_v55, %v579_v2  ;;  %v589_v22 = vsel %vm566_vm7, %v558_v62, -inf  ;;  %v2281_v2 = vld [vmem:[%s2932_s5 + $0x1c] sm:$0xff]  }
  0xf2   :  { %v581_v13 = vsel %vm566_vm7, %v556_v1, -inf  ;;  %v699_v34 = vsel %vm169_vm0, %v2547_v17, 0  ;;  %v2274_v17 = vld [vmem:[%s2930_s3 + $0x38] ss:$0 sps:$4 sm:$0xff]   ;;  %v679_v40 = vrot.slane %v2441_v47, %v2391_v19  ;;  %v869_v42 = vrot.slane %v2450_v51, %v2391_v19  ;;  %v2654_v47 = vpop.f32.mrf.mxu0 }
  0xf3   :  { %v543_v10 = vsel %vm529_vm10, %v522_v44, %v536_v59  ;;  %v582_v20 = vmax.f32 %v574_v7, %v581_v13  ;;  %v588_v24 = vmax.f32 %v580_v8, %v587_v21  ;;  %v889_v37 = vsel %vm169_vm0, %v2274_v17, 0  ;;  %v2280_v59 = vld [vmem:[%s2932_s5 + $0x24] ss:$0 sps:$4 sm:$0xff]   ;;  %v2282_v7 = vld [vmem:[%s2932_s5 + $0x14] sm:$0xff]  }
  0xf4   :  { %v557_v14 = vcombine.high %v543_v10, %v543_v10  ;;  %v583_v15 = vsel %vm566_vm7, %v543_v10, -inf  ;;  %v2656_v43 = vpop.f32.mrf.mxu0  ;;  %v1252_v62 = vsel %vm169_vm0, %v2280_v59, 0  ;;  %v1182_v8 = vsel %vm169_vm0, %v2283_v49, 0  ;;  %v2285_v10 = vld [vmem:[%s2929_s7 + $0x1c] sm:$0xff]  }
  0xf5   :  { %v590_v25 = vmax.f32 %v582_v20, %v589_v22  ;;  %v584_v28 = vmax.f32 %v576_v16, %v583_v15  ;;  %2147 = vmatpush3.bf16.msra.mxu0 %v1252_v62  ;;  %vm1791_vm10 = vcmask 11264  }
  0xf6   :  { %v585_v23 = vsel %vm566_vm7, %v557_v14, -inf  ;;  %v2658_v45 = vpop.f32.mrf.mxu0  ;;  %2148 = vmatprep.subr.bf16.mxu0 %v2302_v11  ;;  %v2290_v14 = vld [vmem:[%s2932_s5 + $0x28] sm:$0xff]  }
  0xf7   :  { %v586_v29 = vmax.f32 %v578_v18, %v585_v23  ;;  %v591_v30 = vmax.f32 %v588_v24, %v590_v25 }
  0xf8   :  { %v2660_v46 = vpop.f32.mrf.mxu0 }
  0xf9   :  { %v592_v31 = vmax.f32 %v584_v28, %v586_v29  ;;  %2149 = vmatpush3.bf16.msra.mxu0 %v2281_v2 }
  0xfa   :  { %v2662_v44 = vpop.f32.mrf.mxu0  ;;  %2150 = vmatprep.subr.bf16.mxu0 %v2302_v11 }
  0xfb   :  { %v593_v32 = vmax.f32 %v591_v30, %v592_v31 }
  0xfc   :  { %v2664_v50 = vpop.f32.mrf.mxu0 }
  0xfd   :  { %v594_v33 = vpack.c.bf16 %v593_v32, %v593_v32  ;;  %2151 = vmatpush3.bf16.msra.mxu0 %v2282_v7 }
  0xfe   :  { %v2107_v54 = vpop.f32.mrf.mxu0  ;;  %2182 = vmatprep.subr.bf16.mxu0 %v2302_v11 }
  0xff   :  { %2077 = vmatmul.mubr.msk.bf16.vlgmr.msra.gmra.mxu1 %vm156_vm1, %v594_v33 }
 0x100   :  { %2081 = vmatpush3.bf16.msra.mxu1 %v699_v34  ;;  %2086 = vmatprep.mubr.msk.bf16.mxu1 %vm156_vm1, %v2426_v41  ;;  %v2666_v55 = vpop.f32.mrf.mxu0 }
 0x101   :  { %2082 = vmatprep.subr.bf16.mxu1 %v2271_v35  ;;  %2153 = vmatmul.mubr.msk.bf16.vlgmr.msra.gmra.mxu0 %vm156_vm1, %v2426_v41  ;;  %v2284_v41 = vld [vmem:[%s2932_s5 + $0x38] ss:$0 sps:$4 sm:$0xff]  }
 0x102   :  { %v2668_v19 = vpop.f32.mrf.mxu0  ;;  %2156 = vmatprep.mubr.msk.bf16.mxu0 %vm2303_vm2, %v2302_v11  ;;  %v1408_v13 = vsel %vm169_vm0, %v2284_v41, 0 }
 0x103   :  { %2183 = vmatpush3.bf16.msra.mxu0 %v1408_v13 }
 0x104   :  { %2083 = vmatpush3.bf16.msra.mxu1 %v2271_v35  ;;  %v2670_v51 = vpop.f32.mrf.mxu0  ;;  %2184 = vmatprep.subr.bf16.mxu0 %v2302_v11 }
 0x105   :  { %2084 = vmatprep.subr.bf16.mxu1 %v2273_v36 }
 0x106   :  { %v2672_v56 = vpop.f32.mrf.mxu0 }
 0x108   :  { %2085 = vmatpush3.bf16.msra.mxu1 %v2273_v36  ;;  %v2674_v57 = vpop.f32.mrf.mxu0 }
 0x109   :  { %2251 = vmatprep.subr.msk.bf16.mxu1 %vm169_vm0, %v2274_v17  ;;  %2157 = vmatmul.mubr.msk.bf16.gmra.mxu0 %vm156_vm1, %v2455_v52 }
 0x10a   :  { %v2676_v58 = vpop.f32.mrf.mxu0  ;;  %2160 = vmatprep.mubr.msk.bf16.mxu0 %vm2303_vm2, %v2302_v11 }
 0x10b   :  { %2087 = vmatmul.mubr.msk.bf16.vlgmr.msra.gmra.mxu1 %vm156_vm1, %v2455_v52  ;;  %v2287_v52 = vld [vmem:[%s2932_s5 + $0x30] sm:$0xff]  }
 0x10c   :  { %2109 = vmatpush3.bf16.msra.mxu1 %v889_v37  ;;  %2090 = vmatprep.mubr.msk.bf16.mxu1 %vm156_vm1, %v2481_v63  ;;  %v2681_v61 = vpop.f32.mrf.mxu0 }
 0x10d   :  { %2110 = vmatprep.subr.bf16.mxu1 %v2277_v38  ;;  %2185 = vmatpush3.bf16.msra.mxu0 %v2287_v52 }
 0x10e   :  { %v2135_v1 = vpop.f32.mrf.mxu0  ;;  %2186 = vmatprep.subr.bf16.mxu0 %v2302_v11 }
 0x110   :  { %2111 = vmatpush3.bf16.msra.mxu1 %v2277_v38  ;;  %v1877_v38 = vld [vmem:[%s2933_s4] ss:$0 sm:$0xff] }
 0x111   :  { %2112 = vmatprep.subr.bf16.mxu1 %v2279_v39  ;;  %2161 = vmatmul.mubr.msk.bf16.gmra.mxu0 %vm156_vm1, %v2481_v63  ;;  %v2293_v63 = vld [vmem:[%s2932_s5 + $0x60] ss:$0 sps:$4 sm:$0xff]  }
 0x112   :  { %2188 = vmatprep.mubr.msk.bf16.mxu0 %vm2303_vm2, %v2302_v11  ;;  %2187 = vmatpush3.bf16.msra.mxu0 %v2290_v14  ;;  %v1586_v15 = vsel %vm169_vm0, %v2293_v63, 0 }
 0x113   :  { %2091 = vmatmul.mubr.msk.bf16.gmra.mxu1 %vm156_vm1, %v679_v40  ;;  %2218 = vmatprep.subr.bf16.mxu0 %v2302_v11 }
 0x114   :  { %2113 = vmatpush3.bf16.msra.mxu1 %v2279_v39  ;;  %2114 = vmatprep.mubr.msk.bf16.mxu1 %vm156_vm1, %v2498_v4 }
 0x115   :  { %2136 = vmatprep.subr.bf16.mxu1 %v2302_v11 }
 0x119   :  { %2189 = vmatmul.mubr.msk.bf16.vlgmr.msra.gmra.mxu0 %vm156_vm1, %v2498_v4  ;;  %v2295_v4 = vld [vmem:[%s2932_s5 + $0x58] sm:$0xff]  }
 0x11a   :  { %2192 = vmatprep.mubr.msk.bf16.mxu0 %vm2303_vm2, %v2302_v11  ;;  %2219 = vmatpush3.bf16.msra.mxu0 %v1586_v15 }
 0x11b   :  { %2115 = vmatmul.mubr.msk.bf16.vlgmr.msra.gmra.mxu1 %vm156_vm1, %v2506_v5  ;;  %2220 = vmatprep.subr.bf16.mxu0 %v2302_v11 }
 0x11c   :  { %2118 = vmatprep.mubr.msk.bf16.mxu1 %vm156_vm1, %v2509_v6  ;;  %2137 = vmatpush3.bf16.msra.mxu1 %v1182_v8 }
 0x11d   :  { %2138 = vmatprep.subr.bf16.mxu1 %v2302_v11 }
 0x11e   :  { %2221 = vmatpush3.bf16.msra.mxu0 %v2295_v4 }
 0x11f   :  { %2222 = vmatprep.subr.bf16.mxu0 %v2302_v11 }
 0x120   :  { %2139 = vmatpush3.bf16.msra.mxu1 %v2285_v10 }
 0x121   :  { %2140 = vmatprep.subr.bf16.mxu1 %v2302_v11  ;;  %2193 = vmatmul.mubr.msk.bf16.gmra.mxu0 %vm156_vm1, %v2506_v5  ;;  %v2297_v5 = vld [vmem:[%s2932_s5 + $0x50] sm:$0xff]  }
 0x122   :  { %2196 = vmatprep.mubr.msk.bf16.mxu0 %vm2303_vm2, %v2302_v11  ;;  %2223 = vmatpush3.bf16.msra.mxu0 %v2297_v5 }
 0x123   :  { %2119 = vmatmul.mubr.msk.bf16.gmra.mxu1 %vm156_vm1, %v869_v42 }
 0x124   :  { %2142 = vmatprep.mubr.msk.bf16.mxu1 %vm2303_vm2, %v2302_v11  ;;  %2141 = vmatpush3.bf16.msra.mxu1 %v2286_v12 }
 0x125   :  { %2164 = vmatprep.subr.bf16.mxu1 %v2302_v11 }
 0x129   :  { %2197 = vmatmul.mubr.msk.bf16.gmra.mxu0 %vm156_vm1, %v2509_v6  ;;  %v1566_v6 = vcombine.low %v2496_v3, %v2520_v9 }
 0x12a   :  { %2224 = vmatprep.mubr.msk.bf16.mxu0 %vm2303_vm2, %v2302_v11 }
 0x131   :  { %2225 = vmatmul.mubr.msk.bf16.vlgmr.msra.gmra.mxu0 %vm156_vm1, %v2457_v53 }
 0x132   :  { %2228 = vmatprep.mubr.msk.bf16.mxu0 %vm2303_vm2, %v2302_v11 }
 0x139   :  { %2229 = vmatmul.mubr.msk.bf16.gmra.mxu0 %vm156_vm1, %v2483_v0 }
 0x13a   :  { %2232 = vmatprep.mubr.msk.bf16.mxu0 %vm2303_vm2, %v2302_v11 }
 0x141   :  { %2233 = vmatmul.mubr.msk.bf16.gmra.mxu0 %vm156_vm1, %v1566_v6 }
 0x1bf   :  { %v2766_v16 = vpop.f32.mrf.mxu1 }
 0x1c1   :  { %v2078_v18 = vpop.f32.mrf.mxu1 }
 0x1c3   :  { %v658_v20 = vpop.f32.mrf.mxu1 }
 0x1c5   :  { %v2079_v21 = vpop.f32.mrf.mxu1 }
 0x1cb   :  { %v2088_v22 = vpop.f32.mrf.mxu1 }
 0x1cc   :  { %v836_v32 = vadd.f32 %v2654_v47, %v2088_v22 }
 0x1cd   :  { %v735_v23 = vpop.f32.mrf.mxu1 }
 0x1ce   :  { %v828_v3 = vadd.f32 %v2656_v43, %v735_v23 }
 0x1cf   :  { %v2089_v24 = vpop.f32.mrf.mxu1 }
 0x1d0   :  { %v839_v35 = vadd.f32 %v2658_v45, %v2089_v24 }
 0x1d1   :  { %v738_v25 = vpop.f32.mrf.mxu1 }
 0x1d2   :  { %v831_v42 = vadd.f32 %v2660_v46, %v738_v25 }
 0x1d3   :  { %v2092_v28 = vpop.f32.mrf.mxu1 }
 0x1d4   :  { %v852_v59 = vadd.f32 %v2662_v44, %v2092_v28 }
 0x1d5   :  { %v751_v29 = vpop.f32.mrf.mxu1 }
 0x1d7   :  { %v2093_v30 = vpop.f32.mrf.mxu1 }
 0x1d9   :  { %v754_v31 = vpop.f32.mrf.mxu1 }
 0x1da   :  { %v847_v13 = vadd.f32 %v2666_v55, %v754_v31 }
 0x1db   :  { %v2116_v33 = vpop.f32.mrf.mxu1 }
 0x1dc   :  { %v957_v9 = vadd.f32 %v2116_v33, %v836_v32 }
 0x1dd   :  { %v925_v34 = vpop.f32.mrf.mxu1 }
 0x1de   :  { %v955_v36 = vadd.f32 %v925_v34, %v828_v3  ;;  %v1074_v17 = vadd.f32 %v2668_v19, %v957_v9  ;;  %v844_v19 = vadd.f32 %v2664_v50, %v751_v29 }
 0x1df   :  { %v2117_v37 = vpop.f32.mrf.mxu1 }
 0x1e0   :  { %v1072_v39 = vadd.f32 %v2670_v51, %v955_v36  ;;  %v958_v40 = vadd.f32 %v2117_v37, %v839_v35  ;;  %v1088_v45 = vadd.f32 %v1877_v38, %v1074_v17 }
 0x1e1   :  { %v928_v47 = vpop.f32.mrf.mxu1 }
 0x1e2   :  { %v1086_v54 = vadd.f32 %v1877_v38, %v1072_v39  ;;  %v1075_v43 = vadd.f32 %v2672_v56, %v958_v40  ;;  %v956_v62 = vadd.f32 %v928_v47, %v831_v42  ;;  %v1102_v46 = vmul.f32 0.1, %v1088_v45 }
 0x1e3   :  { %v2120_v1 = vpop.f32.mrf.mxu1  ;;  %vm1095_vm12 = vcmp.gt.f32.partialorder %v1088_v45, 0.0 }
 0x1e4   :  { %v1100_v2 = vmul.f32 0.1, %v1086_v54  ;;  %v1089_v7 = vadd.f32 %v1877_v38, %v1075_v43  ;;  %v1073_v49 = vadd.f32 %v2674_v57, %v956_v62  ;;  %v961_v8 = vadd.f32 %v2120_v1, %v852_v59 }
 0x1e5   :  { %v941_v51 = vpop.f32.mrf.mxu1  ;;  %vm1093_vm11 = vcmp.gt.f32.partialorder %v1086_v54, 0.0  ;;  %v1109_v4 = vsel %vm1095_vm12, %v1088_v45, %v1102_v46 }
 0x1e6   :  { %v959_v10 = vadd.f32 %v941_v51, %v844_v19  ;;  %v1087_v41 = vadd.f32 %v1877_v38, %v1073_v49  ;;  %v1078_v56 = vadd.f32 %v2676_v58, %v961_v8  ;;  %v1107_v52 = vsel %vm1093_vm11, %v1086_v54, %v1100_v2  ;;  %v1061_v58 = vpop.f32.mrf.mxu0 }
 0x1e7   :  { %v2121_v12 = vpop.f32.mrf.mxu1  ;;  %v1103_v50 = vmul.f32 0.1, %v1089_v7  ;;  %vm1096_vm14 = vcmp.gt.f32.partialorder %v1089_v7, 0.0  ;;  %v1120_v6 = vcombine.high %v1107_v52, %v1107_v52  ;;  %v1132_v18 = vsel %vm566_vm7, %v1107_v52, -inf }
 0x1e8   :  { %v1076_v44 = vadd.f32 %v2681_v61, %v959_v10  ;;  %vm1094_vm13 = vcmp.gt.f32.partialorder %v1087_v41, 0.0  ;;  %v1101_v57 = vmul.f32 0.1, %v1087_v41  ;;  %v1092_v63 = vadd.f32 %v1877_v38, %v1078_v56  ;;  %v2288_v10 = vld [vmem:[%s2932_s5 + $0x10] ss:$0 sps:$4 sm:$0xff]   ;;  %v2289_v56 = vld [vmem:[%s2932_s5 + $0x8] sm:$0xff]  }
 0x1e9   :  { %v944_v14 = vpop.f32.mrf.mxu1  ;;  %v1110_v21 = vsel %vm1096_vm14, %v1089_v7, %v1103_v50  ;;  %v1122_v23 = vcombine.high %v1109_v4, %v1109_v4  ;;  %v1136_v24 = vsel %vm566_vm7, %v1109_v4, -inf  ;;  %v1133_v31 = vsel %vm566_vm7, %v1120_v6, -inf  ;;  %v2294_v50 = vld [vmem:[%s2932_s5 + $0x44] sm:$0xff]  }
 0x1ea   :  { %v1090_v15 = vadd.f32 %v1877_v38, %v1076_v44  ;;  %v960_v5 = vadd.f32 %v944_v14, %v847_v13  ;;  %v1108_v20 = vsel %vm1094_vm13, %v1087_v41, %v1101_v57  ;;  %v1106_v61 = vmul.f32 0.1, %v1092_v63  ;;  %v2291_v44 = vld [vmem:[%s2932_s5] sm:$0xff]   ;;  %v2292_v13 = vld [vmem:[%s2932_s5 + $0x4c] ss:$0 sps:$4 sm:$0xff]  }
 0x1eb   :  { %v1121_v25 = vcombine.high %v1108_v20, %v1108_v20  ;;  %vm1099_vm3 = vcmp.gt.f32.partialorder %v1092_v63, 0.0  ;;  %v1137_v28 = vmax.f32 %v1132_v18, %v1136_v24  ;;  %v1123_v32 = vcombine.high %v1110_v21, %v1110_v21  ;;  %v2296_v14 = vld [vmem:[%s2932_s5 + $0x3c] sm:$0xff]  }
 0x1ec   :  { %vm1097_vm15 = vcmp.gt.f32.partialorder %v1090_v15, 0.0  ;;  %v1104_v22 = vmul.f32 0.1, %v1090_v15  ;;  %v1077_v55 = vadd.f32 %v1061_v58, %v960_v5  ;;  %v1113_v9 = vsel %vm1099_vm3, %v1092_v63, %v1106_v61 }
 0x1ed   :  { %v1138_v36 = vsel %vm566_vm7, %v1122_v23, -inf  ;;  %v1134_v17 = vsel %vm566_vm7, %v1108_v20, -inf  ;;  %v1135_v37 = vsel %vm566_vm7, %v1121_v25, -inf  ;;  %v1142_v47 = vsel %vm566_vm7, %v1123_v32, -inf }
 0x1ee   :  { %v1111_v29 = vsel %vm1097_vm15, %v1090_v15, %v1104_v22  ;;  %v1091_v30 = vadd.f32 %v1877_v38, %v1077_v55  ;;  %v1139_v40 = vmax.f32 %v1133_v31, %v1138_v36  ;;  %v1140_v38 = vsel %vm566_vm7, %v1110_v21, -inf }
 0x1ef   :  { %v1124_v33 = vcombine.high %v1111_v29, %v1111_v29  ;;  %v1144_v3 = vsel %vm566_vm7, %v1111_v29, -inf  ;;  %v1152_v54 = vsel %vm566_vm7, %v1113_v9, -inf  ;;  %v1141_v45 = vmax.f32 %v1134_v17, %v1140_v38 }
 0x1f0   :  { %v1145_v34 = vmax.f32 %v1137_v28, %v1144_v3  ;;  %vm1098_vm4 = vcmp.gt.f32.partialorder %v1091_v30, 0.0  ;;  %v1105_v35 = vmul.f32 0.1, %v1091_v30  ;;  %v1143_v62 = vmax.f32 %v1135_v37, %v1142_v47  ;;  %v2300_v47 = vld [vmem:[%s2929_s7 + $0x28] sm:$0xff]  }
 0x1f1   :  { %v1146_v39 = vsel %vm566_vm7, %v1124_v33, -inf  ;;  %v1327_v12 = vsel %vm169_vm0, %v2288_v10, 0  ;;  %v1495_v52 = vsel %vm169_vm0, %v2292_v13, 0 }
 0x1f2   :  { %v1112_v42 = vsel %vm1098_vm4, %v1091_v30, %v1105_v35  ;;  %v1147_v1 = vmax.f32 %v1139_v40, %v1146_v39  ;;  %v1153_v19 = vmax.f32 %v1145_v34, %v1152_v54  ;;  %v2298_v40 = vld [vmem:[%s2929_s7 + $0x38] ss:$0 sps:$4 sm:$0xff]   ;;  %v1797_v54 = vld [vmem:[%s2934_s8] ss:$0 sm:$0xff] }
 0x1f3   :  { %v1125_v43 = vcombine.high %v1112_v42, %v1112_v42  ;;  %v1148_v59 = vsel %vm566_vm7, %v1112_v42, -inf  ;;  %v1748_v38 = vsel %vm169_vm0, %v2298_v40, 0  ;;  %v2299_v42 = vld [vmem:[%s2929_s7 + $0x30] sm:$0xff]  }
 0x1f4   :  { %v1149_v7 = vmax.f32 %v1141_v45, %v1148_v59  ;;  %v1154_v8 = vmax.f32 %v1153_v19, %v1147_v1 }
 0x1f5   :  { %v1150_v2 = vsel %vm566_vm7, %v1125_v43, -inf  ;;  %v661_v43 = vadd.f32 %v1797_v54, %v2766_v16 }
 0x1f6   :  { %v1151_v49 = vmax.f32 %v1143_v62, %v1150_v2 }
 0x1f8   :  { %v1155_v51 = vmax.f32 %v1149_v7, %v1151_v49 }
 0x1fa   :  { %v1156_v46 = vmax.f32 %v1154_v8, %v1155_v51 }
 0x1fc   :  { %v1157_v41 = vpack.c.bf16 %v1156_v46, %v1156_v46 }
 0x1fe   :  { %2143 = vmatmul.mubr.msk.bf16.vlgmr.msra.gmra.mxu1 %vm156_vm1, %v1157_v41 }
 0x1ff   :  { %2165 = vmatpush3.bf16.msra.mxu1 %v1327_v12  ;;  %2170 = vmatprep.mubr.msk.bf16.mxu1 %vm2303_vm2, %v2302_v11 }
 0x200   :  { %2166 = vmatprep.subr.bf16.mxu1 %v2302_v11 }
 0x203   :  { %2167 = vmatpush3.bf16.msra.mxu1 %v2289_v56 }
 0x204   :  { %2168 = vmatprep.subr.bf16.mxu1 %v2302_v11 }
 0x207   :  { %2169 = vmatpush3.bf16.msra.mxu1 %v2291_v44 }
 0x208   :  { %2200 = vmatprep.subr.bf16.mxu1 %v2302_v11 }
 0x20a   :  { %2171 = vmatmul.mubr.msk.bf16.vlgmr.msra.gmra.mxu1 %vm156_vm1, %v2443_v48  ;;  %v2846_v48 = vpop.f32.mrf.mxu0 }
 0x20b   :  { %2201 = vmatpush3.bf16.msra.mxu1 %v1495_v52  ;;  %2174 = vmatprep.mubr.msk.bf16.mxu1 %vm2303_vm2, %v2302_v11 }
 0x20c   :  { %2202 = vmatprep.subr.bf16.mxu1 %v2302_v11 }
 0x20f   :  { %2203 = vmatpush3.bf16.msra.mxu1 %v2294_v50 }
 0x210   :  { %2204 = vmatprep.subr.bf16.mxu1 %v2302_v11 }
 0x212   :  { %2175 = vmatmul.mubr.msk.bf16.gmra.mxu1 %vm156_vm1, %v2457_v53  ;;  %v2154_v53 = vpop.f32.mrf.mxu0 }
 0x213   :  { %2178 = vmatprep.mubr.msk.bf16.mxu1 %vm2303_vm2, %v2302_v11  ;;  %2205 = vmatpush3.bf16.msra.mxu1 %v2296_v14 }
 0x214   :  { %2236 = vmatprep.subr.bf16.mxu1 %v2302_v11 }
 0x21a   :  { %2179 = vmatmul.mubr.msk.bf16.gmra.mxu1 %vm156_vm1, %v2483_v0  ;;  %v2850_v0 = vpop.f32.mrf.mxu0 }
 0x21b   :  { %2206 = vmatprep.mubr.msk.bf16.mxu1 %vm2303_vm2, %v2302_v11 }
 0x222   :  { %2207 = vmatmul.mubr.msk.bf16.vlgmr.msra.gmra.mxu1 %vm156_vm1, %v2579_v26  ;;  %v2155_v26 = vpop.f32.mrf.mxu0 }
 0x223   :  { %2210 = vmatprep.mubr.msk.bf16.mxu1 %vm2303_vm2, %v2302_v11  ;;  %2237 = vmatpush3.bf16.msra.mxu1 %v1748_v38 }
 0x224   :  { %v2854_v57 = vpop.f32.mrf.mxu0  ;;  %2238 = vmatprep.subr.bf16.mxu1 %v2302_v11 }
 0x226   :  { %v2158_v63 = vpop.f32.mrf.mxu0 }
 0x227   :  { %2239 = vmatpush3.bf16.msra.mxu1 %v2299_v42 }
 0x228   :  { %v2856_v15 = vpop.f32.mrf.mxu0  ;;  %2240 = vmatprep.subr.bf16.mxu1 %v2302_v11 }
 0x22a   :  { %2211 = vmatmul.mubr.msk.bf16.gmra.mxu1 %vm156_vm1, %v2475_v60  ;;  %v2159_v60 = vpop.f32.mrf.mxu0 }
 0x22b   :  { %2214 = vmatprep.mubr.msk.bf16.mxu1 %vm2303_vm2, %v2302_v11  ;;  %2241 = vmatpush3.bf16.msra.mxu1 %v2300_v47 }
 0x22c   :  { %v2858_v4 = vpop.f32.mrf.mxu0 }
 0x22e   :  { %v2162_v5 = vpop.f32.mrf.mxu0 }
 0x230   :  { %v2860_v6 = vpop.f32.mrf.mxu0 }
 0x232   :  { %2215 = vmatmul.mubr.msk.bf16.gmra.mxu1 %vm156_vm1, %v2588_v27  ;;  %v2163_v18 = vpop.f32.mrf.mxu0 }
 0x233   :  { %2242 = vmatprep.mubr.msk.bf16.mxu1 %vm2303_vm2, %v2302_v11 }
 0x234   :  { %v1444_v20 = vpop.f32.mrf.mxu0 }
 0x236   :  { %v2190_v27 = vpop.f32.mrf.mxu0 }
 0x238   :  { %v1447_v58 = vpop.f32.mrf.mxu0 }
 0x23a   :  { %v2191_v21 = vpop.f32.mrf.mxu0 }
 0x23c   :  { %v2862_v61 = vpop.f32.mrf.mxu0 }
 0x23e   :  { %v2194_v22 = vpop.f32.mrf.mxu0 }
 0x240   :  { %v2864_v55 = vpop.f32.mrf.mxu0 }
 0x242   :  { %v2195_v23 = vpop.f32.mrf.mxu0 }
 0x244   :  { %v2866_v24 = vpop.f32.mrf.mxu0 }
 0x246   :  { %v2198_v25 = vpop.f32.mrf.mxu0 }
 0x248   :  { %v2868_v28 = vpop.f32.mrf.mxu0 }
 0x24a   :  { %v2199_v29 = vpop.f32.mrf.mxu0 }
 0x24c   :  { %v1622_v30 = vpop.f32.mrf.mxu0 }
 0x24e   :  { %v2226_v31 = vpop.f32.mrf.mxu0 }
 0x250   :  { %v1625_v32 = vpop.f32.mrf.mxu0 }
 0x252   :  { %v2227_v33 = vpop.f32.mrf.mxu0 }
 0x254   :  { %v1630_v3 = vpop.f32.mrf.mxu0 }
 0x256   :  { %v2230_v9 = vpop.f32.mrf.mxu0 }
 0x258   :  { %v2870_v34 = vpop.f32.mrf.mxu0 }
 0x25a   :  { %v2231_v35 = vpop.f32.mrf.mxu0 }
 0x25c   :  { %v2872_v36 = vpop.f32.mrf.mxu0 }
 0x25e   :  { %v2234_v17 = vpop.f32.mrf.mxu0 }
 0x260   :  { %v2874_v37 = vpop.f32.mrf.mxu0 }
 0x262   :  { %v2235_v39 = vpop.f32.mrf.mxu0 }
 0x2be   :  { %v1218_v59 = vpop.f32.mrf.mxu1 }
 0x2bf   :  { %v2892_v45 = vadd.f32 %v1218_v59, %v661_v43 }
 0x2c0   :  { %v2144_v62 = vpop.f32.mrf.mxu1 }
 0x2c2   :  { %v1221_v1 = vpop.f32.mrf.mxu1 }
 0x2c4   :  { %v2145_v19 = vpop.f32.mrf.mxu1 }
 0x2ca   :  { %v1363_v2 = vpop.f32.mrf.mxu1 }
 0x2cb   :  { %v1364_v56 = vadd.f32 %v1363_v2, %v2846_v48  ;;  %v1932_v48 = vld [vmem:[%s2935_s6] ss:$0 sm:$0xff] }
 0x2cc   :  { %v2172_v7 = vpop.f32.mrf.mxu1 }
 0x2cd   :  { %v1467_v52 = vadd.f32 %v1444_v20, %v1364_v56 }
 0x2ce   :  { %v1366_v11 = vpop.f32.mrf.mxu1 }
 0x2cf   :  { %v1367_v13 = vadd.f32 %v1366_v11, %v2850_v0 }
 0x2d0   :  { %v2173_v49 = vpop.f32.mrf.mxu1 }
 0x2d1   :  { %v1468_v63 = vadd.f32 %v1447_v58, %v1367_v13 }
 0x2d2   :  { %v1371_v8 = vpop.f32.mrf.mxu1 }
 0x2d3   :  { %v1372_v26 = vadd.f32 %v1371_v8, %v2854_v57 }
 0x2d4   :  { %v2176_v51 = vpop.f32.mrf.mxu1 }
 0x2d5   :  { %v1469_v22 = vadd.f32 %v2862_v61, %v1372_v26 }
 0x2d6   :  { %v1374_v10 = vpop.f32.mrf.mxu1 }
 0x2d7   :  { %v1375_v21 = vadd.f32 %v1374_v10, %v2856_v15 }
 0x2d8   :  { %v2177_v46 = vpop.f32.mrf.mxu1 }
 0x2da   :  { %v1379_v41 = vpop.f32.mrf.mxu1 }
 0x2db   :  { %v1380_v57 = vadd.f32 %v1379_v41, %v2858_v4 }
 0x2dc   :  { %v2180_v12 = vpop.f32.mrf.mxu1 }
 0x2de   :  { %v1382_v44 = vpop.f32.mrf.mxu1 }
 0x2df   :  { %v1383_v15 = vadd.f32 %v1382_v44, %v2860_v6 }
 0x2e0   :  { %v2181_v16 = vpop.f32.mrf.mxu1 }
 0x2e1   :  { %v1472_v54 = vadd.f32 %v2868_v28, %v1383_v15 }
 0x2e2   :  { %v1531_v50 = vpop.f32.mrf.mxu1 }
 0x2e3   :  { %v1554_v14 = vadd.f32 %v1531_v50, %v1467_v52 }
 0x2e4   :  { %v2208_v53 = vpop.f32.mrf.mxu1 }
 0x2e5   :  { %v1645_v5 = vadd.f32 %v1622_v30, %v1554_v14  ;;  %v1470_v30 = vadd.f32 %v2864_v55, %v1375_v21 }
 0x2e6   :  { %v1534_v60 = vpop.f32.mrf.mxu1 }
 0x2e7   :  { %v1555_v18 = vadd.f32 %v1534_v60, %v1468_v63  ;;  %v1658_v23 = vadd.f32 %v1932_v48, %v1645_v5 }
 0x2e8   :  { %v2209_v27 = vpop.f32.mrf.mxu1 }
 0x2e9   :  { %v1646_v25 = vadd.f32 %v1625_v32, %v1555_v18  ;;  %v1670_v35 = vmul.f32 0.1, %v1658_v23  ;;  %vm1664_vm0 = vcmp.gt.f32.partialorder %v1658_v23, 0.0  ;;  %v1471_v32 = vadd.f32 %v2866_v24, %v1380_v57 }
 0x2ea   :  { %v1539_v0 = vpop.f32.mrf.mxu1 }
 0x2eb   :  { %v1556_v20 = vadd.f32 %v1539_v0, %v1469_v22  ;;  %v1659_v17 = vadd.f32 %v1932_v48, %v1646_v25  ;;  %v1676_v42 = vsel %vm1664_vm0, %v1658_v23, %v1670_v35 }
 0x2ec   :  { %v2212_v29 = vpop.f32.mrf.mxu1  ;;  %v1688_v24 = vcombine.high %v1676_v42, %v1676_v42 }
 0x2ed   :  { %v1647_v58 = vadd.f32 %v1630_v3, %v1556_v20  ;;  %v1671_v55 = vmul.f32 0.1, %v1659_v17  ;;  %vm1665_vm6 = vcmp.gt.f32.partialorder %v1659_v17, 0.0 }
 0x2ee   :  { %v1542_v31 = vpop.f32.mrf.mxu1  ;;  %v1701_v12 = vsel %vm566_vm7, %v1688_v24, -inf }
 0x2ef   :  { %v1660_v33 = vadd.f32 %v1932_v48, %v1647_v58  ;;  %v1557_v9 = vadd.f32 %v1542_v31, %v1470_v30  ;;  %v1677_v11 = vsel %vm1665_vm6, %v1659_v17, %v1671_v55 }
 0x2f0   :  { %v2213_v39 = vpop.f32.mrf.mxu1  ;;  %v1689_v46 = vcombine.high %v1677_v11, %v1677_v11  ;;  %v1702_v50 = vsel %vm566_vm7, %v1677_v11, -inf }
 0x2f1   :  { %v1672_v61 = vmul.f32 0.1, %v1660_v33  ;;  %v1648_v40 = vadd.f32 %v2870_v34, %v1557_v9  ;;  %vm1666_vm2 = vcmp.gt.f32.partialorder %v1660_v33, 0.0 }
 0x2f2   :  { %v1547_v38 = vpop.f32.mrf.mxu1  ;;  %v1703_v26 = vsel %vm566_vm7, %v1689_v46, -inf }
 0x2f3   :  { %v1661_v4 = vadd.f32 %v1932_v48, %v1648_v40  ;;  %v1558_v3 = vadd.f32 %v1547_v38, %v1471_v32  ;;  %v1678_v43 = vsel %vm1666_vm2, %v1660_v33, %v1672_v61 }
 0x2f4   :  { %v2216_v47 = vpop.f32.mrf.mxu1  ;;  %v1690_v2 = vcombine.high %v1678_v43, %v1678_v43  ;;  %v1704_v44 = vsel %vm566_vm7, %v1678_v43, -inf }
 0x2f5   :  { %vm1667_vm5 = vcmp.gt.f32.partialorder %v1661_v4, 0.0  ;;  %v1673_v6 = vmul.f32 0.1, %v1661_v4  ;;  %v1649_v59 = vadd.f32 %v2872_v36, %v1558_v3 }
 0x2f6   :  { %v1550_v62 = vpop.f32.mrf.mxu1  ;;  %v1706_v41 = vsel %vm566_vm7, %v1690_v2, -inf }
 0x2f7   :  { %v1679_v1 = vsel %vm1667_vm5, %v1661_v4, %v1673_v6  ;;  %v1662_v34 = vadd.f32 %v1932_v48, %v1649_v59  ;;  %v1559_v19 = vadd.f32 %v1550_v62, %v1472_v54  ;;  %v1707_v14 = vmax.f32 %v1701_v12, %v1706_v41 }
 0x2f8   :  { %v2217_v7 = vpop.f32.mrf.mxu1  ;;  %v1691_v51 = vcombine.high %v1679_v1, %v1679_v1  ;;  %v1708_v16 = vsel %vm566_vm7, %v1679_v1, -inf }
 0x2f9   :  { %vm1668_vm8 = vcmp.gt.f32.partialorder %v1662_v34, 0.0  ;;  %v1674_v49 = vmul.f32 0.1, %v1662_v34  ;;  %v1650_v8 = vadd.f32 %v2874_v37, %v1559_v19  ;;  %v1700_v37 = vsel %vm566_vm7, %v1676_v42, -inf }
 0x2fa   :  { %v1710_v13 = vsel %vm566_vm7, %v1691_v51, -inf  ;;  %v1705_v18 = vmax.f32 %v1700_v37, %v1704_v44  ;;  %v1709_v27 = vmax.f32 %v1702_v50, %v1708_v16 }
 0x2fb   :  { %v1680_v28 = vsel %vm1668_vm8, %v1662_v34, %v1674_v49  ;;  %v1663_v10 = vadd.f32 %v1932_v48, %v1650_v8  ;;  %v1711_v21 = vmax.f32 %v1703_v26, %v1710_v13 }
 0x2fc   :  { %v1692_v36 = vcombine.high %v1680_v28, %v1680_v28  ;;  %v1712_v63 = vsel %vm566_vm7, %v1680_v28, -inf }
 0x2fd   :  { %vm1669_vm9 = vcmp.gt.f32.partialorder %v1663_v10, 0.0  ;;  %v1675_v56 = vmul.f32 0.1, %v1663_v10  ;;  %v1713_v0 = vmax.f32 %v1705_v18, %v1712_v63 }
 0x2fe   :  { %v1714_v52 = vsel %vm566_vm7, %v1692_v36, -inf }
 0x2ff   :  { %v1681_v53 = vsel %vm1669_vm9, %v1663_v10, %v1675_v56  ;;  %v1715_v48 = vmax.f32 %v1707_v14, %v1714_v52 }
 0x300   :  { %v1693_v60 = vcombine.high %v1681_v53, %v1681_v53  ;;  %v1716_v5 = vsel %vm566_vm7, %v1681_v53, -inf }
 0x301   :  { %v1717_v20 = vmax.f32 %v1709_v27, %v1716_v5  ;;  %v1720_v25 = vmax.f32 %v1713_v0, %v1715_v48 }
 0x302   :  { %v1718_v22 = vsel %vm566_vm7, %v1693_v60, -inf }
 0x303   :  { %v1719_v23 = vmax.f32 %v1711_v21, %v1718_v22 }
 0x305   :  { %v1721_v29 = vmax.f32 %v1717_v20, %v1719_v23 }
 0x307   :  { %v1722_v57 = vmax.f32 %v1720_v25, %v1721_v29 }
 0x309   :  { %v1723_v58 = vpack.c.bf16 %v1722_v57, %v1722_v57 }
 0x30b   :  { %2243 = vmatmul.mubr.msk.bf16.vlgmr.msra.gmra.mxu1 %vm156_vm1, %v1723_v58 }
 0x3cb   :  { %v1784_v30 = vpop.f32.mrf.mxu1 }
 0x3cc   :  { %v1790_v31 = vadd.f32 %v1784_v30, %v2892_v45 }
 0x3cd   :  { %v2244_v33 = vpop.f32.mrf.mxu1 }
 0x3ce   :  { %1792 = vst.msk [vmem:[%s2936_s9] sm:$0xf] %vm1791_vm10, %v1790_v31 }
 0x3cf   :  { %v1787_v9 = vpop.f32.mrf.mxu1 }
 0x3d1   :  { %v2245_v15 = vpop.f32.mrf.mxu1 }

// kernel: tcnn_forward.2
= control target key start
LH: loop header
LB: loop body
LE: loop exit
PB: predicated region body
PF: predicated region fallthrough
CT: control target
= control target key end

     0   :  { %s19756_s24 = smov 0   ;;  %s22668_s0 = inlined_call_operand.vmem [shape: f32[16,4,40], index: 0, kind: input, shape index: {}]   ;;  %s22669_s1 = inlined_call_operand.vmem [shape: bf16[40,40], index: 1, kind: input, shape index: {}]   ;;  %s22670_s2 = inlined_call_operand.vmem [shape: f32[1,40], index: 2, kind: input, shape index: {}]   ;;  %s22671_s3 = inlined_call_operand.vmem [shape: bf16[40,40], index: 3, kind: input, shape index: {}]   ;;  %s22672_s4 = inlined_call_operand.vmem [shape: f32[1,40], index: 4, kind: input, shape index: {}]   ;;  %s22673_s5 = inlined_call_operand.vmem [shape: bf16[40,40], index: 5, kind: input, shape index: {}]   ;;  %s22674_s6 = inlined_call_operand.vmem [shape: f32[1,40], index: 6, kind: input, shape index: {}]   ;;  %s22675_s7 = inlined_call_operand.vmem [shape: bf16[40,40], index: 7, kind: input, shape index: {}]   ;;  %s22676_s8 = inlined_call_operand.vmem [shape: f32[1,40], index: 8, kind: input, shape index: {}]   ;;  %s22677_s9 = inlined_call_operand.vmem [shape: f32[1,40], index: 9, kind: input, shape index: {}]   ;;  %s22678_s10 = inlined_call_operand.vmem [shape: f32[1,40], index: 10, kind: input, shape index: {}]   ;;  %s22679_s11 = inlined_call_operand.vmem [shape: bf16[40,2048], index: 11, kind: input, shape index: {}]   ;;  %s22680_s12 = inlined_call_operand.vmem [shape: f32[1,2048], index: 12, kind: input, shape index: {}]   ;;  %s22681_s13 = inlined_call_operand.vmem [shape: bf16[2048,40], index: 13, kind: input, shape index: {}]   ;;  %s22682_s14 = inlined_call_operand.vmem [shape: f32[1,40], index: 14, kind: input, shape index: {}]   ;;  %s22683_s15 = inlined_call_operand.vmem [shape: f32[1,40], index: 15, kind: input, shape index: {}]   ;;  %s22684_s16 = inlined_call_operand.vmem [shape: f32[1,40], index: 16, kind: input, shape index: {}]   ;;  %s22685_s17 = inlined_call_operand.vmem [shape: bf16[16,4,40], index: 17, kind: output, shape index: {}]  }
   0x1   :  { %22696 = sst [smem:[#allocation9_spill]] %s22668_s0 }
   0x2   :  { %22697 = sst [smem:[#allocation10_spill]] %s22669_s1 }
   0x3 LB: > { %s17134_s25 = sadd.s32 4294967295, %s19659_s24   ;;  %p17138_p0 = scmp.ge.s32.totalorder %s19659_s24, 1  ;;  %s19659_s24 = sphi %s19756_s24, %s27_s24  }
   0x4   : > { %p488_p1 = scmp.lt.s32.totalorder %s19659_s24, 3 }
   0x6   : > { %p489_p2 = pnand %p17138_p0, %p488_p1 }
   0x8   : > { %492 = sbr.rel (%p489_p2) target bundleno = 6552 (0x1998), region = 88 }
   0xd   : > { %vm613_vm0 = vcmask 1043456   ;;  %v19125_v0 = vld [vmem:[%s22671_s3 + $0x10] ss:$0 sps:$4 sm:$0xff]   ;;  %v19127_v1 = vld [vmem:[%s22671_s3 + $0x8] sm:$0xff]   ;;  %s22698_s18 = sld [smem:[#allocation10_spill]]  ;;  %v19129_v6 = vld [vmem:[%s22671_s3] sm:$0xff]   ;;  %v856_v27 = vlaneseq }
   0xe   : > { %19109 = vmatprep.subr.msk.bf16.mxu1 %vm613_vm0, %v19125_v0  ;;  %v702_v3 = vsel %vm613_vm0, %v19125_v0, 0  ;;  %s17139_s22 = sshll.u32 %s17134_s25, 3  ;;  %v19135_v8 = vld [vmem:[%s22673_s5 + $0x10] ss:$0 sps:$4 sm:$0xff]   ;;  %vm606_vm1 = vcmask 326656   ;;  %s22699_s30 = sld [smem:[#allocation9_spill]] }
   0xf   : > { %18279 = vmatpush3.bf16.msra.mxu1 %v702_v3  ;;  %p541_p3 = scmp.lt.s32.totalorder %s17139_s22, 15  ;;  %v793_v9 = vsel %vm613_vm0, %v19135_v8, 0  ;;  %v19136_v22 = vld [vmem:[%s22673_s5 + $0x8] sm:$0xff]   ;;  %v19137_v25 = vld [vmem:[%s22673_s5] sm:$0xff]   ;;  %v19661_v26 = vmov 0.0   ;;  %vm19662_vm2 = vmmov 0  }
  0x10   : > { %18280 = vmatprep.subr.bf16.mxu1 %v19127_v1  ;;  %v19826_v28 = vand.u32 127, %v856_v27  ;;  %v17149_v31 = vld [vmem:[%s22672_s4] ss:$0 sm:$0xff]  ;;  %vm1487_vm7 = vcmask 27648   ;;  %vm2277_vm8 = vcmask 31744  }
  0x11   : > { %s22715_s22 = smov (!%p541_p3, %s17139_s22), 15  ;;  %v17143_v35 = vld [vmem:[%s22670_s2] ss:$0 sm:$0xff] }
  0x12   : > { %s17140_s29 = sshll.u32 %s22715_s22, 2  ;;  %vm859_vm3 = vcmp.lt.s32.totalorder %v19826_v28, 4  ;;  %v19873_v50 = vld [vmem:[%s22674_s6] ss:$0 sm:$0xff]  ;;  %vm1576_vm4 = vcmp.ge.s32.totalorder %v19826_v28, 4  ;;  %vm1577_vm5 = vcmp.lt.s32.totalorder %v19826_v28, 8 }
  0x13   : > { %v19126_v2 = vld [vmem:[%s22698_s18 + $0x10] ss:$0 sps:$4 sm:$0xff]   ;;  %v19128_v4 = vld [vmem:[%s22698_s18 + $0x8] sm:$0xff]   ;;  %v19132_v7 = vld [vmem:[%s22698_s18] sm:$0xff]   ;;  %18281 = vmatpush3.bf16.msra.mxu1 %v19127_v1  ;;  %v19838_v37 = vsel %vm859_vm3, 1.0, %v19661_v26  ;;  %vm3494_vm9 = vcmp.ge.s32.totalorder %v19826_v28, 8 }
  0x14   : > { %19108 = vmatprep.subr.msk.bf16.mxu0 %vm613_vm0, %v19126_v2  ;;  %v615_v5 = vsel %vm613_vm0, %v19126_v2, 0  ;;  %18282 = vmatprep.subr.bf16.mxu1 %v19129_v6  ;;  %s19796_s19 = scalar_lea.vmem %s22699_s30, %s17140_s29  ;;  %vm1578_vm6 = vmand %vm1576_vm4, %vm1577_vm5  ;;  %vm3495_vm10 = vcmp.lt.s32.totalorder %v19826_v28, 12  ;;  %vm4811_vm12 = vcmp.ge.s32.totalorder %v19826_v28, 12  ;;  %vm4812_vm13 = vcmp.lt.s32.totalorder %v19826_v28, 16  ;;  %s17142_s27 = sshll.u32 %s22715_s22, 1 }
  0x15   : > { %18269 = vmatpush3.bf16.msra.mxu0 %v615_v5  ;;  %v553_v10 = vld [vmem:[%s19796_s19] sm:$0xf]  ;;  %v554_v11 = vld [vmem:[%s19796_s19 + $0x4] sm:$0xf]  ;;  %v555_v12 = vld [vmem:[%s19796_s19 + $0x8] sm:$0xf]  ;;  %s22640_s25 = scalar_lea.vmem %s22685_s17, %s17142_s27 }
  0x16   : > { %18270 = vmatprep.subr.bf16.mxu0 %v19128_v4  ;;  %v556_v13 = vld [vmem:[%s19796_s19 + $0xc] sm:$0xf]  ;;  %v569_v14 = vcombine.low %v553_v10, %v554_v11  ;;  %v557_v15 = vld [vmem:[%s19796_s19 + $0x10] sm:$0xf]  ;;  %v558_v16 = vld [vmem:[%s19796_s19 + $0x14] sm:$0xf] }
  0x17   : > { %18283 = vmatpush3.bf16.msra.mxu1 %v19129_v6  ;;  %v570_v17 = vcombine.low %v555_v12, %v556_v13  ;;  %v559_v18 = vld [vmem:[%s19796_s19 + $0x18] sm:$0xf]  ;;  %v560_v19 = vld [vmem:[%s19796_s19 + $0x1c] sm:$0xf]  ;;  %v571_v20 = vcombine.low %v557_v15, %v558_v16  ;;  %v19956_v6 = vsel %vm1578_vm6, 1.0, %v19661_v26  ;;  %vm3496_vm11 = vmand %vm3494_vm9, %vm3495_vm10  ;;  %vm6128_vm15 = vcmp.ge.s32.totalorder %v19826_v28, 16 }
  0x18   : > { %v572_v21 = vcombine.low %v559_v18, %v560_v19  ;;  %18303 = vmatprep.subr.mxu1 %v19661_v26  ;;  %vm4813_vm14 = vmand %vm4811_vm12, %vm4812_vm13  ;;  %vm6129_vm3 = vcmp.lt.s32.totalorder %v19826_v28, 20  ;;  %vm7445_vm5 = vcmp.ge.s32.totalorder %v19826_v28, 20  ;;  %vm7446_vm6 = vcmp.lt.s32.totalorder %v19826_v28, 24 }
  0x19   : > { %18271 = vmatpush3.bf16.msra.mxu0 %v19128_v4  ;;  %v577_v23 = vpack.c.bf16 %v570_v17, %v569_v14  ;;  %vm6130_vm4 = vmand %vm6128_vm15, %vm6129_vm3  ;;  %vm8762_vm10 = vcmp.ge.s32.totalorder %v19826_v28, 24  ;;  %vm10079_vm13 = vcmp.ge.s32.totalorder %v19826_v28, 28  ;;  %vm11396_vm3 = vcmp.ge.s32.totalorder %v19826_v28, 32 }
  0x1a   : > { %18272 = vmatprep.subr.bf16.mxu0 %v19132_v7  ;;  %v578_v24 = vpack.c.bf16 %v572_v21, %v571_v20  ;;  %vm7447_vm9 = vmand %vm7445_vm5, %vm7446_vm6  ;;  %vm12713_vm6 = vcmp.ge.s32.totalorder %v19826_v28, 36 }
  0x1b   : > { %18284 = vmatprep.mubr.msk.bf16.mxu1 %vm606_vm1, %v577_v23  ;;  %18274 = vmatprep.mubr.msk.bf16.mxu0 %vm606_vm1, %v577_v23 }
  0x1c   : > { %18285 = vmatmul.mubr.msk.bf16.vlgmr.msra.gmra.mxu1 %vm606_vm1, %v578_v24 }
  0x1d   : > { %18273 = vmatpush3.bf16.msra.mxu0 %v19132_v7  ;;  %18305 = vmatprep.mubr.msk.f32.mxu1 %vm19662_vm2, %v19661_v26 }
  0x1e   : > { %19110 = vmatprep.subr.msk.bf16.mxu0 %vm613_vm0, %v19135_v8 }
  0x20   : > { %18275 = vmatmul.mubr.msk.bf16.vlgmr.msra.gmra.mxu0 %vm606_vm1, %v578_v24 }
  0x21   : > { %18289 = vmatpush3.bf16.msra.mxu0 %v793_v9  ;;  %18294 = vmatprep.mubr.msk.bf16.mxu0 %vm606_vm1, %v577_v23 }
  0x22   : > { %18290 = vmatprep.subr.bf16.mxu0 %v19136_v22 }
  0x25   : > { %18291 = vmatpush3.bf16.msra.mxu0 %v19136_v22 }
  0x26   : > { %18292 = vmatprep.subr.bf16.mxu0 %v19137_v25 }
  0x29   : > { %18293 = vmatpush3.bf16.msra.mxu0 %v19137_v25 }
  0x2a   : > { %18298 = vmatprep.subr.mxu0 %v19661_v26 }
  0x2c   : > { %18295 = vmatmul.mubr.msk.bf16.vlgmr.msra.gmra.mxu0 %vm606_vm1, %v578_v24 }
  0x2d   : > { %18300 = vmatprep.mubr.msk.f32.mxu0 %vm19662_vm2, %v19661_v26 }
  0xdc   : > { %v18286_v29 = vpop.f32.mrf.mxu1 }
  0xdd   : > { %v19848_v43 = vadd.f32 %v18286_v29, %v17149_v31 }
  0xde   : > { %v738_v32 = vpop.f32.mrf.mxu1 }
  0xdf   : > { %v19832_v34 = vadd.f32 %v17149_v31, %v738_v32  ;;  %v19877_v51 = vcombine.high %v19848_v43, %v19848_v43  ;;  %v867_v61 = vmul.f32 %v19838_v37, %v19848_v43  ;;  %v1585_v11 = vmul.f32 %v19956_v6, %v19848_v43 }
  0xe0   : > { %v18276_v30 = vpop.f32.mrf.mxu0  ;;  %v18287_v36 = vpop.f32.mrf.mxu1 }
  0xe1   : > { %v863_v39 = vmul.f32 %v19838_v37, %v19832_v34  ;;  %v19844_v40 = vcombine.high %v19832_v34, %v19832_v34  ;;  %v19879_v52 = vadd.f32 %v18287_v36, %v17149_v31  ;;  %v19894_v57 = vadd.f32 %v18276_v30, %v17143_v35 }
  0xe2   : > { %v651_v33 = vpop.f32.mrf.mxu0  ;;  %v741_v42 = vpop.f32.mrf.mxu1  ;;  %v868_v62 = vmul.f32 %v19838_v37, %v19877_v51  ;;  %v1581_v7 = vmul.f32 %v19956_v6, %v19832_v34  ;;  %v1586_v12 = vmul.f32 %v19956_v6, %v19877_v51 }
  0xe3   : > { %v19846_v41 = vadd.f32 %v17143_v35, %v651_v33  ;;  %v19850_v44 = vadd.f32 %v17149_v31, %v741_v42  ;;  %18299 = vmatpush3.xpose.msk.msra.mxu0 %vm606_vm1, %v863_v39  ;;  %v864_v45 = vmul.f32 %v19838_v37, %v19844_v40  ;;  %v19907_v60 = vcombine.high %v19879_v52, %v19879_v52 }
  0xe4   : > { %v18277_v38 = vpop.f32.mrf.mxu0  ;;  %18313 = vmatprep.subr.mxu0 %v19661_v26  ;;  %v19933_v2 = vcombine.high %v19894_v57, %v19894_v57  ;;  %v869_v3 = vmul.f32 %v19838_v37, %v19879_v52  ;;  %v1582_v8 = vmul.f32 %v19956_v6, %v19844_v40  ;;  %v1587_v13 = vmul.f32 %v19956_v6, %v19879_v52 }
  0xe5   : > { %18304 = vmatpush3.xpose.msk.msra.mxu1 %vm606_vm1, %v864_v45  ;;  %v19859_v47 = vcombine.high %v19850_v44, %v19850_v44  ;;  %v19867_v49 = vcombine.high %v19846_v41, %v19846_v41  ;;  %v865_v53 = vmul.f32 %v19838_v37, %v19850_v44  ;;  %v19925_v1 = vadd.f32 %v18277_v38, %v17143_v35 }
  0xe6   : > { %v654_v46 = vpop.f32.mrf.mxu0  ;;  %18301 = vmatmul.mubr.msk.f32.vlgmr.msra.gmra.mxu0 %vm606_vm1, %v19846_v41  ;;  %18308 = vmatprep.subr.mxu1 %v19661_v26  ;;  %v870_v4 = vmul.f32 %v19838_v37, %v19907_v60  ;;  %v1583_v9 = vmul.f32 %v19956_v6, %v19850_v44  ;;  %v1588_v14 = vmul.f32 %v19956_v6, %v19907_v60 }
  0xe7   : > { %v19861_v48 = vadd.f32 %v17143_v35, %v654_v46  ;;  %v866_v54 = vmul.f32 %v19838_v37, %v19859_v47  ;;  %18315 = vmatprep.mubr.msk.f32.mxu0 %vm19662_vm2, %v19661_v26  ;;  %v19953_v5 = vcombine.high %v19925_v1, %v19925_v1  ;;  %v1584_v10 = vmul.f32 %v19956_v6, %v19859_v47 }
  0xe8   : > { %18306 = vmatmul.mubr.msk.f32.vlgmr.msra.gmra.mxu1 %vm606_vm1, %v19867_v49 }
  0xe9   : > { %18309 = vmatpush3.xpose.msk.msra.mxu1 %vm606_vm1, %v865_v53  ;;  %18314 = vmatpush3.xpose.msk.msra.mxu0 %vm606_vm1, %v866_v54  ;;  %v19900_v58 = vcombine.high %v19861_v48, %v19861_v48 }
  0xea   : > { %18310 = vmatprep.mubr.msk.f32.mxu1 %vm19662_vm2, %v19661_v26  ;;  %18318 = vmatprep.subr.mxu1 %v19661_v26 }
  0xeb   : > { %18323 = vmatprep.subr.mxu0 %v19661_v26 }
  0xec   : > { %v18296_v55 = vpop.f32.mrf.mxu0  ;;  %18311 = vmatmul.mubr.msk.f32.vlgmr.msra.gmra.mxu1 %vm606_vm1, %v19861_v48  ;;  %18316 = vmatmul.mubr.msk.f32.vlgmr.msra.gmra.mxu0 %vm606_vm1, %v19900_v58 }
  0xed   : > { %v19892_v56 = vadd.f32 %v18296_v55, %v19873_v50  ;;  %18319 = vmatpush3.xpose.msk.msra.mxu1 %vm606_vm1, %v867_v61  ;;  %18324 = vmatpush3.xpose.msk.msra.mxu0 %vm606_vm1, %v868_v62 }
  0xee   : > { %v19903_v59 = vpop.f32.mrf.mxu0  ;;  %18320 = vmatprep.mubr.msk.f32.mxu1 %vm19662_vm2, %v19661_v26  ;;  %18325 = vmatprep.mubr.msk.f32.mxu0 %vm19662_vm2, %v19661_v26 }
  0xef   : > { %18328 = vmatprep.subr.mxu1 %v19661_v26  ;;  %18333 = vmatprep.subr.mxu0 %v19661_v26  ;;  %v20034_v15 = vadd.f32 %v19873_v50, %v19903_v59 }
  0xf0   : > { %v18297_v63 = vpop.f32.mrf.mxu0  ;;  %18321 = vmatmul.mubr.msk.f32.vlgmr.msra.gmra.mxu1 %vm606_vm1, %v19894_v57  ;;  %18326 = vmatmul.mubr.msk.f32.vlgmr.msra.gmra.mxu0 %vm606_vm1, %v19933_v2 }
  0xf1   : > { %v19923_v0 = vadd.f32 %v18297_v63, %v19873_v50  ;;  %18329 = vmatpush3.xpose.msk.msra.mxu1 %vm606_vm1, %v869_v3  ;;  %18334 = vmatpush3.xpose.msk.msra.mxu0 %vm606_vm1, %v870_v4  ;;  %v1589_v16 = vmul.f32 %v19956_v6, %v20034_v15  ;;  %v20040_v17 = vcombine.high %v20034_v15, %v20034_v15 }
  0xf2   : > { %18330 = vmatprep.mubr.msk.f32.mxu1 %vm19662_vm2, %v19661_v26  ;;  %18335 = vmatprep.mubr.msk.f32.mxu0 %vm19662_vm2, %v19661_v26  ;;  %v20048_v19 = vpop.f32.mrf.mxu0 }
  0xf3   : > { %18338 = vmatprep.subr.mxu1 %v19661_v26  ;;  %18343 = vmatprep.subr.mxu0 %v19661_v26  ;;  %v1590_v18 = vmul.f32 %v19956_v6, %v20040_v17 }
  0xf4   : > { %18331 = vmatmul.mubr.msk.f32.vlgmr.msra.gmra.mxu1 %vm606_vm1, %v19925_v1  ;;  %18336 = vmatmul.mubr.msk.f32.vlgmr.msra.gmra.mxu0 %vm606_vm1, %v19953_v5 }
  0xf5   : > { %18339 = vmatpush3.xpose.msk.msra.mxu1 %vm606_vm1, %v1581_v7  ;;  %18344 = vmatpush3.xpose.msk.msra.mxu0 %vm606_vm1, %v1582_v8 }
  0xf6   : > { %18340 = vmatprep.mubr.msk.f32.mxu1 %vm19662_vm2, %v19661_v26  ;;  %18345 = vmatprep.mubr.msk.f32.mxu0 %vm19662_vm2, %v19661_v26 }
  0xf7   : > { %18348 = vmatprep.subr.mxu1 %v19661_v26  ;;  %18353 = vmatprep.subr.mxu0 %v19661_v26 }
  0xf8   : > { %18341 = vmatmul.mubr.msk.f32.vlgmr.msra.gmra.mxu1 %vm606_vm1, %v19846_v41  ;;  %18346 = vmatmul.mubr.msk.f32.vlgmr.msra.gmra.mxu0 %vm606_vm1, %v19867_v49 }
  0xf9   : > { %18349 = vmatpush3.xpose.msk.msra.mxu1 %vm606_vm1, %v1583_v9  ;;  %18354 = vmatpush3.xpose.msk.msra.mxu0 %vm606_vm1, %v1584_v10 }
  0xfa   : > { %18350 = vmatprep.mubr.msk.f32.mxu1 %vm19662_vm2, %v19661_v26  ;;  %18355 = vmatprep.mubr.msk.f32.mxu0 %vm19662_vm2, %v19661_v26 }
  0xfb   : > { %18358 = vmatprep.subr.mxu1 %v19661_v26  ;;  %18363 = vmatprep.subr.mxu0 %v19661_v26 }
  0xfc   : > { %18351 = vmatmul.mubr.msk.f32.vlgmr.msra.gmra.mxu1 %vm606_vm1, %v19861_v48  ;;  %18356 = vmatmul.mubr.msk.f32.vlgmr.msra.gmra.mxu0 %vm606_vm1, %v19900_v58 }
  0xfd   : > { %18359 = vmatpush3.xpose.msk.msra.mxu1 %vm606_vm1, %v1585_v11  ;;  %18364 = vmatpush3.xpose.msk.msra.mxu0 %vm606_vm1, %v1586_v12 }
  0xfe   : > { %18360 = vmatprep.mubr.msk.f32.mxu1 %vm19662_vm2, %v19661_v26  ;;  %18365 = vmatprep.mubr.msk.f32.mxu0 %vm19662_vm2, %v19661_v26 }
  0xff   : > { %18368 = vmatprep.subr.mxu1 %v19661_v26  ;;  %18373 = vmatprep.subr.mxu0 %v19661_v26 }
 0x100   : > { %18361 = vmatmul.mubr.msk.f32.vlgmr.msra.gmra.mxu1 %vm606_vm1, %v19894_v57  ;;  %18366 = vmatmul.mubr.msk.f32.vlgmr.msra.gmra.mxu0 %vm606_vm1, %v19933_v2 }
 0x101   : > { %18369 = vmatpush3.xpose.msk.msra.mxu1 %vm606_vm1, %v1587_v13  ;;  %18374 = vmatpush3.xpose.msk.msra.mxu0 %vm606_vm1, %v1588_v14 }
 0x102   : > { %18370 = vmatprep.mubr.msk.f32.mxu1 %vm19662_vm2, %v19661_v26  ;;  %18375 = vmatprep.mubr.msk.f32.mxu0 %vm19662_vm2, %v19661_v26 }
 0x103   : > { %18378 = vmatprep.subr.mxu1 %v19661_v26  ;;  %18383 = vmatprep.subr.mxu0 %v19661_v26 }
 0x104   : > { %18371 = vmatmul.mubr.msk.f32.vlgmr.msra.gmra.mxu1 %vm606_vm1, %v19925_v1  ;;  %18376 = vmatmul.mubr.msk.f32.vlgmr.msra.gmra.mxu0 %vm606_vm1, %v19953_v5 }
 0x105   : > { %18380 = vmatprep.mubr.msk.f32.mxu1 %vm19662_vm2, %v19661_v26  ;;  %18385 = vmatprep.mubr.msk.f32.mxu0 %vm19662_vm2, %v19661_v26 }
 0x106   : > { %18379 = vmatpush3.msk.msra.mxu1 %vm613_vm0, %v1589_v16  ;;  %18384 = vmatpush3.msk.msra.mxu0 %vm613_vm0, %v1590_v18 }
 0x107   : > { %18388 = vmatprep.subr.mxu1 %v19661_v26  ;;  %18393 = vmatprep.subr.mxu0 %v19661_v26 }
 0x1a6   : > { %v950_v20 = vpop.f32.mrf.mxu0 }
 0x1a8   : > { %v1025_v21 = vpop.f32.mrf.mxu1  ;;  %v18302_v22 = vpop.f32.mrf.mxu0 }
 0x1aa   : > { %v18307_v23 = vpop.f32.mrf.mxu1 }
 0x1ac   : > { %v1100_v24 = vpop.f32.mrf.mxu1  ;;  %v1175_v25 = vpop.f32.mrf.mxu0 }
 0x1ae   : > { %v18312_v29 = vpop.f32.mrf.mxu1  ;;  %v18317_v30 = vpop.f32.mrf.mxu0 }
 0x1b0   : > { %v1250_v31 = vpop.f32.mrf.mxu1  ;;  %v1325_v32 = vpop.f32.mrf.mxu0 }
 0x1b2   : > { %v18322_v33 = vpop.f32.mrf.mxu1  ;;  %v18327_v35 = vpop.f32.mrf.mxu0 }
 0x1b4   : > { %v1400_v36 = vpop.f32.mrf.mxu1  ;;  %v1475_v38 = vpop.f32.mrf.mxu0 }
 0x1b6   : > { %v18332_v39 = vpop.f32.mrf.mxu1  ;;  %v18337_v42 = vpop.f32.mrf.mxu0 }
 0x1b7   : > { %v20069_v42 = vmul.f32 0.5, %v950_v20 }
 0x1b8   : > { %v1666_v45 = vpop.f32.mrf.mxu1  ;;  %v1739_v46 = vpop.f32.mrf.mxu0 }
 0x1b9   : > { %v20050_v53 = vmul.f32 0.5, %v1666_v45  ;;  %v20052_v59 = vmul.f32 0.5, %v1739_v46  ;;  %v1488_v20 = vsel %vm1487_vm7, %v20069_v42, -inf }
 0x1ba   : > { %v18342_v54 = vpop.f32.mrf.mxu1  ;;  %v18347_v55 = vpop.f32.mrf.mxu0 }
 0x1bb   : > { %v2189_v61 = vsel %vm1487_vm7, %v20050_v53, -inf  ;;  %v2192_v9 = vsel %vm1487_vm7, %v20052_v59, -inf  ;;  %v20076_v55 = vmul.f32 0.5, %v1025_v21 }
 0x1bc   : > { %v1885_v62 = vpop.f32.mrf.mxu0  ;;  %2190 = vmax.xlane.f32.xlu0 %v2189_v61  ;;  %v1812_v63 = vpop.f32.mrf.mxu1  ;;  %v20078_v61 = vmul.f32 0.5, %v1100_v24  ;;  %v20092_v24 = vmul.f32 0.5, %v1325_v32 }
 0x1bd   : > { %v20056_v3 = vmul.f32 0.5, %v1812_v63  ;;  %v20058_v8 = vmul.f32 0.5, %v1885_v62  ;;  %v20084_v63 = vmul.f32 0.5, %v1175_v25 }
 0x1be   : > { %v18352_v4 = vpop.f32.mrf.mxu1  ;;  %v18357_v7 = vpop.f32.mrf.mxu0  ;;  %v1494_v21 = vsel %vm1487_vm7, %v20078_v61, -inf }
 0x1bf   : > { %v2195_v10 = vsel %vm1487_vm7, %v20056_v3, -inf  ;;  %v2198_v22 = vsel %vm1487_vm7, %v20058_v8, -inf  ;;  %v20086_v4 = vmul.f32 0.5, %v1250_v31  ;;  %v1491_v7 = vsel %vm1487_vm7, %v20076_v55, -inf }
 0x1c0   : > { %v2031_v11 = vpop.f32.mrf.mxu0  ;;  %2193 = vmax.xlane.f32.xlu0 %v2192_v9  ;;  %2196 = vmax.xlane.f32.xlu1 %v2195_v10  ;;  %v1958_v12 = vpop.f32.mrf.mxu1  ;;  %v20094_v9 = vmul.f32 0.5, %v1400_v36  ;;  %v1497_v10 = vsel %vm1487_vm7, %v20084_v63, -inf  ;;  %v20100_v31 = vmul.f32 0.5, %v1475_v38 }
 0x1c1   : > { %v2185_v13 = vmul.f32 0.5, %v1958_v12  ;;  %v20064_v18 = vmul.f32 0.5, %v2031_v11  ;;  %v1500_v25 = vsel %vm1487_vm7, %v20086_v4, -inf  ;;  %v1503_v11 = vsel %vm1487_vm7, %v20092_v24, -inf }
 0x1c2   : > { %v18362_v14 = vpop.f32.mrf.mxu1  ;;  %v18367_v16 = vpop.f32.mrf.mxu0  ;;  %v1506_v12 = vsel %vm1487_vm7, %v20094_v9, -inf  ;;  %v1509_v32 = vsel %vm1487_vm7, %v20100_v31, -inf }
 0x1c3   : > { %v2201_v23 = vsel %vm1487_vm7, %v2185_v13, -inf  ;;  %v2204_v46 = vsel %vm1487_vm7, %v20064_v18, -inf }
 0x1c4   : > { %v2177_v29 = vpop.f32.mrf.mxu0  ;;  %2199 = vmax.xlane.f32.xlu1 %v2198_v22  ;;  %2202 = vmax.xlane.f32.xlu0 %v2201_v23  ;;  %v2104_v30 = vpop.f32.mrf.mxu1 }
 0x1c5   : > { %v2187_v33 = vmul.f32 0.5, %v2104_v30  ;;  %v20071_v45 = vmul.f32 0.5, %v2177_v29 }
 0x1c6   : > { %v18372_v35 = vpop.f32.mrf.mxu1  ;;  %v18377_v39 = vpop.f32.mrf.mxu0 }
 0x1c7   : > { %v2207_v54 = vsel %vm1487_vm7, %v2187_v33, -inf  ;;  %v2210_v62 = vsel %vm1487_vm7, %v20071_v45, -inf }
 0x1c8   : > { %2205 = vmax.xlane.f32.xlu1 %v2204_v46  ;;  %2208 = vmax.xlane.f32.xlu0 %v2207_v54 }
 0x1cc   : > { %2211 = vmax.xlane.f32.xlu1 %v2210_v62  ;;  %1489 = vmax.xlane.f32.xlu0 %v1488_v20 }
 0x1d0   : > { %1492 = vmax.xlane.f32.xlu1 %v1491_v7  ;;  %1495 = vmax.xlane.f32.xlu0 %v1494_v21 }
 0x1d4   : > { %1498 = vmax.xlane.f32.xlu1 %v1497_v10  ;;  %1501 = vmax.xlane.f32.xlu0 %v1500_v25 }
 0x1d8   : > { %1504 = vmax.xlane.f32.xlu1 %v1503_v11  ;;  %1507 = vmax.xlane.f32.xlu0 %v1506_v12 }
 0x1dc   : > { %1510 = vmax.xlane.f32.xlu1 %v1509_v32 }
 0x245   : > { %v2191_v36 = vpop.xlane.xlu0 %2190 }
 0x246   : > { %v2213_v14 = vsub.f32 %v20050_v53, %v2191_v36 }
 0x248   : > { %v2221_v16 = vmul.f32 1.442695, %v2213_v14 }
 0x249   : > { %v2194_v22 = vpop.xlane.xlu0 %2193  ;;  %v2197_v23 = vpop.xlane.xlu1 %2196 }
 0x24a   : > { %19285 = vpow2.f32 %v2221_v16  ;;  %v2214_v38 = vsub.f32 %v20052_v59, %v2194_v22  ;;  %v2215_v29 = vsub.f32 %v20056_v3, %v2197_v23 }
 0x24c   : > { %v2223_v30 = vmul.f32 1.442695, %v2214_v38  ;;  %v2225_v35 = vmul.f32 1.442695, %v2215_v29 }
 0x24d   : > { %v2200_v39 = vpop.xlane.xlu1 %2199  ;;  %v2203_v46 = vpop.xlane.xlu0 %2202 }
 0x24e   : > { %19287 = vpow2.f32 %v2223_v30  ;;  %v2216_v54 = vsub.f32 %v20058_v8, %v2200_v39  ;;  %v2217_v62 = vsub.f32 %v2185_v13, %v2203_v46 }
 0x24f   : > { %19289 = vpow2.f32 %v2225_v35 }
 0x250   : > { %v2227_v20 = vmul.f32 1.442695, %v2216_v54  ;;  %v2229_v7 = vmul.f32 1.442695, %v2217_v62 }
 0x251   : > { %v2206_v53 = vpop.xlane.xlu1 %2205  ;;  %v2209_v21 = vpop.xlane.xlu0 %2208 }
 0x252   : > { %19291 = vpow2.f32 %v2227_v20  ;;  %v2218_v10 = vsub.f32 %v20064_v18, %v2206_v53  ;;  %v2219_v25 = vsub.f32 %v2187_v33, %v2209_v21 }
 0x253   : > { %19293 = vpow2.f32 %v2229_v7 }
 0x254   : > { %v2231_v59 = vmul.f32 1.442695, %v2218_v10  ;;  %v2233_v3 = vmul.f32 1.442695, %v2219_v25 }
 0x255   : > { %v2212_v11 = vpop.xlane.xlu1 %2211  ;;  %v1490_v12 = vpop.xlane.xlu0 %1489 }
 0x256   : > { %19295 = vpow2.f32 %v2231_v59  ;;  %v2220_v32 = vsub.f32 %v20071_v45, %v2212_v11  ;;  %v1512_v8 = vsub.f32 %v20069_v42, %v1490_v12 }
 0x257   : > { %v20115_v13 = vpop.eup %19285  ;;  %19297 = vpow2.f32 %v2233_v3 }
 0x258   : > { %v2235_v36 = vmul.f32 1.442695, %v2220_v32  ;;  %v1520_v14 = vmul.f32 1.442695, %v1512_v8  ;;  %v2237_v16 = vsel %vm1487_vm7, %v20115_v13, 0.0 }
 0x259   : > { %v1493_v18 = vpop.xlane.xlu1 %1492  ;;  %2238 = vadd.xlane.f32.xlu0 %v2237_v16  ;;  %v1496_v33 = vpop.xlane.xlu0 %1495 }
 0x25a   : > { %19299 = vpow2.f32 %v2235_v36  ;;  %v1513_v22 = vsub.f32 %v20076_v55, %v1493_v18  ;;  %v1514_v23 = vsub.f32 %v20078_v61, %v1496_v33 }
 0x25b   : > { %v20121_v38 = vpop.eup %19287  ;;  %19301 = vpow2.f32 %v1520_v14 }
 0x25c   : > { %v20123_v42 = vpop.eup %19289  ;;  %v1522_v45 = vmul.f32 1.442695, %v1513_v22  ;;  %v1524_v29 = vmul.f32 1.442695, %v1514_v23  ;;  %v2240_v30 = vsel %vm1487_vm7, %v20121_v38, 0.0 }
 0x25d   : > { %2241 = vadd.xlane.f32.xlu1 %v2240_v30  ;;  %v1499_v35 = vpop.xlane.xlu1 %1498  ;;  %v2243_v39 = vsel %vm1487_vm7, %v20123_v42, 0.0  ;;  %v1502_v46 = vpop.xlane.xlu0 %1501 }
 0x25e   : > { %19303 = vpow2.f32 %v1522_v45  ;;  %v1515_v55 = vsub.f32 %v20084_v63, %v1499_v35  ;;  %2244 = vadd.xlane.f32.xlu0 %v2243_v39  ;;  %v1516_v61 = vsub.f32 %v20086_v4, %v1502_v46 }
 0x25f   : > { %v20131_v54 = vpop.eup %19291  ;;  %19305 = vpow2.f32 %v1524_v29 }
 0x260   : > { %v20133_v62 = vpop.eup %19293  ;;  %v1526_v20 = vmul.f32 1.442695, %v1515_v55  ;;  %v1528_v7 = vmul.f32 1.442695, %v1516_v61  ;;  %v2246_v53 = vsel %vm1487_vm7, %v20131_v54, 0.0 }
 0x261   : > { %2247 = vadd.xlane.f32.xlu1 %v2246_v53  ;;  %v1505_v21 = vpop.xlane.xlu1 %1504  ;;  %v2249_v10 = vsel %vm1487_vm7, %v20133_v62, 0.0  ;;  %v1508_v25 = vpop.xlane.xlu0 %1507 }
 0x262   : > { %19307 = vpow2.f32 %v1526_v20  ;;  %v1517_v63 = vsub.f32 %v20092_v24, %v1505_v21  ;;  %2250 = vadd.xlane.f32.xlu0 %v2249_v10  ;;  %v1518_v4 = vsub.f32 %v20094_v9, %v1508_v25 }
 0x263   : > { %v20141_v59 = vpop.eup %19295  ;;  %19309 = vpow2.f32 %v1528_v7 }
 0x264   : > { %v20143_v3 = vpop.eup %19297  ;;  %v1530_v11 = vmul.f32 1.442695, %v1517_v63  ;;  %v1532_v12 = vmul.f32 1.442695, %v1518_v4  ;;  %v2252_v32 = vsel %vm1487_vm7, %v20141_v59, 0.0 }
 0x265   : > { %2253 = vadd.xlane.f32.xlu1 %v2252_v32  ;;  %v1511_v8 = vpop.xlane.xlu1 %1510  ;;  %v2255_v36 = vsel %vm1487_vm7, %v20143_v3, 0.0 }
 0x266   : > { %19311 = vpow2.f32 %v1530_v11  ;;  %v1519_v24 = vsub.f32 %v20100_v31, %v1511_v8  ;;  %2256 = vadd.xlane.f32.xlu0 %v2255_v36  ;;  %v20188_v11 = vadd.f32 %v19873_v50, %v20048_v19 }
 0x267   : > { %v20150_v9 = vpop.eup %19299  ;;  %19313 = vpow2.f32 %v1532_v12 }
 0x268   : > { %v20152_v14 = vpop.eup %19301  ;;  %v1534_v16 = vmul.f32 1.442695, %v1519_v24  ;;  %v2258_v18 = vsel %vm1487_vm7, %v20150_v9, 0.0 }
 0x269   : > { %2259 = vadd.xlane.f32.xlu1 %v2258_v18  ;;  %v1536_v33 = vsel %vm1487_vm7, %v20152_v14, 0.0  ;;  %v20195_v18 = vcombine.high %v20188_v11, %v20188_v11 }
 0x26a   : > { %19315 = vpow2.f32 %v1534_v16  ;;  %1537 = vadd.xlane.f32.xlu0 %v1536_v33  ;;  %v1591_v16 = vmul.f32 %v19956_v6, %v20188_v11 }
 0x26b   : > { %v20158_v22 = vpop.eup %19303 }
 0x26c   : > { %v20160_v23 = vpop.eup %19305  ;;  %v1539_v31 = vsel %vm1487_vm7, %v20158_v22, 0.0 }
 0x26d   : > { %1540 = vadd.xlane.f32.xlu1 %v1539_v31  ;;  %v1542_v45 = vsel %vm1487_vm7, %v20160_v23, 0.0  ;;  %v20205_v31 = vcombine.high %v19892_v56, %v19892_v56 }
 0x26e   : > { %1543 = vadd.xlane.f32.xlu0 %v1542_v45 }
 0x26f   : > { %v20166_v29 = vpop.eup %19307 }
 0x270   : > { %v20168_v30 = vpop.eup %19309  ;;  %v1545_v35 = vsel %vm1487_vm7, %v20166_v29, 0.0 }
 0x271   : > { %1546 = vadd.xlane.f32.xlu1 %v1545_v35  ;;  %v1548_v39 = vsel %vm1487_vm7, %v20168_v30, 0.0 }
 0x272   : > { %1549 = vadd.xlane.f32.xlu0 %v1548_v39  ;;  %v1592_v39 = vmul.f32 %v19956_v6, %v20195_v18 }
 0x273   : > { %v20174_v46 = vpop.eup %19311 }
 0x274   : > { %v20176_v55 = vpop.eup %19313  ;;  %v1551_v61 = vsel %vm1487_vm7, %v20174_v46, 0.0 }
 0x275   : > { %1552 = vadd.xlane.f32.xlu1 %v1551_v61  ;;  %v1554_v20 = vsel %vm1487_vm7, %v20176_v55, 0.0 }
 0x276   : > { %1555 = vadd.xlane.f32.xlu0 %v1554_v20  ;;  %v1593_v20 = vmul.f32 %v19956_v6, %v19892_v56 }
 0x277   : > { %v20182_v7 = vpop.eup %19315 }
 0x278   : > { %v1557_v53 = vsel %vm1487_vm7, %v20182_v7, 0.0 }
 0x279   : > { %1558 = vadd.xlane.f32.xlu1 %v1557_v53 }
 0x2e2   : > { %v2239_v21 = vpop.xlane.xlu0 %2238 }
 0x2e3   : > { %19317 = vrcp.f32 %v2239_v21  ;;  %v20221_v21 = vcombine.high %v19923_v0, %v19923_v0 }
 0x2e6   : > { %v2242_v10 = vpop.xlane.xlu1 %2241 }
 0x2e7   : > { %19319 = vrcp.f32 %v2242_v10  ;;  %v2245_v25 = vpop.xlane.xlu0 %2244 }
 0x2e8   : > { %19321 = vrcp.f32 %v2245_v25 }
 0x2ea   : > { %v2248_v63 = vpop.xlane.xlu1 %2247 }
 0x2eb   : > { %19323 = vrcp.f32 %v2248_v63  ;;  %v2251_v4 = vpop.xlane.xlu0 %2250  ;;  %v1594_v63 = vmul.f32 %v19956_v6, %v20205_v31 }
 0x2ec   : > { %19325 = vrcp.f32 %v2251_v4 }
 0x2ee   : > { %v2254_v12 = vpop.xlane.xlu1 %2253 }
 0x2ef   : > { %19327 = vrcp.f32 %v2254_v12  ;;  %v2257_v32 = vpop.xlane.xlu0 %2256 }
 0x2f0   : > { %v19318_v8 = vpop.eup %19317  ;;  %19329 = vrcp.f32 %v2257_v32 }
 0x2f1   : > { %v2269_v36 = vmul.f32 %v19318_v8, %v20115_v13 }
 0x2f2   : > { %v2260_v24 = vpop.xlane.xlu1 %2259 }
 0x2f3   : > { %19331 = vrcp.f32 %v2260_v24  ;;  %v1538_v33 = vpop.xlane.xlu0 %1537  ;;  %18381 = vmatmul.mubr.msk.f32.vlgmr.msra.gmra.mxu1 %vm2277_vm8, %v2269_v36  ;;  %v1596_v24 = vmul.f32 %v19956_v6, %v20221_v21 }
 0x2f4   : > { %v19320_v50 = vpop.eup %19319  ;;  %19333 = vrcp.f32 %v1538_v33  ;;  %18389 = vmatpush3.msk.msra.mxu1 %vm613_vm0, %v1591_v16  ;;  %18390 = vmatprep.mubr.msk.f32.mxu1 %vm19662_vm2, %v19661_v26 }
 0x2f5   : > { %v19322_v19 = vpop.eup %19321  ;;  %18398 = vmatprep.subr.mxu1 %v19661_v26  ;;  %v2270_v13 = vmul.f32 %v19320_v50, %v20121_v38 }
 0x2f6   : > { %v1541_v45 = vpop.xlane.xlu1 %1540  ;;  %v2271_v35 = vmul.f32 %v19322_v19, %v20123_v42 }
 0x2f7   : > { %19335 = vrcp.f32 %v1541_v45  ;;  %v1544_v61 = vpop.xlane.xlu0 %1543  ;;  %18386 = vmatmul.mubr.msk.f32.vlgmr.msra.gmra.mxu0 %vm2277_vm8, %v2270_v13  ;;  %v872_v13 = vmul.f32 %v19838_v37, %v20040_v17  ;;  %v873_v45 = vmul.f32 %v19838_v37, %v20188_v11 }
 0x2f8   : > { %v19324_v53 = vpop.eup %19323  ;;  %19337 = vrcp.f32 %v1544_v61  ;;  %18391 = vmatmul.mubr.msk.f32.vlgmr.msra.gmra.mxu1 %vm2277_vm8, %v2271_v35  ;;  %18394 = vmatpush3.msk.msra.mxu0 %vm613_vm0, %v1592_v39  ;;  %v874_v61 = vmul.f32 %v19838_v37, %v20195_v18 }
 0x2f9   : > { %v19326_v38 = vpop.eup %19325  ;;  %18399 = vmatpush3.msk.msra.mxu1 %vm613_vm0, %v1593_v20  ;;  %18395 = vmatprep.mubr.msk.f32.mxu0 %vm19662_vm2, %v19661_v26  ;;  %v2272_v42 = vmul.f32 %v19324_v53, %v20131_v54  ;;  %v1595_v54 = vmul.f32 %v19956_v6, %v19923_v0  ;;  %v875_v20 = vmul.f32 %v19838_v37, %v19892_v56 }
 0x2fa   : > { %18403 = vmatprep.subr.mxu0 %v19661_v26  ;;  %v1547_v10 = vpop.xlane.xlu1 %1546  ;;  %18400 = vmatprep.mubr.msk.f32.mxu1 %vm19662_vm2, %v19661_v26  ;;  %v2273_v25 = vmul.f32 %v19326_v38, %v20133_v62 }
 0x2fb   : > { %19339 = vrcp.f32 %v1547_v10  ;;  %18408 = vmatprep.subr.mxu1 %v19661_v26  ;;  %v1550_v4 = vpop.xlane.xlu0 %1549  ;;  %18396 = vmatmul.mubr.msk.f32.vlgmr.msra.gmra.mxu0 %vm2277_vm8, %v2272_v42  ;;  %v876_v42 = vmul.f32 %v19838_v37, %v20205_v31  ;;  %v877_v10 = vmul.f32 %v19838_v37, %v19923_v0 }
 0x2fc   : > { %v19328_v12 = vpop.eup %19327  ;;  %19341 = vrcp.f32 %v1550_v4  ;;  %18401 = vmatmul.mubr.msk.f32.vlgmr.msra.gmra.mxu1 %vm2277_vm8, %v2273_v25  ;;  %18404 = vmatpush3.msk.msra.mxu0 %vm613_vm0, %v1594_v63  ;;  %v878_v4 = vmul.f32 %v19838_v37, %v20221_v21 }
 0x2fd   : > { %v19330_v32 = vpop.eup %19329  ;;  %18409 = vmatpush3.msk.msra.mxu1 %vm613_vm0, %v1595_v54  ;;  %18405 = vmatprep.mubr.msk.f32.mxu0 %vm19662_vm2, %v19661_v26  ;;  %v2274_v62 = vmul.f32 %v19328_v12, %v20141_v59  ;;  %v871_v59 = vmul.f32 %v19838_v37, %v20034_v15  ;;  %v20312_v54 = vsel %vm3496_vm11, 1.0, %v19661_v26  ;;  %vm8763_vm11 = vcmp.lt.s32.totalorder %v19826_v28, 28 }
 0x2fe   : > { %18413 = vmatprep.subr.mxu0 %v19661_v26  ;;  %v1553_v8 = vpop.xlane.xlu1 %1552  ;;  %18410 = vmatprep.mubr.msk.f32.mxu1 %vm19662_vm2, %v19661_v26  ;;  %v2275_v36 = vmul.f32 %v19330_v32, %v20143_v3  ;;  %v3501_v32 = vmul.f32 %v20312_v54, %v19850_v44  ;;  %vm8764_vm12 = vmand %vm8762_vm10, %vm8763_vm11 }
 0x2ff   : > { %19343 = vrcp.f32 %v1553_v8  ;;  %18418 = vmatprep.subr.mxu1 %v19661_v26  ;;  %v1556_v16 = vpop.xlane.xlu0 %1555  ;;  %18406 = vmatmul.mubr.msk.f32.vlgmr.msra.gmra.mxu0 %vm2277_vm8, %v2274_v62  ;;  %v3503_v62 = vmul.f32 %v20312_v54, %v19848_v43  ;;  %v3504_v8 = vmul.f32 %v20312_v54, %v19877_v51 }
 0x300   : > { %v19332_v33 = vpop.eup %19331  ;;  %19345 = vrcp.f32 %v1556_v16  ;;  %18411 = vmatmul.mubr.msk.f32.vlgmr.msra.gmra.mxu1 %vm2277_vm8, %v2275_v36  ;;  %18414 = vmatpush3.msk.msra.mxu0 %vm613_vm0, %v1596_v24  ;;  %v3505_v36 = vmul.f32 %v20312_v54, %v19879_v52  ;;  %v3506_v24 = vmul.f32 %v20312_v54, %v19907_v60  ;;  %v3507_v16 = vmul.f32 %v20312_v54, %v20034_v15 }
 0x301   : > { %v19334_v50 = vpop.eup %19333  ;;  %18419 = vmatpush3.msk.msra.mxu1 %vm613_vm0, %v871_v59  ;;  %18415 = vmatprep.mubr.msk.f32.mxu0 %vm19662_vm2, %v19661_v26  ;;  %v2276_v6 = vmul.f32 %v19332_v33, %v20150_v9  ;;  %v3508_v59 = vmul.f32 %v20312_v54, %v20040_v17 }
 0x302   : > { %18423 = vmatprep.subr.mxu0 %v19661_v26  ;;  %v1559_v3 = vpop.xlane.xlu1 %1558  ;;  %18420 = vmatprep.mubr.msk.f32.mxu1 %vm19662_vm2, %v19661_v26  ;;  %v1568_v19 = vmul.f32 %v19334_v50, %v20152_v14 }
 0x303   : > { %19347 = vrcp.f32 %v1559_v3  ;;  %18428 = vmatprep.subr.mxu1 %v19661_v26  ;;  %18416 = vmatmul.mubr.msk.f32.vlgmr.msra.gmra.mxu0 %vm2277_vm8, %v2276_v6 }
 0x304   : > { %v19336_v9 = vpop.eup %19335  ;;  %18421 = vmatmul.mubr.msk.f32.vlgmr.msra.gmra.mxu1 %vm2277_vm8, %v1568_v19  ;;  %18424 = vmatpush3.msk.msra.mxu0 %vm613_vm0, %v872_v13 }
 0x305   : > { %v19338_v35 = vpop.eup %19337  ;;  %18429 = vmatpush3.msk.msra.mxu1 %vm613_vm0, %v873_v45  ;;  %18425 = vmatprep.mubr.msk.f32.mxu0 %vm19662_vm2, %v19661_v26  ;;  %v1569_v14 = vmul.f32 %v19336_v9, %v20158_v22 }
 0x306   : > { %18430 = vmatprep.mubr.msk.f32.mxu1 %vm19662_vm2, %v19661_v26  ;;  %18433 = vmatprep.subr.mxu0 %v19661_v26  ;;  %v1570_v39 = vmul.f32 %v19338_v35, %v20160_v23 }
 0x307   : > { %18438 = vmatprep.subr.mxu1 %v19661_v26  ;;  %18426 = vmatmul.mubr.msk.f32.vlgmr.msra.gmra.mxu0 %vm2277_vm8, %v1569_v14 }
 0x308   : > { %v19340_v53 = vpop.eup %19339  ;;  %18431 = vmatmul.mubr.msk.f32.vlgmr.msra.gmra.mxu1 %vm2277_vm8, %v1570_v39  ;;  %18434 = vmatpush3.msk.msra.mxu0 %vm613_vm0, %v874_v61 }
 0x309   : > { %v19342_v22 = vpop.eup %19341  ;;  %18439 = vmatpush3.msk.msra.mxu1 %vm613_vm0, %v875_v20  ;;  %18435 = vmatprep.mubr.msk.f32.mxu0 %vm19662_vm2, %v19661_v26  ;;  %v1571_v23 = vmul.f32 %v19340_v53, %v20166_v29 }
 0x30a   : > { %18440 = vmatprep.mubr.msk.f32.mxu1 %vm19662_vm2, %v19661_v26  ;;  %18443 = vmatprep.subr.mxu0 %v19661_v26  ;;  %v1572_v38 = vmul.f32 %v19342_v22, %v20168_v30 }
 0x30b   : > { %18448 = vmatprep.subr.mxu1 %v19661_v26  ;;  %18436 = vmatmul.mubr.msk.f32.vlgmr.msra.gmra.mxu0 %vm2277_vm8, %v1571_v23 }
 0x30c   : > { %v19344_v25 = vpop.eup %19343  ;;  %18441 = vmatmul.mubr.msk.f32.vlgmr.msra.gmra.mxu1 %vm2277_vm8, %v1572_v38  ;;  %18444 = vmatpush3.msk.msra.mxu0 %vm613_vm0, %v876_v42 }
 0x30d   : > { %v19346_v29 = vpop.eup %19345  ;;  %18449 = vmatpush3.msk.msra.mxu1 %vm613_vm0, %v877_v10  ;;  %18445 = vmatprep.mubr.msk.f32.mxu0 %vm19662_vm2, %v19661_v26  ;;  %v1573_v30 = vmul.f32 %v19344_v25, %v20174_v46  ;;  %v3499_v46 = vmul.f32 %v20312_v54, %v19832_v34 }
 0x30e   : > { %18450 = vmatprep.mubr.msk.f32.mxu1 %vm19662_vm2, %v19661_v26  ;;  %18453 = vmatprep.subr.mxu0 %v19661_v26  ;;  %v1574_v63 = vmul.f32 %v19346_v29, %v20176_v55  ;;  %v3500_v55 = vmul.f32 %v20312_v54, %v19844_v40 }
 0x30f   : > { %18458 = vmatprep.subr.mxu1 %v19661_v26  ;;  %18446 = vmatmul.mubr.msk.f32.vlgmr.msra.gmra.mxu0 %vm2277_vm8, %v1573_v30 }
 0x310   : > { %v19348_v12 = vpop.eup %19347  ;;  %18451 = vmatmul.mubr.msk.f32.vlgmr.msra.gmra.mxu1 %vm2277_vm8, %v1574_v63  ;;  %18454 = vmatpush3.msk.msra.mxu0 %vm613_vm0, %v878_v4 }
 0x311   : > { %18459 = vmatpush3.xpose.msk.msra.mxu1 %vm606_vm1, %v3499_v46  ;;  %18455 = vmatprep.mubr.msk.f32.mxu0 %vm19662_vm2, %v19661_v26  ;;  %v1575_v37 = vmul.f32 %v19348_v12, %v20182_v7  ;;  %v3502_v7 = vmul.f32 %v20312_v54, %v19859_v47 }
 0x312   : > { %18460 = vmatprep.mubr.msk.f32.mxu1 %vm19662_vm2, %v19661_v26  ;;  %18463 = vmatprep.subr.mxu0 %v19661_v26 }
 0x313   : > { %18468 = vmatprep.subr.mxu1 %v19661_v26  ;;  %18456 = vmatmul.mubr.msk.f32.vlgmr.msra.gmra.mxu0 %vm2277_vm8, %v1575_v37 }
 0x314   : > { %18461 = vmatmul.mubr.msk.f32.vlgmr.msra.gmra.mxu1 %vm606_vm1, %v19846_v41  ;;  %18464 = vmatpush3.xpose.msk.msra.mxu0 %vm606_vm1, %v3500_v55 }
 0x315   : > { %18469 = vmatpush3.xpose.msk.msra.mxu1 %vm606_vm1, %v3501_v32  ;;  %18465 = vmatprep.mubr.msk.f32.mxu0 %vm19662_vm2, %v19661_v26 }
 0x316   : > { %18470 = vmatprep.mubr.msk.f32.mxu1 %vm19662_vm2, %v19661_v26  ;;  %18473 = vmatprep.subr.mxu0 %v19661_v26 }
 0x317   : > { %18478 = vmatprep.subr.mxu1 %v19661_v26  ;;  %18466 = vmatmul.mubr.msk.f32.vlgmr.msra.gmra.mxu0 %vm606_vm1, %v19867_v49 }
 0x318   : > { %18471 = vmatmul.mubr.msk.f32.vlgmr.msra.gmra.mxu1 %vm606_vm1, %v19861_v48  ;;  %18474 = vmatpush3.xpose.msk.msra.mxu0 %vm606_vm1, %v3502_v7 }
 0x319   : > { %18479 = vmatpush3.xpose.msk.msra.mxu1 %vm606_vm1, %v3503_v62  ;;  %18475 = vmatprep.mubr.msk.f32.mxu0 %vm19662_vm2, %v19661_v26 }
 0x31a   : > { %18480 = vmatprep.mubr.msk.f32.mxu1 %vm19662_vm2, %v19661_v26  ;;  %18483 = vmatprep.subr.mxu0 %v19661_v26 }
 0x31b   : > { %18488 = vmatprep.subr.mxu1 %v19661_v26  ;;  %18476 = vmatmul.mubr.msk.f32.vlgmr.msra.gmra.mxu0 %vm606_vm1, %v19900_v58 }
 0x31c   : > { %18481 = vmatmul.mubr.msk.f32.vlgmr.msra.gmra.mxu1 %vm606_vm1, %v19894_v57  ;;  %18484 = vmatpush3.xpose.msk.msra.mxu0 %vm606_vm1, %v3504_v8 }
 0x31d   : > { %18489 = vmatpush3.xpose.msk.msra.mxu1 %vm606_vm1, %v3505_v36  ;;  %18485 = vmatprep.mubr.msk.f32.mxu0 %vm19662_vm2, %v19661_v26 }
 0x31e   : > { %18490 = vmatprep.mubr.msk.f32.mxu1 %vm19662_vm2, %v19661_v26  ;;  %18493 = vmatprep.subr.mxu0 %v19661_v26 }
 0x31f   : > { %18498 = vmatprep.subr.mxu1 %v19661_v26  ;;  %18486 = vmatmul.mubr.msk.f32.vlgmr.msra.gmra.mxu0 %vm606_vm1, %v19933_v2 }
 0x320   : > { %18491 = vmatmul.mubr.msk.f32.vlgmr.msra.gmra.mxu1 %vm606_vm1, %v19925_v1  ;;  %18494 = vmatpush3.xpose.msk.msra.mxu0 %vm606_vm1, %v3506_v24 }
 0x321   : > { %18499 = vmatpush3.msk.msra.mxu1 %vm613_vm0, %v3507_v16  ;;  %18495 = vmatprep.mubr.msk.f32.mxu0 %vm19662_vm2, %v19661_v26 }
 0x322   : > { %18503 = vmatprep.subr.mxu0 %v19661_v26  ;;  %18500 = vmatprep.mubr.msk.f32.mxu1 %vm19662_vm2, %v19661_v26 }
 0x323   : > { %18496 = vmatmul.mubr.msk.f32.vlgmr.msra.gmra.mxu0 %vm606_vm1, %v19953_v5  ;;  %18508 = vmatprep.subr.mxu1 %v19661_v26 }
 0x324   : > { %18504 = vmatpush3.msk.msra.mxu0 %vm613_vm0, %v3508_v59  ;;  %18505 = vmatprep.mubr.msk.f32.mxu0 %vm19662_vm2, %v19661_v26 }
 0x325   : > { %18513 = vmatprep.subr.mxu0 %v19661_v26 }
 0x3b3   : > { %v2350_v33 = vpop.f32.mrf.mxu1 }
 0x3b5   : > { %v18382_v50 = vpop.f32.mrf.mxu1 }
 0x3b7   : > { %v2426_v6 = vpop.f32.mrf.mxu0 }
 0x3b8   : > { %v2502_v3 = vpop.f32.mrf.mxu1 }
 0x3b9   : > { %v18387_v19 = vpop.f32.mrf.mxu0 }
 0x3ba   : > { %v18392_v13 = vpop.f32.mrf.mxu1 }
 0x3bb   : > { %v2578_v45 = vpop.f32.mrf.mxu0 }
 0x3bc   : > { %v2654_v9 = vpop.f32.mrf.mxu1 }
 0x3bd   : > { %v18397_v35 = vpop.f32.mrf.mxu0 }
 0x3be   : > { %v18402_v14 = vpop.f32.mrf.mxu1 }
 0x3bf   : > { %v2730_v39 = vpop.f32.mrf.mxu0 }
 0x3c0   : > { %v2806_v61 = vpop.f32.mrf.mxu1 }
 0x3c1   : > { %v18407_v20 = vpop.f32.mrf.mxu0 }
 0x3c2   : > { %v18412_v53 = vpop.f32.mrf.mxu1 }
 0x3c3   : > { %v2882_v22 = vpop.f32.mrf.mxu0 }
 0x3c4   : > { %v2958_v23 = vpop.f32.mrf.mxu1 }
 0x3c5   : > { %v20399_v38 = vadd.f32 %v2958_v23, %v2350_v33  ;;  %v18417_v42 = vpop.f32.mrf.mxu0 }
 0x3c6   : > { %v18422_v10 = vpop.f32.mrf.mxu1 }
 0x3c7   : > { %v3034_v25 = vpop.f32.mrf.mxu0 }
 0x3c8   : > { %v20401_v29 = vadd.f32 %v3034_v25, %v2426_v6  ;;  %v3110_v30 = vpop.f32.mrf.mxu1 }
 0x3c9   : > { %v20403_v63 = vadd.f32 %v3110_v30, %v2502_v3  ;;  %v18427_v4 = vpop.f32.mrf.mxu0 }
 0x3ca   : > { %v18432_v46 = vpop.f32.mrf.mxu1 }
 0x3cb   : > { %v3186_v12 = vpop.f32.mrf.mxu0 }
 0x3cc   : > { %v20405_v37 = vadd.f32 %v3186_v12, %v2578_v45  ;;  %v3262_v55 = vpop.f32.mrf.mxu1 }
 0x3cd   : > { %v20407_v32 = vadd.f32 %v3262_v55, %v2654_v9  ;;  %v18437_v7 = vpop.f32.mrf.mxu0 }
 0x3ce   : > { %v18442_v62 = vpop.f32.mrf.mxu1 }
 0x3cf   : > { %v3338_v8 = vpop.f32.mrf.mxu0 }
 0x3d0   : > { %v20409_v36 = vadd.f32 %v3338_v8, %v2730_v39  ;;  %v3414_v24 = vpop.f32.mrf.mxu1 }
 0x3d1   : > { %v20411_v16 = vadd.f32 %v3414_v24, %v2806_v61  ;;  %v18447_v59 = vpop.f32.mrf.mxu0 }
 0x3d2   : > { %v18452_v33 = vpop.f32.mrf.mxu1 }
 0x3d3   : > { %v3490_v50 = vpop.f32.mrf.mxu0 }
 0x3d4   : > { %v20413_v6 = vadd.f32 %v3490_v50, %v2882_v22  ;;  %v3584_v3 = vpop.f32.mrf.mxu1 }
 0x3d5   : > { %v4099_v19 = vmul.f32 0.5, %v3584_v3  ;;  %v18457_v13 = vpop.f32.mrf.mxu0 }
 0x3d6   : > { %v18462_v45 = vpop.f32.mrf.mxu1 }
 0x3d7   : > { %v3657_v35 = vpop.f32.mrf.mxu0  ;;  %v4107_v9 = vsel %vm1487_vm7, %v4099_v19, -inf }
 0x3d8   : > { %v4100_v14 = vmul.f32 0.5, %v3657_v35  ;;  %4108 = vmax.xlane.f32.xlu0 %v4107_v9  ;;  %v3730_v20 = vpop.f32.mrf.mxu1 }
 0x3d9   : > { %v4101_v39 = vmul.f32 0.5, %v3730_v20  ;;  %v18467_v53 = vpop.f32.mrf.mxu0 }
 0x3da   : > { %v18472_v23 = vpop.f32.mrf.mxu1  ;;  %v4110_v61 = vsel %vm1487_vm7, %v4100_v14, -inf }
 0x3db   : > { %4111 = vmax.xlane.f32.xlu1 %v4110_v61  ;;  %v3803_v42 = vpop.f32.mrf.mxu0  ;;  %v4113_v22 = vsel %vm1487_vm7, %v4101_v39, -inf }
 0x3dc   : > { %v4102_v10 = vmul.f32 0.5, %v3803_v42  ;;  %4114 = vmax.xlane.f32.xlu0 %v4113_v22  ;;  %v3876_v25 = vpop.f32.mrf.mxu1 }
 0x3dd   : > { %v4103_v30 = vmul.f32 0.5, %v3876_v25  ;;  %v18477_v4 = vpop.f32.mrf.mxu0 }
 0x3de   : > { %v18482_v46 = vpop.f32.mrf.mxu1  ;;  %v4116_v12 = vsel %vm1487_vm7, %v4102_v10, -inf }
 0x3df   : > { %4117 = vmax.xlane.f32.xlu1 %v4116_v12  ;;  %v3949_v55 = vpop.f32.mrf.mxu0  ;;  %v4119_v7 = vsel %vm1487_vm7, %v4103_v30, -inf }
 0x3e0   : > { %v4104_v62 = vmul.f32 0.5, %v3949_v55  ;;  %4120 = vmax.xlane.f32.xlu0 %v4119_v7  ;;  %v4022_v8 = vpop.f32.mrf.mxu1 }
 0x3e1   : > { %v4105_v24 = vmul.f32 0.5, %v4022_v8  ;;  %v18487_v59 = vpop.f32.mrf.mxu0 }
 0x3e2   : > { %v18492_v33 = vpop.f32.mrf.mxu1  ;;  %v4122_v50 = vsel %vm1487_vm7, %v4104_v62, -inf }
 0x3e3   : > { %4123 = vmax.xlane.f32.xlu1 %v4122_v50  ;;  %v4095_v3 = vpop.f32.mrf.mxu0  ;;  %v4125_v13 = vsel %vm1487_vm7, %v4105_v24, -inf }
 0x3e4   : > { %v4106_v45 = vmul.f32 0.5, %v4095_v3  ;;  %4126 = vmax.xlane.f32.xlu0 %v4125_v13 }
 0x3e5   : > { %v18497_v35 = vpop.f32.mrf.mxu0 }
 0x3e6   : > { %v4128_v9 = vsel %vm1487_vm7, %v4106_v45, -inf }
 0x3e7   : > { %4129 = vmax.xlane.f32.xlu1 %v4128_v9 }
 0x461   : > { %v4109_v20 = vpop.xlane.xlu0 %4108 }
 0x462   : > { %v4131_v53 = vsub.f32 %v4099_v19, %v4109_v20 }
 0x464   : > { %v4139_v23 = vmul.f32 1.442695, %v4131_v53  ;;  %v4112_v61 = vpop.xlane.xlu1 %4111 }
 0x465   : > { %v4132_v42 = vsub.f32 %v4100_v14, %v4112_v61  ;;  %v4115_v22 = vpop.xlane.xlu0 %4114 }
 0x466   : > { %19349 = vpow2.f32 %v4139_v23  ;;  %v4133_v25 = vsub.f32 %v4101_v39, %v4115_v22 }
 0x467   : > { %v4141_v4 = vmul.f32 1.442695, %v4132_v42 }
 0x468   : > { %v4143_v46 = vmul.f32 1.442695, %v4133_v25  ;;  %v4118_v12 = vpop.xlane.xlu1 %4117 }
 0x469   : > { %19351 = vpow2.f32 %v4141_v4  ;;  %v4134_v55 = vsub.f32 %v4102_v10, %v4118_v12  ;;  %v4121_v7 = vpop.xlane.xlu0 %4120 }
 0x46a   : > { %19353 = vpow2.f32 %v4143_v46  ;;  %v4135_v8 = vsub.f32 %v4103_v30, %v4121_v7 }
 0x46b   : > { %v4145_v59 = vmul.f32 1.442695, %v4134_v55 }
 0x46c   : > { %v4147_v33 = vmul.f32 1.442695, %v4135_v8  ;;  %v4124_v50 = vpop.xlane.xlu1 %4123 }
 0x46d   : > { %19355 = vpow2.f32 %v4145_v59  ;;  %v4136_v3 = vsub.f32 %v4104_v62, %v4124_v50  ;;  %v4127_v19 = vpop.xlane.xlu0 %4126 }
 0x46e   : > { %19357 = vpow2.f32 %v4147_v33  ;;  %v4137_v13 = vsub.f32 %v4105_v24, %v4127_v19 }
 0x46f   : > { %v4149_v14 = vmul.f32 1.442695, %v4136_v3 }
 0x470   : > { %v4151_v35 = vmul.f32 1.442695, %v4137_v13  ;;  %v4130_v9 = vpop.xlane.xlu1 %4129 }
 0x471   : > { %19359 = vpow2.f32 %v4149_v14  ;;  %v4138_v39 = vsub.f32 %v4106_v45, %v4130_v9 }
 0x472   : > { %19361 = vpow2.f32 %v4151_v35 }
 0x473   : > { %v19350_v20 = vpop.eup %19349  ;;  %v4153_v53 = vmul.f32 1.442695, %v4138_v39  ;;  %v3509_v39 = vmul.f32 %v20312_v54, %v20188_v11 }
 0x474   : > { %v4155_v10 = vsel %vm1487_vm7, %v19350_v20, 0.0 }
 0x475   : > { %19363 = vpow2.f32 %v4153_v53  ;;  %4156 = vadd.xlane.f32.xlu0 %v4155_v10 }
 0x476   : > { %v19352_v30 = vpop.eup %19351 }
 0x477   : > { %v19354_v23 = vpop.eup %19353  ;;  %v4158_v61 = vsel %vm1487_vm7, %v19352_v30, 0.0 }
 0x478   : > { %4159 = vadd.xlane.f32.xlu1 %v4158_v61  ;;  %v4161_v62 = vsel %vm1487_vm7, %v19354_v23, 0.0 }
 0x479   : > { %4162 = vadd.xlane.f32.xlu0 %v4161_v62 }
 0x47a   : > { %v19356_v24 = vpop.eup %19355 }
 0x47b   : > { %v19358_v42 = vpop.eup %19357  ;;  %v4164_v22 = vsel %vm1487_vm7, %v19356_v24, 0.0 }
 0x47c   : > { %4165 = vadd.xlane.f32.xlu1 %v4164_v22  ;;  %v4167_v45 = vsel %vm1487_vm7, %v19358_v42, 0.0  ;;  %v3511_v22 = vmul.f32 %v20312_v54, %v19892_v56 }
 0x47d   : > { %4168 = vadd.xlane.f32.xlu0 %v4167_v45 }
 0x47e   : > { %v19360_v25 = vpop.eup %19359 }
 0x47f   : > { %v20428_v4 = vpop.eup %19361  ;;  %v4170_v46 = vsel %vm1487_vm7, %v19360_v25, 0.0 }
 0x480   : > { %4171 = vadd.xlane.f32.xlu1 %v4170_v46  ;;  %v4173_v12 = vsel %vm1487_vm7, %v20428_v4, 0.0 }
 0x481   : > { %4174 = vadd.xlane.f32.xlu0 %v4173_v12  ;;  %v3512_v12 = vmul.f32 %v20312_v54, %v20205_v31 }
 0x482   : > { %v20433_v55 = vpop.eup %19363 }
 0x483   : > { %v4176_v7 = vsel %vm1487_vm7, %v20433_v55, 0.0 }
 0x484   : > { %4177 = vadd.xlane.f32.xlu1 %v4176_v7  ;;  %v3513_v7 = vmul.f32 %v20312_v54, %v19923_v0 }
 0x4fe   : > { %v4157_v8 = vpop.xlane.xlu0 %4156 }
 0x4ff   : > { %19365 = vrcp.f32 %v4157_v8 }
 0x501   : > { %v4160_v59 = vpop.xlane.xlu1 %4159 }
 0x502   : > { %19367 = vrcp.f32 %v4160_v59  ;;  %v4163_v33 = vpop.xlane.xlu0 %4162 }
 0x503   : > { %19369 = vrcp.f32 %v4163_v33  ;;  %v3514_v33 = vmul.f32 %v20312_v54, %v20221_v21 }
 0x505   : > { %v4166_v50 = vpop.xlane.xlu1 %4165 }
 0x506   : > { %19371 = vrcp.f32 %v4166_v50  ;;  %v4169_v3 = vpop.xlane.xlu0 %4168  ;;  %v20477_v50 = vsel %vm4813_vm14, 1.0, %v19661_v26  ;;  %vm10080_vm14 = vcmp.lt.s32.totalorder %v19826_v28, 32 }
 0x507   : > { %19373 = vrcp.f32 %v4169_v3  ;;  %vm10081_vm15 = vmand %vm10079_vm13, %vm10080_vm14 }
 0x509   : > { %v4172_v19 = vpop.xlane.xlu1 %4171 }
 0x50a   : > { %19375 = vrcp.f32 %v4172_v19  ;;  %v4175_v13 = vpop.xlane.xlu0 %4174  ;;  %v4818_v19 = vmul.f32 %v20477_v50, %v19850_v44 }
 0x50b   : > { %19377 = vrcp.f32 %v4175_v13  ;;  %v4820_v13 = vmul.f32 %v20477_v50, %v19848_v43 }
 0x50c   : > { %v19366_v14 = vpop.eup %19365 }
 0x50d   : > { %v4178_v35 = vpop.xlane.xlu1 %4177  ;;  %v4187_v9 = vmul.f32 %v19366_v14, %v19350_v20  ;;  %v3510_v20 = vmul.f32 %v20312_v54, %v20195_v18  ;;  %v4821_v14 = vmul.f32 %v20477_v50, %v19877_v51 }
 0x50e   : > { %19379 = vrcp.f32 %v4178_v35  ;;  %v4822_v35 = vmul.f32 %v20477_v50, %v19879_v52 }
 0x50f   : > { %v19368_v53 = vpop.eup %19367  ;;  %18501 = vmatmul.mubr.msk.f32.vlgmr.msra.gmra.mxu1 %vm2277_vm8, %v4187_v9  ;;  %v4823_v9 = vmul.f32 %v20477_v50, %v19907_v60 }
 0x510   : > { %v19370_v10 = vpop.eup %19369  ;;  %18509 = vmatpush3.msk.msra.mxu1 %vm613_vm0, %v3509_v39  ;;  %18510 = vmatprep.mubr.msk.f32.mxu1 %vm19662_vm2, %v19661_v26  ;;  %v4188_v61 = vmul.f32 %v19368_v53, %v19352_v30  ;;  %v4824_v39 = vmul.f32 %v20477_v50, %v20034_v15  ;;  %v4825_v53 = vmul.f32 %v20477_v50, %v20040_v17 }
 0x511   : > { %18518 = vmatprep.subr.mxu1 %v19661_v26  ;;  %v4189_v62 = vmul.f32 %v19370_v10, %v19354_v23 }
 0x512   : > { %18506 = vmatmul.mubr.msk.f32.vlgmr.msra.gmra.mxu0 %vm2277_vm8, %v4188_v61 }
 0x513   : > { %v19372_v45 = vpop.eup %19371  ;;  %18511 = vmatmul.mubr.msk.f32.vlgmr.msra.gmra.mxu1 %vm2277_vm8, %v4189_v62  ;;  %18514 = vmatpush3.msk.msra.mxu0 %vm613_vm0, %v3510_v20 }
 0x514   : > { %v19374_v30 = vpop.eup %19373  ;;  %18519 = vmatpush3.msk.msra.mxu1 %vm613_vm0, %v3511_v22  ;;  %18515 = vmatprep.mubr.msk.f32.mxu0 %vm19662_vm2, %v19661_v26  ;;  %v4190_v23 = vmul.f32 %v19372_v45, %v19356_v24 }
 0x515   : > { %18520 = vmatprep.mubr.msk.f32.mxu1 %vm19662_vm2, %v19661_v26  ;;  %18523 = vmatprep.subr.mxu0 %v19661_v26  ;;  %v4191_v46 = vmul.f32 %v19374_v30, %v19358_v42 }
 0x516   : > { %18528 = vmatprep.subr.mxu1 %v19661_v26  ;;  %18516 = vmatmul.mubr.msk.f32.vlgmr.msra.gmra.mxu0 %vm2277_vm8, %v4190_v23 }
 0x517   : > { %v19376_v8 = vpop.eup %19375  ;;  %18521 = vmatmul.mubr.msk.f32.vlgmr.msra.gmra.mxu1 %vm2277_vm8, %v4191_v46  ;;  %18524 = vmatpush3.msk.msra.mxu0 %vm613_vm0, %v3512_v12 }
 0x518   : > { %v19378_v24 = vpop.eup %19377  ;;  %18529 = vmatpush3.msk.msra.mxu1 %vm613_vm0, %v3513_v7  ;;  %18525 = vmatprep.mubr.msk.f32.mxu0 %vm19662_vm2, %v19661_v26  ;;  %v4192_v42 = vmul.f32 %v19376_v8, %v19360_v25  ;;  %v4816_v25 = vmul.f32 %v20477_v50, %v19832_v34 }
 0x519   : > { %18530 = vmatprep.mubr.msk.f32.mxu1 %vm19662_vm2, %v19661_v26  ;;  %18533 = vmatprep.subr.mxu0 %v19661_v26  ;;  %v4193_v59 = vmul.f32 %v19378_v24, %v20428_v4  ;;  %v4817_v4 = vmul.f32 %v20477_v50, %v19844_v40 }
 0x51a   : > { %18538 = vmatprep.subr.mxu1 %v19661_v26  ;;  %18526 = vmatmul.mubr.msk.f32.vlgmr.msra.gmra.mxu0 %vm2277_vm8, %v4192_v42 }
 0x51b   : > { %v19380_v3 = vpop.eup %19379  ;;  %18531 = vmatmul.mubr.msk.f32.vlgmr.msra.gmra.mxu1 %vm2277_vm8, %v4193_v59  ;;  %18534 = vmatpush3.msk.msra.mxu0 %vm613_vm0, %v3514_v33 }
 0x51c   : > { %18539 = vmatpush3.xpose.msk.msra.mxu1 %vm606_vm1, %v4816_v25  ;;  %18535 = vmatprep.mubr.msk.f32.mxu0 %vm19662_vm2, %v19661_v26  ;;  %v4194_v54 = vmul.f32 %v19380_v3, %v20433_v55  ;;  %v4819_v55 = vmul.f32 %v20477_v50, %v19859_v47 }
 0x51d   : > { %18540 = vmatprep.mubr.msk.f32.mxu1 %vm19662_vm2, %v19661_v26  ;;  %18543 = vmatprep.subr.mxu0 %v19661_v26 }
 0x51e   : > { %18548 = vmatprep.subr.mxu1 %v19661_v26  ;;  %18536 = vmatmul.mubr.msk.f32.vlgmr.msra.gmra.mxu0 %vm2277_vm8, %v4194_v54 }
 0x51f   : > { %18541 = vmatmul.mubr.msk.f32.vlgmr.msra.gmra.mxu1 %vm606_vm1, %v19846_v41  ;;  %18544 = vmatpush3.xpose.msk.msra.mxu0 %vm606_vm1, %v4817_v4 }
 0x520   : > { %18549 = vmatpush3.xpose.msk.msra.mxu1 %vm606_vm1, %v4818_v19  ;;  %18545 = vmatprep.mubr.msk.f32.mxu0 %vm19662_vm2, %v19661_v26 }
 0x521   : > { %18550 = vmatprep.mubr.msk.f32.mxu1 %vm19662_vm2, %v19661_v26  ;;  %18553 = vmatprep.subr.mxu0 %v19661_v26 }
 0x522   : > { %18558 = vmatprep.subr.mxu1 %v19661_v26  ;;  %18546 = vmatmul.mubr.msk.f32.vlgmr.msra.gmra.mxu0 %vm606_vm1, %v19867_v49 }
 0x523   : > { %18551 = vmatmul.mubr.msk.f32.vlgmr.msra.gmra.mxu1 %vm606_vm1, %v19861_v48  ;;  %18554 = vmatpush3.xpose.msk.msra.mxu0 %vm606_vm1, %v4819_v55 }
 0x524   : > { %18559 = vmatpush3.xpose.msk.msra.mxu1 %vm606_vm1, %v4820_v13  ;;  %18555 = vmatprep.mubr.msk.f32.mxu0 %vm19662_vm2, %v19661_v26 }
 0x525   : > { %18560 = vmatprep.mubr.msk.f32.mxu1 %vm19662_vm2, %v19661_v26  ;;  %18563 = vmatprep.subr.mxu0 %v19661_v26 }
 0x526   : > { %18568 = vmatprep.subr.mxu1 %v19661_v26  ;;  %18556 = vmatmul.mubr.msk.f32.vlgmr.msra.gmra.mxu0 %vm606_vm1, %v19900_v58 }
 0x527   : > { %18561 = vmatmul.mubr.msk.f32.vlgmr.msra.gmra.mxu1 %vm606_vm1, %v19894_v57  ;;  %18564 = vmatpush3.xpose.msk.msra.mxu0 %vm606_vm1, %v4821_v14 }
 0x528   : > { %18569 = vmatpush3.xpose.msk.msra.mxu1 %vm606_vm1, %v4822_v35  ;;  %18565 = vmatprep.mubr.msk.f32.mxu0 %vm19662_vm2, %v19661_v26 }
 0x529   : > { %18570 = vmatprep.mubr.msk.f32.mxu1 %vm19662_vm2, %v19661_v26  ;;  %18573 = vmatprep.subr.mxu0 %v19661_v26 }
 0x52a   : > { %18578 = vmatprep.subr.mxu1 %v19661_v26  ;;  %18566 = vmatmul.mubr.msk.f32.vlgmr.msra.gmra.mxu0 %vm606_vm1, %v19933_v2 }
 0x52b   : > { %18571 = vmatmul.mubr.msk.f32.vlgmr.msra.gmra.mxu1 %vm606_vm1, %v19925_v1  ;;  %18574 = vmatpush3.xpose.msk.msra.mxu0 %vm606_vm1, %v4823_v9 }
 0x52c   : > { %18579 = vmatpush3.msk.msra.mxu1 %vm613_vm0, %v4824_v39  ;;  %18575 = vmatprep.mubr.msk.f32.mxu0 %vm19662_vm2, %v19661_v26 }
 0x52d   : > { %18583 = vmatprep.subr.mxu0 %v19661_v26  ;;  %18580 = vmatprep.mubr.msk.f32.mxu1 %vm19662_vm2, %v19661_v26 }
 0x52e   : > { %18576 = vmatmul.mubr.msk.f32.vlgmr.msra.gmra.mxu0 %vm606_vm1, %v19953_v5  ;;  %18588 = vmatprep.subr.mxu1 %v19661_v26 }
 0x52f   : > { %18584 = vmatpush3.msk.msra.mxu0 %vm613_vm0, %v4825_v53  ;;  %18585 = vmatprep.mubr.msk.f32.mxu0 %vm19662_vm2, %v19661_v26 }
 0x530   : > { %18593 = vmatprep.subr.mxu0 %v19661_v26 }
 0x5cf   : > { %v4267_v10 = vpop.f32.mrf.mxu1 }
 0x5d0   : > { %v20565_v61 = vadd.f32 %v4267_v10, %v20399_v38 }
 0x5d1   : > { %v18502_v62 = vpop.f32.mrf.mxu1 }
 0x5d2   : > { %v4343_v20 = vpop.f32.mrf.mxu0 }
 0x5d3   : > { %v20568_v22 = vadd.f32 %v4343_v20, %v20401_v29  ;;  %v4419_v45 = vpop.f32.mrf.mxu1 }
 0x5d4   : > { %v20571_v30 = vadd.f32 %v4419_v45, %v20403_v63  ;;  %v18507_v23 = vpop.f32.mrf.mxu0 }
 0x5d5   : > { %v18512_v46 = vpop.f32.mrf.mxu1 }
 0x5d6   : > { %v4495_v12 = vpop.f32.mrf.mxu0 }
 0x5d7   : > { %v20574_v7 = vadd.f32 %v4495_v12, %v20405_v37  ;;  %v4571_v8 = vpop.f32.mrf.mxu1 }
 0x5d8   : > { %v20577_v24 = vadd.f32 %v4571_v8, %v20407_v32  ;;  %v18517_v38 = vpop.f32.mrf.mxu0 }
 0x5d9   : > { %v18522_v42 = vpop.f32.mrf.mxu1 }
 0x5da   : > { %v4647_v59 = vpop.f32.mrf.mxu0 }
 0x5db   : > { %v20580_v29 = vadd.f32 %v4647_v59, %v20409_v36  ;;  %v4723_v33 = vpop.f32.mrf.mxu1 }
 0x5dc   : > { %v20583_v63 = vadd.f32 %v4723_v33, %v20411_v16  ;;  %v18527_v25 = vpop.f32.mrf.mxu0 }
 0x5dd   : > { %v18532_v3 = vpop.f32.mrf.mxu1 }
 0x5de   : > { %v4799_v54 = vpop.f32.mrf.mxu0 }
 0x5df   : > { %v20586_v37 = vadd.f32 %v4799_v54, %v20413_v6  ;;  %v4901_v4 = vpop.f32.mrf.mxu1 }
 0x5e0   : > { %v5416_v19 = vmul.f32 0.5, %v4901_v4  ;;  %v18537_v32 = vpop.f32.mrf.mxu0 }
 0x5e1   : > { %v18542_v55 = vpop.f32.mrf.mxu1 }
 0x5e2   : > { %v4974_v13 = vpop.f32.mrf.mxu0  ;;  %v5424_v14 = vsel %vm1487_vm7, %v5416_v19, -inf }
 0x5e3   : > { %v5417_v35 = vmul.f32 0.5, %v4974_v13  ;;  %5425 = vmax.xlane.f32.xlu0 %v5424_v14  ;;  %v5047_v36 = vpop.f32.mrf.mxu1 }
 0x5e4   : > { %v5418_v9 = vmul.f32 0.5, %v5047_v36  ;;  %v18547_v39 = vpop.f32.mrf.mxu0 }
 0x5e5   : > { %v18552_v16 = vpop.f32.mrf.mxu1  ;;  %v5427_v53 = vsel %vm1487_vm7, %v5417_v35, -inf }
 0x5e6   : > { %5428 = vmax.xlane.f32.xlu1 %v5427_v53  ;;  %v5120_v10 = vpop.f32.mrf.mxu0  ;;  %v5430_v6 = vsel %vm1487_vm7, %v5418_v9, -inf }
 0x5e7   : > { %v5419_v62 = vmul.f32 0.5, %v5120_v10  ;;  %5431 = vmax.xlane.f32.xlu0 %v5430_v6  ;;  %v5193_v20 = vpop.f32.mrf.mxu1 }
 0x5e8   : > { %v5420_v45 = vmul.f32 0.5, %v5193_v20  ;;  %v18557_v23 = vpop.f32.mrf.mxu0 }
 0x5e9   : > { %v18562_v46 = vpop.f32.mrf.mxu1  ;;  %v5433_v12 = vsel %vm1487_vm7, %v5419_v62, -inf }
 0x5ea   : > { %5434 = vmax.xlane.f32.xlu1 %v5433_v12  ;;  %v5266_v8 = vpop.f32.mrf.mxu0  ;;  %v5436_v38 = vsel %vm1487_vm7, %v5420_v45, -inf }
 0x5eb   : > { %v5421_v42 = vmul.f32 0.5, %v5266_v8  ;;  %5437 = vmax.xlane.f32.xlu0 %v5436_v38  ;;  %v5339_v59 = vpop.f32.mrf.mxu1 }
 0x5ec   : > { %v5422_v33 = vmul.f32 0.5, %v5339_v59  ;;  %v18567_v25 = vpop.f32.mrf.mxu0 }
 0x5ed   : > { %v18572_v3 = vpop.f32.mrf.mxu1  ;;  %v5439_v54 = vsel %vm1487_vm7, %v5421_v42, -inf }
 0x5ee   : > { %5440 = vmax.xlane.f32.xlu1 %v5439_v54  ;;  %v5412_v4 = vpop.f32.mrf.mxu0  ;;  %v5442_v32 = vsel %vm1487_vm7, %v5422_v33, -inf }
 0x5ef   : > { %v5423_v55 = vmul.f32 0.5, %v5412_v4  ;;  %5443 = vmax.xlane.f32.xlu0 %v5442_v32 }
 0x5f0   : > { %v18577_v13 = vpop.f32.mrf.mxu0 }
 0x5f1   : > { %v5445_v14 = vsel %vm1487_vm7, %v5423_v55, -inf }
 0x5f2   : > { %5446 = vmax.xlane.f32.xlu1 %v5445_v14 }
 0x66c   : > { %v5426_v36 = vpop.xlane.xlu0 %5425 }
 0x66d   : > { %v5448_v39 = vsub.f32 %v5416_v19, %v5426_v36 }
 0x66f   : > { %v5456_v16 = vmul.f32 1.442695, %v5448_v39  ;;  %v5429_v53 = vpop.xlane.xlu1 %5428 }
 0x670   : > { %v5449_v10 = vsub.f32 %v5417_v35, %v5429_v53  ;;  %v5432_v6 = vpop.xlane.xlu0 %5431 }
 0x671   : > { %19381 = vpow2.f32 %v5456_v16  ;;  %v5450_v20 = vsub.f32 %v5418_v9, %v5432_v6 }
 0x672   : > { %v5458_v23 = vmul.f32 1.442695, %v5449_v10 }
 0x673   : > { %v5460_v46 = vmul.f32 1.442695, %v5450_v20  ;;  %v5435_v12 = vpop.xlane.xlu1 %5434 }
 0x674   : > { %19383 = vpow2.f32 %v5458_v23  ;;  %v5451_v8 = vsub.f32 %v5419_v62, %v5435_v12  ;;  %v5438_v38 = vpop.xlane.xlu0 %5437 }
 0x675   : > { %19385 = vpow2.f32 %v5460_v46  ;;  %v5452_v59 = vsub.f32 %v5420_v45, %v5438_v38 }
 0x676   : > { %v5462_v25 = vmul.f32 1.442695, %v5451_v8 }
 0x677   : > { %v5464_v3 = vmul.f32 1.442695, %v5452_v59  ;;  %v5441_v54 = vpop.xlane.xlu1 %5440 }
 0x678   : > { %19387 = vpow2.f32 %v5462_v25  ;;  %v5453_v4 = vsub.f32 %v5421_v42, %v5441_v54  ;;  %v5444_v19 = vpop.xlane.xlu0 %5443 }
 0x679   : > { %19389 = vpow2.f32 %v5464_v3  ;;  %v5454_v32 = vsub.f32 %v5422_v33, %v5444_v19 }
 0x67a   : > { %v5466_v35 = vmul.f32 1.442695, %v5453_v4 }
 0x67b   : > { %v5468_v13 = vmul.f32 1.442695, %v5454_v32  ;;  %v5447_v14 = vpop.xlane.xlu1 %5446 }
 0x67c   : > { %19391 = vpow2.f32 %v5466_v35  ;;  %v5455_v9 = vsub.f32 %v5423_v55, %v5447_v14 }
 0x67d   : > { %19393 = vpow2.f32 %v5468_v13 }
 0x67e   : > { %v19382_v36 = vpop.eup %19381  ;;  %v5470_v39 = vmul.f32 1.442695, %v5455_v9  ;;  %v4826_v9 = vmul.f32 %v20477_v50, %v20188_v11 }
 0x67f   : > { %v5472_v62 = vsel %vm1487_vm7, %v19382_v36, 0.0 }
 0x680   : > { %19395 = vpow2.f32 %v5470_v39  ;;  %5473 = vadd.xlane.f32.xlu0 %v5472_v62 }
 0x681   : > { %v19384_v45 = vpop.eup %19383 }
 0x682   : > { %v19386_v16 = vpop.eup %19385  ;;  %v5475_v53 = vsel %vm1487_vm7, %v19384_v45, 0.0 }
 0x683   : > { %5476 = vadd.xlane.f32.xlu1 %v5475_v53  ;;  %v5478_v42 = vsel %vm1487_vm7, %v19386_v16, 0.0 }
 0x684   : > { %5479 = vadd.xlane.f32.xlu0 %v5478_v42 }
 0x685   : > { %v19388_v33 = vpop.eup %19387 }
 0x686   : > { %v19390_v10 = vpop.eup %19389  ;;  %v5481_v6 = vsel %vm1487_vm7, %v19388_v33, 0.0 }
 0x687   : > { %5482 = vadd.xlane.f32.xlu1 %v5481_v6  ;;  %v5484_v55 = vsel %vm1487_vm7, %v19390_v10, 0.0  ;;  %v4828_v6 = vmul.f32 %v20477_v50, %v19892_v56 }
 0x688   : > { %5485 = vadd.xlane.f32.xlu0 %v5484_v55 }
 0x689   : > { %v19392_v20 = vpop.eup %19391 }
 0x68a   : > { %v20601_v23 = vpop.eup %19393  ;;  %v5487_v46 = vsel %vm1487_vm7, %v19392_v20, 0.0 }
 0x68b   : > { %5488 = vadd.xlane.f32.xlu1 %v5487_v46  ;;  %v5490_v12 = vsel %vm1487_vm7, %v20601_v23, 0.0 }
 0x68c   : > { %5491 = vadd.xlane.f32.xlu0 %v5490_v12  ;;  %v4829_v12 = vmul.f32 %v20477_v50, %v20205_v31 }
 0x68d   : > { %v20606_v8 = vpop.eup %19395 }
 0x68e   : > { %v5493_v38 = vsel %vm1487_vm7, %v20606_v8, 0.0 }
 0x68f   : > { %5494 = vadd.xlane.f32.xlu1 %v5493_v38  ;;  %v4830_v38 = vmul.f32 %v20477_v50, %v19923_v0 }
 0x709   : > { %v5474_v59 = vpop.xlane.xlu0 %5473 }
 0x70a   : > { %19397 = vrcp.f32 %v5474_v59 }
 0x70c   : > { %v5477_v25 = vpop.xlane.xlu1 %5476 }
 0x70d   : > { %19399 = vrcp.f32 %v5477_v25  ;;  %v5480_v3 = vpop.xlane.xlu0 %5479 }
 0x70e   : > { %19401 = vrcp.f32 %v5480_v3  ;;  %v4831_v3 = vmul.f32 %v20477_v50, %v20221_v21 }
 0x710   : > { %v5483_v54 = vpop.xlane.xlu1 %5482 }
 0x711   : > { %19403 = vrcp.f32 %v5483_v54  ;;  %v5486_v4 = vpop.xlane.xlu0 %5485  ;;  %v20650_v54 = vsel %vm6130_vm4, 1.0, %v19661_v26  ;;  %vm11397_vm4 = vcmp.lt.s32.totalorder %v19826_v28, 36 }
 0x712   : > { %19405 = vrcp.f32 %v5486_v4  ;;  %vm11398_vm5 = vmand %vm11396_vm3, %vm11397_vm4 }
 0x714   : > { %v5489_v19 = vpop.xlane.xlu1 %5488 }
 0x715   : > { %19407 = vrcp.f32 %v5489_v19  ;;  %v5492_v32 = vpop.xlane.xlu0 %5491  ;;  %v6135_v19 = vmul.f32 %v20650_v54, %v19850_v44 }
 0x716   : > { %19409 = vrcp.f32 %v5492_v32  ;;  %v6137_v32 = vmul.f32 %v20650_v54, %v19848_v43 }
 0x717   : > { %v19398_v35 = vpop.eup %19397 }
 0x718   : > { %v5495_v13 = vpop.xlane.xlu1 %5494  ;;  %v5504_v14 = vmul.f32 %v19398_v35, %v19382_v36  ;;  %v4827_v36 = vmul.f32 %v20477_v50, %v20195_v18  ;;  %v6138_v35 = vmul.f32 %v20650_v54, %v19877_v51 }
 0x719   : > { %19411 = vrcp.f32 %v5495_v13  ;;  %v6139_v13 = vmul.f32 %v20650_v54, %v19879_v52 }
 0x71a   : > { %v19400_v39 = vpop.eup %19399  ;;  %18581 = vmatmul.mubr.msk.f32.vlgmr.msra.gmra.mxu1 %vm2277_vm8, %v5504_v14  ;;  %v6140_v14 = vmul.f32 %v20650_v54, %v19907_v60 }
 0x71b   : > { %v19402_v62 = vpop.eup %19401  ;;  %18589 = vmatpush3.msk.msra.mxu1 %vm613_vm0, %v4826_v9  ;;  %18590 = vmatprep.mubr.msk.f32.mxu1 %vm19662_vm2, %v19661_v26  ;;  %v5505_v53 = vmul.f32 %v19400_v39, %v19384_v45  ;;  %v6141_v9 = vmul.f32 %v20650_v54, %v20034_v15  ;;  %v6142_v39 = vmul.f32 %v20650_v54, %v20040_v17 }
 0x71c   : > { %18598 = vmatprep.subr.mxu1 %v19661_v26  ;;  %v5506_v42 = vmul.f32 %v19402_v62, %v19386_v16 }
 0x71d   : > { %18586 = vmatmul.mubr.msk.f32.vlgmr.msra.gmra.mxu0 %vm2277_vm8, %v5505_v53 }
 0x71e   : > { %v19404_v55 = vpop.eup %19403  ;;  %18591 = vmatmul.mubr.msk.f32.vlgmr.msra.gmra.mxu1 %vm2277_vm8, %v5506_v42  ;;  %18594 = vmatpush3.msk.msra.mxu0 %vm613_vm0, %v4827_v36 }
 0x71f   : > { %v19406_v45 = vpop.eup %19405  ;;  %18599 = vmatpush3.msk.msra.mxu1 %vm613_vm0, %v4828_v6  ;;  %18595 = vmatprep.mubr.msk.f32.mxu0 %vm19662_vm2, %v19661_v26  ;;  %v5507_v16 = vmul.f32 %v19404_v55, %v19388_v33 }
 0x720   : > { %18600 = vmatprep.mubr.msk.f32.mxu1 %vm19662_vm2, %v19661_v26  ;;  %18603 = vmatprep.subr.mxu0 %v19661_v26  ;;  %v5508_v46 = vmul.f32 %v19406_v45, %v19390_v10 }
 0x721   : > { %18608 = vmatprep.subr.mxu1 %v19661_v26  ;;  %18596 = vmatmul.mubr.msk.f32.vlgmr.msra.gmra.mxu0 %vm2277_vm8, %v5507_v16 }
 0x722   : > { %v19408_v59 = vpop.eup %19407  ;;  %18601 = vmatmul.mubr.msk.f32.vlgmr.msra.gmra.mxu1 %vm2277_vm8, %v5508_v46  ;;  %18604 = vmatpush3.msk.msra.mxu0 %vm613_vm0, %v4829_v12 }
 0x723   : > { %v19410_v33 = vpop.eup %19409  ;;  %18609 = vmatpush3.msk.msra.mxu1 %vm613_vm0, %v4830_v38  ;;  %18605 = vmatprep.mubr.msk.f32.mxu0 %vm19662_vm2, %v19661_v26  ;;  %v5509_v10 = vmul.f32 %v19408_v59, %v19392_v20  ;;  %v6133_v20 = vmul.f32 %v20650_v54, %v19832_v34 }
 0x724   : > { %18610 = vmatprep.mubr.msk.f32.mxu1 %vm19662_vm2, %v19661_v26  ;;  %18613 = vmatprep.subr.mxu0 %v19661_v26  ;;  %v5510_v25 = vmul.f32 %v19410_v33, %v20601_v23  ;;  %v6134_v23 = vmul.f32 %v20650_v54, %v19844_v40 }
 0x725   : > { %18618 = vmatprep.subr.mxu1 %v19661_v26  ;;  %18606 = vmatmul.mubr.msk.f32.vlgmr.msra.gmra.mxu0 %vm2277_vm8, %v5509_v10 }
 0x726   : > { %v19412_v4 = vpop.eup %19411  ;;  %18611 = vmatmul.mubr.msk.f32.vlgmr.msra.gmra.mxu1 %vm2277_vm8, %v5510_v25  ;;  %18614 = vmatpush3.msk.msra.mxu0 %vm613_vm0, %v4831_v3 }
 0x727   : > { %18619 = vmatpush3.xpose.msk.msra.mxu1 %vm606_vm1, %v6133_v20  ;;  %18615 = vmatprep.mubr.msk.f32.mxu0 %vm19662_vm2, %v19661_v26  ;;  %v5511_v50 = vmul.f32 %v19412_v4, %v20606_v8  ;;  %v6136_v8 = vmul.f32 %v20650_v54, %v19859_v47 }
 0x728   : > { %18620 = vmatprep.mubr.msk.f32.mxu1 %vm19662_vm2, %v19661_v26  ;;  %18623 = vmatprep.subr.mxu0 %v19661_v26 }
 0x729   : > { %18628 = vmatprep.subr.mxu1 %v19661_v26  ;;  %18616 = vmatmul.mubr.msk.f32.vlgmr.msra.gmra.mxu0 %vm2277_vm8, %v5511_v50 }
 0x72a   : > { %18621 = vmatmul.mubr.msk.f32.vlgmr.msra.gmra.mxu1 %vm606_vm1, %v19846_v41  ;;  %18624 = vmatpush3.xpose.msk.msra.mxu0 %vm606_vm1, %v6134_v23 }
 0x72b   : > { %18629 = vmatpush3.xpose.msk.msra.mxu1 %vm606_vm1, %v6135_v19  ;;  %18625 = vmatprep.mubr.msk.f32.mxu0 %vm19662_vm2, %v19661_v26 }
 0x72c   : > { %18630 = vmatprep.mubr.msk.f32.mxu1 %vm19662_vm2, %v19661_v26  ;;  %18633 = vmatprep.subr.mxu0 %v19661_v26 }
 0x72d   : > { %18638 = vmatprep.subr.mxu1 %v19661_v26  ;;  %18626 = vmatmul.mubr.msk.f32.vlgmr.msra.gmra.mxu0 %vm606_vm1, %v19867_v49 }
 0x72e   : > { %18631 = vmatmul.mubr.msk.f32.vlgmr.msra.gmra.mxu1 %vm606_vm1, %v19861_v48  ;;  %18634 = vmatpush3.xpose.msk.msra.mxu0 %vm606_vm1, %v6136_v8 }
 0x72f   : > { %18639 = vmatpush3.xpose.msk.msra.mxu1 %vm606_vm1, %v6137_v32  ;;  %18635 = vmatprep.mubr.msk.f32.mxu0 %vm19662_vm2, %v19661_v26 }
 0x730   : > { %18640 = vmatprep.mubr.msk.f32.mxu1 %vm19662_vm2, %v19661_v26  ;;  %18643 = vmatprep.subr.mxu0 %v19661_v26 }
 0x731   : > { %18648 = vmatprep.subr.mxu1 %v19661_v26  ;;  %18636 = vmatmul.mubr.msk.f32.vlgmr.msra.gmra.mxu0 %vm606_vm1, %v19900_v58 }
 0x732   : > { %18641 = vmatmul.mubr.msk.f32.vlgmr.msra.gmra.mxu1 %vm606_vm1, %v19894_v57  ;;  %18644 = vmatpush3.xpose.msk.msra.mxu0 %vm606_vm1, %v6138_v35 }
 0x733   : > { %18649 = vmatpush3.xpose.msk.msra.mxu1 %vm606_vm1, %v6139_v13  ;;  %18645 = vmatprep.mubr.msk.f32.mxu0 %vm19662_vm2, %v19661_v26 }
 0x734   : > { %18650 = vmatprep.mubr.msk.f32.mxu1 %vm19662_vm2, %v19661_v26  ;;  %18653 = vmatprep.subr.mxu0 %v19661_v26 }
 0x735   : > { %18658 = vmatprep.subr.mxu1 %v19661_v26  ;;  %18646 = vmatmul.mubr.msk.f32.vlgmr.msra.gmra.mxu0 %vm606_vm1, %v19933_v2 }
 0x736   : > { %18651 = vmatmul.mubr.msk.f32.vlgmr.msra.gmra.mxu1 %vm606_vm1, %v19925_v1  ;;  %18654 = vmatpush3.xpose.msk.msra.mxu0 %vm606_vm1, %v6140_v14 }
 0x737   : > { %18659 = vmatpush3.msk.msra.mxu1 %vm613_vm0, %v6141_v9  ;;  %18655 = vmatprep.mubr.msk.f32.mxu0 %vm19662_vm2, %v19661_v26 }
 0x738   : > { %18663 = vmatprep.subr.mxu0 %v19661_v26  ;;  %18660 = vmatprep.mubr.msk.f32.mxu1 %vm19662_vm2, %v19661_v26 }
 0x739   : > { %18656 = vmatmul.mubr.msk.f32.vlgmr.msra.gmra.mxu0 %vm606_vm1, %v19953_v5  ;;  %18668 = vmatprep.subr.mxu1 %v19661_v26 }
 0x73a   : > { %18664 = vmatpush3.msk.msra.mxu0 %vm613_vm0, %v6142_v39  ;;  %18665 = vmatprep.mubr.msk.f32.mxu0 %vm19662_vm2, %v19661_v26 }
 0x73b   : > { %18673 = vmatprep.subr.mxu0 %v19661_v26 }
 0x7da   : > { %v5584_v62 = vpop.f32.mrf.mxu1 }
 0x7db   : > { %v20738_v53 = vadd.f32 %v5584_v62, %v20565_v61 }
 0x7dc   : > { %v18582_v42 = vpop.f32.mrf.mxu1 }
 0x7dd   : > { %v5660_v36 = vpop.f32.mrf.mxu0 }
 0x7de   : > { %v20741_v6 = vadd.f32 %v5660_v36, %v20568_v22  ;;  %v5736_v55 = vpop.f32.mrf.mxu1 }
 0x7df   : > { %v20744_v45 = vadd.f32 %v5736_v55, %v20571_v30  ;;  %v18587_v16 = vpop.f32.mrf.mxu0 }
 0x7e0   : > { %v18592_v46 = vpop.f32.mrf.mxu1 }
 0x7e1   : > { %v5812_v12 = vpop.f32.mrf.mxu0 }
 0x7e2   : > { %v20747_v38 = vadd.f32 %v5812_v12, %v20574_v7  ;;  %v5888_v59 = vpop.f32.mrf.mxu1 }
 0x7e3   : > { %v20750_v33 = vadd.f32 %v5888_v59, %v20577_v24  ;;  %v18597_v61 = vpop.f32.mrf.mxu0 }
 0x7e4   : > { %v18602_v10 = vpop.f32.mrf.mxu1 }
 0x7e5   : > { %v5964_v25 = vpop.f32.mrf.mxu0 }
 0x7e6   : > { %v20753_v22 = vadd.f32 %v5964_v25, %v20580_v29  ;;  %v6040_v3 = vpop.f32.mrf.mxu1 }
 0x7e7   : > { %v20756_v30 = vadd.f32 %v6040_v3, %v20583_v63  ;;  %v18607_v20 = vpop.f32.mrf.mxu0 }
 0x7e8   : > { %v18612_v4 = vpop.f32.mrf.mxu1 }
 0x7e9   : > { %v6116_v50 = vpop.f32.mrf.mxu0 }
 0x7ea   : > { %v20759_v7 = vadd.f32 %v6116_v50, %v20586_v37  ;;  %v6218_v23 = vpop.f32.mrf.mxu1 }
 0x7eb   : > { %v6733_v19 = vmul.f32 0.5, %v6218_v23  ;;  %v18617_v24 = vpop.f32.mrf.mxu0 }
 0x7ec   : > { %v18622_v8 = vpop.f32.mrf.mxu1 }
 0x7ed   : > { %v6291_v32 = vpop.f32.mrf.mxu0  ;;  %v6741_v35 = vsel %vm1487_vm7, %v6733_v19, -inf }
 0x7ee   : > { %v6734_v13 = vmul.f32 0.5, %v6291_v32  ;;  %6742 = vmax.xlane.f32.xlu0 %v6741_v35  ;;  %v6364_v29 = vpop.f32.mrf.mxu1 }
 0x7ef   : > { %v6735_v14 = vmul.f32 0.5, %v6364_v29  ;;  %v18627_v9 = vpop.f32.mrf.mxu0 }
 0x7f0   : > { %v18632_v63 = vpop.f32.mrf.mxu1  ;;  %v6744_v39 = vsel %vm1487_vm7, %v6734_v13, -inf }
 0x7f1   : > { %6745 = vmax.xlane.f32.xlu1 %v6744_v39  ;;  %v6437_v62 = vpop.f32.mrf.mxu0  ;;  %v6747_v37 = vsel %vm1487_vm7, %v6735_v14, -inf }
 0x7f2   : > { %v6736_v42 = vmul.f32 0.5, %v6437_v62  ;;  %6748 = vmax.xlane.f32.xlu0 %v6747_v37  ;;  %v6510_v36 = vpop.f32.mrf.mxu1 }
 0x7f3   : > { %v6737_v55 = vmul.f32 0.5, %v6510_v36  ;;  %v18637_v16 = vpop.f32.mrf.mxu0 }
 0x7f4   : > { %v18642_v46 = vpop.f32.mrf.mxu1  ;;  %v6750_v12 = vsel %vm1487_vm7, %v6736_v42, -inf }
 0x7f5   : > { %6751 = vmax.xlane.f32.xlu1 %v6750_v12  ;;  %v6583_v59 = vpop.f32.mrf.mxu0  ;;  %v6753_v61 = vsel %vm1487_vm7, %v6737_v55, -inf }
 0x7f6   : > { %v6738_v10 = vmul.f32 0.5, %v6583_v59  ;;  %6754 = vmax.xlane.f32.xlu0 %v6753_v61  ;;  %v6656_v25 = vpop.f32.mrf.mxu1 }
 0x7f7   : > { %v6739_v3 = vmul.f32 0.5, %v6656_v25  ;;  %v18647_v20 = vpop.f32.mrf.mxu0 }
 0x7f8   : > { %v18652_v4 = vpop.f32.mrf.mxu1  ;;  %v6756_v50 = vsel %vm1487_vm7, %v6738_v10, -inf }
 0x7f9   : > { %6757 = vmax.xlane.f32.xlu1 %v6756_v50  ;;  %v6729_v23 = vpop.f32.mrf.mxu0  ;;  %v6759_v24 = vsel %vm1487_vm7, %v6739_v3, -inf }
 0x7fa   : > { %v6740_v8 = vmul.f32 0.5, %v6729_v23  ;;  %6760 = vmax.xlane.f32.xlu0 %v6759_v24 }
 0x7fb   : > { %v18657_v32 = vpop.f32.mrf.mxu0 }
 0x7fc   : > { %v6762_v35 = vsel %vm1487_vm7, %v6740_v8, -inf }
 0x7fd   : > { %6763 = vmax.xlane.f32.xlu1 %v6762_v35 }
 0x877   : > { %v6743_v29 = vpop.xlane.xlu0 %6742 }
 0x878   : > { %v6765_v9 = vsub.f32 %v6733_v19, %v6743_v29 }
 0x87a   : > { %v6773_v63 = vmul.f32 1.442695, %v6765_v9  ;;  %v6746_v39 = vpop.xlane.xlu1 %6745 }
 0x87b   : > { %v6766_v62 = vsub.f32 %v6734_v13, %v6746_v39  ;;  %v6749_v37 = vpop.xlane.xlu0 %6748 }
 0x87c   : > { %19413 = vpow2.f32 %v6773_v63  ;;  %v6767_v36 = vsub.f32 %v6735_v14, %v6749_v37 }
 0x87d   : > { %v6775_v16 = vmul.f32 1.442695, %v6766_v62 }
 0x87e   : > { %v6777_v46 = vmul.f32 1.442695, %v6767_v36  ;;  %v6752_v12 = vpop.xlane.xlu1 %6751 }
 0x87f   : > { %19415 = vpow2.f32 %v6775_v16  ;;  %v6768_v59 = vsub.f32 %v6736_v42, %v6752_v12  ;;  %v6755_v61 = vpop.xlane.xlu0 %6754 }
 0x880   : > { %19417 = vpow2.f32 %v6777_v46  ;;  %v6769_v25 = vsub.f32 %v6737_v55, %v6755_v61 }
 0x881   : > { %v6779_v20 = vmul.f32 1.442695, %v6768_v59 }
 0x882   : > { %v6781_v4 = vmul.f32 1.442695, %v6769_v25  ;;  %v6758_v50 = vpop.xlane.xlu1 %6757 }
 0x883   : > { %19419 = vpow2.f32 %v6779_v20  ;;  %v6770_v23 = vsub.f32 %v6738_v10, %v6758_v50  ;;  %v6761_v19 = vpop.xlane.xlu0 %6760 }
 0x884   : > { %19421 = vpow2.f32 %v6781_v4  ;;  %v6771_v24 = vsub.f32 %v6739_v3, %v6761_v19 }
 0x885   : > { %v6783_v13 = vmul.f32 1.442695, %v6770_v23 }
 0x886   : > { %v6785_v32 = vmul.f32 1.442695, %v6771_v24  ;;  %v6764_v35 = vpop.xlane.xlu1 %6763 }
 0x887   : > { %19423 = vpow2.f32 %v6783_v13  ;;  %v6772_v14 = vsub.f32 %v6740_v8, %v6764_v35 }
 0x888   : > { %19425 = vpow2.f32 %v6785_v32 }
 0x889   : > { %v19414_v29 = vpop.eup %19413  ;;  %v6787_v9 = vmul.f32 1.442695, %v6772_v14  ;;  %v6143_v14 = vmul.f32 %v20650_v54, %v20188_v11 }
 0x88a   : > { %v6789_v42 = vsel %vm1487_vm7, %v19414_v29, 0.0 }
 0x88b   : > { %19427 = vpow2.f32 %v6787_v9  ;;  %6790 = vadd.xlane.f32.xlu0 %v6789_v42 }
 0x88c   : > { %v19416_v55 = vpop.eup %19415 }
 0x88d   : > { %v19418_v63 = vpop.eup %19417  ;;  %v6792_v39 = vsel %vm1487_vm7, %v19416_v55, 0.0 }
 0x88e   : > { %6793 = vadd.xlane.f32.xlu1 %v6792_v39  ;;  %v6795_v10 = vsel %vm1487_vm7, %v19418_v63, 0.0 }
 0x88f   : > { %6796 = vadd.xlane.f32.xlu0 %v6795_v10 }
 0x890   : > { %v19420_v3 = vpop.eup %19419 }
 0x891   : > { %v19422_v62 = vpop.eup %19421  ;;  %v6798_v37 = vsel %vm1487_vm7, %v19420_v3, 0.0 }
 0x892   : > { %6799 = vadd.xlane.f32.xlu1 %v6798_v37  ;;  %v6801_v8 = vsel %vm1487_vm7, %v19422_v62, 0.0  ;;  %v6145_v37 = vmul.f32 %v20650_v54, %v19892_v56 }
 0x893   : > { %6802 = vadd.xlane.f32.xlu0 %v6801_v8 }
 0x894   : > { %v19424_v36 = vpop.eup %19423 }
 0x895   : > { %v20774_v16 = vpop.eup %19425  ;;  %v6804_v46 = vsel %vm1487_vm7, %v19424_v36, 0.0 }
 0x896   : > { %6805 = vadd.xlane.f32.xlu1 %v6804_v46  ;;  %v6807_v12 = vsel %vm1487_vm7, %v20774_v16, 0.0 }
 0x897   : > { %6808 = vadd.xlane.f32.xlu0 %v6807_v12  ;;  %v6146_v12 = vmul.f32 %v20650_v54, %v20205_v31 }
 0x898   : > { %v20779_v59 = vpop.eup %19427 }
 0x899   : > { %v6810_v61 = vsel %vm1487_vm7, %v20779_v59, 0.0 }
 0x89a   : > { %6811 = vadd.xlane.f32.xlu1 %v6810_v61  ;;  %v6147_v61 = vmul.f32 %v20650_v54, %v19923_v0 }
 0x914   : > { %v6791_v25 = vpop.xlane.xlu0 %6790 }
 0x915   : > { %19429 = vrcp.f32 %v6791_v25 }
 0x917   : > { %v6794_v20 = vpop.xlane.xlu1 %6793 }
 0x918   : > { %19431 = vrcp.f32 %v6794_v20  ;;  %v6797_v4 = vpop.xlane.xlu0 %6796 }
 0x919   : > { %19433 = vrcp.f32 %v6797_v4  ;;  %v6148_v4 = vmul.f32 %v20650_v54, %v20221_v21 }
 0x91b   : > { %v6800_v50 = vpop.xlane.xlu1 %6799 }
 0x91c   : > { %19435 = vrcp.f32 %v6800_v50  ;;  %v6803_v23 = vpop.xlane.xlu0 %6802  ;;  %v20823_v50 = vsel %vm7447_vm9, 1.0, %v19661_v26  ;;  %vm12714_vm9 = vcmp.lt.s32.totalorder %v19826_v28, 40 }
 0x91d   : > { %19437 = vrcp.f32 %v6803_v23  ;;  %vm12715_vm10 = vmand %vm12713_vm6, %vm12714_vm9 }
 0x91f   : > { %v6806_v19 = vpop.xlane.xlu1 %6805 }
 0x920   : > { %19439 = vrcp.f32 %v6806_v19  ;;  %v6809_v24 = vpop.xlane.xlu0 %6808  ;;  %v7452_v19 = vmul.f32 %v20823_v50, %v19850_v44 }
 0x921   : > { %19441 = vrcp.f32 %v6809_v24  ;;  %v7454_v24 = vmul.f32 %v20823_v50, %v19848_v43 }
 0x922   : > { %v19430_v13 = vpop.eup %19429 }
 0x923   : > { %v6812_v32 = vpop.xlane.xlu1 %6811  ;;  %v6821_v35 = vmul.f32 %v19430_v13, %v19414_v29  ;;  %v6144_v29 = vmul.f32 %v20650_v54, %v20195_v18  ;;  %v7455_v13 = vmul.f32 %v20823_v50, %v19877_v51 }
 0x924   : > { %19443 = vrcp.f32 %v6812_v32  ;;  %v7456_v32 = vmul.f32 %v20823_v50, %v19879_v52 }
 0x925   : > { %v19432_v9 = vpop.eup %19431  ;;  %18661 = vmatmul.mubr.msk.f32.vlgmr.msra.gmra.mxu1 %vm2277_vm8, %v6821_v35  ;;  %v7457_v35 = vmul.f32 %v20823_v50, %v19907_v60 }
 0x926   : > { %v19434_v42 = vpop.eup %19433  ;;  %18669 = vmatpush3.msk.msra.mxu1 %vm613_vm0, %v6143_v14  ;;  %18670 = vmatprep.mubr.msk.f32.mxu1 %vm19662_vm2, %v19661_v26  ;;  %v6822_v39 = vmul.f32 %v19432_v9, %v19416_v55  ;;  %v7458_v14 = vmul.f32 %v20823_v50, %v20034_v15  ;;  %v7459_v9 = vmul.f32 %v20823_v50, %v20040_v17 }
 0x927   : > { %18678 = vmatprep.subr.mxu1 %v19661_v26  ;;  %v6823_v10 = vmul.f32 %v19434_v42, %v19418_v63 }
 0x928   : > { %18666 = vmatmul.mubr.msk.f32.vlgmr.msra.gmra.mxu0 %vm2277_vm8, %v6822_v39 }
 0x929   : > { %v19436_v8 = vpop.eup %19435  ;;  %18671 = vmatmul.mubr.msk.f32.vlgmr.msra.gmra.mxu1 %vm2277_vm8, %v6823_v10  ;;  %18674 = vmatpush3.msk.msra.mxu0 %vm613_vm0, %v6144_v29 }
 0x92a   : > { %v19438_v55 = vpop.eup %19437  ;;  %18679 = vmatpush3.msk.msra.mxu1 %vm613_vm0, %v6145_v37  ;;  %18675 = vmatprep.mubr.msk.f32.mxu0 %vm19662_vm2, %v19661_v26  ;;  %v6824_v63 = vmul.f32 %v19436_v8, %v19420_v3 }
 0x92b   : > { %18680 = vmatprep.mubr.msk.f32.mxu1 %vm19662_vm2, %v19661_v26  ;;  %18683 = vmatprep.subr.mxu0 %v19661_v26  ;;  %v6825_v46 = vmul.f32 %v19438_v55, %v19422_v62 }
 0x92c   : > { %18688 = vmatprep.subr.mxu1 %v19661_v26  ;;  %18676 = vmatmul.mubr.msk.f32.vlgmr.msra.gmra.mxu0 %vm2277_vm8, %v6824_v63 }
 0x92d   : > { %v19440_v25 = vpop.eup %19439  ;;  %18681 = vmatmul.mubr.msk.f32.vlgmr.msra.gmra.mxu1 %vm2277_vm8, %v6825_v46  ;;  %18684 = vmatpush3.msk.msra.mxu0 %vm613_vm0, %v6146_v12 }
 0x92e   : > { %v19442_v3 = vpop.eup %19441  ;;  %18689 = vmatpush3.msk.msra.mxu1 %vm613_vm0, %v6147_v61  ;;  %18685 = vmatprep.mubr.msk.f32.mxu0 %vm19662_vm2, %v19661_v26  ;;  %v6826_v62 = vmul.f32 %v19440_v25, %v19424_v36  ;;  %v7450_v36 = vmul.f32 %v20823_v50, %v19832_v34 }
 0x92f   : > { %18690 = vmatprep.mubr.msk.f32.mxu1 %vm19662_vm2, %v19661_v26  ;;  %18693 = vmatprep.subr.mxu0 %v19661_v26  ;;  %v6827_v20 = vmul.f32 %v19442_v3, %v20774_v16  ;;  %v7451_v16 = vmul.f32 %v20823_v50, %v19844_v40 }
 0x930   : > { %18698 = vmatprep.subr.mxu1 %v19661_v26  ;;  %18686 = vmatmul.mubr.msk.f32.vlgmr.msra.gmra.mxu0 %vm2277_vm8, %v6826_v62 }
 0x931   : > { %v19444_v23 = vpop.eup %19443  ;;  %18691 = vmatmul.mubr.msk.f32.vlgmr.msra.gmra.mxu1 %vm2277_vm8, %v6827_v20  ;;  %18694 = vmatpush3.msk.msra.mxu0 %vm613_vm0, %v6148_v4 }
 0x932   : > { %18699 = vmatpush3.xpose.msk.msra.mxu1 %vm606_vm1, %v7450_v36  ;;  %18695 = vmatprep.mubr.msk.f32.mxu0 %vm19662_vm2, %v19661_v26  ;;  %v6828_v54 = vmul.f32 %v19444_v23, %v20779_v59  ;;  %v7453_v59 = vmul.f32 %v20823_v50, %v19859_v47 }
 0x933   : > { %18700 = vmatprep.mubr.msk.f32.mxu1 %vm19662_vm2, %v19661_v26  ;;  %18703 = vmatprep.subr.mxu0 %v19661_v26 }
 0x934   : > { %18708 = vmatprep.subr.mxu1 %v19661_v26  ;;  %18696 = vmatmul.mubr.msk.f32.vlgmr.msra.gmra.mxu0 %vm2277_vm8, %v6828_v54 }
 0x935   : > { %18701 = vmatmul.mubr.msk.f32.vlgmr.msra.gmra.mxu1 %vm606_vm1, %v19846_v41  ;;  %18704 = vmatpush3.xpose.msk.msra.mxu0 %vm606_vm1, %v7451_v16 }
 0x936   : > { %18709 = vmatpush3.xpose.msk.msra.mxu1 %vm606_vm1, %v7452_v19  ;;  %18705 = vmatprep.mubr.msk.f32.mxu0 %vm19662_vm2, %v19661_v26 }
 0x937   : > { %18710 = vmatprep.mubr.msk.f32.mxu1 %vm19662_vm2, %v19661_v26  ;;  %18713 = vmatprep.subr.mxu0 %v19661_v26 }
 0x938   : > { %18718 = vmatprep.subr.mxu1 %v19661_v26  ;;  %18706 = vmatmul.mubr.msk.f32.vlgmr.msra.gmra.mxu0 %vm606_vm1, %v19867_v49 }
 0x939   : > { %18711 = vmatmul.mubr.msk.f32.vlgmr.msra.gmra.mxu1 %vm606_vm1, %v19861_v48  ;;  %18714 = vmatpush3.xpose.msk.msra.mxu0 %vm606_vm1, %v7453_v59 }
 0x93a   : > { %18719 = vmatpush3.xpose.msk.msra.mxu1 %vm606_vm1, %v7454_v24  ;;  %18715 = vmatprep.mubr.msk.f32.mxu0 %vm19662_vm2, %v19661_v26 }
 0x93b   : > { %18720 = vmatprep.mubr.msk.f32.mxu1 %vm19662_vm2, %v19661_v26  ;;  %18723 = vmatprep.subr.mxu0 %v19661_v26 }
 0x93c   : > { %18728 = vmatprep.subr.mxu1 %v19661_v26  ;;  %18716 = vmatmul.mubr.msk.f32.vlgmr.msra.gmra.mxu0 %vm606_vm1, %v19900_v58 }
 0x93d   : > { %18721 = vmatmul.mubr.msk.f32.vlgmr.msra.gmra.mxu1 %vm606_vm1, %v19894_v57  ;;  %18724 = vmatpush3.xpose.msk.msra.mxu0 %vm606_vm1, %v7455_v13 }
 0x93e   : > { %18729 = vmatpush3.xpose.msk.msra.mxu1 %vm606_vm1, %v7456_v32  ;;  %18725 = vmatprep.mubr.msk.f32.mxu0 %vm19662_vm2, %v19661_v26 }
 0x93f   : > { %18730 = vmatprep.mubr.msk.f32.mxu1 %vm19662_vm2, %v19661_v26  ;;  %18733 = vmatprep.subr.mxu0 %v19661_v26 }
 0x940   : > { %18738 = vmatprep.subr.mxu1 %v19661_v26  ;;  %18726 = vmatmul.mubr.msk.f32.vlgmr.msra.gmra.mxu0 %vm606_vm1, %v19933_v2 }
 0x941   : > { %18731 = vmatmul.mubr.msk.f32.vlgmr.msra.gmra.mxu1 %vm606_vm1, %v19925_v1  ;;  %18734 = vmatpush3.xpose.msk.msra.mxu0 %vm606_vm1, %v7457_v35 }
 0x942   : > { %18739 = vmatpush3.msk.msra.mxu1 %vm613_vm0, %v7458_v14  ;;  %18735 = vmatprep.mubr.msk.f32.mxu0 %vm19662_vm2, %v19661_v26 }
 0x943   : > { %18743 = vmatprep.subr.mxu0 %v19661_v26  ;;  %18740 = vmatprep.mubr.msk.f32.mxu1 %vm19662_vm2, %v19661_v26 }
 0x944   : > { %18736 = vmatmul.mubr.msk.f32.vlgmr.msra.gmra.mxu0 %vm606_vm1, %v19953_v5  ;;  %18748 = vmatprep.subr.mxu1 %v19661_v26 }
 0x945   : > { %18744 = vmatpush3.msk.msra.mxu0 %vm613_vm0, %v7459_v9  ;;  %18745 = vmatprep.mubr.msk.f32.mxu0 %vm19662_vm2, %v19661_v26 }
 0x946   : > { %18753 = vmatprep.subr.mxu0 %v19661_v26 }
 0x9e5   : > { %v6901_v42 = vpop.f32.mrf.mxu1 }
 0x9e6   : > { %v20911_v39 = vadd.f32 %v6901_v42, %v20738_v53 }
 0x9e7   : > { %v18662_v10 = vpop.f32.mrf.mxu1 }
 0x9e8   : > { %v6977_v29 = vpop.f32.mrf.mxu0 }
 0x9e9   : > { %v20914_v37 = vadd.f32 %v6977_v29, %v20741_v6  ;;  %v7053_v8 = vpop.f32.mrf.mxu1 }
 0x9ea   : > { %v20917_v55 = vadd.f32 %v7053_v8, %v20744_v45  ;;  %v18667_v63 = vpop.f32.mrf.mxu0 }
 0x9eb   : > { %v18672_v46 = vpop.f32.mrf.mxu1 }
 0x9ec   : > { %v7129_v12 = vpop.f32.mrf.mxu0 }
 0x9ed   : > { %v20920_v61 = vadd.f32 %v7129_v12, %v20747_v38  ;;  %v7205_v25 = vpop.f32.mrf.mxu1 }
 0x9ee   : > { %v20923_v3 = vadd.f32 %v7205_v25, %v20750_v33  ;;  %v18677_v53 = vpop.f32.mrf.mxu0 }
 0x9ef   : > { %v18682_v62 = vpop.f32.mrf.mxu1 }
 0x9f0   : > { %v7281_v20 = vpop.f32.mrf.mxu0 }
 0x9f1   : > { %v20926_v6 = vadd.f32 %v7281_v20, %v20753_v22  ;;  %v7357_v4 = vpop.f32.mrf.mxu1 }
 0x9f2   : > { %v20929_v45 = vadd.f32 %v7357_v4, %v20756_v30  ;;  %v18687_v36 = vpop.f32.mrf.mxu0 }
 0x9f3   : > { %v18692_v23 = vpop.f32.mrf.mxu1 }
 0x9f4   : > { %v7433_v54 = vpop.f32.mrf.mxu0 }
 0x9f5   : > { %v20932_v38 = vadd.f32 %v7433_v54, %v20759_v7  ;;  %v7535_v16 = vpop.f32.mrf.mxu1 }
 0x9f6   : > { %v8050_v19 = vmul.f32 0.5, %v7535_v16  ;;  %v18697_v33 = vpop.f32.mrf.mxu0 }
 0x9f7   : > { %v18702_v59 = vpop.f32.mrf.mxu1 }
 0x9f8   : > { %v7608_v24 = vpop.f32.mrf.mxu0  ;;  %v8058_v13 = vsel %vm1487_vm7, %v8050_v19, -inf }
 0x9f9   : > { %v8051_v32 = vmul.f32 0.5, %v7608_v24  ;;  %8059 = vmax.xlane.f32.xlu0 %v8058_v13  ;;  %v7681_v22 = vpop.f32.mrf.mxu1 }
 0x9fa   : > { %v8052_v35 = vmul.f32 0.5, %v7681_v22  ;;  %v18707_v14 = vpop.f32.mrf.mxu0 }
 0x9fb   : > { %v18712_v30 = vpop.f32.mrf.mxu1  ;;  %v8061_v9 = vsel %vm1487_vm7, %v8051_v32, -inf }
 0x9fc   : > { %8062 = vmax.xlane.f32.xlu1 %v8061_v9  ;;  %v7754_v42 = vpop.f32.mrf.mxu0  ;;  %v8064_v7 = vsel %vm1487_vm7, %v8052_v35, -inf }
 0x9fd   : > { %v8053_v10 = vmul.f32 0.5, %v7754_v42  ;;  %8065 = vmax.xlane.f32.xlu0 %v8064_v7  ;;  %v7827_v29 = vpop.f32.mrf.mxu1 }
 0x9fe   : > { %v8054_v8 = vmul.f32 0.5, %v7827_v29  ;;  %v18717_v63 = vpop.f32.mrf.mxu0 }
 0x9ff   : > { %v18722_v46 = vpop.f32.mrf.mxu1  ;;  %v8067_v12 = vsel %vm1487_vm7, %v8053_v10, -inf }
 0xa00   : > { %8068 = vmax.xlane.f32.xlu1 %v8067_v12  ;;  %v7900_v25 = vpop.f32.mrf.mxu0  ;;  %v8070_v53 = vsel %vm1487_vm7, %v8054_v8, -inf }
 0xa01   : > { %v8055_v62 = vmul.f32 0.5, %v7900_v25  ;;  %8071 = vmax.xlane.f32.xlu0 %v8070_v53  ;;  %v7973_v20 = vpop.f32.mrf.mxu1 }
 0xa02   : > { %v8056_v4 = vmul.f32 0.5, %v7973_v20  ;;  %v18727_v36 = vpop.f32.mrf.mxu0 }
 0xa03   : > { %v18732_v23 = vpop.f32.mrf.mxu1  ;;  %v8073_v54 = vsel %vm1487_vm7, %v8055_v62, -inf }
 0xa04   : > { %8074 = vmax.xlane.f32.xlu1 %v8073_v54  ;;  %v8046_v16 = vpop.f32.mrf.mxu0  ;;  %v8076_v33 = vsel %vm1487_vm7, %v8056_v4, -inf }
 0xa05   : > { %v8057_v59 = vmul.f32 0.5, %v8046_v16  ;;  %8077 = vmax.xlane.f32.xlu0 %v8076_v33 }
 0xa06   : > { %v18737_v24 = vpop.f32.mrf.mxu0 }
 0xa07   : > { %v8079_v13 = vsel %vm1487_vm7, %v8057_v59, -inf }
 0xa08   : > { %8080 = vmax.xlane.f32.xlu1 %v8079_v13 }
 0xa82   : > { %v8060_v22 = vpop.xlane.xlu0 %8059 }
 0xa83   : > { %v8082_v14 = vsub.f32 %v8050_v19, %v8060_v22 }
 0xa85   : > { %v8090_v30 = vmul.f32 1.442695, %v8082_v14  ;;  %v8063_v9 = vpop.xlane.xlu1 %8062 }
 0xa86   : > { %v8083_v42 = vsub.f32 %v8051_v32, %v8063_v9  ;;  %v8066_v7 = vpop.xlane.xlu0 %8065 }
 0xa87   : > { %19445 = vpow2.f32 %v8090_v30  ;;  %v8084_v29 = vsub.f32 %v8052_v35, %v8066_v7 }
 0xa88   : > { %v8092_v63 = vmul.f32 1.442695, %v8083_v42 }
 0xa89   : > { %v8094_v46 = vmul.f32 1.442695, %v8084_v29  ;;  %v8069_v12 = vpop.xlane.xlu1 %8068 }
 0xa8a   : > { %19447 = vpow2.f32 %v8092_v63  ;;  %v8085_v25 = vsub.f32 %v8053_v10, %v8069_v12  ;;  %v8072_v53 = vpop.xlane.xlu0 %8071 }
 0xa8b   : > { %19449 = vpow2.f32 %v8094_v46  ;;  %v8086_v20 = vsub.f32 %v8054_v8, %v8072_v53 }
 0xa8c   : > { %v8096_v36 = vmul.f32 1.442695, %v8085_v25 }
 0xa8d   : > { %v8098_v23 = vmul.f32 1.442695, %v8086_v20  ;;  %v8075_v54 = vpop.xlane.xlu1 %8074 }
 0xa8e   : > { %19451 = vpow2.f32 %v8096_v36  ;;  %v8087_v16 = vsub.f32 %v8055_v62, %v8075_v54  ;;  %v8078_v19 = vpop.xlane.xlu0 %8077 }
 0xa8f   : > { %19453 = vpow2.f32 %v8098_v23  ;;  %v8088_v33 = vsub.f32 %v8056_v4, %v8078_v19 }
 0xa90   : > { %v8100_v32 = vmul.f32 1.442695, %v8087_v16 }
 0xa91   : > { %v8102_v24 = vmul.f32 1.442695, %v8088_v33  ;;  %v8081_v13 = vpop.xlane.xlu1 %8080 }
 0xa92   : > { %19455 = vpow2.f32 %v8100_v32  ;;  %v8089_v35 = vsub.f32 %v8057_v59, %v8081_v13 }
 0xa93   : > { %19457 = vpow2.f32 %v8102_v24 }
 0xa94   : > { %v19446_v22 = vpop.eup %19445  ;;  %v8104_v14 = vmul.f32 1.442695, %v8089_v35  ;;  %v7460_v35 = vmul.f32 %v20823_v50, %v20188_v11 }
 0xa95   : > { %v8106_v10 = vsel %vm1487_vm7, %v19446_v22, 0.0 }
 0xa96   : > { %19459 = vpow2.f32 %v8104_v14  ;;  %8107 = vadd.xlane.f32.xlu0 %v8106_v10 }
 0xa97   : > { %v19448_v8 = vpop.eup %19447 }
 0xa98   : > { %v19450_v30 = vpop.eup %19449  ;;  %v8109_v9 = vsel %vm1487_vm7, %v19448_v8, 0.0 }
 0xa99   : > { %8110 = vadd.xlane.f32.xlu1 %v8109_v9  ;;  %v8112_v62 = vsel %vm1487_vm7, %v19450_v30, 0.0 }
 0xa9a   : > { %8113 = vadd.xlane.f32.xlu0 %v8112_v62 }
 0xa9b   : > { %v19452_v4 = vpop.eup %19451 }
 0xa9c   : > { %v19454_v42 = vpop.eup %19453  ;;  %v8115_v7 = vsel %vm1487_vm7, %v19452_v4, 0.0 }
 0xa9d   : > { %8116 = vadd.xlane.f32.xlu1 %v8115_v7  ;;  %v8118_v59 = vsel %vm1487_vm7, %v19454_v42, 0.0  ;;  %v7462_v7 = vmul.f32 %v20823_v50, %v19892_v56 }
 0xa9e   : > { %8119 = vadd.xlane.f32.xlu0 %v8118_v59 }
 0xa9f   : > { %v19456_v29 = vpop.eup %19455 }
 0xaa0   : > { %v20947_v63 = vpop.eup %19457  ;;  %v8121_v46 = vsel %vm1487_vm7, %v19456_v29, 0.0 }
 0xaa1   : > { %8122 = vadd.xlane.f32.xlu1 %v8121_v46  ;;  %v8124_v12 = vsel %vm1487_vm7, %v20947_v63, 0.0 }
 0xaa2   : > { %8125 = vadd.xlane.f32.xlu0 %v8124_v12  ;;  %v7463_v12 = vmul.f32 %v20823_v50, %v20205_v31 }
 0xaa3   : > { %v20952_v25 = vpop.eup %19459 }
 0xaa4   : > { %v8127_v53 = vsel %vm1487_vm7, %v20952_v25, 0.0 }
 0xaa5   : > { %8128 = vadd.xlane.f32.xlu1 %v8127_v53  ;;  %v7464_v53 = vmul.f32 %v20823_v50, %v19923_v0 }
 0xb1f   : > { %v8108_v20 = vpop.xlane.xlu0 %8107 }
 0xb20   : > { %19461 = vrcp.f32 %v8108_v20 }
 0xb22   : > { %v8111_v36 = vpop.xlane.xlu1 %8110 }
 0xb23   : > { %19463 = vrcp.f32 %v8111_v36  ;;  %v8114_v23 = vpop.xlane.xlu0 %8113 }
 0xb24   : > { %19465 = vrcp.f32 %v8114_v23  ;;  %v7465_v23 = vmul.f32 %v20823_v50, %v20221_v21 }
 0xb26   : > { %v8117_v54 = vpop.xlane.xlu1 %8116 }
 0xb27   : > { %19467 = vrcp.f32 %v8117_v54  ;;  %v8120_v16 = vpop.xlane.xlu0 %8119  ;;  %v20996_v54 = vsel %vm8764_vm12, 1.0, %v19661_v26 }
 0xb28   : > { %19469 = vrcp.f32 %v8120_v16 }
 0xb2a   : > { %v8123_v19 = vpop.xlane.xlu1 %8122 }
 0xb2b   : > { %19471 = vrcp.f32 %v8123_v19  ;;  %v8126_v33 = vpop.xlane.xlu0 %8125  ;;  %v8769_v19 = vmul.f32 %v20996_v54, %v19850_v44 }
 0xb2c   : > { %19473 = vrcp.f32 %v8126_v33  ;;  %v8771_v33 = vmul.f32 %v20996_v54, %v19848_v43 }
 0xb2d   : > { %v19462_v32 = vpop.eup %19461 }
 0xb2e   : > { %v8129_v24 = vpop.xlane.xlu1 %8128  ;;  %v8138_v13 = vmul.f32 %v19462_v32, %v19446_v22  ;;  %v7461_v22 = vmul.f32 %v20823_v50, %v20195_v18  ;;  %v8772_v32 = vmul.f32 %v20996_v54, %v19877_v51 }
 0xb2f   : > { %19475 = vrcp.f32 %v8129_v24  ;;  %v8773_v24 = vmul.f32 %v20996_v54, %v19879_v52 }
 0xb30   : > { %v19464_v14 = vpop.eup %19463  ;;  %18741 = vmatmul.mubr.msk.f32.vlgmr.msra.gmra.mxu1 %vm2277_vm8, %v8138_v13  ;;  %v8774_v13 = vmul.f32 %v20996_v54, %v19907_v60 }
 0xb31   : > { %v19466_v10 = vpop.eup %19465  ;;  %18749 = vmatpush3.msk.msra.mxu1 %vm613_vm0, %v7460_v35  ;;  %18750 = vmatprep.mubr.msk.f32.mxu1 %vm19662_vm2, %v19661_v26  ;;  %v8139_v9 = vmul.f32 %v19464_v14, %v19448_v8  ;;  %v8775_v35 = vmul.f32 %v20996_v54, %v20034_v15  ;;  %v8776_v14 = vmul.f32 %v20996_v54, %v20040_v17 }
 0xb32   : > { %18758 = vmatprep.subr.mxu1 %v19661_v26  ;;  %v8140_v62 = vmul.f32 %v19466_v10, %v19450_v30 }
 0xb33   : > { %18746 = vmatmul.mubr.msk.f32.vlgmr.msra.gmra.mxu0 %vm2277_vm8, %v8139_v9 }
 0xb34   : > { %v19468_v59 = vpop.eup %19467  ;;  %18751 = vmatmul.mubr.msk.f32.vlgmr.msra.gmra.mxu1 %vm2277_vm8, %v8140_v62  ;;  %18754 = vmatpush3.msk.msra.mxu0 %vm613_vm0, %v7461_v22 }
 0xb35   : > { %v19470_v8 = vpop.eup %19469  ;;  %18759 = vmatpush3.msk.msra.mxu1 %vm613_vm0, %v7462_v7  ;;  %18755 = vmatprep.mubr.msk.f32.mxu0 %vm19662_vm2, %v19661_v26  ;;  %v8141_v30 = vmul.f32 %v19468_v59, %v19452_v4 }
 0xb36   : > { %18760 = vmatprep.mubr.msk.f32.mxu1 %vm19662_vm2, %v19661_v26  ;;  %18763 = vmatprep.subr.mxu0 %v19661_v26  ;;  %v8142_v46 = vmul.f32 %v19470_v8, %v19454_v42 }
 0xb37   : > { %18768 = vmatprep.subr.mxu1 %v19661_v26  ;;  %18756 = vmatmul.mubr.msk.f32.vlgmr.msra.gmra.mxu0 %vm2277_vm8, %v8141_v30 }
 0xb38   : > { %v19472_v20 = vpop.eup %19471  ;;  %18761 = vmatmul.mubr.msk.f32.vlgmr.msra.gmra.mxu1 %vm2277_vm8, %v8142_v46  ;;  %18764 = vmatpush3.msk.msra.mxu0 %vm613_vm0, %v7463_v12 }
 0xb39   : > { %v19474_v4 = vpop.eup %19473  ;;  %18769 = vmatpush3.msk.msra.mxu1 %vm613_vm0, %v7464_v53  ;;  %18765 = vmatprep.mubr.msk.f32.mxu0 %vm19662_vm2, %v19661_v26  ;;  %v8143_v42 = vmul.f32 %v19472_v20, %v19456_v29  ;;  %v8767_v29 = vmul.f32 %v20996_v54, %v19832_v34 }
 0xb3a   : > { %18770 = vmatprep.mubr.msk.f32.mxu1 %vm19662_vm2, %v19661_v26  ;;  %18773 = vmatprep.subr.mxu0 %v19661_v26  ;;  %v8144_v36 = vmul.f32 %v19474_v4, %v20947_v63  ;;  %v8768_v63 = vmul.f32 %v20996_v54, %v19844_v40 }
 0xb3b   : > { %18778 = vmatprep.subr.mxu1 %v19661_v26  ;;  %18766 = vmatmul.mubr.msk.f32.vlgmr.msra.gmra.mxu0 %vm2277_vm8, %v8143_v42 }
 0xb3c   : > { %v19476_v16 = vpop.eup %19475  ;;  %18771 = vmatmul.mubr.msk.f32.vlgmr.msra.gmra.mxu1 %vm2277_vm8, %v8144_v36  ;;  %18774 = vmatpush3.msk.msra.mxu0 %vm613_vm0, %v7465_v23 }
 0xb3d   : > { %18779 = vmatpush3.xpose.msk.msra.mxu1 %vm606_vm1, %v8767_v29  ;;  %18775 = vmatprep.mubr.msk.f32.mxu0 %vm19662_vm2, %v19661_v26  ;;  %v8145_v50 = vmul.f32 %v19476_v16, %v20952_v25  ;;  %v8770_v25 = vmul.f32 %v20996_v54, %v19859_v47 }
 0xb3e   : > { %18780 = vmatprep.mubr.msk.f32.mxu1 %vm19662_vm2, %v19661_v26  ;;  %18783 = vmatprep.subr.mxu0 %v19661_v26 }
 0xb3f   : > { %18788 = vmatprep.subr.mxu1 %v19661_v26  ;;  %18776 = vmatmul.mubr.msk.f32.vlgmr.msra.gmra.mxu0 %vm2277_vm8, %v8145_v50 }
 0xb40   : > { %18781 = vmatmul.mubr.msk.f32.vlgmr.msra.gmra.mxu1 %vm606_vm1, %v19846_v41  ;;  %18784 = vmatpush3.xpose.msk.msra.mxu0 %vm606_vm1, %v8768_v63 }
 0xb41   : > { %18789 = vmatpush3.xpose.msk.msra.mxu1 %vm606_vm1, %v8769_v19  ;;  %18785 = vmatprep.mubr.msk.f32.mxu0 %vm19662_vm2, %v19661_v26 }
 0xb42   : > { %18790 = vmatprep.mubr.msk.f32.mxu1 %vm19662_vm2, %v19661_v26  ;;  %18793 = vmatprep.subr.mxu0 %v19661_v26 }
 0xb43   : > { %18798 = vmatprep.subr.mxu1 %v19661_v26  ;;  %18786 = vmatmul.mubr.msk.f32.vlgmr.msra.gmra.mxu0 %vm606_vm1, %v19867_v49 }
 0xb44   : > { %18791 = vmatmul.mubr.msk.f32.vlgmr.msra.gmra.mxu1 %vm606_vm1, %v19861_v48  ;;  %18794 = vmatpush3.xpose.msk.msra.mxu0 %vm606_vm1, %v8770_v25 }
 0xb45   : > { %18799 = vmatpush3.xpose.msk.msra.mxu1 %vm606_vm1, %v8771_v33  ;;  %18795 = vmatprep.mubr.msk.f32.mxu0 %vm19662_vm2, %v19661_v26 }
 0xb46   : > { %18800 = vmatprep.mubr.msk.f32.mxu1 %vm19662_vm2, %v19661_v26  ;;  %18803 = vmatprep.subr.mxu0 %v19661_v26 }
 0xb47   : > { %18808 = vmatprep.subr.mxu1 %v19661_v26  ;;  %18796 = vmatmul.mubr.msk.f32.vlgmr.msra.gmra.mxu0 %vm606_vm1, %v19900_v58 }
 0xb48   : > { %18801 = vmatmul.mubr.msk.f32.vlgmr.msra.gmra.mxu1 %vm606_vm1, %v19894_v57  ;;  %18804 = vmatpush3.xpose.msk.msra.mxu0 %vm606_vm1, %v8772_v32 }
 0xb49   : > { %18809 = vmatpush3.xpose.msk.msra.mxu1 %vm606_vm1, %v8773_v24  ;;  %18805 = vmatprep.mubr.msk.f32.mxu0 %vm19662_vm2, %v19661_v26 }
 0xb4a   : > { %18810 = vmatprep.mubr.msk.f32.mxu1 %vm19662_vm2, %v19661_v26  ;;  %18813 = vmatprep.subr.mxu0 %v19661_v26 }
 0xb4b   : > { %18818 = vmatprep.subr.mxu1 %v19661_v26  ;;  %18806 = vmatmul.mubr.msk.f32.vlgmr.msra.gmra.mxu0 %vm606_vm1, %v19933_v2 }
 0xb4c   : > { %18811 = vmatmul.mubr.msk.f32.vlgmr.msra.gmra.mxu1 %vm606_vm1, %v19925_v1  ;;  %18814 = vmatpush3.xpose.msk.msra.mxu0 %vm606_vm1, %v8774_v13 }
 0xb4d   : > { %18819 = vmatpush3.msk.msra.mxu1 %vm613_vm0, %v8775_v35  ;;  %18815 = vmatprep.mubr.msk.f32.mxu0 %vm19662_vm2, %v19661_v26 }
 0xb4e   : > { %18823 = vmatprep.subr.mxu0 %v19661_v26  ;;  %18820 = vmatprep.mubr.msk.f32.mxu1 %vm19662_vm2, %v19661_v26 }
 0xb4f   : > { %18816 = vmatmul.mubr.msk.f32.vlgmr.msra.gmra.mxu0 %vm606_vm1, %v19953_v5  ;;  %18828 = vmatprep.subr.mxu1 %v19661_v26 }
 0xb50   : > { %18824 = vmatpush3.msk.msra.mxu0 %vm613_vm0, %v8776_v14  ;;  %18825 = vmatprep.mubr.msk.f32.mxu0 %vm19662_vm2, %v19661_v26 }
 0xb51   : > { %18833 = vmatprep.subr.mxu0 %v19661_v26 }
 0xbf0   : > { %v8218_v10 = vpop.f32.mrf.mxu1 }
 0xbf1   : > { %v21084_v9 = vadd.f32 %v8218_v10, %v20911_v39 }
 0xbf2   : > { %v18742_v62 = vpop.f32.mrf.mxu1 }
 0xbf3   : > { %v8294_v22 = vpop.f32.mrf.mxu0 }
 0xbf4   : > { %v21087_v7 = vadd.f32 %v8294_v22, %v20914_v37  ;;  %v8370_v59 = vpop.f32.mrf.mxu1 }
 0xbf5   : > { %v21090_v8 = vadd.f32 %v8370_v59, %v20917_v55  ;;  %v18747_v30 = vpop.f32.mrf.mxu0 }
 0xbf6   : > { %v18752_v46 = vpop.f32.mrf.mxu1 }
 0xbf7   : > { %v8446_v12 = vpop.f32.mrf.mxu0 }
 0xbf8   : > { %v21093_v53 = vadd.f32 %v8446_v12, %v20920_v61  ;;  %v8522_v20 = vpop.f32.mrf.mxu1 }
 0xbf9   : > { %v21096_v4 = vadd.f32 %v8522_v20, %v20923_v3  ;;  %v18757_v39 = vpop.f32.mrf.mxu0 }
 0xbfa   : > { %v18762_v42 = vpop.f32.mrf.mxu1 }
 0xbfb   : > { %v8598_v36 = vpop.f32.mrf.mxu0 }
 0xbfc   : > { %v21099_v37 = vadd.f32 %v8598_v36, %v20926_v6  ;;  %v8674_v23 = vpop.f32.mrf.mxu1 }
 0xbfd   : > { %v21102_v55 = vadd.f32 %v8674_v23, %v20929_v45  ;;  %v18767_v29 = vpop.f32.mrf.mxu0 }
 0xbfe   : > { %v18772_v16 = vpop.f32.mrf.mxu1 }
 0xbff   : > { %v8750_v50 = vpop.f32.mrf.mxu0 }
 0xc00   : > { %v21105_v61 = vadd.f32 %v8750_v50, %v20932_v38  ;;  %v8852_v63 = vpop.f32.mrf.mxu1 }
 0xc01   : > { %v9367_v19 = vmul.f32 0.5, %v8852_v63  ;;  %v18777_v3 = vpop.f32.mrf.mxu0 }
 0xc02   : > { %v18782_v25 = vpop.f32.mrf.mxu1 }
 0xc03   : > { %v8925_v33 = vpop.f32.mrf.mxu0  ;;  %v9375_v32 = vsel %vm1487_vm7, %v9367_v19, -inf }
 0xc04   : > { %v9368_v24 = vmul.f32 0.5, %v8925_v33  ;;  %9376 = vmax.xlane.f32.xlu0 %v9375_v32  ;;  %v8998_v6 = vpop.f32.mrf.mxu1 }
 0xc05   : > { %v9369_v13 = vmul.f32 0.5, %v8998_v6  ;;  %v18787_v35 = vpop.f32.mrf.mxu0 }
 0xc06   : > { %v18792_v45 = vpop.f32.mrf.mxu1  ;;  %v9378_v14 = vsel %vm1487_vm7, %v9368_v24, -inf }
 0xc07   : > { %9379 = vmax.xlane.f32.xlu1 %v9378_v14  ;;  %v9071_v10 = vpop.f32.mrf.mxu0  ;;  %v9381_v38 = vsel %vm1487_vm7, %v9369_v13, -inf }
 0xc08   : > { %v9370_v62 = vmul.f32 0.5, %v9071_v10  ;;  %9382 = vmax.xlane.f32.xlu0 %v9381_v38  ;;  %v9144_v22 = vpop.f32.mrf.mxu1 }
 0xc09   : > { %v9371_v59 = vmul.f32 0.5, %v9144_v22  ;;  %v18797_v30 = vpop.f32.mrf.mxu0 }
 0xc0a   : > { %v18802_v46 = vpop.f32.mrf.mxu1  ;;  %v9384_v12 = vsel %vm1487_vm7, %v9370_v62, -inf }
 0xc0b   : > { %9385 = vmax.xlane.f32.xlu1 %v9384_v12  ;;  %v9217_v20 = vpop.f32.mrf.mxu0  ;;  %v9387_v39 = vsel %vm1487_vm7, %v9371_v59, -inf }
 0xc0c   : > { %v9372_v42 = vmul.f32 0.5, %v9217_v20  ;;  %9388 = vmax.xlane.f32.xlu0 %v9387_v39  ;;  %v9290_v36 = vpop.f32.mrf.mxu1 }
 0xc0d   : > { %v9373_v23 = vmul.f32 0.5, %v9290_v36  ;;  %v18807_v29 = vpop.f32.mrf.mxu0 }
 0xc0e   : > { %v18812_v16 = vpop.f32.mrf.mxu1  ;;  %v9390_v50 = vsel %vm1487_vm7, %v9372_v42, -inf }
 0xc0f   : > { %9391 = vmax.xlane.f32.xlu1 %v9390_v50  ;;  %v9363_v63 = vpop.f32.mrf.mxu0  ;;  %v9393_v3 = vsel %vm1487_vm7, %v9373_v23, -inf }
 0xc10   : > { %v9374_v25 = vmul.f32 0.5, %v9363_v63  ;;  %9394 = vmax.xlane.f32.xlu0 %v9393_v3 }
 0xc11   : > { %v18817_v33 = vpop.f32.mrf.mxu0 }
 0xc12   : > { %v9396_v32 = vsel %vm1487_vm7, %v9374_v25, -inf }
 0xc13   : > { %9397 = vmax.xlane.f32.xlu1 %v9396_v32 }
 0xc8d   : > { %v9377_v6 = vpop.xlane.xlu0 %9376 }
 0xc8e   : > { %v9399_v35 = vsub.f32 %v9367_v19, %v9377_v6 }
 0xc90   : > { %v9407_v45 = vmul.f32 1.442695, %v9399_v35  ;;  %v9380_v14 = vpop.xlane.xlu1 %9379 }
 0xc91   : > { %v9400_v10 = vsub.f32 %v9368_v24, %v9380_v14  ;;  %v9383_v38 = vpop.xlane.xlu0 %9382 }
 0xc92   : > { %19477 = vpow2.f32 %v9407_v45  ;;  %v9401_v22 = vsub.f32 %v9369_v13, %v9383_v38 }
 0xc93   : > { %v9409_v30 = vmul.f32 1.442695, %v9400_v10 }
 0xc94   : > { %v9411_v46 = vmul.f32 1.442695, %v9401_v22  ;;  %v9386_v12 = vpop.xlane.xlu1 %9385 }
 0xc95   : > { %19479 = vpow2.f32 %v9409_v30  ;;  %v9402_v20 = vsub.f32 %v9370_v62, %v9386_v12  ;;  %v9389_v39 = vpop.xlane.xlu0 %9388 }
 0xc96   : > { %19481 = vpow2.f32 %v9411_v46  ;;  %v9403_v36 = vsub.f32 %v9371_v59, %v9389_v39 }
 0xc97   : > { %v9413_v29 = vmul.f32 1.442695, %v9402_v20 }
 0xc98   : > { %v9415_v16 = vmul.f32 1.442695, %v9403_v36  ;;  %v9392_v50 = vpop.xlane.xlu1 %9391 }
 0xc99   : > { %19483 = vpow2.f32 %v9413_v29  ;;  %v9404_v63 = vsub.f32 %v9372_v42, %v9392_v50  ;;  %v9395_v19 = vpop.xlane.xlu0 %9394 }
 0xc9a   : > { %19485 = vpow2.f32 %v9415_v16  ;;  %v9405_v3 = vsub.f32 %v9373_v23, %v9395_v19 }
 0xc9b   : > { %v9417_v24 = vmul.f32 1.442695, %v9404_v63 }
 0xc9c   : > { %v9419_v33 = vmul.f32 1.442695, %v9405_v3  ;;  %v9398_v32 = vpop.xlane.xlu1 %9397 }
 0xc9d   : > { %19487 = vpow2.f32 %v9417_v24  ;;  %v9406_v13 = vsub.f32 %v9374_v25, %v9398_v32 }
 0xc9e   : > { %19489 = vpow2.f32 %v9419_v33 }
 0xc9f   : > { %v19478_v6 = vpop.eup %19477  ;;  %v9421_v35 = vmul.f32 1.442695, %v9406_v13  ;;  %v8777_v13 = vmul.f32 %v20996_v54, %v20188_v11 }
 0xca0   : > { %v9423_v62 = vsel %vm1487_vm7, %v19478_v6, 0.0 }
 0xca1   : > { %19491 = vpow2.f32 %v9421_v35  ;;  %9424 = vadd.xlane.f32.xlu0 %v9423_v62 }
 0xca2   : > { %v19480_v59 = vpop.eup %19479 }
 0xca3   : > { %v19482_v45 = vpop.eup %19481  ;;  %v9426_v14 = vsel %vm1487_vm7, %v19480_v59, 0.0 }
 0xca4   : > { %9427 = vadd.xlane.f32.xlu1 %v9426_v14  ;;  %v9429_v42 = vsel %vm1487_vm7, %v19482_v45, 0.0 }
 0xca5   : > { %9430 = vadd.xlane.f32.xlu0 %v9429_v42 }
 0xca6   : > { %v19484_v23 = vpop.eup %19483 }
 0xca7   : > { %v19486_v10 = vpop.eup %19485  ;;  %v9432_v38 = vsel %vm1487_vm7, %v19484_v23, 0.0 }
 0xca8   : > { %9433 = vadd.xlane.f32.xlu1 %v9432_v38  ;;  %v9435_v25 = vsel %vm1487_vm7, %v19486_v10, 0.0  ;;  %v8779_v38 = vmul.f32 %v20996_v54, %v19892_v56 }
 0xca9   : > { %9436 = vadd.xlane.f32.xlu0 %v9435_v25 }
 0xcaa   : > { %v19488_v22 = vpop.eup %19487 }
 0xcab   : > { %v19490_v30 = vpop.eup %19489  ;;  %v9438_v46 = vsel %vm1487_vm7, %v19488_v22, 0.0 }
 0xcac   : > { %9439 = vadd.xlane.f32.xlu1 %v9438_v46  ;;  %v9441_v12 = vsel %vm1487_vm7, %v19490_v30, 0.0 }
 0xcad   : > { %9442 = vadd.xlane.f32.xlu0 %v9441_v12  ;;  %v8780_v12 = vmul.f32 %v20996_v54, %v20205_v31 }
 0xcae   : > { %v21122_v20 = vpop.eup %19491 }
 0xcaf   : > { %v9444_v39 = vsel %vm1487_vm7, %v21122_v20, 0.0 }
 0xcb0   : > { %9445 = vadd.xlane.f32.xlu1 %v9444_v39 }
 0xd2a   : > { %v9425_v36 = vpop.xlane.xlu0 %9424 }
 0xd2b   : > { %19493 = vrcp.f32 %v9425_v36 }
 0xd2d   : > { %v9428_v29 = vpop.xlane.xlu1 %9427 }
 0xd2e   : > { %19495 = vrcp.f32 %v9428_v29  ;;  %v9431_v16 = vpop.xlane.xlu0 %9430 }
 0xd2f   : > { %19497 = vrcp.f32 %v9431_v16  ;;  %v8782_v16 = vmul.f32 %v20996_v54, %v20221_v21 }
 0xd31   : > { %v9434_v50 = vpop.xlane.xlu1 %9433 }
 0xd32   : > { %19499 = vrcp.f32 %v9434_v50  ;;  %v9437_v63 = vpop.xlane.xlu0 %9436  ;;  %v21165_v50 = vsel %vm10081_vm15, 1.0, %v19661_v26 }
 0xd33   : > { %19501 = vrcp.f32 %v9437_v63 }
 0xd35   : > { %v9440_v19 = vpop.xlane.xlu1 %9439 }
 0xd36   : > { %19503 = vrcp.f32 %v9440_v19  ;;  %v9443_v3 = vpop.xlane.xlu0 %9442  ;;  %v10087_v19 = vmul.f32 %v21165_v50, %v19859_v47 }
 0xd37   : > { %19505 = vrcp.f32 %v9443_v3  ;;  %v10088_v3 = vmul.f32 %v21165_v50, %v19848_v43 }
 0xd38   : > { %v19494_v24 = vpop.eup %19493 }
 0xd39   : > { %v9446_v33 = vpop.xlane.xlu1 %9445  ;;  %v9455_v32 = vmul.f32 %v19494_v24, %v19478_v6  ;;  %v8778_v6 = vmul.f32 %v20996_v54, %v20195_v18  ;;  %v10089_v24 = vmul.f32 %v21165_v50, %v19877_v51 }
 0xd3a   : > { %19507 = vrcp.f32 %v9446_v33  ;;  %v10090_v33 = vmul.f32 %v21165_v50, %v19879_v52 }
 0xd3b   : > { %v19496_v35 = vpop.eup %19495  ;;  %18821 = vmatmul.mubr.msk.f32.vlgmr.msra.gmra.mxu1 %vm2277_vm8, %v9455_v32  ;;  %v10091_v32 = vmul.f32 %v21165_v50, %v19907_v60 }
 0xd3c   : > { %v19498_v62 = vpop.eup %19497  ;;  %v9456_v14 = vmul.f32 %v19496_v35, %v19480_v59  ;;  %18829 = vmatpush3.msk.msra.mxu1 %vm613_vm0, %v8777_v13  ;;  %18830 = vmatprep.mubr.msk.f32.mxu1 %vm19662_vm2, %v19661_v26  ;;  %v10092_v13 = vmul.f32 %v21165_v50, %v20034_v15  ;;  %v10093_v35 = vmul.f32 %v21165_v50, %v20040_v17 }
 0xd3d   : > { %18838 = vmatprep.subr.mxu1 %v19661_v26  ;;  %v9457_v42 = vmul.f32 %v19498_v62, %v19482_v45 }
 0xd3e   : > { %18826 = vmatmul.mubr.msk.f32.vlgmr.msra.gmra.mxu0 %vm2277_vm8, %v9456_v14 }
 0xd3f   : > { %v19500_v25 = vpop.eup %19499  ;;  %18831 = vmatmul.mubr.msk.f32.vlgmr.msra.gmra.mxu1 %vm2277_vm8, %v9457_v42  ;;  %18834 = vmatpush3.msk.msra.mxu0 %vm613_vm0, %v8778_v6 }
 0xd40   : > { %v19502_v59 = vpop.eup %19501  ;;  %v9458_v46 = vmul.f32 %v19500_v25, %v19484_v23  ;;  %18839 = vmatpush3.msk.msra.mxu1 %vm613_vm0, %v8779_v38  ;;  %18835 = vmatprep.mubr.msk.f32.mxu0 %vm19662_vm2, %v19661_v26  ;;  %v8781_v23 = vmul.f32 %v20996_v54, %v19923_v0  ;;  %v10085_v54 = vmul.f32 %v21165_v50, %v19844_v40 }
 0xd41   : > { %v9459_v45 = vmul.f32 %v19502_v59, %v19486_v10  ;;  %18840 = vmatprep.mubr.msk.f32.mxu1 %vm19662_vm2, %v19661_v26  ;;  %18843 = vmatprep.subr.mxu0 %v19661_v26 }
 0xd42   : > { %18848 = vmatprep.subr.mxu1 %v19661_v26  ;;  %18836 = vmatmul.mubr.msk.f32.vlgmr.msra.gmra.mxu0 %vm2277_vm8, %v9458_v46 }
 0xd43   : > { %v19504_v39 = vpop.eup %19503  ;;  %18841 = vmatmul.mubr.msk.f32.vlgmr.msra.gmra.mxu1 %vm2277_vm8, %v9459_v45  ;;  %18844 = vmatpush3.msk.msra.mxu0 %vm613_vm0, %v8780_v12 }
 0xd44   : > { %v19506_v10 = vpop.eup %19505  ;;  %v9460_v36 = vmul.f32 %v19504_v39, %v19488_v22  ;;  %18849 = vmatpush3.msk.msra.mxu1 %vm613_vm0, %v8781_v23  ;;  %18845 = vmatprep.mubr.msk.f32.mxu0 %vm19662_vm2, %v19661_v26  ;;  %v10084_v22 = vmul.f32 %v21165_v50, %v19832_v34 }
 0xd45   : > { %v9461_v29 = vmul.f32 %v19506_v10, %v19490_v30  ;;  %18850 = vmatprep.mubr.msk.f32.mxu1 %vm19662_vm2, %v19661_v26  ;;  %18853 = vmatprep.subr.mxu0 %v19661_v26 }
 0xd46   : > { %18858 = vmatprep.subr.mxu1 %v19661_v26  ;;  %18846 = vmatmul.mubr.msk.f32.vlgmr.msra.gmra.mxu0 %vm2277_vm8, %v9460_v36 }
 0xd47   : > { %v19508_v63 = vpop.eup %19507  ;;  %18851 = vmatmul.mubr.msk.f32.vlgmr.msra.gmra.mxu1 %vm2277_vm8, %v9461_v29  ;;  %18854 = vmatpush3.msk.msra.mxu0 %vm613_vm0, %v8782_v16 }
 0xd48   : > { %v9462_v30 = vmul.f32 %v19508_v63, %v21122_v20  ;;  %18859 = vmatpush3.xpose.msk.msra.mxu1 %vm606_vm1, %v10084_v22  ;;  %18855 = vmatprep.mubr.msk.f32.mxu0 %vm19662_vm2, %v19661_v26  ;;  %v10086_v20 = vmul.f32 %v21165_v50, %v19850_v44 }
 0xd49   : > { %18860 = vmatprep.mubr.msk.f32.mxu1 %vm19662_vm2, %v19661_v26  ;;  %18863 = vmatprep.subr.mxu0 %v19661_v26 }
 0xd4a   : > { %18868 = vmatprep.subr.mxu1 %v19661_v26  ;;  %18856 = vmatmul.mubr.msk.f32.vlgmr.msra.gmra.mxu0 %vm2277_vm8, %v9462_v30 }
 0xd4b   : > { %18861 = vmatmul.mubr.msk.f32.vlgmr.msra.gmra.mxu1 %vm606_vm1, %v19846_v41  ;;  %18864 = vmatpush3.xpose.msk.msra.mxu0 %vm606_vm1, %v10085_v54 }
 0xd4c   : > { %18869 = vmatpush3.xpose.msk.msra.mxu1 %vm606_vm1, %v10086_v20  ;;  %18865 = vmatprep.mubr.msk.f32.mxu0 %vm19662_vm2, %v19661_v26 }
 0xd4d   : > { %18870 = vmatprep.mubr.msk.f32.mxu1 %vm19662_vm2, %v19661_v26  ;;  %18873 = vmatprep.subr.mxu0 %v19661_v26 }
 0xd4e   : > { %18878 = vmatprep.subr.mxu1 %v19661_v26  ;;  %18866 = vmatmul.mubr.msk.f32.vlgmr.msra.gmra.mxu0 %vm606_vm1, %v19867_v49 }
 0xd4f   : > { %18871 = vmatmul.mubr.msk.f32.vlgmr.msra.gmra.mxu1 %vm606_vm1, %v19861_v48  ;;  %18874 = vmatpush3.xpose.msk.msra.mxu0 %vm606_vm1, %v10087_v19 }
 0xd50   : > { %18879 = vmatpush3.xpose.msk.msra.mxu1 %vm606_vm1, %v10088_v3  ;;  %18875 = vmatprep.mubr.msk.f32.mxu0 %vm19662_vm2, %v19661_v26 }
 0xd51   : > { %18880 = vmatprep.mubr.msk.f32.mxu1 %vm19662_vm2, %v19661_v26  ;;  %18883 = vmatprep.subr.mxu0 %v19661_v26 }
 0xd52   : > { %18888 = vmatprep.subr.mxu1 %v19661_v26  ;;  %18876 = vmatmul.mubr.msk.f32.vlgmr.msra.gmra.mxu0 %vm606_vm1, %v19900_v58 }
 0xd53   : > { %18881 = vmatmul.mubr.msk.f32.vlgmr.msra.gmra.mxu1 %vm606_vm1, %v19894_v57  ;;  %18884 = vmatpush3.xpose.msk.msra.mxu0 %vm606_vm1, %v10089_v24 }
 0xd54   : > { %18889 = vmatpush3.xpose.msk.msra.mxu1 %vm606_vm1, %v10090_v33  ;;  %18885 = vmatprep.mubr.msk.f32.mxu0 %vm19662_vm2, %v19661_v26 }
 0xd55   : > { %18890 = vmatprep.mubr.msk.f32.mxu1 %vm19662_vm2, %v19661_v26  ;;  %18893 = vmatprep.subr.mxu0 %v19661_v26 }
 0xd56   : > { %18898 = vmatprep.subr.mxu1 %v19661_v26  ;;  %18886 = vmatmul.mubr.msk.f32.vlgmr.msra.gmra.mxu0 %vm606_vm1, %v19933_v2 }
 0xd57   : > { %18891 = vmatmul.mubr.msk.f32.vlgmr.msra.gmra.mxu1 %vm606_vm1, %v19925_v1  ;;  %18894 = vmatpush3.xpose.msk.msra.mxu0 %vm606_vm1, %v10091_v32 }
 0xd58   : > { %18899 = vmatpush3.msk.msra.mxu1 %vm613_vm0, %v10092_v13  ;;  %18895 = vmatprep.mubr.msk.f32.mxu0 %vm19662_vm2, %v19661_v26 }
 0xd59   : > { %18903 = vmatprep.subr.mxu0 %v19661_v26  ;;  %18900 = vmatprep.mubr.msk.f32.mxu1 %vm19662_vm2, %v19661_v26 }
 0xd5a   : > { %18896 = vmatmul.mubr.msk.f32.vlgmr.msra.gmra.mxu0 %vm606_vm1, %v19953_v5  ;;  %18908 = vmatprep.subr.mxu1 %v19661_v26 }
 0xd5b   : > { %18904 = vmatpush3.msk.msra.mxu0 %vm613_vm0, %v10093_v35  ;;  %18905 = vmatprep.mubr.msk.f32.mxu0 %vm19662_vm2, %v19661_v26 }
 0xd5c   : > { %18913 = vmatprep.subr.mxu0 %v19661_v26 }
 0xdfb   : > { %v9535_v62 = vpop.f32.mrf.mxu1 }
 0xdfc   : > { %v21253_v14 = vadd.f32 %v9535_v62, %v21084_v9 }
 0xdfd   : > { %v18822_v42 = vpop.f32.mrf.mxu1 }
 0xdfe   : > { %v9611_v6 = vpop.f32.mrf.mxu0 }
 0xdff   : > { %v21256_v38 = vadd.f32 %v9611_v6, %v21087_v7  ;;  %v9687_v25 = vpop.f32.mrf.mxu1 }
 0xe00   : > { %v21259_v59 = vadd.f32 %v9687_v25, %v21090_v8  ;;  %v18827_v46 = vpop.f32.mrf.mxu0 }
 0xe01   : > { %v18832_v45 = vpop.f32.mrf.mxu1 }
 0xe02   : > { %v9763_v12 = vpop.f32.mrf.mxu0 }
 0xe03   : > { %v21262_v23 = vadd.f32 %v9763_v12, %v21093_v53  ;;  %v9839_v39 = vpop.f32.mrf.mxu1 }
 0xe04   : > { %v21265_v10 = vadd.f32 %v9839_v39, %v21096_v4  ;;  %v18837_v9 = vpop.f32.mrf.mxu0 }
 0xe05   : > { %v18842_v36 = vpop.f32.mrf.mxu1 }
 0xe06   : > { %v9915_v29 = vpop.f32.mrf.mxu0 }
 0xe07   : > { %v21268_v7 = vadd.f32 %v9915_v29, %v21099_v37  ;;  %v9991_v16 = vpop.f32.mrf.mxu1 }
 0xe08   : > { %v21271_v8 = vadd.f32 %v9991_v16, %v21102_v55  ;;  %v18847_v22 = vpop.f32.mrf.mxu0 }
 0xe09   : > { %v18852_v63 = vpop.f32.mrf.mxu1 }
 0xe0a   : > { %v10067_v30 = vpop.f32.mrf.mxu0 }
 0xe0b   : > { %v21274_v53 = vadd.f32 %v10067_v30, %v21105_v61  ;;  %v10169_v54 = vpop.f32.mrf.mxu1 }
 0xe0c   : > { %v10684_v20 = vmul.f32 0.5, %v10169_v54  ;;  %v18857_v4 = vpop.f32.mrf.mxu0 }
 0xe0d   : > { %v18862_v19 = vpop.f32.mrf.mxu1 }
 0xe0e   : > { %v10242_v3 = vpop.f32.mrf.mxu0  ;;  %v10692_v24 = vsel %vm1487_vm7, %v10684_v20, -inf }
 0xe0f   : > { %v10685_v33 = vmul.f32 0.5, %v10242_v3  ;;  %10693 = vmax.xlane.f32.xlu0 %v10692_v24  ;;  %v10315_v37 = vpop.f32.mrf.mxu1 }
 0xe10   : > { %v10686_v32 = vmul.f32 0.5, %v10315_v37  ;;  %v18867_v13 = vpop.f32.mrf.mxu0 }
 0xe11   : > { %v18872_v55 = vpop.f32.mrf.mxu1  ;;  %v10695_v35 = vsel %vm1487_vm7, %v10685_v33, -inf }
 0xe12   : > { %10696 = vmax.xlane.f32.xlu1 %v10695_v35  ;;  %v10388_v62 = vpop.f32.mrf.mxu0  ;;  %v10698_v61 = vsel %vm1487_vm7, %v10686_v32, -inf }
 0xe13   : > { %v10687_v42 = vmul.f32 0.5, %v10388_v62  ;;  %10699 = vmax.xlane.f32.xlu0 %v10698_v61  ;;  %v10461_v6 = vpop.f32.mrf.mxu1 }
 0xe14   : > { %v10688_v25 = vmul.f32 0.5, %v10461_v6  ;;  %v18877_v46 = vpop.f32.mrf.mxu0 }
 0xe15   : > { %v18882_v45 = vpop.f32.mrf.mxu1  ;;  %v10701_v12 = vsel %vm1487_vm7, %v10687_v42, -inf }
 0xe16   : > { %10702 = vmax.xlane.f32.xlu1 %v10701_v12  ;;  %v10534_v39 = vpop.f32.mrf.mxu0  ;;  %v10704_v9 = vsel %vm1487_vm7, %v10688_v25, -inf }
 0xe17   : > { %v10689_v36 = vmul.f32 0.5, %v10534_v39  ;;  %10705 = vmax.xlane.f32.xlu0 %v10704_v9  ;;  %v10607_v29 = vpop.f32.mrf.mxu1 }
 0xe18   : > { %v10690_v16 = vmul.f32 0.5, %v10607_v29  ;;  %v18887_v22 = vpop.f32.mrf.mxu0 }
 0xe19   : > { %v18892_v63 = vpop.f32.mrf.mxu1  ;;  %v10707_v30 = vsel %vm1487_vm7, %v10689_v36, -inf }
 0xe1a   : > { %10708 = vmax.xlane.f32.xlu1 %v10707_v30  ;;  %v10680_v54 = vpop.f32.mrf.mxu0  ;;  %v10710_v4 = vsel %vm1487_vm7, %v10690_v16, -inf }
 0xe1b   : > { %v10691_v19 = vmul.f32 0.5, %v10680_v54  ;;  %10711 = vmax.xlane.f32.xlu0 %v10710_v4 }
 0xe1c   : > { %v18897_v3 = vpop.f32.mrf.mxu0 }
 0xe1d   : > { %v10713_v24 = vsel %vm1487_vm7, %v10691_v19, -inf }
 0xe1e   : > { %10714 = vmax.xlane.f32.xlu1 %v10713_v24 }
 0xe98   : > { %v10694_v37 = vpop.xlane.xlu0 %10693 }
 0xe99   : > { %v10716_v13 = vsub.f32 %v10684_v20, %v10694_v37 }
 0xe9b   : > { %v10724_v55 = vmul.f32 1.442695, %v10716_v13  ;;  %v10697_v35 = vpop.xlane.xlu1 %10696 }
 0xe9c   : > { %v10717_v62 = vsub.f32 %v10685_v33, %v10697_v35  ;;  %v10700_v61 = vpop.xlane.xlu0 %10699 }
 0xe9d   : > { %19509 = vpow2.f32 %v10724_v55  ;;  %v10718_v6 = vsub.f32 %v10686_v32, %v10700_v61 }
 0xe9e   : > { %v10726_v46 = vmul.f32 1.442695, %v10717_v62 }
 0xe9f   : > { %v10728_v45 = vmul.f32 1.442695, %v10718_v6  ;;  %v10703_v12 = vpop.xlane.xlu1 %10702 }
 0xea0   : > { %19511 = vpow2.f32 %v10726_v46  ;;  %v10719_v39 = vsub.f32 %v10687_v42, %v10703_v12  ;;  %v10706_v9 = vpop.xlane.xlu0 %10705 }
 0xea1   : > { %19513 = vpow2.f32 %v10728_v45  ;;  %v10720_v29 = vsub.f32 %v10688_v25, %v10706_v9 }
 0xea2   : > { %v10730_v22 = vmul.f32 1.442695, %v10719_v39 }
 0xea3   : > { %v10732_v63 = vmul.f32 1.442695, %v10720_v29  ;;  %v10709_v30 = vpop.xlane.xlu1 %10708 }
 0xea4   : > { %19515 = vpow2.f32 %v10730_v22  ;;  %v10721_v54 = vsub.f32 %v10689_v36, %v10709_v30  ;;  %v10712_v20 = vpop.xlane.xlu0 %10711 }
 0xea5   : > { %19517 = vpow2.f32 %v10732_v63  ;;  %v10722_v4 = vsub.f32 %v10690_v16, %v10712_v20 }
 0xea6   : > { %v10734_v33 = vmul.f32 1.442695, %v10721_v54 }
 0xea7   : > { %v10736_v3 = vmul.f32 1.442695, %v10722_v4  ;;  %v10715_v24 = vpop.xlane.xlu1 %10714 }
 0xea8   : > { %19519 = vpow2.f32 %v10734_v33  ;;  %v10723_v32 = vsub.f32 %v10691_v19, %v10715_v24 }
 0xea9   : > { %19521 = vpow2.f32 %v10736_v3 }
 0xeaa   : > { %v19510_v37 = vpop.eup %19509  ;;  %v10738_v13 = vmul.f32 1.442695, %v10723_v32  ;;  %v10094_v32 = vmul.f32 %v21165_v50, %v20188_v11 }
 0xeab   : > { %v10740_v42 = vsel %vm1487_vm7, %v19510_v37, 0.0 }
 0xeac   : > { %19523 = vpow2.f32 %v10738_v13  ;;  %10741 = vadd.xlane.f32.xlu0 %v10740_v42 }
 0xead   : > { %v19512_v25 = vpop.eup %19511 }
 0xeae   : > { %v19514_v55 = vpop.eup %19513  ;;  %v10743_v35 = vsel %vm1487_vm7, %v19512_v25, 0.0 }
 0xeaf   : > { %10744 = vadd.xlane.f32.xlu1 %v10743_v35  ;;  %v10746_v36 = vsel %vm1487_vm7, %v19514_v55, 0.0 }
 0xeb0   : > { %10747 = vadd.xlane.f32.xlu0 %v10746_v36 }
 0xeb1   : > { %v19516_v16 = vpop.eup %19515 }
 0xeb2   : > { %v19518_v62 = vpop.eup %19517  ;;  %v10749_v61 = vsel %vm1487_vm7, %v19516_v16, 0.0 }
 0xeb3   : > { %10750 = vadd.xlane.f32.xlu1 %v10749_v61  ;;  %v10752_v19 = vsel %vm1487_vm7, %v19518_v62, 0.0  ;;  %v10096_v61 = vmul.f32 %v21165_v50, %v19892_v56 }
 0xeb4   : > { %10753 = vadd.xlane.f32.xlu0 %v10752_v19 }
 0xeb5   : > { %v19520_v6 = vpop.eup %19519 }
 0xeb6   : > { %v19522_v46 = vpop.eup %19521  ;;  %v10755_v45 = vsel %vm1487_vm7, %v19520_v6, 0.0 }
 0xeb7   : > { %10756 = vadd.xlane.f32.xlu1 %v10755_v45  ;;  %v10758_v12 = vsel %vm1487_vm7, %v19522_v46, 0.0 }
 0xeb8   : > { %10759 = vadd.xlane.f32.xlu0 %v10758_v12  ;;  %v10097_v12 = vmul.f32 %v21165_v50, %v20205_v31 }
 0xeb9   : > { %v21291_v39 = vpop.eup %19523 }
 0xeba   : > { %v10761_v9 = vsel %vm1487_vm7, %v21291_v39, 0.0 }
 0xebb   : > { %10762 = vadd.xlane.f32.xlu1 %v10761_v9 }
 0xf35   : > { %v10742_v29 = vpop.xlane.xlu0 %10741 }
 0xf36   : > { %19525 = vrcp.f32 %v10742_v29 }
 0xf38   : > { %v10745_v22 = vpop.xlane.xlu1 %10744 }
 0xf39   : > { %19527 = vrcp.f32 %v10745_v22  ;;  %v10748_v63 = vpop.xlane.xlu0 %10747 }
 0xf3a   : > { %19529 = vrcp.f32 %v10748_v63  ;;  %v10099_v63 = vmul.f32 %v21165_v50, %v20221_v21 }
 0xf3c   : > { %v10751_v30 = vpop.xlane.xlu1 %10750 }
 0xf3d   : > { %19531 = vrcp.f32 %v10751_v30  ;;  %v10754_v54 = vpop.xlane.xlu0 %10753  ;;  %v21334_v30 = vsel %vm11398_vm5, 1.0, %v19661_v26 }
 0xf3e   : > { %19533 = vrcp.f32 %v10754_v54  ;;  %v11415_v28 = vmul.f32 %v21334_v30, %v19923_v0 }
 0xf40   : > { %v10757_v20 = vpop.xlane.xlu1 %10756 }
 0xf41   : > { %19535 = vrcp.f32 %v10757_v20  ;;  %v10760_v4 = vpop.xlane.xlu0 %10759  ;;  %v11404_v20 = vmul.f32 %v21334_v30, %v19859_v47 }
 0xf42   : > { %19537 = vrcp.f32 %v10760_v4  ;;  %v11405_v4 = vmul.f32 %v21334_v30, %v19848_v43 }
 0xf43   : > { %v19526_v33 = vpop.eup %19525 }
 0xf44   : > { %v10772_v3 = vmul.f32 %v19526_v33, %v19510_v37  ;;  %v10763_v24 = vpop.xlane.xlu1 %10762  ;;  %v10095_v37 = vmul.f32 %v21165_v50, %v20195_v18  ;;  %v11406_v33 = vmul.f32 %v21334_v30, %v19877_v51 }
 0xf45   : > { %19539 = vrcp.f32 %v10763_v24  ;;  %v11408_v24 = vmul.f32 %v21334_v30, %v19907_v60 }
 0xf46   : > { %v19528_v13 = vpop.eup %19527  ;;  %18901 = vmatmul.mubr.msk.f32.vlgmr.msra.gmra.mxu1 %vm2277_vm8, %v10772_v3  ;;  %v11407_v3 = vmul.f32 %v21334_v30, %v19879_v52 }
 0xf47   : > { %v19530_v42 = vpop.eup %19529  ;;  %v10773_v35 = vmul.f32 %v19528_v13, %v19512_v25  ;;  %18909 = vmatpush3.msk.msra.mxu1 %vm613_vm0, %v10094_v32  ;;  %18910 = vmatprep.mubr.msk.f32.mxu1 %vm19662_vm2, %v19661_v26  ;;  %v11409_v32 = vmul.f32 %v21334_v30, %v20034_v15  ;;  %v11410_v13 = vmul.f32 %v21334_v30, %v20040_v17 }
 0xf48   : > { %v10774_v36 = vmul.f32 %v19530_v42, %v19514_v55  ;;  %18918 = vmatprep.subr.mxu1 %v19661_v26 }
 0xf49   : > { %18906 = vmatmul.mubr.msk.f32.vlgmr.msra.gmra.mxu0 %vm2277_vm8, %v10773_v35 }
 0xf4a   : > { %v19532_v19 = vpop.eup %19531  ;;  %18911 = vmatmul.mubr.msk.f32.vlgmr.msra.gmra.mxu1 %vm2277_vm8, %v10774_v36  ;;  %18914 = vmatpush3.msk.msra.mxu0 %vm613_vm0, %v10095_v37 }
 0xf4b   : > { %v19534_v25 = vpop.eup %19533  ;;  %v10775_v55 = vmul.f32 %v19532_v19, %v19516_v16  ;;  %18919 = vmatpush3.msk.msra.mxu1 %vm613_vm0, %v10096_v61  ;;  %18915 = vmatprep.mubr.msk.f32.mxu0 %vm19662_vm2, %v19661_v26  ;;  %v10098_v16 = vmul.f32 %v21165_v50, %v19923_v0  ;;  %v11402_v50 = vmul.f32 %v21334_v30, %v19844_v40 }
 0xf4c   : > { %v10776_v45 = vmul.f32 %v19534_v25, %v19518_v62  ;;  %18920 = vmatprep.mubr.msk.f32.mxu1 %vm19662_vm2, %v19661_v26  ;;  %18923 = vmatprep.subr.mxu0 %v19661_v26 }
 0xf4d   : > { %18928 = vmatprep.subr.mxu1 %v19661_v26  ;;  %18916 = vmatmul.mubr.msk.f32.vlgmr.msra.gmra.mxu0 %vm2277_vm8, %v10775_v55 }
 0xf4e   : > { %v19536_v9 = vpop.eup %19535  ;;  %18921 = vmatmul.mubr.msk.f32.vlgmr.msra.gmra.mxu1 %vm2277_vm8, %v10776_v45  ;;  %18924 = vmatpush3.msk.msra.mxu0 %vm613_vm0, %v10097_v12 }
 0xf4f   : > { %v19538_v62 = vpop.eup %19537  ;;  %v10777_v29 = vmul.f32 %v19536_v9, %v19520_v6  ;;  %18929 = vmatpush3.msk.msra.mxu1 %vm613_vm0, %v10098_v16  ;;  %18925 = vmatprep.mubr.msk.f32.mxu0 %vm19662_vm2, %v19661_v26  ;;  %v11401_v6 = vmul.f32 %v21334_v30, %v19832_v34 }
 0xf50   : > { %v10778_v22 = vmul.f32 %v19538_v62, %v19522_v46  ;;  %18930 = vmatprep.mubr.msk.f32.mxu1 %vm19662_vm2, %v19661_v26  ;;  %18933 = vmatprep.subr.mxu0 %v19661_v26 }
 0xf51   : > { %18938 = vmatprep.subr.mxu1 %v19661_v26  ;;  %18926 = vmatmul.mubr.msk.f32.vlgmr.msra.gmra.mxu0 %vm2277_vm8, %v10777_v29 }
 0xf52   : > { %v19540_v54 = vpop.eup %19539  ;;  %18931 = vmatmul.mubr.msk.f32.vlgmr.msra.gmra.mxu1 %vm2277_vm8, %v10778_v22  ;;  %18934 = vmatpush3.msk.msra.mxu0 %vm613_vm0, %v10099_v63 }
 0xf53   : > { %v10779_v46 = vmul.f32 %v19540_v54, %v21291_v39  ;;  %18939 = vmatpush3.xpose.msk.msra.mxu1 %vm606_vm1, %v11401_v6  ;;  %18935 = vmatprep.mubr.msk.f32.mxu0 %vm19662_vm2, %v19661_v26  ;;  %v11403_v39 = vmul.f32 %v21334_v30, %v19850_v44 }
 0xf54   : > { %18940 = vmatprep.mubr.msk.f32.mxu1 %vm19662_vm2, %v19661_v26  ;;  %18943 = vmatprep.subr.mxu0 %v19661_v26 }
 0xf55   : > { %18948 = vmatprep.subr.mxu1 %v19661_v26  ;;  %18936 = vmatmul.mubr.msk.f32.vlgmr.msra.gmra.mxu0 %vm2277_vm8, %v10779_v46 }
 0xf56   : > { %18941 = vmatmul.mubr.msk.f32.vlgmr.msra.gmra.mxu1 %vm606_vm1, %v19846_v41  ;;  %18944 = vmatpush3.xpose.msk.msra.mxu0 %vm606_vm1, %v11402_v50 }
 0xf57   : > { %18949 = vmatpush3.xpose.msk.msra.mxu1 %vm606_vm1, %v11403_v39  ;;  %18945 = vmatprep.mubr.msk.f32.mxu0 %vm19662_vm2, %v19661_v26 }
 0xf58   : > { %18950 = vmatprep.mubr.msk.f32.mxu1 %vm19662_vm2, %v19661_v26  ;;  %18953 = vmatprep.subr.mxu0 %v19661_v26 }
 0xf59   : > { %18958 = vmatprep.subr.mxu1 %v19661_v26  ;;  %18946 = vmatmul.mubr.msk.f32.vlgmr.msra.gmra.mxu0 %vm606_vm1, %v19867_v49 }
 0xf5a   : > { %18951 = vmatmul.mubr.msk.f32.vlgmr.msra.gmra.mxu1 %vm606_vm1, %v19861_v48  ;;  %18954 = vmatpush3.xpose.msk.msra.mxu0 %vm606_vm1, %v11404_v20 }
 0xf5b   : > { %18959 = vmatpush3.xpose.msk.msra.mxu1 %vm606_vm1, %v11405_v4  ;;  %18955 = vmatprep.mubr.msk.f32.mxu0 %vm19662_vm2, %v19661_v26 }
 0xf5c   : > { %18960 = vmatprep.mubr.msk.f32.mxu1 %vm19662_vm2, %v19661_v26  ;;  %18963 = vmatprep.subr.mxu0 %v19661_v26 }
 0xf5d   : > { %18968 = vmatprep.subr.mxu1 %v19661_v26  ;;  %18956 = vmatmul.mubr.msk.f32.vlgmr.msra.gmra.mxu0 %vm606_vm1, %v19900_v58 }
 0xf5e   : > { %18961 = vmatmul.mubr.msk.f32.vlgmr.msra.gmra.mxu1 %vm606_vm1, %v19894_v57  ;;  %18964 = vmatpush3.xpose.msk.msra.mxu0 %vm606_vm1, %v11406_v33 }
 0xf5f   : > { %18969 = vmatpush3.xpose.msk.msra.mxu1 %vm606_vm1, %v11407_v3  ;;  %18965 = vmatprep.mubr.msk.f32.mxu0 %vm19662_vm2, %v19661_v26 }
 0xf60   : > { %18970 = vmatprep.mubr.msk.f32.mxu1 %vm19662_vm2, %v19661_v26  ;;  %18973 = vmatprep.subr.mxu0 %v19661_v26 }
 0xf61   : > { %18978 = vmatprep.subr.mxu1 %v19661_v26  ;;  %18966 = vmatmul.mubr.msk.f32.vlgmr.msra.gmra.mxu0 %vm606_vm1, %v19933_v2 }
 0xf62   : > { %18971 = vmatmul.mubr.msk.f32.vlgmr.msra.gmra.mxu1 %vm606_vm1, %v19925_v1  ;;  %18974 = vmatpush3.xpose.msk.msra.mxu0 %vm606_vm1, %v11408_v24 }
 0xf63   : > { %18979 = vmatpush3.msk.msra.mxu1 %vm613_vm0, %v11409_v32  ;;  %18975 = vmatprep.mubr.msk.f32.mxu0 %vm19662_vm2, %v19661_v26 }
 0xf64   : > { %18983 = vmatprep.subr.mxu0 %v19661_v26  ;;  %18980 = vmatprep.mubr.msk.f32.mxu1 %vm19662_vm2, %v19661_v26 }
 0xf65   : > { %18976 = vmatmul.mubr.msk.f32.vlgmr.msra.gmra.mxu0 %vm606_vm1, %v19953_v5  ;;  %18988 = vmatprep.subr.mxu1 %v19661_v26 }
 0xf66   : > { %18984 = vmatpush3.msk.msra.mxu0 %vm613_vm0, %v11410_v13  ;;  %18985 = vmatprep.mubr.msk.f32.mxu0 %vm19662_vm2, %v19661_v26 }
 0xf67   : > { %18993 = vmatprep.subr.mxu0 %v19661_v26 }
0x1006   : > { %v10852_v42 = vpop.f32.mrf.mxu1 }
0x1007   : > { %v21422_v35 = vadd.f32 %v10852_v42, %v21253_v14 }
0x1008   : > { %v18902_v36 = vpop.f32.mrf.mxu1 }
0x1009   : > { %v10928_v37 = vpop.f32.mrf.mxu0 }
0x100a   : > { %v21425_v61 = vadd.f32 %v10928_v37, %v21256_v38  ;;  %v11004_v19 = vpop.f32.mrf.mxu1 }
0x100b   : > { %v21428_v25 = vadd.f32 %v11004_v19, %v21259_v59  ;;  %v18907_v55 = vpop.f32.mrf.mxu0 }
0x100c   : > { %v18912_v45 = vpop.f32.mrf.mxu1 }
0x100d   : > { %v11080_v12 = vpop.f32.mrf.mxu0 }
0x100e   : > { %v21431_v16 = vadd.f32 %v11080_v12, %v21262_v23  ;;  %v11156_v9 = vpop.f32.mrf.mxu1 }
0x100f   : > { %v21434_v62 = vadd.f32 %v11156_v9, %v21265_v10  ;;  %v18917_v14 = vpop.f32.mrf.mxu0 }
0x1010   : > { %v18922_v29 = vpop.f32.mrf.mxu1 }
0x1011   : > { %v11232_v22 = vpop.f32.mrf.mxu0 }
0x1012   : > { %v21437_v38 = vadd.f32 %v11232_v22, %v21268_v7  ;;  %v11308_v63 = vpop.f32.mrf.mxu1 }
0x1013   : > { %v21440_v59 = vadd.f32 %v11308_v63, %v21271_v8  ;;  %v18927_v6 = vpop.f32.mrf.mxu0 }
0x1014   : > { %v18932_v54 = vpop.f32.mrf.mxu1 }
0x1015   : > { %v11384_v46 = vpop.f32.mrf.mxu0 }
0x1016   : > { %v21443_v23 = vadd.f32 %v11384_v46, %v21274_v53  ;;  %v11486_v50 = vpop.f32.mrf.mxu1 }
0x1017   : > { %v12001_v39 = vmul.f32 0.5, %v11486_v50  ;;  %v18937_v10 = vpop.f32.mrf.mxu0 }
0x1018   : > { %v18942_v20 = vpop.f32.mrf.mxu1 }
0x1019   : > { %v11559_v4 = vpop.f32.mrf.mxu0  ;;  %v12009_v33 = vsel %vm1487_vm7, %v12001_v39, -inf }
0x101a   : > { %v12002_v3 = vmul.f32 0.5, %v11559_v4  ;;  %12010 = vmax.xlane.f32.xlu0 %v12009_v33  ;;  %v11632_v7 = vpop.f32.mrf.mxu1 }
0x101b   : > { %v12003_v24 = vmul.f32 0.5, %v11632_v7  ;;  %v18947_v32 = vpop.f32.mrf.mxu0 }
0x101c   : > { %v18952_v8 = vpop.f32.mrf.mxu1  ;;  %v12012_v13 = vsel %vm1487_vm7, %v12002_v3, -inf }
0x101d   : > { %12013 = vmax.xlane.f32.xlu1 %v12012_v13  ;;  %v11705_v42 = vpop.f32.mrf.mxu0  ;;  %v12015_v53 = vsel %vm1487_vm7, %v12003_v24, -inf }
0x101e   : > { %v12004_v36 = vmul.f32 0.5, %v11705_v42  ;;  %12016 = vmax.xlane.f32.xlu0 %v12015_v53  ;;  %v11778_v37 = vpop.f32.mrf.mxu1 }
0x101f   : > { %v12005_v19 = vmul.f32 0.5, %v11778_v37  ;;  %v18957_v55 = vpop.f32.mrf.mxu0 }
0x1020   : > { %v18962_v45 = vpop.f32.mrf.mxu1  ;;  %v12018_v12 = vsel %vm1487_vm7, %v12004_v36, -inf }
0x1021   : > { %12019 = vmax.xlane.f32.xlu1 %v12018_v12  ;;  %v11851_v9 = vpop.f32.mrf.mxu0  ;;  %v12021_v14 = vsel %vm1487_vm7, %v12005_v19, -inf }
0x1022   : > { %v12006_v29 = vmul.f32 0.5, %v11851_v9  ;;  %12022 = vmax.xlane.f32.xlu0 %v12021_v14  ;;  %v11924_v22 = vpop.f32.mrf.mxu1 }
0x1023   : > { %v12007_v63 = vmul.f32 0.5, %v11924_v22  ;;  %v18967_v6 = vpop.f32.mrf.mxu0 }
0x1024   : > { %v18972_v54 = vpop.f32.mrf.mxu1  ;;  %v12024_v46 = vsel %vm1487_vm7, %v12006_v29, -inf }
0x1025   : > { %12025 = vmax.xlane.f32.xlu1 %v12024_v46  ;;  %v11997_v50 = vpop.f32.mrf.mxu0  ;;  %v12027_v10 = vsel %vm1487_vm7, %v12007_v63, -inf }
0x1026   : > { %v12008_v20 = vmul.f32 0.5, %v11997_v50  ;;  %12028 = vmax.xlane.f32.xlu0 %v12027_v10 }
0x1027   : > { %v18977_v4 = vpop.f32.mrf.mxu0 }
0x1028   : > { %v12030_v33 = vsel %vm1487_vm7, %v12008_v20, -inf }
0x1029   : > { %12031 = vmax.xlane.f32.xlu1 %v12030_v33 }
0x10a3   : > { %v12011_v7 = vpop.xlane.xlu0 %12010 }
0x10a4   : > { %v12033_v32 = vsub.f32 %v12001_v39, %v12011_v7 }
0x10a6   : > { %v12041_v8 = vmul.f32 1.442695, %v12033_v32  ;;  %v12014_v13 = vpop.xlane.xlu1 %12013 }
0x10a7   : > { %v12034_v42 = vsub.f32 %v12002_v3, %v12014_v13  ;;  %v12017_v53 = vpop.xlane.xlu0 %12016 }
0x10a8   : > { %19541 = vpow2.f32 %v12041_v8  ;;  %v12035_v37 = vsub.f32 %v12003_v24, %v12017_v53 }
0x10a9   : > { %v12043_v55 = vmul.f32 1.442695, %v12034_v42 }
0x10aa   : > { %v12045_v45 = vmul.f32 1.442695, %v12035_v37  ;;  %v12020_v12 = vpop.xlane.xlu1 %12019 }
0x10ab   : > { %19543 = vpow2.f32 %v12043_v55  ;;  %v12036_v9 = vsub.f32 %v12004_v36, %v12020_v12  ;;  %v12023_v14 = vpop.xlane.xlu0 %12022 }
0x10ac   : > { %19545 = vpow2.f32 %v12045_v45  ;;  %v12037_v22 = vsub.f32 %v12005_v19, %v12023_v14 }
0x10ad   : > { %v12047_v6 = vmul.f32 1.442695, %v12036_v9 }
0x10ae   : > { %v12049_v54 = vmul.f32 1.442695, %v12037_v22  ;;  %v12026_v46 = vpop.xlane.xlu1 %12025 }
0x10af   : > { %19547 = vpow2.f32 %v12047_v6  ;;  %v12038_v50 = vsub.f32 %v12006_v29, %v12026_v46  ;;  %v12029_v39 = vpop.xlane.xlu0 %12028 }
0x10b0   : > { %19549 = vpow2.f32 %v12049_v54  ;;  %v12039_v10 = vsub.f32 %v12007_v63, %v12029_v39 }
0x10b1   : > { %v12051_v3 = vmul.f32 1.442695, %v12038_v50 }
0x10b2   : > { %v12053_v4 = vmul.f32 1.442695, %v12039_v10  ;;  %v12032_v33 = vpop.xlane.xlu1 %12031 }
0x10b3   : > { %19551 = vpow2.f32 %v12051_v3  ;;  %v12040_v24 = vsub.f32 %v12008_v20, %v12032_v33 }
0x10b4   : > { %19553 = vpow2.f32 %v12053_v4 }
0x10b5   : > { %v19542_v7 = vpop.eup %19541  ;;  %v12055_v32 = vmul.f32 1.442695, %v12040_v24  ;;  %v11411_v24 = vmul.f32 %v21334_v30, %v20188_v11 }
0x10b6   : > { %v12057_v36 = vsel %vm1487_vm7, %v19542_v7, 0.0 }
0x10b7   : > { %19555 = vpow2.f32 %v12055_v32  ;;  %12058 = vadd.xlane.f32.xlu0 %v12057_v36 }
0x10b8   : > { %v19544_v19 = vpop.eup %19543 }
0x10b9   : > { %v19546_v8 = vpop.eup %19545  ;;  %v12060_v13 = vsel %vm1487_vm7, %v19544_v19, 0.0 }
0x10ba   : > { %12061 = vadd.xlane.f32.xlu1 %v12060_v13  ;;  %v12063_v29 = vsel %vm1487_vm7, %v19546_v8, 0.0 }
0x10bb   : > { %12064 = vadd.xlane.f32.xlu0 %v12063_v29 }
0x10bc   : > { %v19548_v63 = vpop.eup %19547 }
0x10bd   : > { %v19550_v42 = vpop.eup %19549  ;;  %v12066_v53 = vsel %vm1487_vm7, %v19548_v63, 0.0 }
0x10be   : > { %12067 = vadd.xlane.f32.xlu1 %v12066_v53  ;;  %v12069_v20 = vsel %vm1487_vm7, %v19550_v42, 0.0  ;;  %v11413_v53 = vmul.f32 %v21334_v30, %v19892_v56 }
0x10bf   : > { %12070 = vadd.xlane.f32.xlu0 %v12069_v20 }
0x10c0   : > { %v19552_v37 = vpop.eup %19551 }
0x10c1   : > { %v19554_v55 = vpop.eup %19553  ;;  %v12072_v45 = vsel %vm1487_vm7, %v19552_v37, 0.0 }
0x10c2   : > { %12073 = vadd.xlane.f32.xlu1 %v12072_v45  ;;  %v12075_v12 = vsel %vm1487_vm7, %v19554_v55, 0.0 }
0x10c3   : > { %12076 = vadd.xlane.f32.xlu0 %v12075_v12  ;;  %v11414_v12 = vmul.f32 %v21334_v30, %v20205_v31 }
0x10c4   : > { %v21460_v9 = vpop.eup %19555 }
0x10c5   : > { %v12078_v14 = vsel %vm1487_vm7, %v21460_v9, 0.0 }
0x10c6   : > { %12079 = vadd.xlane.f32.xlu1 %v12078_v14 }
0x1140   : > { %v12059_v22 = vpop.xlane.xlu0 %12058 }
0x1141   : > { %19557 = vrcp.f32 %v12059_v22 }
0x1143   : > { %v12062_v6 = vpop.xlane.xlu1 %12061 }
0x1144   : > { %19559 = vrcp.f32 %v12062_v6  ;;  %v12065_v54 = vpop.xlane.xlu0 %12064  ;;  %v11416_v6 = vmul.f32 %v21334_v30, %v20221_v21 }
0x1145   : > { %19561 = vrcp.f32 %v12065_v54  ;;  %v21503_v54 = vsel %vm12715_vm10, 1.0, %v19661_v26 }
0x1147   : > { %v12068_v46 = vpop.xlane.xlu1 %12067 }
0x1148   : > { %19563 = vrcp.f32 %v12068_v46  ;;  %v12071_v50 = vpop.xlane.xlu0 %12070 }
0x1149   : > { %19565 = vrcp.f32 %v12071_v50 }
0x114b   : > { %v12074_v39 = vpop.xlane.xlu1 %12073 }
0x114c   : > { %19567 = vrcp.f32 %v12074_v39  ;;  %v12077_v10 = vpop.xlane.xlu0 %12076 }
0x114d   : > { %19569 = vrcp.f32 %v12077_v10 }
0x114e   : > { %v19558_v3 = vpop.eup %19557 }
0x114f   : > { %v12089_v4 = vmul.f32 %v19558_v3, %v19542_v7  ;;  %v12080_v33 = vpop.xlane.xlu1 %12079  ;;  %v11412_v7 = vmul.f32 %v21334_v30, %v20195_v18  ;;  %v12720_v30 = vmul.f32 %v21503_v54, %v19850_v44  ;;  %v12723_v44 = vmul.f32 %v21503_v54, %v19877_v51 }
0x1150   : > { %19571 = vrcp.f32 %v12080_v33 }
0x1151   : > { %v19560_v32 = vpop.eup %19559  ;;  %18981 = vmatmul.mubr.msk.f32.vlgmr.msra.gmra.mxu1 %vm2277_vm8, %v12089_v4 }
0x1152   : > { %v19562_v36 = vpop.eup %19561  ;;  %v12090_v13 = vmul.f32 %v19560_v32, %v19544_v19  ;;  %18989 = vmatpush3.msk.msra.mxu1 %vm613_vm0, %v11411_v24  ;;  %18990 = vmatprep.mubr.msk.f32.mxu1 %vm19662_vm2, %v19661_v26 }
0x1153   : > { %v12091_v29 = vmul.f32 %v19562_v36, %v19546_v8  ;;  %18998 = vmatprep.subr.mxu1 %v19661_v26 }
0x1154   : > { %18986 = vmatmul.mubr.msk.f32.vlgmr.msra.gmra.mxu0 %vm2277_vm8, %v12090_v13 }
0x1155   : > { %v19564_v20 = vpop.eup %19563  ;;  %18991 = vmatmul.mubr.msk.f32.vlgmr.msra.gmra.mxu1 %vm2277_vm8, %v12091_v29  ;;  %18994 = vmatpush3.msk.msra.mxu0 %vm613_vm0, %v11412_v7 }
0x1156   : > { %v19566_v19 = vpop.eup %19565  ;;  %v12092_v8 = vmul.f32 %v19564_v20, %v19548_v63  ;;  %18999 = vmatpush3.msk.msra.mxu1 %vm613_vm0, %v11413_v53  ;;  %18995 = vmatprep.mubr.msk.f32.mxu0 %vm19662_vm2, %v19661_v26 }
0x1157   : > { %v12093_v45 = vmul.f32 %v19566_v19, %v19550_v42  ;;  %19000 = vmatprep.mubr.msk.f32.mxu1 %vm19662_vm2, %v19661_v26  ;;  %19003 = vmatprep.subr.mxu0 %v19661_v26 }
0x1158   : > { %19008 = vmatprep.subr.mxu1 %v19661_v26  ;;  %18996 = vmatmul.mubr.msk.f32.vlgmr.msra.gmra.mxu0 %vm2277_vm8, %v12092_v8 }
0x1159   : > { %v19568_v63 = vpop.eup %19567  ;;  %19001 = vmatmul.mubr.msk.f32.vlgmr.msra.gmra.mxu1 %vm2277_vm8, %v12093_v45  ;;  %19004 = vmatpush3.msk.msra.mxu0 %vm613_vm0, %v11414_v12 }
0x115a   : > { %v19570_v42 = vpop.eup %19569  ;;  %v12094_v14 = vmul.f32 %v19568_v63, %v19552_v37  ;;  %19009 = vmatpush3.msk.msra.mxu1 %vm613_vm0, %v11415_v28  ;;  %19005 = vmatprep.mubr.msk.f32.mxu0 %vm19662_vm2, %v19661_v26  ;;  %v12718_v37 = vmul.f32 %v21503_v54, %v19832_v34  ;;  %v12719_v34 = vmul.f32 %v21503_v54, %v19844_v40 }
0x115b   : > { %v12095_v22 = vmul.f32 %v19570_v42, %v19554_v55  ;;  %19010 = vmatprep.mubr.msk.f32.mxu1 %vm19662_vm2, %v19661_v26  ;;  %19013 = vmatprep.subr.mxu0 %v19661_v26  ;;  %v12721_v40 = vmul.f32 %v21503_v54, %v19859_v47  ;;  %v12725_v47 = vmul.f32 %v21503_v54, %v19907_v60 }
0x115c   : > { %19018 = vmatprep.subr.mxu1 %v19661_v26  ;;  %19006 = vmatmul.mubr.msk.f32.vlgmr.msra.gmra.mxu0 %vm2277_vm8, %v12094_v14 }
0x115d   : > { %v19572_v46 = vpop.eup %19571  ;;  %19011 = vmatmul.mubr.msk.f32.vlgmr.msra.gmra.mxu1 %vm2277_vm8, %v12095_v22  ;;  %19014 = vmatpush3.msk.msra.mxu0 %vm613_vm0, %v11416_v6 }
0x115e   : > { %v12096_v55 = vmul.f32 %v19572_v46, %v21460_v9  ;;  %19019 = vmatpush3.xpose.msk.msra.mxu1 %vm606_vm1, %v12718_v37  ;;  %19015 = vmatprep.mubr.msk.f32.mxu0 %vm19662_vm2, %v19661_v26 }
0x115f   : > { %19020 = vmatprep.mubr.msk.f32.mxu1 %vm19662_vm2, %v19661_v26  ;;  %19023 = vmatprep.subr.mxu0 %v19661_v26 }
0x1160   : > { %19028 = vmatprep.subr.mxu1 %v19661_v26  ;;  %19016 = vmatmul.mubr.msk.f32.vlgmr.msra.gmra.mxu0 %vm2277_vm8, %v12096_v55 }
0x1161   : > { %19021 = vmatmul.mubr.msk.f32.vlgmr.msra.gmra.mxu1 %vm606_vm1, %v19846_v41  ;;  %19024 = vmatpush3.xpose.msk.msra.mxu0 %vm606_vm1, %v12719_v34  ;;  %v12722_v41 = vmul.f32 %v21503_v54, %v19848_v43  ;;  %v12724_v43 = vmul.f32 %v21503_v54, %v19879_v52 }
0x1162   : > { %19029 = vmatpush3.xpose.msk.msra.mxu1 %vm606_vm1, %v12720_v30  ;;  %19025 = vmatprep.mubr.msk.f32.mxu0 %vm19662_vm2, %v19661_v26 }
0x1163   : > { %19030 = vmatprep.mubr.msk.f32.mxu1 %vm19662_vm2, %v19661_v26  ;;  %19033 = vmatprep.subr.mxu0 %v19661_v26 }
0x1164   : > { %19038 = vmatprep.subr.mxu1 %v19661_v26  ;;  %19026 = vmatmul.mubr.msk.f32.vlgmr.msra.gmra.mxu0 %vm606_vm1, %v19867_v49  ;;  %v12727_v49 = vmul.f32 %v21503_v54, %v20040_v17 }
0x1165   : > { %19031 = vmatmul.mubr.msk.f32.vlgmr.msra.gmra.mxu1 %vm606_vm1, %v19861_v48  ;;  %19034 = vmatpush3.xpose.msk.msra.mxu0 %vm606_vm1, %v12721_v40  ;;  %v12726_v48 = vmul.f32 %v21503_v54, %v20034_v15 }
0x1166   : > { %19039 = vmatpush3.xpose.msk.msra.mxu1 %vm606_vm1, %v12722_v41  ;;  %19035 = vmatprep.mubr.msk.f32.mxu0 %vm19662_vm2, %v19661_v26 }
0x1167   : > { %19040 = vmatprep.mubr.msk.f32.mxu1 %vm19662_vm2, %v19661_v26  ;;  %19043 = vmatprep.subr.mxu0 %v19661_v26 }
0x1168   : > { %19048 = vmatprep.subr.mxu1 %v19661_v26  ;;  %19036 = vmatmul.mubr.msk.f32.vlgmr.msra.gmra.mxu0 %vm606_vm1, %v19900_v58 }
0x1169   : > { %19041 = vmatmul.mubr.msk.f32.vlgmr.msra.gmra.mxu1 %vm606_vm1, %v19894_v57  ;;  %19044 = vmatpush3.xpose.msk.msra.mxu0 %vm606_vm1, %v12723_v44 }
0x116a   : > { %19049 = vmatpush3.xpose.msk.msra.mxu1 %vm606_vm1, %v12724_v43  ;;  %19045 = vmatprep.mubr.msk.f32.mxu0 %vm19662_vm2, %v19661_v26 }
0x116b   : > { %19050 = vmatprep.mubr.msk.f32.mxu1 %vm19662_vm2, %v19661_v26  ;;  %19053 = vmatprep.subr.mxu0 %v19661_v26 }
0x116c   : > { %19058 = vmatprep.subr.mxu1 %v19661_v26  ;;  %19046 = vmatmul.mubr.msk.f32.vlgmr.msra.gmra.mxu0 %vm606_vm1, %v19933_v2 }
0x116d   : > { %19051 = vmatmul.mubr.msk.f32.vlgmr.msra.gmra.mxu1 %vm606_vm1, %v19925_v1  ;;  %19054 = vmatpush3.xpose.msk.msra.mxu0 %vm606_vm1, %v12725_v47 }
0x116e   : > { %19059 = vmatpush3.msk.msra.mxu1 %vm613_vm0, %v12726_v48  ;;  %19055 = vmatprep.mubr.msk.f32.mxu0 %vm19662_vm2, %v19661_v26 }
0x116f   : > { %19063 = vmatprep.subr.mxu0 %v19661_v26  ;;  %19060 = vmatprep.mubr.msk.f32.mxu1 %vm19662_vm2, %v19661_v26 }
0x1170   : > { %19056 = vmatmul.mubr.msk.f32.vlgmr.msra.gmra.mxu0 %vm606_vm1, %v19953_v5  ;;  %19068 = vmatprep.subr.mxu1 %v19661_v26 }
0x1171   : > { %19064 = vmatpush3.msk.msra.mxu0 %vm613_vm0, %v12727_v49  ;;  %19065 = vmatprep.mubr.msk.f32.mxu0 %vm19662_vm2, %v19661_v26 }
0x1172   : > { %19073 = vmatprep.subr.mxu0 %v19661_v26 }
0x1211   : > { %v12169_v51 = vpop.f32.mrf.mxu1 }
0x1212   : > { %v21591_v52 = vadd.f32 %v12169_v51, %v21422_v35 }
0x1213   : > { %v18982_v57 = vpop.f32.mrf.mxu1 }
0x1214   : > { %v12245_v58 = vpop.f32.mrf.mxu0 }
0x1215   : > { %v21594_v60 = vadd.f32 %v12245_v58, %v21425_v61  ;;  %v12321_v1 = vpop.f32.mrf.mxu1 }
0x1216   : > { %v21597_v2 = vadd.f32 %v12321_v1, %v21428_v25  ;;  %v18987_v5 = vpop.f32.mrf.mxu0 }
0x1217   : > { %v18992_v15 = vpop.f32.mrf.mxu1 }
0x1218   : > { %v12397_v17 = vpop.f32.mrf.mxu0 }
0x1219   : > { %v21600_v9 = vadd.f32 %v12397_v17, %v21431_v16  ;;  %v12473_v50 = vpop.f32.mrf.mxu1 }
0x121a   : > { %v21603_v39 = vadd.f32 %v12473_v50, %v21434_v62  ;;  %v18997_v35 = vpop.f32.mrf.mxu0 }
0x121b   : > { %v19002_v10 = vpop.f32.mrf.mxu1 }
0x121c   : > { %v12549_v3 = vpop.f32.mrf.mxu0 }
0x121d   : > { %v21606_v61 = vadd.f32 %v12549_v3, %v21437_v38  ;;  %v12625_v4 = vpop.f32.mrf.mxu1 }
0x121e   : > { %v21609_v25 = vadd.f32 %v12625_v4, %v21440_v59  ;;  %v19007_v33 = vpop.f32.mrf.mxu0 }
0x121f   : > { %v19012_v24 = vpop.f32.mrf.mxu1 }
0x1220   : > { %v12701_v32 = vpop.f32.mrf.mxu0 }
0x1221   : > { %v21612_v16 = vadd.f32 %v12701_v32, %v21443_v23  ;;  %v12803_v36 = vpop.f32.mrf.mxu1 }
0x1222   : > { %v13318_v13 = vmul.f32 0.5, %v12803_v36  ;;  %v19017_v62 = vpop.f32.mrf.mxu0 }
0x1223   : > { %v19022_v29 = vpop.f32.mrf.mxu1 }
0x1224   : > { %v12876_v7 = vpop.f32.mrf.mxu0  ;;  %v13326_v53 = vsel %vm1487_vm7, %v13318_v13, -inf }
0x1225   : > { %v13319_v20 = vmul.f32 0.5, %v12876_v7  ;;  %13327 = vmax.xlane.f32.xlu0 %v13326_v53  ;;  %v12949_v38 = vpop.f32.mrf.mxu1 }
0x1226   : > { %v13320_v19 = vmul.f32 0.5, %v12949_v38  ;;  %v19027_v8 = vpop.f32.mrf.mxu0 }
0x1227   : > { %v19032_v59 = vpop.f32.mrf.mxu1  ;;  %v13329_v45 = vsel %vm1487_vm7, %v13319_v20, -inf }
0x1228   : > { %13330 = vmax.xlane.f32.xlu1 %v13329_v45  ;;  %v13022_v12 = vpop.f32.mrf.mxu0  ;;  %v13332_v23 = vsel %vm1487_vm7, %v13320_v19, -inf }
0x1229   : > { %v13321_v28 = vmul.f32 0.5, %v13022_v12  ;;  %13333 = vmax.xlane.f32.xlu0 %v13332_v23  ;;  %v13095_v63 = vpop.f32.mrf.mxu1 }
0x122a   : > { %v13322_v42 = vmul.f32 0.5, %v13095_v63  ;;  %v19037_v14 = vpop.f32.mrf.mxu0 }
0x122b   : > { %v19042_v22 = vpop.f32.mrf.mxu1  ;;  %v13335_v6 = vsel %vm1487_vm7, %v13321_v28, -inf }
0x122c   : > { %13336 = vmax.xlane.f32.xlu1 %v13335_v6  ;;  %v13168_v37 = vpop.f32.mrf.mxu0  ;;  %v13338_v46 = vsel %vm1487_vm7, %v13322_v42, -inf }
0x122d   : > { %v13323_v55 = vmul.f32 0.5, %v13168_v37  ;;  %13339 = vmax.xlane.f32.xlu0 %v13338_v46  ;;  %v13241_v34 = vpop.f32.mrf.mxu1 }
0x122e   : > { %v13324_v30 = vmul.f32 0.5, %v13241_v34  ;;  %v19047_v40 = vpop.f32.mrf.mxu0 }
0x122f   : > { %v19052_v41 = vpop.f32.mrf.mxu1  ;;  %v13341_v44 = vsel %vm1487_vm7, %v13323_v55, -inf }
0x1230   : > { %13342 = vmax.xlane.f32.xlu1 %v13341_v44  ;;  %v13314_v43 = vpop.f32.mrf.mxu0  ;;  %v13344_v47 = vsel %vm1487_vm7, %v13324_v30, -inf }
0x1231   : > { %v13325_v48 = vmul.f32 0.5, %v13314_v43  ;;  %13345 = vmax.xlane.f32.xlu0 %v13344_v47 }
0x1232   : > { %v19057_v49 = vpop.f32.mrf.mxu0 }
0x1233   : > { %v13347_v51 = vsel %vm1487_vm7, %v13325_v48, -inf }
0x1234   : > { %13348 = vmax.xlane.f32.xlu1 %v13347_v51 }
0x12ae   : > { %v13328_v57 = vpop.xlane.xlu0 %13327 }
0x12af   : > { %v13350_v58 = vsub.f32 %v13318_v13, %v13328_v57 }
0x12b1   : > { %v13358_v1 = vmul.f32 1.442695, %v13350_v58  ;;  %v13331_v5 = vpop.xlane.xlu1 %13330 }
0x12b2   : > { %v13351_v15 = vsub.f32 %v13319_v20, %v13331_v5  ;;  %v13334_v17 = vpop.xlane.xlu0 %13333  ;;  %v12728_v5 = vmul.f32 %v21503_v54, %v20188_v11  ;;  %v12730_v11 = vmul.f32 %v21503_v54, %v19892_v56  ;;  %v12731_v56 = vmul.f32 %v21503_v54, %v20205_v31 }
0x12b3   : > { %19573 = vpow2.f32 %v13358_v1  ;;  %v13352_v50 = vsub.f32 %v13320_v19, %v13334_v17 }
0x12b4   : > { %v13360_v35 = vmul.f32 1.442695, %v13351_v15 }
0x12b5   : > { %v13362_v10 = vmul.f32 1.442695, %v13352_v50  ;;  %v13337_v3 = vpop.xlane.xlu1 %13336 }
0x12b6   : > { %19575 = vpow2.f32 %v13360_v35  ;;  %v13353_v4 = vsub.f32 %v13321_v28, %v13337_v3  ;;  %v13340_v33 = vpop.xlane.xlu0 %13339 }
0x12b7   : > { %19577 = vpow2.f32 %v13362_v10  ;;  %v13354_v24 = vsub.f32 %v13322_v42, %v13340_v33  ;;  %v12729_v10 = vmul.f32 %v21503_v54, %v20195_v18  ;;  %v12732_v18 = vmul.f32 %v21503_v54, %v19923_v0 }
0x12b8   : > { %v13364_v32 = vmul.f32 1.442695, %v13353_v4  ;;  %v12733_v0 = vmul.f32 %v21503_v54, %v20221_v21  ;;  %v19139_v54 = vld [vmem:[%s22675_s7 + $0x8] sm:$0xff]  }
0x12b9   : > { %v13366_v36 = vmul.f32 1.442695, %v13354_v24  ;;  %v13343_v62 = vpop.xlane.xlu1 %13342 }
0x12ba   : > { %19579 = vpow2.f32 %v13364_v32  ;;  %v13355_v29 = vsub.f32 %v13323_v55, %v13343_v62  ;;  %v13346_v13 = vpop.xlane.xlu0 %13345 }
0x12bb   : > { %19581 = vpow2.f32 %v13366_v36  ;;  %v13356_v7 = vsub.f32 %v13324_v30, %v13346_v13 }
0x12bc   : > { %v13368_v53 = vmul.f32 1.442695, %v13355_v29 }
0x12bd   : > { %v13370_v20 = vmul.f32 1.442695, %v13356_v7  ;;  %v13349_v38 = vpop.xlane.xlu1 %13348  ;;  %v19138_v7 = vld [vmem:[%s22675_s7 + $0x10] ss:$0 sps:$4 sm:$0xff]  }
0x12be   : > { %19583 = vpow2.f32 %v13368_v53  ;;  %v13357_v19 = vsub.f32 %v13325_v48, %v13349_v38  ;;  %v14082_v21 = vsel %vm613_vm0, %v19138_v7, 0 }
0x12bf   : > { %19585 = vpow2.f32 %v13370_v20 }
0x12c0   : > { %v19574_v8 = vpop.eup %19573  ;;  %v13372_v59 = vmul.f32 1.442695, %v13357_v19 }
0x12c1   : > { %v13374_v45 = vsel %vm1487_vm7, %v19574_v8, 0.0 }
0x12c2   : > { %19587 = vpow2.f32 %v13372_v59  ;;  %13375 = vadd.xlane.f32.xlu0 %v13374_v45 }
0x12c3   : > { %v19576_v12 = vpop.eup %19575 }
0x12c4   : > { %v19578_v23 = vpop.eup %19577  ;;  %v13377_v28 = vsel %vm1487_vm7, %v19576_v12, 0.0 }
0x12c5   : > { %13378 = vadd.xlane.f32.xlu1 %v13377_v28  ;;  %v13380_v63 = vsel %vm1487_vm7, %v19578_v23, 0.0 }
0x12c6   : > { %13381 = vadd.xlane.f32.xlu0 %v13380_v63 }
0x12c7   : > { %v19580_v42 = vpop.eup %19579 }
0x12c8   : > { %v19582_v14 = vpop.eup %19581  ;;  %v13383_v22 = vsel %vm1487_vm7, %v19580_v42, 0.0 }
0x12c9   : > { %13384 = vadd.xlane.f32.xlu1 %v13383_v22  ;;  %v13386_v6 = vsel %vm1487_vm7, %v19582_v14, 0.0 }
0x12ca   : > { %13387 = vadd.xlane.f32.xlu0 %v13386_v6 }
0x12cb   : > { %v19584_v37 = vpop.eup %19583 }
0x12cc   : > { %v19586_v46 = vpop.eup %19585  ;;  %v13389_v55 = vsel %vm1487_vm7, %v19584_v37, 0.0 }
0x12cd   : > { %13390 = vadd.xlane.f32.xlu1 %v13389_v55  ;;  %v13392_v34 = vsel %vm1487_vm7, %v19586_v46, 0.0 }
0x12ce   : > { %13393 = vadd.xlane.f32.xlu0 %v13392_v34 }
0x12cf   : > { %v19588_v30 = vpop.eup %19587 }
0x12d0   : > { %v13395_v40 = vsel %vm1487_vm7, %v19588_v30, 0.0 }
0x12d1   : > { %13396 = vadd.xlane.f32.xlu1 %v13395_v40 }
0x134b   : > { %v13376_v41 = vpop.xlane.xlu0 %13375 }
0x134c   : > { %19589 = vrcp.f32 %v13376_v41 }
0x134e   : > { %v13379_v44 = vpop.xlane.xlu1 %13378 }
0x134f   : > { %19591 = vrcp.f32 %v13379_v44  ;;  %v13382_v43 = vpop.xlane.xlu0 %13381 }
0x1350   : > { %19593 = vrcp.f32 %v13382_v43 }
0x1352   : > { %v13385_v47 = vpop.xlane.xlu1 %13384 }
0x1353   : > { %19595 = vrcp.f32 %v13385_v47  ;;  %v13388_v48 = vpop.xlane.xlu0 %13387 }
0x1354   : > { %19597 = vrcp.f32 %v13388_v48 }
0x1356   : > { %v13391_v49 = vpop.xlane.xlu1 %13390 }
0x1357   : > { %19599 = vrcp.f32 %v13391_v49  ;;  %v13394_v51 = vpop.xlane.xlu0 %13393 }
0x1358   : > { %19601 = vrcp.f32 %v13394_v51 }
0x1359   : > { %v19590_v57 = vpop.eup %19589 }
0x135a   : > { %v13406_v58 = vmul.f32 %v19590_v57, %v19574_v8  ;;  %v13397_v1 = vpop.xlane.xlu1 %13396 }
0x135b   : > { %19603 = vrcp.f32 %v13397_v1 }
0x135c   : > { %v19592_v15 = vpop.eup %19591  ;;  %19061 = vmatmul.mubr.msk.f32.vlgmr.msra.gmra.mxu1 %vm2277_vm8, %v13406_v58 }
0x135d   : > { %v19594_v17 = vpop.eup %19593  ;;  %v13407_v50 = vmul.f32 %v19592_v15, %v19576_v12  ;;  %19069 = vmatpush3.msk.msra.mxu1 %vm613_vm0, %v12728_v5  ;;  %19070 = vmatprep.mubr.msk.f32.mxu1 %vm19662_vm2, %v19661_v26  ;;  %v19637_v5 = vld [vmem:[%s19796_s19 + $0x14] sm:$0xf] }
0x135e   : > { %v13408_v35 = vmul.f32 %v19594_v17, %v19578_v23  ;;  %19078 = vmatprep.subr.mxu1 %v19661_v26 }
0x135f   : > { %19066 = vmatmul.mubr.msk.f32.vlgmr.msra.gmra.mxu0 %vm2277_vm8, %v13407_v50  ;;  %v19638_v50 = vld [vmem:[%s19796_s19] sm:$0xf] }
0x1360   : > { %v19596_v3 = vpop.eup %19595  ;;  %19071 = vmatmul.mubr.msk.f32.vlgmr.msra.gmra.mxu1 %vm2277_vm8, %v13408_v35  ;;  %19074 = vmatpush3.msk.msra.mxu0 %vm613_vm0, %v12729_v10  ;;  %v19639_v10 = vld [vmem:[%s19796_s19 + $0x4] sm:$0xf] }
0x1361   : > { %v19598_v4 = vpop.eup %19597  ;;  %v13409_v33 = vmul.f32 %v19596_v3, %v19580_v42  ;;  %19079 = vmatpush3.msk.msra.mxu1 %vm613_vm0, %v12730_v11  ;;  %19075 = vmatprep.mubr.msk.f32.mxu0 %vm19662_vm2, %v19661_v26 }
0x1362   : > { %v13410_v24 = vmul.f32 %v19598_v4, %v19582_v14  ;;  %19080 = vmatprep.mubr.msk.f32.mxu1 %vm19662_vm2, %v19661_v26  ;;  %19083 = vmatprep.subr.mxu0 %v19661_v26 }
0x1363   : > { %19088 = vmatprep.subr.mxu1 %v19661_v26  ;;  %19076 = vmatmul.mubr.msk.f32.vlgmr.msra.gmra.mxu0 %vm2277_vm8, %v13409_v33  ;;  %v19640_v33 = vld [vmem:[%s19796_s19 + $0x10] sm:$0xf] }
0x1364   : > { %v19600_v32 = vpop.eup %19599  ;;  %19081 = vmatmul.mubr.msk.f32.vlgmr.msra.gmra.mxu1 %vm2277_vm8, %v13410_v24  ;;  %19084 = vmatpush3.msk.msra.mxu0 %vm613_vm0, %v12731_v56 }
0x1365   : > { %v19602_v36 = vpop.eup %19601  ;;  %v13411_v62 = vmul.f32 %v19600_v32, %v19584_v37  ;;  %19089 = vmatpush3.msk.msra.mxu1 %vm613_vm0, %v12732_v18  ;;  %19085 = vmatprep.mubr.msk.f32.mxu0 %vm19662_vm2, %v19661_v26 }
0x1366   : > { %v13412_v31 = vmul.f32 %v19602_v36, %v19586_v46  ;;  %19090 = vmatprep.mubr.msk.f32.mxu1 %vm19662_vm2, %v19661_v26  ;;  %19093 = vmatprep.subr.mxu0 %v19661_v26  ;;  %v19641_v36 = vld [vmem:[%s19796_s19 + $0x1c] sm:$0xf] }
0x1367   : > { %19086 = vmatmul.mubr.msk.f32.vlgmr.msra.gmra.mxu0 %vm2277_vm8, %v13411_v62  ;;  %19111 = vmatprep.subr.msk.bf16.mxu1 %vm613_vm0, %v19138_v7 }
0x1368   : > { %v19604_v29 = vpop.eup %19603  ;;  %19091 = vmatmul.mubr.msk.f32.vlgmr.msra.gmra.mxu1 %vm2277_vm8, %v13412_v31  ;;  %19094 = vmatpush3.msk.msra.mxu0 %vm613_vm0, %v12733_v0  ;;  %v19642_v31 = vld [vmem:[%s19796_s19 + $0x8] sm:$0xf] }
0x1369   : > { %v13413_v13 = vmul.f32 %v19604_v29, %v19588_v30  ;;  %19095 = vmatprep.mubr.msk.f32.mxu0 %vm19662_vm2, %v19661_v26  ;;  %19099 = vmatpush3.bf16.msra.mxu1 %v14082_v21  ;;  %v19140_v26 = vld [vmem:[%s22675_s7] sm:$0xff]   ;;  %v19643_v29 = vld [vmem:[%s19796_s19 + $0xc] sm:$0xf]  ;;  %v19644_v21 = vld [vmem:[%s19796_s19 + $0x18] sm:$0xf] }
0x136a   : > { %19100 = vmatprep.subr.bf16.mxu1 %v19139_v54 }
0x136b   : > { %19096 = vmatmul.mubr.msk.f32.vlgmr.msra.gmra.mxu0 %vm2277_vm8, %v13413_v13 }
0x136d   : > { %19101 = vmatpush3.bf16.msra.mxu1 %v19139_v54 }
0x136e   : > { %19102 = vmatprep.subr.bf16.mxu1 %v19140_v26 }
0x1371   : > { %19103 = vmatpush3.bf16.msra.mxu1 %v19140_v26 }
0x141c   : > { %v13486_v53 = vpop.f32.mrf.mxu1 }
0x141d   : > { %v14022_v19 = vadd.f32 %v13486_v53, %v21591_v52 }
0x141e   : > { %v19062_v20 = vpop.f32.mrf.mxu1 }
0x141f   : > { %v13562_v38 = vpop.f32.mrf.mxu0 }
0x1420   : > { %v14023_v8 = vadd.f32 %v13562_v38, %v21594_v60  ;;  %v13638_v59 = vpop.f32.mrf.mxu1 }
0x1421   : > { %v19067_v45 = vpop.f32.mrf.mxu0  ;;  %v14024_v63 = vadd.f32 %v13638_v59, %v21597_v2 }
0x1422   : > { %v14038_v12 = vcombine.low %v14022_v19, %v14023_v8  ;;  %v19072_v23 = vpop.f32.mrf.mxu1  ;;  %v19663_v8 = vmov 839922192   ;;  %v19664_v45 = vmov 1985246804  }
0x1423   : > { %v13714_v28 = vpop.f32.mrf.mxu0  ;;  %v14191_v59 = vunpack.c.l.s4 %v19663_v8  ;;  %v14439_v8 = vld [vmem:[%s22679_s11 + $0x8] sm:$0xff] }
0x1424   : > { %v14025_v42 = vadd.f32 %v13714_v28, %v21600_v9  ;;  %v13790_v14 = vpop.f32.mrf.mxu1  ;;  %v21709_v28 = vshrl.u32 %v856_v27, 7 }
0x1425   : > { %v19077_v22 = vpop.f32.mrf.mxu0  ;;  %v14026_v34 = vadd.f32 %v13790_v14, %v21603_v39  ;;  %v17491_v39 = vld [vmem:[%s22676_s8] ss:$0 sm:$0xff]  ;;  %v14192_v23 = vunpack.c.0.s8 %v14191_v59 }
0x1426   : > { %v14039_v6 = vcombine.low %v14024_v63, %v14025_v42  ;;  %v19082_v37 = vpop.f32.mrf.mxu1 }
0x1427   : > { %v13866_v46 = vpop.f32.mrf.mxu0  ;;  %v21712_v42 = vsub.s32 %v14192_v23, %v21709_v28 }
0x1428   : > { %v14046_v55 = vpack.c.bf16 %v14039_v6, %v14038_v12  ;;  %v14027_v52 = vadd.f32 %v13866_v46, %v21606_v61  ;;  %v13942_v60 = vpop.f32.mrf.mxu1  ;;  %v14198_v12 = vunpack.c.l.s4 %v19664_v45 }
0x1429   : > { %v19087_v30 = vpop.f32.mrf.mxu0  ;;  %v14028_v2 = vadd.f32 %v13942_v60, %v21609_v25  ;;  %22700 = vst [vmem:[#allocation2_spill] sm:$0xff] %v21712_v42 }
0x142a   : > { %v14040_v40 = vcombine.low %v14026_v34, %v14027_v52  ;;  %v19092_v41 = vpop.f32.mrf.mxu1  ;;  %19104 = vmatprep.mubr.msk.bf16.mxu1 %vm606_vm1, %v14046_v55  ;;  %v14199_v63 = vunpack.c.0.s8 %v14198_v12  ;;  %v14447_v12 = vld [vmem:[%s22679_s11 + $0x48] sm:$0xff] }
0x142b   : > { %v14018_v44 = vpop.f32.mrf.mxu0 }
0x142c   : > { %v14029_v9 = vadd.f32 %v14018_v44, %v21612_v16  ;;  %v21715_v14 = vsub.s32 %v14199_v63, %v21709_v28 }
0x142d   : > { %v19097_v43 = vpop.f32.mrf.mxu0 }
0x142e   : > { %v14041_v47 = vcombine.low %v14028_v2, %v14029_v9  ;;  %22701 = vst [vmem:[#allocation3_spill] sm:$0xff] %v21715_v14 }
0x1430   : > { %v14047_v48 = vpack.c.bf16 %v14041_v47, %v14040_v40 }
0x1432   : > { %19105 = vmatmul.mubr.msk.bf16.vlgmr.msra.gmra.mxu1 %vm606_vm1, %v14047_v48 }
0x14f2   : > { %v19106_v61 = vpop.f32.mrf.mxu1 }
0x14f3   : > { %v14127_v49 = vadd.f32 %v19106_v61, %v17491_v39 }
0x14f4   : > { %v14118_v51 = vpop.f32.mrf.mxu1 }
0x14f5   : > { %v14139_v57 = vcombine.high %v14127_v49, %v14127_v49  ;;  %v14119_v58 = vadd.f32 %v17491_v39, %v14118_v51  ;;  %v14149_v24 = vadd.f32 %v19640_v33, %v14127_v49 }
0x14f6   : > { %v19107_v25 = vpop.f32.mrf.mxu1 }
0x14f7   : > { %v14137_v1 = vcombine.high %v14119_v58, %v14119_v58  ;;  %v14130_v16 = vadd.f32 %v19107_v25, %v17491_v39  ;;  %v14150_v15 = vadd.f32 %v19637_v5, %v14139_v57  ;;  %v14145_v35 = vadd.f32 %v19638_v50, %v14119_v58 }
0x14f8   : > { %v14121_v17 = vpop.f32.mrf.mxu1 }
0x14f9   : > { %v14146_v11 = vadd.f32 %v19639_v10, %v14137_v1  ;;  %v14140_v3 = vcombine.high %v14130_v16, %v14130_v16  ;;  %v14122_v4 = vadd.f32 %v17491_v39, %v14121_v17  ;;  %v14163_v32 = vcombine.low %v14149_v24, %v14150_v15 }
0x14fa   : > { %v14151_v54 = vadd.f32 %v19644_v21, %v14130_v16  ;;  %v14455_v21 = vld [vmem:[%s22679_s11 + $0x88] sm:$0xff] }
0x14fb   : > { %v14138_v56 = vcombine.high %v14122_v4, %v14122_v4  ;;  %v14161_v18 = vcombine.low %v14145_v35, %v14146_v11  ;;  %v14152_v62 = vadd.f32 %v19641_v36, %v14140_v3  ;;  %v14147_v0 = vadd.f32 %v19642_v31, %v14122_v4  ;;  %v14471_v36 = vld [vmem:[%s22679_s11 + $0x108] sm:$0xff] }
0x14fc   : > { %v14175_v20 = vsel %vm606_vm1, %v14163_v32, 0.0  ;;  %v14470_v32 = vld [vmem:[%s22679_s11 + $0x100] sm:$0xff] }
0x14fd   : > { %v14148_v13 = vadd.f32 %v19643_v29, %v14138_v56  ;;  %v14169_v7 = vsel %vm606_vm1, %v14161_v18, 0.0  ;;  %v14164_v38 = vcombine.low %v14151_v54, %v14152_v62  ;;  %v17532_v31 = vcombine.high %v14470_v32, %v14470_v32 }
0x14fe   : > { %14170 = vadd.xlane.f32.xlu0 %v14169_v7  ;;  %v17531_v29 = vcombine.low %v14470_v32, %v14470_v32  ;;  %v14462_v7 = vld [vmem:[%s22679_s11 + $0xc0] sm:$0xff] }
0x14ff   : > { %v14162_v26 = vcombine.low %v14147_v0, %v14148_v13  ;;  %v14178_v19 = vsel %vm606_vm1, %v14164_v38, 0.0  ;;  %v14438_v38 = vld [vmem:[%s22679_s11] sm:$0xff]  ;;  %17547 = vmatprep.subr.msk.bf16.mxu0 %vm613_vm0, %v17532_v31 }
0x1500   : > { %v14769_v59 = vsel %vm613_vm0, %v17531_v29, 0 }
0x1501   : > { %v14172_v53 = vsel %vm606_vm1, %v14162_v26, 0.0  ;;  %v19665_v26 = vmov 0   ;;  %14827 = vmatpush1.bf16.msra.mxu0 %v14769_v59 }
0x1502   : > { %14173 = vadd.xlane.f32.xlu1 %v14172_v53  ;;  %14176 = vadd.xlane.f32.xlu0 %v14175_v20 }
0x1503   : > { %14848 = vmatprep.mubr.bf16.mxu0 %v19665_v26  ;;  %14901 = vmatprep.mubr.bf16.mxu1 %v19665_v26 }
0x1506   : > { %14179 = vadd.xlane.f32.xlu1 %v14178_v19  ;;  %v14446_v19 = vld [vmem:[%s22679_s11 + $0x40] sm:$0xff] }
0x1587   : > { %v14171_v22 = vpop.xlane.xlu0 %14170 }
0x1588   : > { %v14182_v6 = vmul.f32 0.025, %v14171_v22  ;;  %v17500_v22 = vcombine.high %v14438_v38, %v14446_v19 }
0x158a   : > { %v14196_v37 = vrot.slane %v14182_v6, %v21712_v42  ;;  %v14203_v46 = vrot.slane %v14182_v6, %v21715_v14  ;;  %v17502_v6 = vcombine.high %v14439_v8, %v14447_v12 }
0x158b   : > { %v14174_v55 = vpop.xlane.xlu1 %14173  ;;  %v14177_v34 = vpop.xlane.xlu0 %14176 }
0x158c   : > { %v21719_v52 = vsub.f32 %v14145_v35, %v14196_v37  ;;  %v21721_v60 = vsub.f32 %v14146_v11, %v14203_v46  ;;  %v14183_v27 = vmul.f32 0.025, %v14174_v55  ;;  %v14184_v30 = vmul.f32 0.025, %v14177_v34  ;;  %v21800_v37 = vld [vmem:[%s22679_s11 + $0x110] sm:$0xff]  ;;  %v21805_v46 = vld [vmem:[%s22679_s11 + $0x118] sm:$0xff] }
0x158d   : > { %v17499_v55 = vcombine.low %v14438_v38, %v14446_v19  ;;  %v17501_v34 = vcombine.low %v14439_v8, %v14447_v12  ;;  %v17535_v19 = vcombine.low %v21800_v37, %v21800_v37  ;;  %v17537_v59 = vcombine.low %v21805_v46, %v21805_v46 }
0x158e   : > { %v14210_v40 = vrot.slane %v14183_v27, %v21712_v42  ;;  %v14217_v41 = vrot.slane %v14183_v27, %v21715_v14  ;;  %v14224_v44 = vrot.slane %v14184_v30, %v21712_v42  ;;  %v14231_v2 = vrot.slane %v14184_v30, %v21715_v14 }
0x158f   : > { %v14180_v9 = vpop.xlane.xlu1 %14179  ;;  %v14262_v43 = vmul.f32 %v21719_v52, %v21719_v52  ;;  %v14263_v47 = vmul.f32 %v21721_v60, %v21721_v60  ;;  %v17536_v27 = vcombine.high %v21800_v37, %v21800_v37  ;;  %v17538_v30 = vcombine.high %v21805_v46, %v21805_v46  ;;  %v14457_v37 = vld [vmem:[%s22679_s11 + $0x98] sm:$0xff] }
0x1590   : > { %v21731_v48 = vsub.f32 %v14147_v0, %v14210_v40  ;;  %v21733_v39 = vsub.f32 %v14148_v13, %v14217_v41  ;;  %v21735_v61 = vsub.f32 %v14149_v24, %v14224_v44  ;;  %v21737_v49 = vsub.f32 %v14150_v15, %v14231_v2 }
0x1591   : > { %v14185_v51 = vmul.f32 0.025, %v14180_v9  ;;  %v14278_v57 = vcombine.low %v14262_v43, %v14263_v47  ;;  %v17534_v0 = vcombine.high %v14471_v36, %v14471_v36  ;;  %v17533_v13 = vcombine.low %v14471_v36, %v14471_v36 }
0x1592   : > { %v14264_v58 = vmul.f32 %v21731_v48, %v21731_v48  ;;  %v14265_v25 = vmul.f32 %v21733_v39, %v21733_v39  ;;  %v14266_v1 = vmul.f32 %v21735_v61, %v21735_v61  ;;  %v14267_v16 = vmul.f32 %v21737_v49, %v21737_v49 }
0x1593   : > { %v14238_v5 = vrot.slane %v14185_v51, %v21712_v42  ;;  %v14245_v17 = vrot.slane %v14185_v51, %v21715_v14  ;;  %v14286_v15 = vsel %vm606_vm1, %v14278_v57, 0.0  ;;  %17550 = vmatprep.subr.msk.bf16.mxu1 %vm613_vm0, %v17534_v0  ;;  %v14775_v45 = vsel %vm613_vm0, %v17533_v13, 0 }
0x1594   : > { %14287 = vadd.xlane.f32.xlu0 %v14286_v15  ;;  %v14279_v50 = vcombine.low %v14264_v58, %v14265_v25  ;;  %v14280_v35 = vcombine.low %v14266_v1, %v14267_v16  ;;  %14880 = vmatpush1.bf16.msra.mxu1 %v14775_v45  ;;  %v17497_v16 = vld [vmem:[%s22677_s9] ss:$0 sm:$0xff] }
0x1595   : > { %v21750_v10 = vsub.f32 %v14151_v54, %v14238_v5  ;;  %v21752_v11 = vsub.f32 %v14152_v62, %v14245_v17  ;;  %v14454_v62 = vld [vmem:[%s22679_s11 + $0x80] sm:$0xff]  ;;  %v14463_v54 = vld [vmem:[%s22679_s11 + $0xc8] sm:$0xff]  ;;  %v14393_v15 = vcombine.high %v17497_v16, %v17497_v16 }
0x1596   : > { %v14289_v3 = vsel %vm606_vm1, %v14279_v50, 0.0  ;;  %v14292_v4 = vsel %vm606_vm1, %v14280_v35, 0.0  ;;  %v17516_v53 = vcombine.high %v14454_v62, %v14462_v7  ;;  %v17518_v20 = vcombine.high %v14455_v21, %v14463_v54  ;;  %v17498_v17 = vld [vmem:[%s22678_s10] ss:$0 sm:$0xff] }
0x1597   : > { %14290 = vadd.xlane.f32.xlu1 %v14289_v3  ;;  %v14268_v33 = vmul.f32 %v21750_v10, %v21750_v10  ;;  %v14269_v24 = vmul.f32 %v21752_v11, %v21752_v11  ;;  %v17515_v23 = vcombine.low %v14454_v62, %v14462_v7  ;;  %v17517_v63 = vcombine.low %v14455_v21, %v14463_v54 }
0x1598   : > { %14293 = vadd.xlane.f32.xlu0 %v14292_v4  ;;  %14828 = vmatprep.subr.bf16.mxu0 %v17516_v53  ;;  %v14410_v4 = vcombine.high %v17498_v17, %v17498_v17 }
0x1599   : > { %v14281_v56 = vcombine.low %v14268_v33, %v14269_v24  ;;  %14881 = vmatprep.subr.bf16.mxu1 %v17518_v20  ;;  %14829 = vmatpush1.bf16.msra.mxu0 %v17515_v23 }
0x159a   : > { %14882 = vmatpush1.bf16.msra.mxu1 %v17517_v63  ;;  %14830 = vmatprep.subr.bf16.mxu0 %v17500_v22 }
0x159b   : > { %v14295_v18 = vsel %vm606_vm1, %v14281_v56, 0.0  ;;  %14883 = vmatprep.subr.bf16.mxu1 %v17502_v6  ;;  %v14464_v6 = vld [vmem:[%s22679_s11 + $0xd0] sm:$0xff] }
0x159c   : > { %14296 = vadd.xlane.f32.xlu1 %v14295_v18 }
0x159d   : > { %14831 = vmatpush1.bf16.msra.mxu0 %v17499_v55 }
0x159e   : > { %14884 = vmatpush1.bf16.msra.mxu1 %v17501_v34  ;;  %17553 = vmatprep.subr.msk.bf16.mxu0 %vm613_vm0, %v17536_v27  ;;  %v14781_v27 = vsel %vm613_vm0, %v17535_v19, 0 }
0x159f   : > { %17556 = vmatprep.subr.msk.bf16.mxu1 %vm613_vm0, %v17538_v30  ;;  %v14440_v30 = vld [vmem:[%s22679_s11 + $0x10] sm:$0xff] }
0x161d   : > { %v14288_v40 = vpop.xlane.xlu0 %14287 }
0x161e   : > { %v14298_v41 = vmul.f32 0.025, %v14288_v40 }
0x1620   : > { %v14302_v44 = vadd.f32 1e-05, %v14298_v41  ;;  %v14291_v2 = vpop.xlane.xlu1 %14290 }
0x1621   : > { %v14299_v9 = vmul.f32 0.025, %v14291_v2  ;;  %v14294_v43 = vpop.xlane.xlu0 %14293  ;;  %v14448_v2 = vld [vmem:[%s22679_s11 + $0x50] sm:$0xff] }
0x1622   : > { %19605 = vrsqrt.f32 %v14302_v44  ;;  %v14300_v47 = vmul.f32 0.025, %v14294_v43  ;;  %v14449_v43 = vld [vmem:[%s22679_s11 + $0x58] sm:$0xff] }
0x1623   : > { %v14303_v51 = vadd.f32 1e-05, %v14299_v9  ;;  %v14441_v9 = vld [vmem:[%s22679_s11 + $0x18] sm:$0xff] }
0x1624   : > { %v14304_v57 = vadd.f32 1e-05, %v14300_v47 }
0x1625   : > { %19607 = vrsqrt.f32 %v14303_v51  ;;  %v14297_v58 = vpop.xlane.xlu1 %14296 }
0x1626   : > { %19609 = vrsqrt.f32 %v14304_v57  ;;  %v14301_v25 = vmul.f32 0.025, %v14297_v58 }
0x1628   : > { %v14305_v1 = vadd.f32 1e-05, %v14301_v25 }
0x162a   : > { %19611 = vrsqrt.f32 %v14305_v1 }
0x162f   : > { %v19606_v5 = vpop.eup %19605 }
0x1630   : > { %v14320_v50 = vrot.slane %v19606_v5, %v21712_v42  ;;  %v14327_v35 = vrot.slane %v19606_v5, %v21715_v14  ;;  %v17506_v5 = vcombine.high %v14441_v9, %v14449_v43 }
0x1632   : > { %v19608_v3 = vpop.eup %19607  ;;  %v14378_v33 = vmul.f32 %v14320_v50, %v21719_v52  ;;  %v14379_v24 = vmul.f32 %v14327_v35, %v21721_v60  ;;  %v14475_v50 = vld [vmem:[%s22679_s11 + $0x128] sm:$0xff]  ;;  %v17503_v35 = vcombine.low %v14440_v30, %v14448_v2 }
0x1633   : > { %v19610_v56 = vpop.eup %19609  ;;  %v14334_v18 = vrot.slane %v19608_v3, %v21712_v42  ;;  %v14341_v32 = vrot.slane %v19608_v3, %v21715_v14  ;;  %v17505_v3 = vcombine.low %v14441_v9, %v14449_v43  ;;  %v14445_v9 = vld [vmem:[%s22679_s11 + $0x38] sm:$0xff] }
0x1634   : > { %v14395_v36 = vmul.f32 %v17497_v16, %v14378_v33  ;;  %v14396_v62 = vmul.f32 %v14393_v15, %v14379_v24  ;;  %v14348_v31 = vrot.slane %v19610_v56, %v21712_v42  ;;  %v14355_v0 = vrot.slane %v19610_v56, %v21715_v14  ;;  %v14453_v43 = vld [vmem:[%s22679_s11 + $0x78] sm:$0xff] }
0x1635   : > { %v14380_v29 = vmul.f32 %v14334_v18, %v21731_v48  ;;  %v14381_v13 = vmul.f32 %v14341_v32, %v21733_v39  ;;  %v17542_v24 = vcombine.high %v14475_v50, %v14475_v50  ;;  %v17541_v18 = vcombine.low %v14475_v50, %v14475_v50  ;;  %v14458_v32 = vld [vmem:[%s22679_s11 + $0xa0] sm:$0xff]  ;;  %v19158_v50 = vld [vmem:[%s22681_s13 + $0xf8] sm:$0xff]  }
0x1636   : > { %v21829_v7 = vadd.f32 %v17498_v17, %v14395_v36  ;;  %v21831_v52 = vadd.f32 %v14410_v4, %v14396_v62  ;;  %v14382_v53 = vmul.f32 %v14348_v31, %v21735_v61  ;;  %v14383_v20 = vmul.f32 %v14355_v0, %v21737_v49  ;;  %v14456_v49 = vld [vmem:[%s22679_s11 + $0x90] sm:$0xff]  ;;  %v14466_v36 = vld [vmem:[%s22679_s11 + $0xe0] sm:$0xff]  ;;  %v14459_v62 = vld [vmem:[%s22679_s11 + $0xa8] sm:$0xff] }
0x1637   : > { %v19612_v60 = vpop.eup %19611  ;;  %v14397_v21 = vmul.f32 %v17497_v16, %v14380_v29  ;;  %v14398_v54 = vmul.f32 %v14393_v15, %v14381_v13  ;;  %v17520_v41 = vcombine.high %v14456_v49, %v14464_v6  ;;  %v17519_v58 = vcombine.low %v14456_v49, %v14464_v6  ;;  %v14467_v31 = vld [vmem:[%s22679_s11 + $0xe8] sm:$0xff]  ;;  %v14442_v13 = vld [vmem:[%s22679_s11 + $0x20] sm:$0xff] }
0x1638   : > { %v14362_v38 = vrot.slane %v19612_v60, %v21712_v42  ;;  %v14369_v39 = vrot.slane %v19612_v60, %v21715_v14  ;;  %v14428_v45 = vcombine.low %v21829_v7, %v21831_v52  ;;  %v14399_v23 = vmul.f32 %v17497_v16, %v14382_v53  ;;  %v14443_v53 = vld [vmem:[%s22679_s11 + $0x28] sm:$0xff] }
0x1639   : > { %v21838_v8 = vadd.f32 %v17498_v17, %v14397_v21  ;;  %v21840_v48 = vadd.f32 %v14410_v4, %v14398_v54  ;;  %v14400_v63 = vmul.f32 %v14393_v15, %v14383_v20  ;;  %v14799_v29 = vsel %vm613_vm0, %v17541_v18, 0  ;;  %v14450_v54 = vld [vmem:[%s22679_s11 + $0x60] sm:$0xff]  ;;  %v14451_v20 = vld [vmem:[%s22679_s11 + $0x68] sm:$0xff]  ;;  %v19164_v18 = vld [vmem:[%s22681_s13 + $0xb0] sm:$0xff]  }
0x163a   : > { %v14384_v61 = vmul.f32 %v14362_v38, %v21750_v10  ;;  %v14385_v22 = vmul.f32 %v14369_v39, %v21752_v11  ;;  %v14465_v10 = vld [vmem:[%s22679_s11 + $0xd8] sm:$0xff]  ;;  %v14787_v11 = vsel %vm613_vm0, %v17537_v59, 0  ;;  %v21881_v47 = vadd.f32 %v17498_v17, %v14399_v23 }
0x163b   : > { %22702 = vst [vmem:[#allocation4_spill] sm:$0xff] %v21840_v48  ;;  %v14429_v12 = vcombine.low %v21838_v8, %v21840_v48  ;;  %v17522_v44 = vcombine.high %v14457_v37, %v14465_v10  ;;  %v21883_v51 = vadd.f32 %v14410_v4, %v14400_v63  ;;  %v17521_v25 = vcombine.low %v14457_v37, %v14465_v10  ;;  %v14460_v37 = vld [vmem:[%s22679_s11 + $0xb0] sm:$0xff] }
0x163c   : > { %v14401_v46 = vmul.f32 %v17497_v16, %v14384_v61  ;;  %v14402_v34 = vmul.f32 %v14393_v15, %v14385_v22  ;;  %22704 = vst [vmem:[#allocation6_spill] sm:$0xff] %v21881_v47  ;;  %v17504_v16 = vcombine.high %v14440_v30, %v14448_v2  ;;  %v14474_v15 = vld [vmem:[%s22679_s11 + $0x120] sm:$0xff]  ;;  %v17524_v60 = vcombine.high %v14458_v32, %v14466_v36  ;;  %v14477_v61 = vld [vmem:[%s22679_s11 + $0x138] sm:$0xff]  ;;  %v14468_v10 = vld [vmem:[%s22679_s11 + $0xf0] sm:$0xff] }
0x163d   : > { %v21863_v55 = vpack.c.bf16 %v14429_v12, %v14428_v45  ;;  %22705 = vst [vmem:[#allocation7_spill] sm:$0xff] %v21883_v51  ;;  %v17540_v33 = vcombine.high %v14474_v15, %v14474_v15  ;;  %v17539_v56 = vcombine.low %v14474_v15, %v14474_v15  ;;  %v17526_v21 = vcombine.high %v14459_v62, %v14467_v31  ;;  %v14476_v45 = vld [vmem:[%s22679_s11 + $0x130] sm:$0xff]  ;;  %v19157_v15 = vld [vmem:[%s22681_s13 + $0x78] sm:$0xff]  }
0x163e   : > { %v21870_v40 = vadd.f32 %v17498_v17, %v14401_v46  ;;  %v21885_v57 = vadd.f32 %v14410_v4, %v14402_v34  ;;  %v14430_v17 = vcombine.low %v21881_v47, %v21883_v51  ;;  %v17523_v38 = vcombine.low %v14458_v32, %v14466_v36  ;;  %v14461_v46 = vld [vmem:[%s22679_s11 + $0xb8] sm:$0xff]  ;;  %v14444_v30 = vld [vmem:[%s22679_s11 + $0x30] sm:$0xff]  ;;  %v19167_v32 = vld [vmem:[%s22681_s13 + $0x28] sm:$0xff]  }
0x163f   : > { %17548 = vmatmul.mubr.msk.bf16.vlgmr.msra.gmra.mxu0 %vm606_vm1, %v21863_v55  ;;  %17551 = vmatmul.mubr.msk.bf16.vlgmr.msra.gmra.mxu1 %vm606_vm1, %v21863_v55  ;;  %v14793_v0 = vsel %vm613_vm0, %v17539_v56, 0  ;;  %v17525_v19 = vcombine.low %v14459_v62, %v14467_v31  ;;  %v17508_v39 = vcombine.high %v14442_v13, %v14450_v54  ;;  %v17510_v59 = vcombine.high %v14443_v53, %v14451_v20  ;;  %v14469_v34 = vld [vmem:[%s22679_s11 + $0xf8] sm:$0xff]  ;;  %v14452_v2 = vld [vmem:[%s22679_s11 + $0x70] sm:$0xff]  ;;  %v19168_v36 = vld [vmem:[%s22681_s13 + $0xa8] sm:$0xff]  }
0x1640   : > { %22703 = vst [vmem:[#allocation5_spill] sm:$0xff] %v21870_v40  ;;  %22706 = vst [vmem:[#allocation8_spill] sm:$0xff] %v21885_v57  ;;  %14933 = vmatpush1.bf16.msra.mxu0 %v14781_v27  ;;  %14986 = vmatpush1.bf16.msra.mxu1 %v14787_v11  ;;  %v14431_v1 = vcombine.low %v21870_v40, %v21885_v57  ;;  %v17507_v49 = vcombine.low %v14442_v13, %v14450_v54  ;;  %v19163_v56 = vld [vmem:[%s22681_s13 + $0x30] sm:$0xff]   ;;  %v19169_v62 = vld [vmem:[%s22681_s13 + $0x60] sm:$0xff]  }
0x1641   : > { %14858 = vmatprep.mubr.bf16.mxu0 %v19665_v26  ;;  %14911 = vmatprep.mubr.bf16.mxu1 %v19665_v26  ;;  %v17509_v12 = vcombine.low %v14443_v53, %v14451_v20  ;;  %v17544_v23 = vcombine.high %v14476_v45, %v14476_v45  ;;  %v17546_v63 = vcombine.high %v14477_v61, %v14477_v61  ;;  %v19170_v31 = vld [vmem:[%s22681_s13 + $0xe0] sm:$0xff]   ;;  %v19173_v13 = vld [vmem:[%s22681_s13 + $0x58] sm:$0xff]   ;;  %v19177_v54 = vld [vmem:[%s22681_s13 + $0x50] sm:$0xff]  }
0x1642   : > { %14934 = vmatprep.subr.bf16.mxu0 %v17520_v41  ;;  %14987 = vmatprep.subr.bf16.mxu1 %v17522_v44  ;;  %v21903_v4 = vpack.c.bf16 %v14431_v1, %v14430_v17  ;;  %v17543_v22 = vcombine.low %v14476_v45, %v14476_v45  ;;  %v17545_v6 = vcombine.low %v14477_v61, %v14477_v61  ;;  %v19178_v53 = vld [vmem:[%s22681_s13 + $0xd0] sm:$0xff]   ;;  %v19184_v45 = vld [vmem:[%s22681_s13 + $0x88] sm:$0xff]   ;;  %v19185_v61 = vld [vmem:[%s22681_s13 + $0x40] sm:$0xff]  }
0x1643   : > { %v17528_v41 = vcombine.high %v14460_v37, %v14468_v10  ;;  %v17530_v44 = vcombine.high %v14461_v46, %v14469_v34  ;;  %v17512_v1 = vcombine.high %v14444_v30, %v14452_v2  ;;  %v17513_v17 = vcombine.low %v14445_v9, %v14453_v43  ;;  %v19179_v20 = vld [vmem:[%s22681_s13 + $0x10] sm:$0xff]  }
0x1644   : > { %14935 = vmatpush1.bf16.msra.mxu0 %v17519_v58  ;;  %14988 = vmatpush1.bf16.msra.mxu1 %v17521_v25  ;;  %v14805_v27 = vsel %vm613_vm0, %v17543_v22, 0  ;;  %v14811_v11 = vsel %vm613_vm0, %v17545_v6, 0  ;;  %v17527_v58 = vcombine.low %v14460_v37, %v14468_v10  ;;  %v17529_v25 = vcombine.low %v14461_v46, %v14469_v34  ;;  %v19190_v22 = vld [vmem:[%s22681_s13 + $0x1f8] sm:$0xff]   ;;  %v22116_v34 = vld [vmem:[%s22680_s12] sm:$0xff] }
0x1645   : > { %14936 = vmatprep.subr.bf16.mxu0 %v17504_v16  ;;  %14989 = vmatprep.subr.bf16.mxu1 %v17506_v5  ;;  %v17514_v16 = vcombine.high %v14445_v9, %v14453_v43  ;;  %v17511_v5 = vcombine.low %v14444_v30, %v14452_v2  ;;  %v14488_v6 = vsub.s32 1, %v21709_v28  ;;  %v14496_v37 = vsub.s32 3, %v21709_v28 }
0x1646   : > { %v14484_v10 = vsub.s32 0, %v21709_v28  ;;  %v14492_v46 = vsub.s32 2, %v21709_v28 }
0x1647   : > { %17549 = vmatmul.mubr.msk.bf16.gmra.mxu0 %vm606_vm1, %v21903_v4  ;;  %17552 = vmatmul.mubr.msk.bf16.gmra.mxu1 %vm606_vm1, %v21903_v4  ;;  %v14489_v30 = vrot.slane %v22116_v34, %v14488_v6 }
0x1648   : > { %14937 = vmatpush1.bf16.msra.mxu0 %v17503_v35  ;;  %14990 = vmatpush1.bf16.msra.mxu1 %v17505_v3  ;;  %v19159_v35 = vld [vmem:[%s22681_s13 + $0x38] sm:$0xff]   ;;  %v14493_v2 = vrot.slane %v22116_v34, %v14492_v46 }
0x1649   : > { %14954 = vmatprep.mubr.bf16.mxu0 %v19665_v26  ;;  %15007 = vmatprep.mubr.bf16.mxu1 %v19665_v26  ;;  %v19160_v3 = vld [vmem:[%s22681_s13 + $0xb8] sm:$0xff]  }
0x164a   : > { %17559 = vmatprep.subr.msk.bf16.mxu0 %vm613_vm0, %v17540_v33  ;;  %17562 = vmatprep.subr.msk.bf16.mxu1 %vm613_vm0, %v17542_v24  ;;  %v19161_v33 = vld [vmem:[%s22681_s13 + $0x70] sm:$0xff]  }
0x164b   : > { %v19162_v24 = vld [vmem:[%s22681_s13 + $0xf0] sm:$0xff]  }
0x164f   : > { %17554 = vmatmul.mubr.msk.bf16.vlgmr.msra.gmra.mxu0 %vm606_vm1, %v21863_v55  ;;  %17557 = vmatmul.mubr.msk.bf16.vlgmr.msra.gmra.mxu1 %vm606_vm1, %v21863_v55 }
0x1650   : > { %15039 = vmatpush1.bf16.msra.mxu0 %v14793_v0  ;;  %15092 = vmatpush1.bf16.msra.mxu1 %v14799_v29  ;;  %v19171_v0 = vld [vmem:[%s22681_s13 + $0x20] sm:$0xff]  }
0x1651   : > { %14964 = vmatprep.mubr.bf16.mxu0 %v19665_v26  ;;  %15017 = vmatprep.mubr.bf16.mxu1 %v19665_v26  ;;  %v19172_v29 = vld [vmem:[%s22681_s13 + $0xa0] sm:$0xff]  }
0x1652   : > { %15040 = vmatprep.subr.bf16.mxu0 %v17524_v60  ;;  %15093 = vmatprep.subr.bf16.mxu1 %v17526_v21  ;;  %v19175_v60 = vld [vmem:[%s22681_s13 + $0x18] sm:$0xff]  }
0x1653   : > { %v19176_v21 = vld [vmem:[%s22681_s13 + $0x98] sm:$0xff]  }
0x1654   : > { %15041 = vmatpush1.bf16.msra.mxu0 %v17523_v38  ;;  %15094 = vmatpush1.bf16.msra.mxu1 %v17525_v19  ;;  %v19180_v38 = vld [vmem:[%s22681_s13 + $0x90] sm:$0xff]   ;;  %v19181_v19 = vld [vmem:[%s22681_s13 + $0x48] sm:$0xff]  }
0x1655   : > { %15042 = vmatprep.subr.bf16.mxu0 %v17508_v39  ;;  %15095 = vmatprep.subr.bf16.mxu1 %v17510_v59  ;;  %v19182_v39 = vld [vmem:[%s22681_s13 + $0xc8] sm:$0xff]  }
0x1656   : > { %v19183_v59 = vld [vmem:[%s22681_s13 + $0x8] sm:$0xff]  }
0x1657   : > { %17555 = vmatmul.mubr.msk.bf16.gmra.mxu0 %vm606_vm1, %v21903_v4  ;;  %17558 = vmatmul.mubr.msk.bf16.gmra.mxu1 %vm606_vm1, %v21903_v4 }
0x1658   : > { %15043 = vmatpush1.bf16.msra.mxu0 %v17507_v49  ;;  %15096 = vmatpush1.bf16.msra.mxu1 %v17509_v12  ;;  %v19186_v49 = vld [vmem:[%s22681_s13 + $0xc0] sm:$0xff]  }
0x1659   : > { %15060 = vmatprep.mubr.bf16.mxu0 %v19665_v26  ;;  %15113 = vmatprep.mubr.bf16.mxu1 %v19665_v26  ;;  %v19187_v12 = vld [vmem:[%s22681_s13] sm:$0xff]  }
0x165a   : > { %17565 = vmatprep.subr.msk.bf16.mxu0 %vm613_vm0, %v17544_v23  ;;  %17568 = vmatprep.subr.msk.bf16.mxu1 %vm613_vm0, %v17546_v63  ;;  %v19188_v23 = vld [vmem:[%s22681_s13 + $0x80] sm:$0xff]   ;;  %v19189_v63 = vld [vmem:[%s22681_s13 + $0x178] sm:$0xff]   ;;  %vm17069_vm0 = vcmask 320512  }
0x165f   : > { %17560 = vmatmul.mubr.msk.bf16.vlgmr.msra.gmra.mxu0 %vm606_vm1, %v21863_v55  ;;  %17563 = vmatmul.mubr.msk.bf16.vlgmr.msra.gmra.mxu1 %vm606_vm1, %v21863_v55 }
0x1660   : > { %15145 = vmatpush1.bf16.msra.mxu0 %v14805_v27  ;;  %15198 = vmatpush1.bf16.msra.mxu1 %v14811_v11 }
0x1661   : > { %15070 = vmatprep.mubr.bf16.mxu0 %v19665_v26  ;;  %15123 = vmatprep.mubr.bf16.mxu1 %v19665_v26 }
0x1662   : > { %15146 = vmatprep.subr.bf16.mxu0 %v17528_v41  ;;  %15199 = vmatprep.subr.bf16.mxu1 %v17530_v44  ;;  %v14497_v41 = vrot.slane %v22116_v34, %v14496_v37  ;;  %v14485_v44 = vrot.slane %v22116_v34, %v14484_v10 }
0x1664   : > { %15147 = vmatpush1.bf16.msra.mxu0 %v17527_v58  ;;  %15200 = vmatpush1.bf16.msra.mxu1 %v17529_v25 }
0x1665   : > { %15148 = vmatprep.subr.bf16.mxu0 %v17512_v1  ;;  %15201 = vmatprep.subr.bf16.mxu1 %v17514_v16 }
0x1667   : > { %17561 = vmatmul.mubr.msk.bf16.gmra.mxu0 %vm606_vm1, %v21903_v4  ;;  %17564 = vmatmul.mubr.msk.bf16.gmra.mxu1 %vm606_vm1, %v21903_v4 }
0x1668   : > { %15149 = vmatpush1.bf16.msra.mxu0 %v17511_v5  ;;  %15202 = vmatpush1.bf16.msra.mxu1 %v17513_v17 }
0x1669   : > { %15166 = vmatprep.mubr.bf16.mxu0 %v19665_v26  ;;  %15219 = vmatprep.mubr.bf16.mxu1 %v19665_v26 }
0x166a   : > { %18044 = vmatprep.subr.bf16.mxu0 %v19157_v15  ;;  %18072 = vmatprep.subr.bf16.mxu1 %v19158_v50 }
0x166f   : > { %17566 = vmatmul.mubr.msk.bf16.vlgmr.msra.gmra.mxu0 %vm606_vm1, %v21863_v55  ;;  %17569 = vmatmul.mubr.msk.bf16.vlgmr.msra.gmra.mxu1 %vm606_vm1, %v21863_v55  ;;  %v19165_v55 = vld [vmem:[%s22681_s13 + $0x68] sm:$0xff]  }
0x1670   : > { %15176 = vmatprep.mubr.bf16.mxu0 %v19665_v26  ;;  %15229 = vmatprep.mubr.bf16.mxu1 %v19665_v26  ;;  %v19166_v26 = vld [vmem:[%s22681_s13 + $0xe8] sm:$0xff]  }
0x1671   : > { %18045 = vmatpush3.bf16.msra.mxu0 %v19159_v35  ;;  %18073 = vmatpush3.bf16.msra.mxu1 %v19160_v3 }
0x1672   : > { %18046 = vmatprep.subr.bf16.mxu0 %v19161_v33  ;;  %18074 = vmatprep.subr.bf16.mxu1 %v19162_v24 }
0x1675   : > { %18047 = vmatpush3.bf16.msra.mxu0 %v19163_v56  ;;  %18075 = vmatpush3.bf16.msra.mxu1 %v19164_v18 }
0x1676   : > { %18048 = vmatprep.subr.bf16.mxu0 %v19165_v55  ;;  %18076 = vmatprep.subr.bf16.mxu1 %v19166_v26 }
0x1677   : > { %17567 = vmatmul.mubr.msk.bf16.gmra.mxu0 %vm606_vm1, %v21903_v4  ;;  %17570 = vmatmul.mubr.msk.bf16.gmra.mxu1 %vm606_vm1, %v21903_v4  ;;  %v19174_v4 = vld [vmem:[%s22681_s13 + $0xd8] sm:$0xff]  }
0x1679   : > { %18049 = vmatpush3.bf16.msra.mxu0 %v19167_v32  ;;  %18077 = vmatpush3.bf16.msra.mxu1 %v19168_v36 }
0x167a   : > { %18050 = vmatprep.subr.bf16.mxu0 %v19169_v62  ;;  %18078 = vmatprep.subr.bf16.mxu1 %v19170_v31 }
0x167d   : > { %18051 = vmatpush3.bf16.msra.mxu0 %v19171_v0  ;;  %18079 = vmatpush3.bf16.msra.mxu1 %v19172_v29 }
0x167e   : > { %18052 = vmatprep.subr.bf16.mxu0 %v19173_v13  ;;  %18080 = vmatprep.subr.bf16.mxu1 %v19174_v4 }
0x1681   : > { %18053 = vmatpush3.bf16.msra.mxu0 %v19175_v60  ;;  %18081 = vmatpush3.bf16.msra.mxu1 %v19176_v21 }
0x1682   : > { %18054 = vmatprep.subr.bf16.mxu0 %v19177_v54  ;;  %18082 = vmatprep.subr.bf16.mxu1 %v19178_v53  ;;  %v19191_v54 = vld [vmem:[%s22681_s13 + $0x138] sm:$0xff]  }
0x1683   : > { %v19192_v53 = vld [vmem:[%s22681_s13 + $0x1b8] sm:$0xff]  }
0x1685   : > { %18055 = vmatpush3.bf16.msra.mxu0 %v19179_v20  ;;  %18083 = vmatpush3.bf16.msra.mxu1 %v19180_v38  ;;  %v14504_v20 = vsub.s32 5, %v21709_v28 }
0x1686   : > { %18056 = vmatprep.subr.bf16.mxu0 %v19181_v19  ;;  %18084 = vmatprep.subr.bf16.mxu1 %v19182_v39 }
0x1689   : > { %18057 = vmatpush3.bf16.msra.mxu0 %v19183_v59  ;;  %18085 = vmatpush3.bf16.msra.mxu1 %v19184_v45 }
0x168a   : > { %18058 = vmatprep.subr.bf16.mxu0 %v19185_v61  ;;  %18086 = vmatprep.subr.bf16.mxu1 %v19186_v49  ;;  %v19193_v61 = vld [vmem:[%s22681_s13 + $0x170] sm:$0xff]  }
0x168b   : > { %v19194_v49 = vld [vmem:[%s22681_s13 + $0x1f0] sm:$0xff]  }
0x168d   : > { %18059 = vmatpush3.bf16.msra.mxu0 %v19187_v12  ;;  %18087 = vmatpush3.bf16.msra.mxu1 %v19188_v23  ;;  %v14512_v12 = vsub.s32 7, %v21709_v28 }
0x168e   : > { %18100 = vmatprep.subr.bf16.mxu0 %v19189_v63  ;;  %18128 = vmatprep.subr.bf16.mxu1 %v19190_v22 }
0x16ff   : > { %v14850_v27 = vpop.f32.mrf.mxu0  ;;  %v14903_v11 = vpop.f32.mrf.mxu1 }
0x1700   : > { %v14851_v15 = vadd.f32 %v14850_v27, %v14485_v44  ;;  %v14904_v50 = vadd.f32 %v14903_v11, %v14493_v2 }
0x1701   : > { %v14852_v9 = vpop.f32.mrf.mxu0  ;;  %v14905_v43 = vpop.f32.mrf.mxu1 }
0x1702   : > { %v14853_v1 = vadd.f32 %v14852_v9, %v14489_v30  ;;  %v14906_v16 = vadd.f32 %v14905_v43, %v14497_v41  ;;  %v15240_v0 = vmax.f32 %v14851_v15, 0.0  ;;  %v15242_v29 = vmax.f32 %v14904_v50, 0.0 }
0x1703   : > { %v14854_v58 = vpop.f32.mrf.mxu0  ;;  %v14907_v25 = vpop.f32.mrf.mxu1 }
0x1704   : > { %v14855_v5 = vadd.f32 %v14854_v58, %v14485_v44  ;;  %v14908_v17 = vadd.f32 %v14907_v25, %v14493_v2  ;;  %v15241_v32 = vmax.f32 %v14853_v1, 0.0  ;;  %v15243_v36 = vmax.f32 %v14906_v16, 0.0  ;;  %v19195_v1 = vld [vmem:[%s22681_s13 + $0x130] sm:$0xff]  }
0x1705   : > { %v14856_v35 = vpop.f32.mrf.mxu0  ;;  %v14909_v3 = vpop.f32.mrf.mxu1 }
0x1706   : > { %v14857_v33 = vadd.f32 %v14856_v35, %v14489_v30  ;;  %v14910_v24 = vadd.f32 %v14909_v3, %v14497_v41  ;;  %v15256_v56 = vmax.f32 %v14855_v5, 0.0  ;;  %v15258_v18 = vmax.f32 %v14908_v17, 0.0 }
0x1707   : > { %v14860_v55 = vpop.f32.mrf.mxu0  ;;  %v14913_v26 = vpop.f32.mrf.mxu1 }
0x1708   : > { %v15257_v62 = vmax.f32 %v14857_v33, 0.0  ;;  %v15259_v31 = vmax.f32 %v14910_v24, 0.0  ;;  %v15304_v38 = vpack.c.bf16 %v15256_v56, %v15240_v0  ;;  %v15306_v19 = vpack.c.bf16 %v15258_v18, %v15242_v29 }
0x1709   : > { %v14862_v13 = vpop.f32.mrf.mxu0  ;;  %v14915_v4 = vpop.f32.mrf.mxu1  ;;  %v14861_v27 = vadd.f32 %v14860_v55, %v14485_v44  ;;  %v14914_v43 = vadd.f32 %v14913_v26, %v14493_v2  ;;  %v19198_v55 = vld [vmem:[%s22681_s13 + $0x1e8] sm:$0xff]  }
0x170a   : > { %v15305_v60 = vpack.c.bf16 %v15257_v62, %v15241_v32  ;;  %v15307_v21 = vpack.c.bf16 %v15259_v31, %v15243_v36  ;;  %v14863_v39 = vadd.f32 %v14862_v13, %v14489_v30  ;;  %v14916_v23 = vadd.f32 %v14915_v4, %v14497_v41  ;;  %v19199_v62 = vld [vmem:[%s22681_s13 + $0x128] sm:$0xff]   ;;  %v19201_v4 = vld [vmem:[%s22681_s13 + $0x160] sm:$0xff]  }
0x170b   : > { %v14864_v59 = vpop.f32.mrf.mxu0  ;;  %v14917_v45 = vpop.f32.mrf.mxu1  ;;  %v15272_v24 = vmax.f32 %v14861_v27, 0.0  ;;  %v15274_v26 = vmax.f32 %v14914_v43, 0.0  ;;  %v19200_v13 = vld [vmem:[%s22681_s13 + $0x1a8] sm:$0xff]   ;;  %v19206_v43 = vld [vmem:[%s22681_s13 + $0x1d8] sm:$0xff]  }
0x170c   : > { %v14865_v63 = vadd.f32 %v14864_v59, %v14485_v44  ;;  %v14918_v22 = vadd.f32 %v14917_v45, %v14493_v2  ;;  %16399 = vmatprep.mubr.bf16.mxu0 %v15305_v60  ;;  %16448 = vmatprep.mubr.bf16.mxu1 %v15307_v21  ;;  %v15273_v16 = vmax.f32 %v14863_v39, 0.0  ;;  %v22154_v44 = vrot.slane %v22116_v34, %v14504_v20  ;;  %v19197_v2 = vld [vmem:[%s22681_s13 + $0x168] sm:$0xff]   ;;  %v19203_v45 = vld [vmem:[%s22681_s13 + $0x120] sm:$0xff]  }
0x170d   : > { %v14866_v11 = vpop.f32.mrf.mxu0  ;;  %v14919_v9 = vpop.f32.mrf.mxu1  ;;  %16400 = vmatmul.mubr.bf16.vlgmr.msra.gmra.mxu0 %v15304_v38  ;;  %16449 = vmatmul.mubr.bf16.vlgmr.msra.gmra.mxu1 %v15306_v19  ;;  %v15275_v50 = vmax.f32 %v14916_v23, 0.0  ;;  %v19204_v23 = vld [vmem:[%s22681_s13 + $0x1a0] sm:$0xff]  }
0x170e   : > { %v14867_v58 = vadd.f32 %v14866_v11, %v14489_v30  ;;  %v14920_v25 = vadd.f32 %v14919_v9, %v14497_v41  ;;  %18101 = vmatpush3.bf16.msra.mxu0 %v19191_v54  ;;  %18129 = vmatpush3.bf16.msra.mxu1 %v19192_v53  ;;  %v15288_v5 = vmax.f32 %v14865_v63, 0.0  ;;  %v22159_v30 = vrot.slane %v22116_v34, %v14512_v12  ;;  %v19196_v41 = vld [vmem:[%s22681_s13 + $0x1b0] sm:$0xff]   ;;  %v19202_v53 = vld [vmem:[%s22681_s13 + $0x1e0] sm:$0xff]   ;;  %v19205_v63 = vld [vmem:[%s22681_s13 + $0x158] sm:$0xff]  }
0x170f   : > { %v22147_v17 = vpop.f32.mrf.mxu0  ;;  %v22149_v15 = vpop.f32.mrf.mxu1  ;;  %18102 = vmatprep.subr.bf16.mxu0 %v19193_v61  ;;  %18130 = vmatprep.subr.bf16.mxu1 %v19194_v49  ;;  %v15290_v35 = vmax.f32 %v14918_v22, 0.0 }
0x1710   : > { %v15289_v3 = vmax.f32 %v14867_v58, 0.0  ;;  %v15291_v33 = vmax.f32 %v14920_v25, 0.0  ;;  %v15320_v31 = vpack.c.bf16 %v15288_v5, %v15272_v24  ;;  %v19207_v5 = vld [vmem:[%s22681_s13 + $0x118] sm:$0xff]  }
0x1711   : > { %v14958_v56 = vpop.f32.mrf.mxu0  ;;  %v15011_v18 = vpop.f32.mrf.mxu1  ;;  %v15322_v60 = vpack.c.bf16 %v15290_v35, %v15274_v26  ;;  %v19209_v35 = vld [vmem:[%s22681_s13 + $0x150] sm:$0xff]  }
0x1712   : > { %v15321_v32 = vpack.c.bf16 %v15289_v3, %v15273_v16  ;;  %v15323_v36 = vpack.c.bf16 %v15291_v33, %v15275_v50  ;;  %18103 = vmatpush3.bf16.msra.mxu0 %v19195_v1  ;;  %18131 = vmatpush3.bf16.msra.mxu1 %v19196_v41  ;;  %v14959_v21 = vadd.f32 %v14958_v56, %v22154_v44  ;;  %v19208_v50 = vld [vmem:[%s22681_s13 + $0x198] sm:$0xff]   ;;  %v19210_v3 = vld [vmem:[%s22681_s13 + $0x1d0] sm:$0xff]   ;;  %v14500_v33 = vsub.s32 4, %v21709_v28 }
0x1713   : > { %v22173_v0 = vpop.f32.mrf.mxu0  ;;  %v22175_v29 = vpop.f32.mrf.mxu1  ;;  %18104 = vmatprep.subr.bf16.mxu0 %v19197_v2  ;;  %v15012_v54 = vadd.f32 %v15011_v18, %v22159_v30  ;;  %18132 = vmatprep.subr.bf16.mxu1 %v19198_v55  ;;  %v14508_v18 = vsub.s32 6, %v21709_v28  ;;  %v19211_v55 = vld [vmem:[%s22681_s13 + $0x110] sm:$0xff]   ;;  %v19281_v28 = vld [vmem:[%s22681_s13 + $0x340] sm:$0xff]  }
0x1714   : > { %16407 = vmatprep.mubr.bf16.mxu0 %v15321_v32  ;;  %16456 = vmatprep.mubr.bf16.mxu1 %v15323_v36  ;;  %v15245_v22 = vmax.f32 %v14959_v21, 0.0  ;;  %v19212_v36 = vld [vmem:[%s22681_s13 + $0x190] sm:$0xff]  }
0x1715   : > { %v14962_v38 = vpop.f32.mrf.mxu0  ;;  %v15015_v19 = vpop.f32.mrf.mxu1  ;;  %16408 = vmatmul.mubr.bf16.gmra.mxu0 %v15320_v31  ;;  %16457 = vmatmul.mubr.bf16.gmra.mxu1 %v15322_v60  ;;  %v15247_v27 = vmax.f32 %v15012_v54, 0.0  ;;  %v19214_v31 = vld [vmem:[%s22681_s13 + $0x1c8] sm:$0xff]   ;;  %v14509_v60 = vrot.slane %v22116_v34, %v14508_v18 }
0x1716   : > { %v14963_v39 = vadd.f32 %v14962_v38, %v22154_v44  ;;  %v15016_v59 = vadd.f32 %v15015_v19, %v22159_v30  ;;  %18105 = vmatpush3.bf16.msra.mxu0 %v19199_v62  ;;  %18133 = vmatpush3.bf16.msra.mxu1 %v19200_v13  ;;  %v19213_v62 = vld [vmem:[%s22681_s13 + $0x148] sm:$0xff]   ;;  %v14501_v13 = vrot.slane %v22116_v34, %v14500_v33  ;;  %v19217_v19 = vld [vmem:[%s22681_s13 + $0x140] sm:$0xff]  }
0x1717   : > { %v22193_v61 = vpop.f32.mrf.mxu0  ;;  %v22195_v49 = vpop.f32.mrf.mxu1  ;;  %18106 = vmatprep.subr.bf16.mxu0 %v19201_v4  ;;  %18134 = vmatprep.subr.bf16.mxu1 %v19202_v53  ;;  %v19215_v54 = vld [vmem:[%s22681_s13 + $0x108] sm:$0xff]   ;;  %v15014_v34 = vadd.f32 %v22175_v29, %v14509_v60  ;;  %v19219_v29 = vld [vmem:[%s22681_s13 + $0x100] sm:$0xff]  }
0x1718   : > { %v15261_v11 = vmax.f32 %v14963_v39, 0.0  ;;  %v15263_v9 = vmax.f32 %v15016_v59, 0.0  ;;  %v14961_v53 = vadd.f32 %v22173_v0, %v14501_v13  ;;  %v19216_v38 = vld [vmem:[%s22681_s13 + $0x188] sm:$0xff]   ;;  %v19218_v59 = vld [vmem:[%s22681_s13 + $0x1c0] sm:$0xff]   ;;  %v14957_v0 = vadd.f32 %v22147_v17, %v14501_v13 }
0x1719   : > { %v14968_v58 = vpop.f32.mrf.mxu0  ;;  %v15021_v25 = vpop.f32.mrf.mxu1  ;;  %v19220_v17 = vld [vmem:[%s22681_s13 + $0x180] sm:$0xff]  }
0x171a   : > { %v15309_v1 = vpack.c.bf16 %v15261_v11, %v15245_v22  ;;  %v15311_v16 = vpack.c.bf16 %v15263_v9, %v15247_v27  ;;  %18107 = vmatpush3.bf16.msra.mxu0 %v19203_v45  ;;  %18135 = vmatpush3.bf16.msra.mxu1 %v19204_v23  ;;  %v14969_v22 = vadd.f32 %v14968_v58, %v22154_v44  ;;  %v15260_v11 = vmax.f32 %v14961_v53, 0.0  ;;  %v19222_v58 = vld [vmem:[%s22681_s13 + $0x2f8] sm:$0xff]  }
0x171b   : > { %v22209_v41 = vpop.f32.mrf.mxu0  ;;  %v22211_v2 = vpop.f32.mrf.mxu1  ;;  %18108 = vmatprep.subr.bf16.mxu0 %v19205_v63  ;;  %18136 = vmatprep.subr.bf16.mxu1 %v19206_v43  ;;  %v15010_v63 = vadd.f32 %v22149_v15, %v14509_v60  ;;  %v15022_v9 = vadd.f32 %v15021_v25, %v22159_v30  ;;  %v19221_v15 = vld [vmem:[%s22681_s13 + $0x278] sm:$0xff]  }
0x171c   : > { %16497 = vmatprep.mubr.bf16.mxu0 %v15309_v1  ;;  %16546 = vmatprep.mubr.bf16.mxu1 %v15311_v16  ;;  %v15244_v1 = vmax.f32 %v14957_v0, 0.0 }
0x171d   : > { %v14972_v24 = vpop.f32.mrf.mxu0  ;;  %v15025_v56 = vpop.f32.mrf.mxu1 }
0x171e   : > { %18109 = vmatpush3.bf16.msra.mxu0 %v19207_v5  ;;  %18137 = vmatpush3.bf16.msra.mxu1 %v19208_v50  ;;  %v14973_v39 = vadd.f32 %v14972_v24, %v22154_v44  ;;  %v15026_v45 = vadd.f32 %v15025_v56, %v22159_v30  ;;  %v15262_v44 = vmax.f32 %v15014_v34, 0.0  ;;  %v22287_v30 = vld [vmem:[%s22680_s12 + $0x8] sm:$0xff]  ;;  %v15246_v5 = vmax.f32 %v15010_v63, 0.0  ;;  %v19227_v63 = vld [vmem:[%s22681_s13 + $0x230] sm:$0xff]  }
0x171f   : > { %v22227_v26 = vpop.f32.mrf.mxu0  ;;  %v22229_v32 = vpop.f32.mrf.mxu1  ;;  %18110 = vmatprep.subr.bf16.mxu0 %v19209_v35  ;;  %18138 = vmatprep.subr.bf16.mxu1 %v19210_v3  ;;  %v15277_v50 = vmax.f32 %v14969_v22, 0.0  ;;  %v22292_v35 = vrot.slane %v22287_v30, %v14488_v6  ;;  %v15308_v24 = vpack.c.bf16 %v15260_v11, %v15244_v1  ;;  %v15279_v56 = vmax.f32 %v15022_v9, 0.0  ;;  %v19230_v11 = vld [vmem:[%s22681_s13 + $0x2e8] sm:$0xff]  }
0x1720   : > { %v15293_v43 = vmax.f32 %v14973_v39, 0.0  ;;  %v15295_v16 = vmax.f32 %v15026_v45, 0.0  ;;  %v15024_v6 = vadd.f32 %v22211_v2, %v14509_v60  ;;  %v19226_v2 = vld [vmem:[%s22681_s13 + $0x2f0] sm:$0xff]   ;;  %v15020_v39 = vadd.f32 %v22195_v49, %v14509_v60  ;;  %v19229_v60 = vld [vmem:[%s22681_s13 + $0x268] sm:$0xff]  }
0x1721   : > { %v15064_v4 = vpop.f32.mrf.mxu0  ;;  %v22246_v21 = vpop.f32.mrf.mxu1  ;;  %v19231_v1 = vld [vmem:[%s22681_s13 + $0x228] sm:$0xff]  }
0x1722   : > { %18111 = vmatpush3.bf16.msra.mxu0 %v19211_v55  ;;  %18139 = vmatpush3.bf16.msra.mxu1 %v19212_v36  ;;  %v14971_v55 = vadd.f32 %v22209_v41, %v14501_v13  ;;  %v22298_v36 = vrot.slane %v22287_v30, %v14496_v37  ;;  %v19224_v41 = vld [vmem:[%s22681_s13 + $0x2b8] sm:$0xff]   ;;  %v19225_v37 = vld [vmem:[%s22681_s13 + $0x270] sm:$0xff]   ;;  %v15294_v22 = vmax.f32 %v15024_v6, 0.0  ;;  %v15278_v9 = vmax.f32 %v15020_v39, 0.0 }
0x1723   : > { %18112 = vmatprep.subr.bf16.mxu0 %v19213_v62  ;;  %18140 = vmatprep.subr.bf16.mxu1 %v19214_v31  ;;  %v22265_v23 = vpop.f32.mrf.mxu0  ;;  %v22269_v27 = vpop.f32.mrf.mxu1  ;;  %v19223_v62 = vld [vmem:[%s22681_s13 + $0x238] sm:$0xff]   ;;  %v15310_v31 = vpack.c.bf16 %v15262_v44, %v15246_v5  ;;  %v19232_v5 = vld [vmem:[%s22681_s13 + $0x2a8] sm:$0xff]  }
0x1724   : > { %v15292_v45 = vmax.f32 %v14971_v55, 0.0  ;;  %v19237_v6 = vld [vmem:[%s22681_s13 + $0x258] sm:$0xff]  }
0x1725   : > { %v15068_v25 = vpop.f32.mrf.mxu0  ;;  %v15121_v3 = vpop.f32.mrf.mxu1 }
0x1726   : > { %18113 = vmatpush3.bf16.msra.mxu0 %v19215_v54  ;;  %18141 = vmatpush3.bf16.msra.mxu1 %v19216_v38  ;;  %v15325_v54 = vpack.c.bf16 %v15293_v43, %v15277_v50  ;;  %v15069_v53 = vadd.f32 %v15068_v25, %v22292_v35  ;;  %v14967_v38 = vadd.f32 %v22193_v61, %v14501_v13  ;;  %v19233_v50 = vld [vmem:[%s22681_s13 + $0x260] sm:$0xff]  }
0x1727   : > { %18114 = vmatprep.subr.bf16.mxu0 %v19217_v19  ;;  %18142 = vmatprep.subr.bf16.mxu1 %v19218_v59  ;;  %v15327_v19 = vpack.c.bf16 %v15295_v16, %v15279_v56  ;;  %v15122_v34 = vadd.f32 %v15121_v3, %v22298_v36  ;;  %v15065_v59 = vadd.f32 %v15064_v4, %v22292_v35  ;;  %v22318_v0 = vpop.f32.mrf.mxu0  ;;  %v22322_v13 = vpop.f32.mrf.mxu1  ;;  %v19228_v4 = vld [vmem:[%s22681_s13 + $0x2b0] sm:$0xff]  }
0x1728   : > { %v15118_v61 = vadd.f32 %v22246_v21, %v22298_v36  ;;  %v15265_v49 = vmax.f32 %v15069_v53, 0.0  ;;  %v15276_v21 = vmax.f32 %v14967_v38, 0.0  ;;  %v15326_v16 = vpack.c.bf16 %v15294_v22, %v15278_v9  ;;  %v19240_v38 = vld [vmem:[%s22681_s13 + $0x298] sm:$0xff]  }
0x1729   : > { %v14517_v22 = vrot.slane %v22287_v30, %v14484_v10  ;;  %v19249_v10 = vld [vmem:[%s22681_s13 + $0x240] sm:$0xff]  }
0x172a   : > { %18115 = vmatpush3.bf16.msra.mxu0 %v19219_v29  ;;  %18143 = vmatpush3.bf16.msra.mxu1 %v19220_v17  ;;  %v15267_v29 = vmax.f32 %v15122_v34, 0.0  ;;  %v15249_v17 = vmax.f32 %v15065_v59, 0.0  ;;  %v15324_v44 = vpack.c.bf16 %v15292_v45, %v15276_v21  ;;  %v15251_v43 = vmax.f32 %v15118_v61, 0.0  ;;  %v19242_v34 = vld [vmem:[%s22681_s13 + $0x2d0] sm:$0xff]   ;;  %v19245_v61 = vld [vmem:[%s22681_s13 + $0x248] sm:$0xff]  }
0x172b   : > { %18156 = vmatprep.subr.bf16.mxu0 %v19221_v15  ;;  %18184 = vmatprep.subr.bf16.mxu1 %v19222_v58  ;;  %v22336_v15 = vpop.f32.mrf.mxu0  ;;  %v22338_v58 = vpop.f32.mrf.mxu1  ;;  %v19243_v59 = vld [vmem:[%s22681_s13 + $0x210] sm:$0xff]   ;;  %v19247_v21 = vld [vmem:[%s22681_s13 + $0x208] sm:$0xff]  }
0x172c   : > { %v15313_v25 = vpack.c.bf16 %v15265_v49, %v15249_v17  ;;  %v15315_v3 = vpack.c.bf16 %v15267_v29, %v15251_v43  ;;  %v19244_v45 = vld [vmem:[%s22681_s13 + $0x290] sm:$0xff]   ;;  %v15067_v29 = vadd.f32 %v22265_v23, %v14517_v22  ;;  %v19250_v17 = vld [vmem:[%s22681_s13 + $0x2c0] sm:$0xff]   ;;  %v15063_v23 = vadd.f32 %v22227_v26, %v14517_v22 }
0x172d   : > { %16498 = vmatmul.mubr.bf16.vlgmr.msra.gmra.mxu0 %v15308_v24  ;;  %16547 = vmatmul.mubr.bf16.vlgmr.msra.gmra.mxu1 %v15310_v31  ;;  %v19234_v24 = vld [vmem:[%s22681_s13 + $0x2e0] sm:$0xff]   ;;  %v22352_v56 = vpop.f32.mrf.mxu0  ;;  %v22354_v55 = vpop.f32.mrf.mxu1  ;;  %v15128_v26 = vadd.f32 %v22338_v58, %v22298_v36 }
0x172e   : > { %16505 = vmatprep.mubr.bf16.mxu0 %v15325_v54  ;;  %16554 = vmatprep.mubr.bf16.mxu1 %v15327_v19  ;;  %v19236_v31 = vld [vmem:[%s22681_s13 + $0x2a0] sm:$0xff]   ;;  %v19238_v54 = vld [vmem:[%s22681_s13 + $0x2d8] sm:$0xff]   ;;  %v19241_v19 = vld [vmem:[%s22681_s13 + $0x250] sm:$0xff]  }
0x172f   : > { %18157 = vmatpush3.bf16.msra.mxu0 %v19223_v62  ;;  %18185 = vmatpush3.bf16.msra.mxu1 %v19224_v41  ;;  %v19235_v62 = vld [vmem:[%s22681_s13 + $0x220] sm:$0xff]   ;;  %v15078_v53 = vpop.f32.mrf.mxu0  ;;  %v15131_v41 = vpop.f32.mrf.mxu1 }
0x1730   : > { %18158 = vmatprep.subr.bf16.mxu0 %v19225_v37  ;;  %18186 = vmatprep.subr.bf16.mxu1 %v19226_v2  ;;  %v19239_v37 = vld [vmem:[%s22681_s13 + $0x218] sm:$0xff]   ;;  %v15079_v9 = vadd.f32 %v15078_v53, %v22292_v35 }
0x1731   : > { %v22380_v2 = vpop.f32.mrf.mxu0  ;;  %v22382_v39 = vpop.f32.mrf.mxu1 }
0x1733   : > { %18159 = vmatpush3.bf16.msra.mxu0 %v19227_v63  ;;  %18187 = vmatpush3.bf16.msra.mxu1 %v19228_v4  ;;  %v19246_v63 = vld [vmem:[%s22681_s13 + $0x2c8] sm:$0xff]   ;;  %v15170_v49 = vpop.f32.mrf.mxu0  ;;  %v14525_v4 = vrot.slane %v22287_v30, %v14492_v46 }
0x1734   : > { %18160 = vmatprep.subr.bf16.mxu0 %v19229_v60  ;;  %18188 = vmatprep.subr.bf16.mxu1 %v19230_v11  ;;  %v15223_v60 = vpop.f32.mrf.mxu1  ;;  %v19248_v11 = vld [vmem:[%s22681_s13 + $0x288] sm:$0xff]  }
0x1735   : > { %16506 = vmatmul.mubr.bf16.gmra.mxu0 %v15324_v44  ;;  %16555 = vmatmul.mubr.bf16.gmra.mxu1 %v15326_v16  ;;  %v15120_v46 = vadd.f32 %v22269_v27, %v14525_v4  ;;  %v15132_v44 = vadd.f32 %v15131_v41, %v22298_v36  ;;  %v22419_v43 = vpop.f32.mrf.mxu0  ;;  %v15075_v16 = vadd.f32 %v22336_v15, %v22292_v35  ;;  %v19251_v27 = vld [vmem:[%s22681_s13 + $0x200] sm:$0xff]   ;;  %v19253_v35 = vld [vmem:[%s22681_s13 + $0x378] sm:$0xff]   ;;  %v15283_v41 = vmax.f32 %v15128_v26, 0.0 }
0x1736   : > { %16595 = vmatprep.mubr.bf16.mxu0 %v15313_v25  ;;  %16644 = vmatprep.mubr.bf16.mxu1 %v15315_v3  ;;  %v22424_v25 = vpop.f32.mrf.mxu1  ;;  %v19254_v3 = vld [vmem:[%s22681_s13 + $0x3f8] sm:$0xff]  }
0x1737   : > { %18161 = vmatpush3.bf16.msra.mxu0 %v19231_v1  ;;  %18189 = vmatpush3.bf16.msra.mxu1 %v19232_v5  ;;  %v15116_v1 = vadd.f32 %v22229_v32, %v14525_v4  ;;  %v15264_v5 = vmax.f32 %v15067_v29, 0.0  ;;  %v19252_v32 = vld [vmem:[%s22681_s13 + $0x280] sm:$0xff]   ;;  %v15266_v15 = vmax.f32 %v15120_v46, 0.0  ;;  %v15174_v36 = vpop.f32.mrf.mxu0  ;;  %v15126_v29 = vadd.f32 %v22322_v13, %v14525_v4  ;;  %v19260_v13 = vld [vmem:[%s22681_s13 + $0x3b0] sm:$0xff]  }
0x1738   : > { %18162 = vmatprep.subr.bf16.mxu0 %v19233_v50  ;;  %18190 = vmatprep.subr.bf16.mxu1 %v19234_v24  ;;  %v15297_v50 = vmax.f32 %v15079_v9, 0.0  ;;  %v15248_v24 = vmax.f32 %v15063_v23, 0.0 }
0x1739   : > { %v15250_v58 = vmax.f32 %v15116_v1, 0.0  ;;  %v15282_v23 = vmax.f32 %v15126_v29, 0.0 }
0x173a   : > { %v15312_v53 = vpack.c.bf16 %v15264_v5, %v15248_v24 }
0x173b   : > { %18163 = vmatpush3.bf16.msra.mxu0 %v19235_v62  ;;  %18191 = vmatpush3.bf16.msra.mxu1 %v19236_v31  ;;  %v15299_v62 = vmax.f32 %v15132_v44, 0.0  ;;  %v15281_v31 = vmax.f32 %v15075_v16, 0.0 }
0x173c   : > { %18164 = vmatprep.subr.bf16.mxu0 %v19237_v6  ;;  %18192 = vmatprep.subr.bf16.mxu1 %v19238_v54  ;;  %v22443_v6 = vrot.slane %v22287_v30, %v14504_v20  ;;  %v15227_v54 = vpop.f32.mrf.mxu1  ;;  %v15130_v20 = vadd.f32 %v22354_v55, %v14525_v4  ;;  %v19258_v55 = vld [vmem:[%s22681_s13 + $0x3f0] sm:$0xff]  }
0x173e   : > { %v22496_v24 = vpop.f32.mrf.mxu1 }
0x173f   : > { %18165 = vmatpush3.bf16.msra.mxu0 %v19239_v37  ;;  %18193 = vmatpush3.bf16.msra.mxu1 %v19240_v38  ;;  %v15077_v37 = vadd.f32 %v22352_v56, %v14517_v22  ;;  %v22449_v38 = vrot.slane %v22287_v30, %v14512_v12  ;;  %v19256_v56 = vld [vmem:[%s22681_s13 + $0x3b8] sm:$0xff]   ;;  %v19257_v12 = vld [vmem:[%s22681_s13 + $0x370] sm:$0xff]  }
0x1740   : > { %18166 = vmatprep.subr.bf16.mxu0 %v19241_v19  ;;  %18194 = vmatprep.subr.bf16.mxu1 %v19242_v34  ;;  %v19255_v19 = vld [vmem:[%s22681_s13 + $0x338] sm:$0xff]   ;;  %v15314_v34 = vpack.c.bf16 %v15266_v15, %v15250_v58 }
0x1741   : > { %v15224_v46 = vadd.f32 %v15223_v60, %v22449_v38  ;;  %v19269_v58 = vld [vmem:[%s22681_s13 + $0x358] sm:$0xff]  }
0x1743   : > { %18167 = vmatpush3.bf16.msra.mxu0 %v19243_v59  ;;  %18195 = vmatpush3.bf16.msra.mxu1 %v19244_v45  ;;  %v15329_v59 = vpack.c.bf16 %v15297_v50, %v15281_v31  ;;  %v15175_v45 = vadd.f32 %v15174_v36, %v22443_v6  ;;  %v15255_v16 = vmax.f32 %v15224_v46, 0.0  ;;  %v19266_v50 = vld [vmem:[%s22681_s13 + $0x3e0] sm:$0xff]   ;;  %v19270_v31 = vld [vmem:[%s22681_s13 + $0x3d8] sm:$0xff]   ;;  %v19280_v46 = vld [vmem:[%s22681_s13 + $0x388] sm:$0xff]  }
0x1744   : > { %18168 = vmatprep.subr.bf16.mxu0 %v19245_v61  ;;  %18196 = vmatprep.subr.bf16.mxu1 %v19246_v63  ;;  %v15073_v61 = vadd.f32 %v22318_v0, %v14517_v22  ;;  %v15331_v63 = vpack.c.bf16 %v15299_v62, %v15283_v41  ;;  %v19259_v0 = vld [vmem:[%s22681_s13 + $0x330] sm:$0xff]   ;;  %v15298_v22 = vmax.f32 %v15130_v20, 0.0  ;;  %v19267_v62 = vld [vmem:[%s22681_s13 + $0x320] sm:$0xff]   ;;  %v19271_v41 = vld [vmem:[%s22681_s13 + $0x318] sm:$0xff]  }
0x1745   : > { %v15269_v9 = vmax.f32 %v15175_v45, 0.0  ;;  %v19268_v36 = vld [vmem:[%s22681_s13 + $0x3a0] sm:$0xff]   ;;  %v19275_v45 = vld [vmem:[%s22681_s13 + $0x310] sm:$0xff]  }
0x1746   : > { %v15280_v4 = vmax.f32 %v15073_v61, 0.0  ;;  %v15330_v5 = vpack.c.bf16 %v15298_v22, %v15282_v23  ;;  %v19278_v61 = vld [vmem:[%s22681_s13 + $0x3c8] sm:$0xff]  }
0x1747   : > { %18169 = vmatpush3.bf16.msra.mxu0 %v19247_v21  ;;  %18197 = vmatpush3.bf16.msra.mxu1 %v19248_v11  ;;  %v15228_v21 = vadd.f32 %v15227_v54, %v22449_v38  ;;  %v15171_v11 = vadd.f32 %v15170_v49, %v22443_v6  ;;  %v19261_v49 = vld [vmem:[%s22681_s13 + $0x368] sm:$0xff]  }
0x1748   : > { %18170 = vmatprep.subr.bf16.mxu0 %v19249_v10  ;;  %18198 = vmatprep.subr.bf16.mxu1 %v19250_v17  ;;  %v15296_v10 = vmax.f32 %v15077_v37, 0.0  ;;  %v19262_v17 = vld [vmem:[%s22681_s13 + $0x3e8] sm:$0xff]   ;;  %v19272_v37 = vld [vmem:[%s22681_s13 + $0x398] sm:$0xff]  }
0x1749   : > { %v15271_v60 = vmax.f32 %v15228_v21, 0.0  ;;  %v15253_v44 = vmax.f32 %v15171_v11, 0.0  ;;  %v19279_v11 = vld [vmem:[%s22681_s13 + $0x308] sm:$0xff]  }
0x174a   : > { %v15328_v1 = vpack.c.bf16 %v15296_v10, %v15280_v4 }
0x174b   : > { %18171 = vmatpush3.bf16.msra.mxu0 %v19251_v27  ;;  %18199 = vmatpush3.bf16.msra.mxu1 %v19252_v32  ;;  %v19263_v27 = vld [vmem:[%s22681_s13 + $0x328] sm:$0xff]   ;;  %v15317_v26 = vpack.c.bf16 %v15269_v9, %v15253_v44  ;;  %v15319_v15 = vpack.c.bf16 %v15271_v60, %v15255_v16 }
0x174c   : > { %18212 = vmatprep.subr.bf16.mxu0 %v19253_v35  ;;  %18240 = vmatprep.subr.bf16.mxu1 %v19254_v3  ;;  %v19264_v32 = vld [vmem:[%s22681_s13 + $0x3a8] sm:$0xff]   ;;  %v19265_v35 = vld [vmem:[%s22681_s13 + $0x360] sm:$0xff]   ;;  %v22494_v3 = vpop.f32.mrf.mxu0 }
0x174e   : > { %16596 = vmatmul.mubr.bf16.vlgmr.msra.gmra.mxu0 %v15312_v53  ;;  %16645 = vmatmul.mubr.bf16.vlgmr.msra.gmra.mxu1 %v15314_v34  ;;  %v15180_v54 = vpop.f32.mrf.mxu0  ;;  %v15233_v53 = vpop.f32.mrf.mxu1  ;;  %v19274_v34 = vld [vmem:[%s22681_s13 + $0x3d0] sm:$0xff]  }
0x174f   : > { %16603 = vmatprep.mubr.bf16.mxu0 %v15329_v59  ;;  %16652 = vmatprep.mubr.bf16.mxu1 %v15331_v63  ;;  %v14533_v63 = vrot.slane %v22287_v30, %v14500_v33  ;;  %v15181_v9 = vadd.f32 %v15180_v54, %v22443_v6 }
0x1750   : > { %18213 = vmatpush3.bf16.msra.mxu0 %v19255_v19  ;;  %18241 = vmatpush3.bf16.msra.mxu1 %v19256_v56  ;;  %v19273_v19 = vld [vmem:[%s22681_s13 + $0x350] sm:$0xff]   ;;  %v15182_v20 = vpop.f32.mrf.mxu0  ;;  %v15235_v59 = vpop.f32.mrf.mxu1 }
0x1751   : > { %18214 = vmatprep.subr.bf16.mxu0 %v19257_v12  ;;  %18242 = vmatprep.subr.bf16.mxu1 %v19258_v55  ;;  %v19276_v56 = vld [vmem:[%s22681_s13 + $0x390] sm:$0xff]   ;;  %v19277_v12 = vld [vmem:[%s22681_s13 + $0x348] sm:$0xff]   ;;  %v14541_v55 = vrot.slane %v22287_v30, %v14508_v18  ;;  %v15173_v10 = vadd.f32 %v22419_v43, %v14533_v63  ;;  %v19282_v30 = vld [vmem:[%s22681_s13 + $0x3c0] sm:$0xff]   ;;  %v15169_v43 = vadd.f32 %v22380_v2, %v14533_v63  ;;  %v15285_v23 = vmax.f32 %v15181_v9, 0.0 }
0x1752   : > { %v15184_v21 = vpop.f32.mrf.mxu0  ;;  %v15237_v29 = vpop.f32.mrf.mxu1  ;;  %v19284_v2 = vld [vmem:[%s22681_s13 + $0x380] sm:$0xff]   ;;  %v15183_v16 = vadd.f32 %v15182_v20, %v14533_v63 }
0x1753   : > { %v15226_v33 = vadd.f32 %v22424_v25, %v14541_v55  ;;  %v15185_v18 = vadd.f32 %v15184_v21, %v22443_v6  ;;  %v15222_v22 = vadd.f32 %v22382_v39, %v14541_v55  ;;  %v19283_v25 = vld [vmem:[%s22681_s13 + $0x300] sm:$0xff]   ;;  %v15252_v39 = vmax.f32 %v15169_v43, 0.0 }
0x1754   : > { %18215 = vmatpush3.bf16.msra.mxu0 %v19259_v0  ;;  %18243 = vmatpush3.bf16.msra.mxu1 %v19260_v13  ;;  %v15238_v0 = vadd.f32 %v15237_v29, %v22449_v38  ;;  %v15268_v13 = vmax.f32 %v15173_v10, 0.0 }
0x1755   : > { %18216 = vmatprep.subr.bf16.mxu0 %v19261_v49  ;;  %18244 = vmatprep.subr.bf16.mxu1 %v19262_v17  ;;  %v15234_v49 = vadd.f32 %v15233_v53, %v22449_v38  ;;  %v15270_v4 = vmax.f32 %v15226_v33, 0.0  ;;  %v15301_v60 = vmax.f32 %v15185_v18, 0.0  ;;  %v15254_v6 = vmax.f32 %v15222_v22, 0.0 }
0x1756   : > { %16604 = vmatmul.mubr.bf16.gmra.mxu0 %v15328_v1  ;;  %16653 = vmatmul.mubr.bf16.gmra.mxu1 %v15330_v5  ;;  %v15303_v17 = vmax.f32 %v15238_v0, 0.0  ;;  %v15316_v44 = vpack.c.bf16 %v15268_v13, %v15252_v39  ;;  %v15236_v38 = vadd.f32 %v15235_v59, %v14541_v55 }
0x1757   : > { %16693 = vmatprep.mubr.bf16.mxu0 %v15317_v26  ;;  %16742 = vmatprep.mubr.bf16.mxu1 %v15319_v15  ;;  %v15287_v1 = vmax.f32 %v15234_v49, 0.0  ;;  %v15333_v5 = vpack.c.bf16 %v15301_v60, %v15285_v23  ;;  %v15179_v26 = vadd.f32 %v22494_v3, %v14533_v63  ;;  %v15300_v15 = vmax.f32 %v15183_v16, 0.0  ;;  %v17571_v16 = vld [vmem:[%s22682_s14] ss:$0 sm:$0xff] }
0x1758   : > { %18217 = vmatpush3.bf16.msra.mxu0 %v19263_v27  ;;  %18245 = vmatpush3.bf16.msra.mxu1 %v19264_v32  ;;  %v15318_v27 = vpack.c.bf16 %v15270_v4, %v15254_v6 }
0x1759   : > { %18218 = vmatprep.subr.bf16.mxu0 %v19265_v35  ;;  %18246 = vmatprep.subr.bf16.mxu1 %v19266_v50  ;;  %v15335_v32 = vpack.c.bf16 %v15303_v17, %v15287_v1  ;;  %v15232_v35 = vadd.f32 %v22496_v24, %v14541_v55  ;;  %v15302_v50 = vmax.f32 %v15236_v38, 0.0 }
0x175c   : > { %18219 = vmatpush3.bf16.msra.mxu0 %v19267_v62  ;;  %18247 = vmatpush3.bf16.msra.mxu1 %v19268_v36  ;;  %v15284_v62 = vmax.f32 %v15179_v26, 0.0  ;;  %v15286_v36 = vmax.f32 %v15232_v35, 0.0 }
0x175d   : > { %18220 = vmatprep.subr.bf16.mxu0 %v19269_v58  ;;  %18248 = vmatprep.subr.bf16.mxu1 %v19270_v31 }
0x175e   : > { %v15332_v58 = vpack.c.bf16 %v15300_v15, %v15284_v62  ;;  %v15334_v31 = vpack.c.bf16 %v15302_v50, %v15286_v36 }
0x1760   : > { %18221 = vmatpush3.bf16.msra.mxu0 %v19271_v41  ;;  %18249 = vmatpush3.bf16.msra.mxu1 %v19272_v37 }
0x1761   : > { %18222 = vmatprep.subr.bf16.mxu0 %v19273_v19  ;;  %18250 = vmatprep.subr.bf16.mxu1 %v19274_v34 }
0x1764   : > { %18223 = vmatpush3.bf16.msra.mxu0 %v19275_v45  ;;  %18251 = vmatpush3.bf16.msra.mxu1 %v19276_v56 }
0x1765   : > { %18224 = vmatprep.subr.bf16.mxu0 %v19277_v12  ;;  %18252 = vmatprep.subr.bf16.mxu1 %v19278_v61 }
0x1768   : > { %18225 = vmatpush3.bf16.msra.mxu0 %v19279_v11  ;;  %18253 = vmatpush3.bf16.msra.mxu1 %v19280_v46 }
0x1769   : > { %18226 = vmatprep.subr.bf16.mxu0 %v19281_v28  ;;  %18254 = vmatprep.subr.bf16.mxu1 %v19282_v30 }
0x176c   : > { %18227 = vmatpush3.bf16.msra.mxu0 %v19283_v25  ;;  %18255 = vmatpush3.bf16.msra.mxu1 %v19284_v2 }
0x176f   : > { %16694 = vmatmul.mubr.bf16.vlgmr.msra.gmra.mxu0 %v15316_v44  ;;  %16743 = vmatmul.mubr.bf16.vlgmr.msra.gmra.mxu1 %v15318_v27 }
0x1770   : > { %16701 = vmatprep.mubr.bf16.mxu0 %v15333_v5  ;;  %16750 = vmatprep.mubr.bf16.mxu1 %v15335_v32 }
0x1777   : > { %16702 = vmatmul.mubr.bf16.gmra.mxu0 %v15332_v58  ;;  %16751 = vmatmul.mubr.bf16.gmra.mxu1 %v15334_v31 }
0x17cd   : > { %v18060_v54 = vpop.f32.mrf.mxu0  ;;  %v18088_v53 = vpop.f32.mrf.mxu1 }
0x17cf   : > { %v18061_v41 = vpop.f32.mrf.mxu0  ;;  %v18089_v37 = vpop.f32.mrf.mxu1 }
0x17d0   : > { %v18062_v44 = vadd.f32 %v18061_v41, %v18060_v54  ;;  %v18090_v32 = vadd.f32 %v18089_v37, %v18088_v53 }
0x17d1   : > { %v18063_v3 = vpop.f32.mrf.mxu0  ;;  %v18091_v19 = vpop.f32.mrf.mxu1 }
0x17d2   : > { %v16402_v38 = vadd.f32 %v18062_v44, %v17571_v16 }
0x17d3   : > { %v18064_v34 = vpop.f32.mrf.mxu0  ;;  %v18092_v20 = vpop.f32.mrf.mxu1 }
0x17d4   : > { %v18065_v5 = vadd.f32 %v18064_v34, %v18063_v3  ;;  %v16451_v62 = vadd.f32 %v18090_v32, %v16402_v38  ;;  %v18093_v31 = vadd.f32 %v18092_v20, %v18091_v19 }
0x17d5   : > { %v18066_v24 = vpop.f32.mrf.mxu0  ;;  %v18094_v59 = vpop.f32.mrf.mxu1 }
0x17d6   : > { %v16405_v36 = vadd.f32 %v18065_v5, %v17571_v16 }
0x17d7   : > { %v18067_v45 = vpop.f32.mrf.mxu0  ;;  %v18095_v56 = vpop.f32.mrf.mxu1 }
0x17d8   : > { %v18068_v15 = vadd.f32 %v18067_v45, %v18066_v24  ;;  %v16454_v40 = vadd.f32 %v18093_v31, %v16405_v36  ;;  %v18096_v44 = vadd.f32 %v18095_v56, %v18094_v59 }
0x17d9   : > { %v18069_v12 = vpop.f32.mrf.mxu0  ;;  %v18097_v61 = vpop.f32.mrf.mxu1 }
0x17da   : > { %v16410_v54 = vadd.f32 %v18068_v15, %v17571_v16 }
0x17db   : > { %v18070_v63 = vpop.f32.mrf.mxu0  ;;  %v18098_v21 = vpop.f32.mrf.mxu1 }
0x17dc   : > { %v18071_v41 = vadd.f32 %v18070_v63, %v18069_v12  ;;  %v16459_v37 = vadd.f32 %v18096_v44, %v16410_v54  ;;  %v18099_v20 = vadd.f32 %v18098_v21, %v18097_v61 }
0x17de   : > { %v16413_v24 = vadd.f32 %v18071_v41, %v17571_v16 }
0x17ed   : > { %v18116_v55 = vpop.f32.mrf.mxu0  ;;  %v18144_v29 = vpop.f32.mrf.mxu1 }
0x17ef   : > { %v18117_v11 = vpop.f32.mrf.mxu0  ;;  %v18145_v10 = vpop.f32.mrf.mxu1 }
0x17f0   : > { %v18118_v35 = vadd.f32 %v18117_v11, %v18116_v55  ;;  %v18146_v51 = vadd.f32 %v18145_v10, %v18144_v29  ;;  %v16462_v10 = vadd.f32 %v18099_v20, %v16413_v24 }
0x17f1   : > { %v18119_v46 = vpop.f32.mrf.mxu0  ;;  %v18147_v28 = vpop.f32.mrf.mxu1 }
0x17f2   : > { %v16500_v14 = vadd.f32 %v18118_v35, %v16451_v62 }
0x17f3   : > { %v18120_v33 = vpop.f32.mrf.mxu0  ;;  %v18148_v18 = vpop.f32.mrf.mxu1 }
0x17f4   : > { %v18121_v42 = vadd.f32 %v18120_v33, %v18119_v46  ;;  %v16549_v34 = vadd.f32 %v18146_v51, %v16500_v14  ;;  %v18149_v55 = vadd.f32 %v18148_v18, %v18147_v28 }
0x17f5   : > { %v18122_v30 = vpop.f32.mrf.mxu0  ;;  %v18150_v43 = vpop.f32.mrf.mxu1 }
0x17f6   : > { %v16503_v53 = vadd.f32 %v18121_v42, %v16454_v40 }
0x17f7   : > { %v18123_v0 = vpop.f32.mrf.mxu0  ;;  %v18151_v22 = vpop.f32.mrf.mxu1 }
0x17f8   : > { %v18124_v3 = vadd.f32 %v18123_v0, %v18122_v30  ;;  %v16552_v63 = vadd.f32 %v18149_v55, %v16503_v53 }
0x17f9   : > { %v18125_v9 = vpop.f32.mrf.mxu0  ;;  %v22568_v25 = vpop.f32.mrf.mxu1 }
0x17fa   : > { %v16508_v46 = vadd.f32 %v18124_v3, %v16459_v37 }
0x17fb   : > { %v18126_v13 = vpop.f32.mrf.mxu0  ;;  %v22570_v49 = vpop.f32.mrf.mxu1 }
0x17fc   : > { %v18127_v33 = vadd.f32 %v18126_v13, %v18125_v9  ;;  %v18155_v9 = vadd.f32 %v22570_v49, %v22568_v25 }
0x17fe   : > { %v16511_v28 = vadd.f32 %v18127_v33, %v16462_v10  ;;  %v22708_v33 = vld [vmem:[#allocation6_spill] sm:$0xff] }
0x180e   : > { %v18172_v2 = vpop.f32.mrf.mxu0  ;;  %v18200_v4 = vpop.f32.mrf.mxu1 }
0x1810   : > { %v18173_v60 = vpop.f32.mrf.mxu0  ;;  %v18201_v39 = vpop.f32.mrf.mxu1 }
0x1811   : > { %v18174_v47 = vadd.f32 %v18173_v60, %v18172_v2  ;;  %v18202_v5 = vadd.f32 %v18201_v39, %v18200_v4  ;;  %v18152_v2 = vadd.f32 %v18151_v22, %v18150_v43 }
0x1812   : > { %v18175_v17 = vpop.f32.mrf.mxu0  ;;  %v18203_v6 = vpop.f32.mrf.mxu1 }
0x1813   : > { %v16598_v11 = vadd.f32 %v18174_v47, %v16549_v34  ;;  %v16557_v30 = vadd.f32 %v18152_v2, %v16508_v46 }
0x1814   : > { %v18176_v23 = vpop.f32.mrf.mxu0  ;;  %v18204_v1 = vpop.f32.mrf.mxu1 }
0x1815   : > { %v18177_v38 = vadd.f32 %v18176_v23, %v18175_v17  ;;  %v16647_v14 = vadd.f32 %v18202_v5, %v16598_v11  ;;  %v18205_v18 = vadd.f32 %v18204_v1, %v18203_v6  ;;  %v16560_v23 = vadd.f32 %v18155_v9, %v16511_v28 }
0x1816   : > { %v18178_v27 = vpop.f32.mrf.mxu0  ;;  %v18206_v26 = vpop.f32.mrf.mxu1 }
0x1817   : > { %v16601_v42 = vadd.f32 %v18177_v38, %v16552_v63  ;;  %v22707_v38 = vld [vmem:[#allocation4_spill] sm:$0xff] }
0x1818   : > { %v18179_v50 = vpop.f32.mrf.mxu0  ;;  %v18207_v58 = vpop.f32.mrf.mxu1 }
0x1819   : > { %v18180_v59 = vadd.f32 %v18179_v50, %v18178_v27  ;;  %v16650_v43 = vadd.f32 %v18205_v18, %v16601_v42  ;;  %v18208_v16 = vadd.f32 %v18207_v58, %v18206_v26  ;;  %v22711_v42 = vld [vmem:[#allocation8_spill] sm:$0xff]  ;;  %v22712_v18 = vld [vmem:[#allocation2_spill] sm:$0xff] }
0x181a   : > { %v18181_v57 = vpop.f32.mrf.mxu0  ;;  %v18209_v48 = vpop.f32.mrf.mxu1 }
0x181b   : > { %v16606_v13 = vadd.f32 %v18180_v59, %v16557_v30  ;;  %v22710_v59 = vld [vmem:[#allocation5_spill] sm:$0xff] }
0x181c   : > { %v18182_v45 = vpop.f32.mrf.mxu0  ;;  %v18210_v19 = vpop.f32.mrf.mxu1 }
0x181d   : > { %v18183_v4 = vadd.f32 %v18182_v45, %v18181_v57  ;;  %v16655_v1 = vadd.f32 %v18208_v16, %v16606_v13  ;;  %v18211_v54 = vadd.f32 %v18210_v19, %v18209_v48 }
0x181f   : > { %v16609_v50 = vadd.f32 %v18183_v4, %v16560_v23 }
0x1821   : > { %v16658_v53 = vadd.f32 %v18211_v54, %v16609_v50 }
0x182f   : > { %v18228_v12 = vpop.f32.mrf.mxu0  ;;  %v18256_v29 = vpop.f32.mrf.mxu1 }
0x1831   : > { %v18229_v56 = vpop.f32.mrf.mxu0  ;;  %v18257_v51 = vpop.f32.mrf.mxu1 }
0x1832   : > { %v18230_v40 = vadd.f32 %v18229_v56, %v18228_v12  ;;  %v18258_v61 = vadd.f32 %v18257_v51, %v18256_v29  ;;  %v22709_v29 = vld [vmem:[#allocation7_spill] sm:$0xff] }
0x1833   : > { %v18231_v47 = vpop.f32.mrf.mxu0  ;;  %v18259_v21 = vpop.f32.mrf.mxu1 }
0x1834   : > { %v16696_v0 = vadd.f32 %v18230_v40, %v16647_v14 }
0x1835   : > { %v18232_v60 = vpop.f32.mrf.mxu0  ;;  %v18260_v17 = vpop.f32.mrf.mxu1 }
0x1836   : > { %v16745_v22 = vadd.f32 %v18258_v61, %v16696_v0  ;;  %v18233_v39 = vadd.f32 %v18232_v60, %v18231_v47  ;;  %v18261_v15 = vadd.f32 %v18260_v17, %v18259_v21  ;;  %v22713_v61 = vld [vmem:[#allocation3_spill] sm:$0xff] }
0x1837   : > { %v18234_v27 = vpop.f32.mrf.mxu0  ;;  %v18262_v6 = vpop.f32.mrf.mxu1 }
0x1838   : > { %v16763_v32 = vcombine.high %v16745_v22, %v16745_v22  ;;  %v16699_v35 = vadd.f32 %v18233_v39, %v16650_v43  ;;  %v16771_v36 = vadd.f32 %v16745_v22, %v21829_v7 }
0x1839   : > { %v18235_v62 = vpop.f32.mrf.mxu0  ;;  %v18263_v57 = vpop.f32.mrf.mxu1 }
0x183a   : > { %v16748_v25 = vadd.f32 %v18261_v15, %v16699_v35  ;;  %v18236_v49 = vadd.f32 %v18235_v62, %v18234_v27  ;;  %v16772_v31 = vadd.f32 %v16763_v32, %v21831_v52  ;;  %v18264_v26 = vadd.f32 %v18263_v57, %v18262_v6 }
0x183b   : > { %v18237_v41 = vpop.f32.mrf.mxu0  ;;  %v18265_v58 = vpop.f32.mrf.mxu1 }
0x183c   : > { %v16764_v44 = vcombine.high %v16748_v25, %v16748_v25  ;;  %v16704_v3 = vadd.f32 %v18236_v49, %v16655_v1  ;;  %v16787_v34 = vcombine.low %v16771_v36, %v16772_v31  ;;  %v16773_v37 = vadd.f32 %v16748_v25, %v21838_v8 }
0x183d   : > { %v18238_v24 = vpop.f32.mrf.mxu0  ;;  %v18266_v11 = vpop.f32.mrf.mxu1 }
0x183e   : > { %v16753_v45 = vadd.f32 %v18264_v26, %v16704_v3  ;;  %v18239_v55 = vadd.f32 %v18238_v24, %v18237_v41  ;;  %v16795_v7 = vsel %vm606_vm1, %v16787_v34, 0.0  ;;  %v16774_v20 = vadd.f32 %v16764_v44, %v22707_v38 }
0x183f   : > { %16796 = vadd.xlane.f32.xlu0 %v16795_v7  ;;  %v18267_v19 = vadd.f32 %v18266_v11, %v18265_v58 }
0x1840   : > { %v16765_v52 = vcombine.high %v16753_v45, %v16753_v45  ;;  %v16707_v48 = vadd.f32 %v18239_v55, %v16658_v53  ;;  %v16788_v46 = vcombine.low %v16773_v37, %v16774_v20  ;;  %v16775_v12 = vadd.f32 %v16753_v45, %v22708_v33 }
0x1842   : > { %v16756_v63 = vadd.f32 %v18267_v19, %v16707_v48  ;;  %v16798_v5 = vsel %vm606_vm1, %v16788_v46, 0.0  ;;  %v16776_v8 = vadd.f32 %v16765_v52, %v22709_v29 }
0x1843   : > { %16799 = vadd.xlane.f32.xlu1 %v16798_v5 }
0x1844   : > { %v16766_v10 = vcombine.high %v16756_v63, %v16756_v63  ;;  %v16789_v2 = vcombine.low %v16775_v12, %v16776_v8  ;;  %v16777_v56 = vadd.f32 %v16756_v63, %v22710_v59 }
0x1846   : > { %v16801_v14 = vsel %vm606_vm1, %v16789_v2, 0.0  ;;  %v16778_v40 = vadd.f32 %v16766_v10, %v22711_v42  ;;  %v17701_v2 = vld [vmem:[%s22684_s16] ss:$0 sm:$0xff] }
0x1847   : > { %16802 = vadd.xlane.f32.xlu0 %v16801_v14  ;;  %v17035_v42 = vcombine.high %v17701_v2, %v17701_v2 }
0x1848   : > { %v16790_v51 = vcombine.low %v16777_v56, %v16778_v40 }
0x184a   : > { %v16804_v30 = vsel %vm606_vm1, %v16790_v51, 0.0 }
0x184b   : > { %16805 = vadd.xlane.f32.xlu1 %v16804_v30 }
0x18c8   : > { %v16797_v28 = vpop.xlane.xlu0 %16796 }
0x18c9   : > { %v16807_v47 = vmul.f32 0.025, %v16797_v28 }
0x18cb   : > { %v16821_v0 = vrot.slane %v16807_v47, %v22712_v18  ;;  %v16828_v21 = vrot.slane %v16807_v47, %v22713_v61 }
0x18cc   : > { %v16800_v9 = vpop.xlane.xlu1 %16799 }
0x18cd   : > { %v16879_v13 = vsub.f32 %v16771_v36, %v16821_v0  ;;  %v16880_v4 = vsub.f32 %v16772_v31, %v16828_v21  ;;  %v16808_v60 = vmul.f32 0.025, %v16800_v9 }
0x18cf   : > { %v16835_v43 = vrot.slane %v16808_v60, %v22712_v18  ;;  %v16842_v22 = vrot.slane %v16808_v60, %v22713_v61  ;;  %v16887_v39 = vmul.f32 %v16879_v13, %v16879_v13  ;;  %v16888_v17 = vmul.f32 %v16880_v4, %v16880_v4 }
0x18d0   : > { %v16803_v23 = vpop.xlane.xlu0 %16802 }
0x18d1   : > { %v22593_v16 = vsub.f32 %v16773_v37, %v16835_v43  ;;  %v22595_v27 = vsub.f32 %v16774_v20, %v16842_v22  ;;  %v16809_v32 = vmul.f32 0.025, %v16803_v23  ;;  %v16903_v35 = vcombine.low %v16887_v39, %v16888_v17 }
0x18d3   : > { %v16849_v15 = vrot.slane %v16809_v32, %v22712_v18  ;;  %v16856_v6 = vrot.slane %v16809_v32, %v22713_v61  ;;  %v16911_v1 = vsel %vm606_vm1, %v16903_v35, 0.0  ;;  %v16889_v50 = vmul.f32 %v22593_v16, %v22593_v16 }
0x18d4   : > { %v16806_v62 = vpop.xlane.xlu1 %16805  ;;  %16912 = vadd.xlane.f32.xlu0 %v16911_v1  ;;  %v16890_v36 = vmul.f32 %v22595_v27, %v22595_v27 }
0x18d5   : > { %v16883_v25 = vsub.f32 %v16775_v12, %v16849_v15  ;;  %v16884_v49 = vsub.f32 %v16776_v8, %v16856_v6  ;;  %v16810_v57 = vmul.f32 0.025, %v16806_v62  ;;  %v17700_v8 = vld [vmem:[%s22683_s15] ss:$0 sm:$0xff] }
0x18d6   : > { %v16904_v31 = vcombine.low %v16889_v50, %v16890_v36  ;;  %v17018_v59 = vcombine.high %v17700_v8, %v17700_v8 }
0x18d7   : > { %v16863_v54 = vrot.slane %v16810_v57, %v22712_v18  ;;  %v16870_v41 = vrot.slane %v16810_v57, %v22713_v61  ;;  %v16891_v44 = vmul.f32 %v16883_v25, %v16883_v25  ;;  %v16892_v3 = vmul.f32 %v16884_v49, %v16884_v49 }
0x18d8   : > { %v16914_v26 = vsel %vm606_vm1, %v16904_v31, 0.0 }
0x18d9   : > { %v22607_v58 = vsub.f32 %v16777_v56, %v16863_v54  ;;  %v22609_v34 = vsub.f32 %v16778_v40, %v16870_v41  ;;  %16915 = vadd.xlane.f32.xlu1 %v16914_v26  ;;  %v16905_v53 = vcombine.low %v16891_v44, %v16892_v3  ;;  %v19645_v3 = vld [vmem:[%s19796_s19] sm:$0xf] }
0x18db   : > { %v16917_v37 = vsel %vm606_vm1, %v16905_v53, 0.0  ;;  %v16893_v24 = vmul.f32 %v22607_v58, %v22607_v58  ;;  %v16894_v45 = vmul.f32 %v22609_v34, %v22609_v34 }
0x18dc   : > { %16918 = vadd.xlane.f32.xlu0 %v16917_v37 }
0x18dd   : > { %v16906_v55 = vcombine.low %v16893_v24, %v16894_v45 }
0x18df   : > { %v16920_v11 = vsel %vm606_vm1, %v16906_v55, 0.0  ;;  %v19647_v55 = vld [vmem:[%s19796_s19 + $0x8] sm:$0xf] }
0x18e0   : > { %16921 = vadd.xlane.f32.xlu1 %v16920_v11 }
0x195d   : > { %v16913_v7 = vpop.xlane.xlu0 %16912 }
0x195e   : > { %v16923_v38 = vmul.f32 0.025, %v16913_v7  ;;  %v19648_v7 = vld [vmem:[%s19796_s19 + $0xc] sm:$0xf] }
0x1960   : > { %v16927_v20 = vadd.f32 1e-05, %v16923_v38 }
0x1962   : > { %19613 = vrsqrt.f32 %v16927_v20  ;;  %v16916_v52 = vpop.xlane.xlu1 %16915 }
0x1963   : > { %v16924_v48 = vmul.f32 0.025, %v16916_v52 }
0x1965   : > { %v16928_v19 = vadd.f32 1e-05, %v16924_v48  ;;  %v16919_v46 = vpop.xlane.xlu0 %16918 }
0x1966   : > { %v16925_v33 = vmul.f32 0.025, %v16919_v46  ;;  %v19649_v46 = vld [vmem:[%s19796_s19 + $0x10] sm:$0xf] }
0x1967   : > { %19615 = vrsqrt.f32 %v16928_v19 }
0x1968   : > { %v16929_v12 = vadd.f32 1e-05, %v16925_v33 }
0x1969   : > { %v16922_v63 = vpop.xlane.xlu1 %16921 }
0x196a   : > { %19617 = vrsqrt.f32 %v16929_v12  ;;  %v16926_v5 = vmul.f32 0.025, %v16922_v63  ;;  %v19650_v12 = vld [vmem:[%s19796_s19 + $0x14] sm:$0xf] }
0x196c   : > { %v16930_v29 = vadd.f32 1e-05, %v16926_v5 }
0x196e   : > { %19619 = vrsqrt.f32 %v16930_v29 }
0x196f   : > { %v19614_v10 = vpop.eup %19613 }
0x1970   : > { %v16945_v56 = vrot.slane %v19614_v10, %v22712_v18  ;;  %v16952_v14 = vrot.slane %v19614_v10, %v22713_v61 }
0x1972   : > { %v17003_v40 = vmul.f32 %v16945_v56, %v16879_v13  ;;  %v17004_v51 = vmul.f32 %v16952_v14, %v16880_v4  ;;  %v19652_v56 = vld [vmem:[%s19796_s19 + $0x1c] sm:$0xf] }
0x1974   : > { %v19616_v30 = vpop.eup %19615  ;;  %v17020_v28 = vmul.f32 %v17700_v8, %v17003_v40  ;;  %v17021_v47 = vmul.f32 %v17018_v59, %v17004_v51 }
0x1975   : > { %v16959_v0 = vrot.slane %v19616_v30, %v22712_v18  ;;  %v16966_v21 = vrot.slane %v19616_v30, %v22713_v61 }
0x1976   : > { %v17037_v9 = vadd.f32 %v17701_v2, %v17020_v28  ;;  %v17038_v60 = vadd.f32 %v17035_v42, %v17021_v47 }
0x1977   : > { %v19618_v43 = vpop.eup %19617  ;;  %v17005_v22 = vmul.f32 %v16959_v0, %v22593_v16  ;;  %v17006_v39 = vmul.f32 %v16966_v21, %v22595_v27 }
0x1978   : > { %19621 = vtanh.f32 %v17037_v9  ;;  %v16973_v17 = vrot.slane %v19618_v43, %v22712_v18  ;;  %v16980_v13 = vrot.slane %v19618_v43, %v22713_v61 }
0x1979   : > { %19623 = vtanh.f32 %v17038_v60  ;;  %v17022_v4 = vmul.f32 %v17700_v8, %v17005_v22  ;;  %v17023_v23 = vmul.f32 %v17018_v59, %v17006_v39 }
0x197a   : > { %v17007_v32 = vmul.f32 %v16973_v17, %v16883_v25  ;;  %v17008_v35 = vmul.f32 %v16980_v13, %v16884_v49 }
0x197b   : > { %v19620_v15 = vpop.eup %19619  ;;  %v17039_v6 = vadd.f32 %v17701_v2, %v17022_v4  ;;  %v17040_v1 = vadd.f32 %v17035_v42, %v17023_v23 }
0x197c   : > { %v17024_v50 = vmul.f32 %v17700_v8, %v17007_v32  ;;  %v17025_v62 = vmul.f32 %v17018_v59, %v17008_v35  ;;  %v16987_v16 = vrot.slane %v19620_v15, %v22712_v18  ;;  %v16994_v27 = vrot.slane %v19620_v15, %v22713_v61 }
0x197d   : > { %19625 = vtanh.f32 %v17039_v6 }
0x197e   : > { %19627 = vtanh.f32 %v17040_v1  ;;  %v17041_v36 = vadd.f32 %v17701_v2, %v17024_v50  ;;  %v17042_v57 = vadd.f32 %v17035_v42, %v17025_v62  ;;  %v17009_v31 = vmul.f32 %v16987_v16, %v22607_v58  ;;  %v19646_v58 = vld [vmem:[%s19796_s19 + $0x4] sm:$0xf] }
0x197f   : > { %v17010_v25 = vmul.f32 %v16994_v27, %v22609_v34 }
0x1980   : > { %19629 = vtanh.f32 %v17041_v36  ;;  %v17026_v49 = vmul.f32 %v17700_v8, %v17009_v31 }
0x1981   : > { %19631 = vtanh.f32 %v17042_v57  ;;  %v17027_v54 = vmul.f32 %v17018_v59, %v17010_v25 }
0x1982   : > { %v17043_v41 = vadd.f32 %v17701_v2, %v17026_v49  ;;  %v19651_v2 = vld [vmem:[%s19796_s19 + $0x18] sm:$0xf] }
0x1983   : > { %v17044_v44 = vadd.f32 %v17035_v42, %v17027_v54 }
0x1984   : > { %19633 = vtanh.f32 %v17043_v41 }
0x1985   : > { %v19622_v18 = vpop.eup %19621  ;;  %19635 = vtanh.f32 %v17044_v44 }
0x1986   : > { %v19624_v61 = vpop.eup %19623  ;;  %v17053_v26 = vmul.f32 %v19645_v3, %v19622_v18 }
0x1987   : > { %v17054_v34 = vmul.f32 %v19646_v58, %v19624_v61 }
0x1988   : > { %v17061_v53 = vpack.c.bf16 %v17053_v26, %v17053_v26 }
0x1989   : > { %v17062_v37 = vpack.c.bf16 %v17054_v34, %v17054_v34 }
0x198a   : > { %v19626_v24 = vpop.eup %19625  ;;  %17070 = vst.msk [vmem:[%s22640_s25] sm:$0x3] %vm17069_vm0, %v17061_v53 }
0x198b   : > { %v19628_v45 = vpop.eup %19627  ;;  %17071 = vst.msk [vmem:[%s22640_s25 + $0x2] sm:$0x3] %vm17069_vm0, %v17062_v37  ;;  %v17055_v11 = vmul.f32 %v19647_v55, %v19626_v24 }
0x198c   : > { %v17056_v38 = vmul.f32 %v19648_v7, %v19628_v45 }
0x198d   : > { %v19630_v20 = vpop.eup %19629  ;;  %v17063_v52 = vpack.c.bf16 %v17055_v11, %v17055_v11 }
0x198e   : > { %v19632_v48 = vpop.eup %19631  ;;  %v17064_v19 = vpack.c.bf16 %v17056_v38, %v17056_v38  ;;  %v17057_v33 = vmul.f32 %v19649_v46, %v19630_v20 }
0x198f   : > { %17072 = vst.msk [vmem:[%s22640_s25 + $0x4] sm:$0x3] %vm17069_vm0, %v17063_v52  ;;  %v17058_v63 = vmul.f32 %v19650_v12, %v19632_v48 }
0x1990   : > { %17073 = vst.msk [vmem:[%s22640_s25 + $0x6] sm:$0x3] %vm17069_vm0, %v17064_v19  ;;  %v17065_v5 = vpack.c.bf16 %v17057_v33, %v17057_v33 }
0x1991   : > { %v19634_v29 = vpop.eup %19633  ;;  %v17066_v8 = vpack.c.bf16 %v17058_v63, %v17058_v63 }
0x1992   : > { %v19636_v10 = vpop.eup %19635  ;;  %17074 = vst.msk [vmem:[%s22640_s25 + $0x8] sm:$0x3] %vm17069_vm0, %v17065_v5  ;;  %v17059_v59 = vmul.f32 %v19651_v2, %v19634_v29 }
0x1993   : > { %17075 = vst.msk [vmem:[%s22640_s25 + $0xa] sm:$0x3] %vm17069_vm0, %v17066_v8  ;;  %v17060_v14 = vmul.f32 %v19652_v56, %v19636_v10 }
0x1994   : > { %v17067_v42 = vpack.c.bf16 %v17059_v59, %v17059_v59 }
0x1995   : > { %v17068_v40 = vpack.c.bf16 %v17060_v14, %v17060_v14 }
0x1996   : > { %17076 = vst.msk [vmem:[%s22640_s25 + $0xc] sm:$0x3] %vm17069_vm0, %v17067_v42 }
0x1997   : > { %17077 = vst.msk [vmem:[%s22640_s25 + $0xe] sm:$0x3] %vm17069_vm0, %v17068_v40 }
0x1998 PF: > { %s27_s24 = sadd.s32 1, %s19659_s24  }
0x1999   : > { %p24_p4 = scmp.ge.s32.totalorder %s27_s24, 4  }
0x199b   :  { %26 = sbr.rel (!%p24_p4) target bundleno = 3 (0x3), region = 118 }

</bundles_post_ra>
